<compile_context>
chip_gen: v7x
topology: tpu7x:2x2x1
jax: 0.10.0
libtpu: 0.0.40
codegen_flags: <defaults>
</compile_context>

<pallas_src>
import math
from functools import partial

import jax
import jax.numpy as jnp
import numpy as np
from jax.experimental import pallas as pl
from jax.experimental.pallas import tpu as pltpu

_SQRT_HALF = 0.7071067811865476
_NEG_INF = -1e30

BLOCK_PARAM_ORDER = (
    "ln1_g", "ln1_b", "w_qkv", "b_qkv", "wo_s", "bo_s",
    "ln2_g", "ln2_b", "wq_c", "bq_c", "w_kv_c", "b_kv_c", "wo_c", "bo_c",
    "ln3_g", "ln3_b", "w1", "b1", "w2", "b2",
)


# ----------------------------------------------------------------------------
# Kernels
# ----------------------------------------------------------------------------
def decoder_block_kernel(x_ref, enc_ref,
                         g1_ref, be1_ref, wqkv_ref, bqkv_ref, wos_ref, bos_ref,
                         g2_ref, be2_ref, wqc_ref, bqc_ref, wkvc_ref, bkvc_ref,
                         woc_ref, boc_ref,
                         g3_ref, be3_ref, w1_ref, bb1_ref, w2_ref, bb2_ref,
                         o_ref, *, n_head: int, head_size: int, eps: float = 1e-5):
    Bb, T, C = x_ref.shape
    S = enc_ref.shape[1]

    # Flatten the batch block so every projection/MLP matmul sees (Bb*T, C) rows.
    x = x_ref[...].astype(jnp.float32).reshape(Bb * T, C)     # residual stream (f32)
    enc = enc_ref[...].astype(jnp.float32).reshape(Bb * S, C)

    def layer_norm(z, g_ref, b_ref):
        mu = jnp.mean(z, axis=-1, keepdims=True)
        var = jnp.mean(jnp.square(z - mu), axis=-1, keepdims=True)
        return (z - mu) * jax.lax.rsqrt(var + eps) * g_ref[...] + b_ref[...]

    def mm(a, w_ref):
        # bf16 MXU operands, f32 accumulation.
        return jnp.dot(a.astype(jnp.bfloat16), w_ref[...],
                       preferred_element_type=jnp.float32)

    scale = 1.0 / math.sqrt(head_size)

    def attention(qp, kp, vp, Tq, Tk, causal):
        """qp: (Bb*Tq, C), kp/vp: (Bb*Tk, C) f32 -> (Bb*Tq, C) f32 (pre-out-proj).

        Scores / PV matmuls run per batch & head (small contractions); per-head
        outputs are concatenated once so the caller can do a single full
        C-contraction output projection on the MXU."""
        if causal:
            row = jax.lax.broadcasted_iota(jnp.int32, (Tq, Tk), 0)
            col = jax.lax.broadcasted_iota(jnp.int32, (Tq, Tk), 1)
            keep = col <= row
        outs = []
        # TODO(synk): for large n_head / long sequences use lax.fori_loop(unroll=2..4)
        # over heads and flash-style KV tiling (online softmax over an "arbitrary"
        # KV grid axis) to bound vreg / VMEM pressure instead of this static unroll.
        for b in range(Bb):
            q_b = qp[b * Tq:(b + 1) * Tq, :]
            k_b = kp[b * Tk:(b + 1) * Tk, :]
            v_b = vp[b * Tk:(b + 1) * Tk, :]
            heads = []
            for h in range(n_head):
                sl = slice(h * head_size, (h + 1) * head_size)
                qh = q_b[:, sl].astype(jnp.bfloat16)
                kh = k_b[:, sl].astype(jnp.bfloat16)
                vh = v_b[:, sl].astype(jnp.bfloat16)
                # contract head dim of both operands -> no kh.T relayout
                s = jax.lax.dot_general(qh, kh, (((1,), (1,)), ((), ())),
                                        preferred_element_type=jnp.float32) * scale
                if causal:
                    s = jnp.where(keep, s, _NEG_INF)
                s = s - jnp.max(s, axis=-1, keepdims=True)
                p = jnp.exp(s)
                p = p / jnp.sum(p, axis=-1, keepdims=True)   # exact softmax normalization
                heads.append(jnp.dot(p.astype(jnp.bfloat16), vh,
                                     preferred_element_type=jnp.float32))   # (Tq, hs)
            outs.append(jnp.concatenate(heads, axis=-1))                    # (Tq, C)
        return jnp.concatenate(outs, axis=0)                                # (Bb*Tq, C)

    # --- causal self-attention (pre-LN), fused QKV projection ---
    qn = layer_norm(x, g1_ref, be1_ref)
    qkv = mm(qn, wqkv_ref) + bqkv_ref[...]                            # (Bb*T, 3C)
    y = attention(qkv[:, :C], qkv[:, C:2 * C], qkv[:, 2 * C:], T, T, causal=True)
    x = x + mm(y, wos_ref) + bos_ref[...]                             # single C-contraction out proj

    # --- cross-attention over encoder output (not causal), fused KV projection ---
    xn = layer_norm(x, g2_ref, be2_ref)
    qc = mm(xn, wqc_ref) + bqc_ref[...]                               # (Bb*T, C)
    kv = mm(enc, wkvc_ref) + bkvc_ref[...]                            # (Bb*S, 2C)
    y = attention(qc, kv[:, :C], kv[:, C:], T, S, causal=False)
    x = x + mm(y, woc_ref) + boc_ref[...]

    # --- MLP: Linear -> exact (erf) GELU -> Linear (matches nn.GELU default) ---
    xn = layer_norm(x, g3_ref, be3_ref)
    h = mm(xn, w1_ref) + bb1_ref[...]
    h = 0.5 * h * (1.0 + jax.lax.erf(h * _SQRT_HALF))
    x = x + mm(h, w2_ref) + bb2_ref[...]

    o_ref[...] = x.reshape(Bb, T, C).astype(o_ref.dtype)


def final_ln_logits_kernel(x_ref, g_ref, b_ref, wt_ref, o_ref, *, eps: float = 1e-5):
    Bb, T, C = x_ref.shape
    tile_v = wt_ref.shape[1]
    x = x_ref[...].astype(jnp.float32).reshape(Bb * T, C)
    mu = jnp.mean(x, axis=-1, keepdims=True)
    var = jnp.mean(jnp.square(x - mu), axis=-1, keepdims=True)
    xn = (x - mu) * jax.lax.rsqrt(var + eps) * g_ref[...] + b_ref[...]
    out = jnp.dot(xn.astype(jnp.bfloat16), wt_ref[...],
                  preferred_element_type=jnp.float32)                # (Bb*T, tile_v)
    o_ref[...] = out.reshape(Bb, T, tile_v).astype(o_ref.dtype)


# ----------------------------------------------------------------------------
# Wrappers
# ----------------------------------------------------------------------------
def _vmem_limit_bytes():
    """Per-generation VMEM budget with headroom (don't request all of v7x's 64 MiB)."""
    try:
        info = pltpu.get_tpu_info()
        cap = getattr(info, "vmem_capacity_bytes", None)
        if cap:
            return int(cap * 0.8)      # ~51 MiB on v7x, ~102 MiB on v5e/v6e
    except Exception:
        pass
    return 48 * 1024 * 1024


def _pick_batch_block(B, T, target_rows=256):
    """Bb so that Bb*T approaches target_rows (MXU M-dim utilization), Bb | B."""
    bb = min(B, max(1, -(-target_rows // T)))
    while B % bb:
        bb -= 1
    return bb


def _pick_vocab_tile(V):
    """Largest 128-multiple divisor of V, capped at 2048 (lane-dense logit stores)."""
    if V % 128 != 0:
        return V
    t = min(V, 2048)
    while V % t:
        t -= 128
    return t


def decoder_block(x, enc_out, p, *, n_head):
    B, T, C = x.shape
    S = enc_out.shape[1]
    Bb = _pick_batch_block(B, T)
    ordered = [p[name] for name in BLOCK_PARAM_ORDER]
    in_specs = [pl.BlockSpec((Bb, T, C), lambda b: (b, 0, 0)),
                pl.BlockSpec((Bb, S, C), lambda b: (b, 0, 0))]
    # TODO(synk): on v7x mark these weight specs pipeline_mode=pl.Buffered(1) —
    # constant index_map means double-buffering them is pure VMEM waste.
    in_specs += [pl.BlockSpec(w.shape, lambda b: (0, 0)) for w in ordered]
    return pl.pallas_call(
        partial(decoder_block_kernel, n_head=n_head, head_size=C // n_head),
        out_shape=jax.ShapeDtypeStruct((B, T, C), x.dtype),
        grid=(B // Bb,),
        in_specs=in_specs,
        out_specs=pl.BlockSpec((Bb, T, C), lambda b: (b, 0, 0)),
        compiler_params=pltpu.CompilerParams(
            dimension_semantics=("parallel",),
            vmem_limit_bytes=_vmem_limit_bytes()),
    )(x, enc_out, *ordered)


def final_ln_logits(x, g, b, emb_t):
    B, T, C = x.shape
    V = emb_t.shape[1]
    Bb = _pick_batch_block(B, T)
    tile_v = _pick_vocab_tile(V)
    return pl.pallas_call(
        final_ln_logits_kernel,
        out_shape=jax.ShapeDtypeStruct((B, T, V), jnp.float32),
        grid=(B // Bb, V // tile_v),
        in_specs=[pl.BlockSpec((Bb, T, C), lambda b, j: (b, 0, 0)),
                  pl.BlockSpec((1, C), lambda b, j: (0, 0)),
                  pl.BlockSpec((1, C), lambda b, j: (0, 0)),
                  pl.BlockSpec((C, tile_v), lambda b, j: (0, j))],
        out_specs=pl.BlockSpec((Bb, T, tile_v), lambda b, j: (b, 0, j)),
        compiler_params=pltpu.CompilerParams(
            dimension_semantics=("parallel", "parallel"),
            vmem_limit_bytes=_vmem_limit_bytes()),
    )(x, g, b, emb_t)


def decoder_forward(token_ids, enc_out, params, *, n_head, inference=False):
    """Mirrors Decoder.forward(x, enc_out, inference)."""
    # TODO(synk): the token-embedding row gather is data-dependent; it is done with
    # jnp.take (XLA) in the wrapper rather than inside a Pallas kernel.
    T = token_ids.shape[1]
    x = jnp.take(params["tok_emb"], token_ids, axis=0) + params["pos_emb"][:T]
    # TODO(synk): on v5e, prefetch the next layer's weights behind this layer's
    # compute (cross-pallas_call prefetch or a layer grid axis) to hide weight DMA.
    for blk in params["blocks"]:
        x = decoder_block(x, enc_out, blk, n_head=n_head)
    if inference:
        x = x[:, -1:, :]     # last token only: T-fold fewer logits FLOPs / HBM writes
    emb_t = params["tok_emb"].T.astype(jnp.bfloat16)   # (C, V) lane-dense logits weight
    logits = final_ln_logits(x, params["ln_g"], params["ln_b"], emb_t)
    if inference:
        logits = logits[:, 0, :]
    return logits


# ----------------------------------------------------------------------------
# Parameter init (weights stored transposed vs. nn.Linear, i.e. (in, out), bf16)
# ----------------------------------------------------------------------------
def init_decoder_params(key, vocab_size, n_ctx, n_embd, n_head, n_layer):
    C = n_embd

    def linear(k, fin, fout):
        kw, kb = jax.random.split(k)
        bound = 1.0 / math.sqrt(fin)
        w = jax.random.uniform(kw, (fin, fout), jnp.float32, -bound, bound)
        b = jax.random.uniform(kb, (1, fout), jnp.float32, -bound, bound)
        return w.astype(jnp.bfloat16), b     # bf16 weight, f32 bias

    def layernorm_params(k):
        kg, kb = jax.random.split(k)
        g = 1.0 + 0.02 * jax.random.normal(kg, (1, C), jnp.float32)
        b = 0.02 * jax.random.normal(kb, (1, C), jnp.float32)
        return g, b

    key, k_tok, k_pos, k_lnf = jax.random.split(key, 4)
    blocks = []
    for _ in range(n_layer):
        key, *ks = jax.random.split(key, 14)
        wq, bq = linear(ks[0], C, C)
        wk, bk = linear(ks[1], C, C)
        wv, bv = linear(ks[2], C, C)
        wo_s, bo_s = linear(ks[3], C, C)
        wq_c, bq_c = linear(ks[4], C, C)
        wk_c, bk_c = linear(ks[5], C, C)
        wv_c, bv_c = linear(ks[6], C, C)
        wo_c, bo_c = linear(ks[7], C, C)
        w1, b1 = linear(ks[8], C, 4 * C)
        w2, b2 = linear(ks[9], 4 * C, C)
        g1, be1 = layernorm_params(ks[10])
        g2, be2 = layernorm_params(ks[11])
        g3, be3 = layernorm_params(ks[12])
        blocks.append(dict(
            ln1_g=g1, ln1_b=be1,
            w_qkv=jnp.concatenate([wq, wk, wv], axis=1),
            b_qkv=jnp.concatenate([bq, bk, bv], axis=1),
            wo_s=wo_s, bo_s=bo_s,
            ln2_g=g2, ln2_b=be2,
            wq_c=wq_c, bq_c=bq_c,
            w_kv_c=jnp.concatenate([wk_c, wv_c], axis=1),
            b_kv_c=jnp.concatenate([bk_c, bv_c], axis=1),
            wo_c=wo_c, bo_c=bo_c,
            ln3_g=g3, ln3_b=be3,
            w1=w1, b1=b1, w2=w2, b2=b2,
        ))
    g_f, b_f = layernorm_params(k_lnf)
    return dict(
        tok_emb=jax.random.normal(k_tok, (vocab_size, C), jnp.float32),
        pos_emb=0.02 * jax.random.normal(k_pos, (n_ctx, C), jnp.float32),
        blocks=blocks,
        ln_g=g_f, ln_b=b_f,
    )


# ----------------------------------------------------------------------------
# Pure-JAX reference (mirrors the PyTorch forward; matmuls use the same bf16
# operands / f32 accumulation and the same exact softmax / rsqrt-LN as the kernel
# so the comparison is apples-to-apples)
# ----------------------------------------------------------------------------
def _ln_ref(z, g, b, eps=1e-5):
    mu = jnp.mean(z, axis=-1, keepdims=True)
    var = jnp.mean(jnp.square(z - mu), axis=-1, keepdims=True)
    return (z - mu) * jax.lax.rsqrt(var + eps) * g + b


def _mm_ref(a, w_bf16):
    return jnp.dot(a.astype(jnp.bfloat16), w_bf16, preferred_element_type=jnp.float32)


def _mha_ref(q_in, k_in, v_in, wq, bq, wk, bk, wv, bv, wo, bo, n_head, causal):
    B, Tq, C = q_in.shape
    Tk = k_in.shape[1]
    hs = C // n_head
    scale = 1.0 / math.sqrt(hs)
    q = (_mm_ref(q_in, wq) + bq).reshape(B, Tq, n_head, hs).transpose(0, 2, 1, 3)
    k = (_mm_ref(k_in, wk) + bk).reshape(B, Tk, n_head, hs).transpose(0, 2, 1, 3)
    v = (_mm_ref(v_in, wv) + bv).reshape(B, Tk, n_head, hs).transpose(0, 2, 1, 3)
    s = jnp.einsum("bhqd,bhkd->bhqk", q.astype(jnp.bfloat16), k.astype(jnp.bfloat16),
                   preferred_element_type=jnp.float32) * scale
    if causal:
        mask = jnp.tril(jnp.ones((Tq, Tk), bool))
        s = jnp.where(mask, s, _NEG_INF)
    s = s - jnp.max(s, axis=-1, keepdims=True)
    p = jnp.exp(s)
    p = p / jnp.sum(p, axis=-1, keepdims=True)
    y = jnp.einsum("bhqk,bhkd->bhqd", p.astype(jnp.bfloat16), v.astype(jnp.bfloat16),
                   preferred_element_type=jnp.float32)
    y = y.transpose(0, 2, 1, 3).reshape(B, Tq, C)
    return _mm_ref(y, wo) + bo


def reference_block(x, enc_out, p, n_head):
    C = x.shape[-1]
    wq, wk, wv = p["w_qkv"][:, :C], p["w_qkv"][:, C:2 * C], p["w_qkv"][:, 2 * C:]
    bq, bk, bv = p["b_qkv"][:, :C], p["b_qkv"][:, C:2 * C], p["b_qkv"][:, 2 * C:]
    q_ = _ln_ref(x, p["ln1_g"], p["ln1_b"])
    x = x + _mha_ref(q_, q_, q_, wq, bq, wk, bk, wv, bv,
                     p["wo_s"], p["bo_s"], n_head, causal=True)
    wk_c, wv_c = p["w_kv_c"][:, :C], p["w_kv_c"][:, C:]
    bk_c, bv_c = p["b_kv_c"][:, :C], p["b_kv_c"][:, C:]
    xq = _ln_ref(x, p["ln2_g"], p["ln2_b"])
    x = x + _mha_ref(xq, enc_out, enc_out, p["wq_c"], p["bq_c"], wk_c, bk_c, wv_c, bv_c,
                     p["wo_c"], p["bo_c"], n_head, causal=False)
    xn = _ln_ref(x, p["ln3_g"], p["ln3_b"])
    h = _mm_ref(xn, p["w1"]) + p["b1"]
    h = 0.5 * h * (1.0 + jax.lax.erf(h * _SQRT_HALF))
    return x + _mm_ref(h, p["w2"]) + p["b2"]


def reference_decoder(token_ids, enc_out, params, n_head):
    T = token_ids.shape[1]
    x = jnp.take(params["tok_emb"], token_ids, axis=0) + params["pos_emb"][:T]
    for p in params["blocks"]:
        x = reference_block(x, enc_out, p, n_head)
    xn = _ln_ref(x, params["ln_g"], params["ln_b"])
    return _mm_ref(xn, params["tok_emb"].T.astype(jnp.bfloat16))


# ----------------------------------------------------------------------------
if __name__ == "__main__":
    vocab_size, n_ctx, n_embd, n_head, n_layer = 128, 16, 128, 4, 2
    B, T, S = 2, 8, 16     # decoder seq T, encoder (enc_out) seq S

    key = jax.random.PRNGKey(0)
    k_tok, k_enc, k_par = jax.random.split(key, 3)
    token_ids = jax.random.randint(k_tok, (B, T), 0, vocab_size)
    enc_out = jax.random.normal(k_enc, (B, S, n_embd), jnp.float32)
    params = init_decoder_params(k_par, vocab_size, n_ctx, n_embd, n_head, n_layer)

    fwd = jax.jit(partial(decoder_forward, n_head=n_head))
    logits = jax.block_until_ready(fwd(token_ids, enc_out, params))

    ref = jax.block_until_ready(reference_decoder(token_ids, enc_out, params, n_head))
    np.testing.assert_allclose(np.asarray(logits), np.asarray(ref), rtol=2e-2, atol=2e-2)

    # last-token inference path (only the final row's logits are computed)
    fwd_inf = jax.jit(partial(decoder_forward, n_head=n_head, inference=True))
    logits_last = jax.block_until_ready(fwd_inf(token_ids, enc_out, params))
    np.testing.assert_allclose(np.asarray(logits_last), np.asarray(ref)[:, -1, :],
                               rtol=2e-2, atol=2e-2)

    print("KERNEL_OK")
</pallas_src>

<mosaic_0001>
module attributes {stable_mosaic.version = 11 : i64} {
  func.func @final_ln_logits_kernel(%arg0: i32, %arg1: i32, %arg2: memref<2x8x128xf32, #tpu.memory_space<vmem>>, %arg3: memref<1x128xf32, #tpu.memory_space<vmem>>, %arg4: memref<1x128xf32, #tpu.memory_space<vmem>>, %arg5: memref<128x128xbf16, #tpu.memory_space<vmem>>, %arg6: memref<2x8x128xf32, #tpu.memory_space<vmem>>) attributes {dimension_semantics = [#tpu.dimension_semantics<parallel>, #tpu.dimension_semantics<parallel>], iteration_bounds = array<i64: 1, 1>, scalar_prefetch = 0 : i64, scratch_operands = 0 : i64, tpu.core_type = #tpu.core_type<tc>, window_params = [{transform_indices = @transform_0, window_bounds = array<i64: 2, 8, 128>}, {pipeline_mode = #tpu.pipeline_mode<synchronous>, transform_indices = @transform_1, window_bounds = array<i64: 1, 128>}, {pipeline_mode = #tpu.pipeline_mode<synchronous>, transform_indices = @transform_2, window_bounds = array<i64: 1, 128>}, {transform_indices = @transform_3, window_bounds = array<i64: 128, 128>}, {transform_indices = @transform_4, window_bounds = array<i64: 2, 8, 128>}]} {
    %c0 = arith.constant 0 : index
    %c0_0 = arith.constant 0 : index
    %c0_1 = arith.constant 0 : index
    %0 = vector.load %arg2[%c0, %c0_0, %c0_1] : memref<2x8x128xf32, #tpu.memory_space<vmem>>, vector<2x8x128xf32>
    %1 = vector.shape_cast %0 : vector<2x8x128xf32> to vector<16x128xf32>
    %cst = arith.constant dense<0.000000e+00> : vector<16xf32>
    %2 = vector.multi_reduction <add>, %1, %cst [1] : vector<16x128xf32> to vector<16xf32>
    %3 = vector.shape_cast %2 : vector<16xf32> to vector<16x1xf32>
    %cst_2 = arith.constant 1.280000e+02 : f32
    %4 = vector.broadcast %cst_2 : f32 to vector<16x1xf32>
    %5 = arith.divf %3, %4 : vector<16x1xf32>
    %6 = vector.broadcast %5 : vector<16x1xf32> to vector<16x128xf32>
    %7 = arith.subf %1, %6 : vector<16x128xf32>
    %8 = arith.mulf %7, %7 : vector<16x128xf32>
    %cst_3 = arith.constant dense<0.000000e+00> : vector<16xf32>
    %9 = vector.multi_reduction <add>, %8, %cst_3 [1] : vector<16x128xf32> to vector<16xf32>
    %10 = vector.shape_cast %9 : vector<16xf32> to vector<16x1xf32>
    %cst_4 = arith.constant 1.280000e+02 : f32
    %11 = vector.broadcast %cst_4 : f32 to vector<16x1xf32>
    %12 = arith.divf %10, %11 : vector<16x1xf32>
    %13 = vector.broadcast %5 : vector<16x1xf32> to vector<16x128xf32>
    %14 = arith.subf %1, %13 : vector<16x128xf32>
    %cst_5 = arith.constant 9.99999974E-6 : f32
    %15 = vector.broadcast %cst_5 : f32 to vector<16x1xf32>
    %16 = arith.addf %12, %15 : vector<16x1xf32>
    %17 = math.rsqrt %16 : vector<16x1xf32>
    %18 = vector.broadcast %17 : vector<16x1xf32> to vector<16x128xf32>
    %19 = arith.mulf %14, %18 : vector<16x128xf32>
    %c0_6 = arith.constant 0 : index
    %c0_7 = arith.constant 0 : index
    %20 = vector.load %arg3[%c0_6, %c0_7] : memref<1x128xf32, #tpu.memory_space<vmem>>, vector<1x128xf32>
    %21 = vector.broadcast %20 : vector<1x128xf32> to vector<16x128xf32>
    %22 = arith.mulf %19, %21 : vector<16x128xf32>
    %c0_8 = arith.constant 0 : index
    %c0_9 = arith.constant 0 : index
    %23 = vector.load %arg4[%c0_8, %c0_9] : memref<1x128xf32, #tpu.memory_space<vmem>>, vector<1x128xf32>
    %24 = vector.broadcast %23 : vector<1x128xf32> to vector<16x128xf32>
    %25 = arith.addf %22, %24 : vector<16x128xf32>
    %26 = arith.truncf %25 : vector<16x128xf32> to vector<16x128xbf16>
    %c0_10 = arith.constant 0 : index
    %c0_11 = arith.constant 0 : index
    %27 = vector.load %arg5[%c0_10, %c0_11] : memref<128x128xbf16, #tpu.memory_space<vmem>>, vector<128x128xbf16>
    %cst_12 = arith.constant dense<0.000000e+00> : vector<16x128xf32>
    %28 = tpu.matmul %26, %27, %cst_12 {dimension_numbers = #tpu.dot_dimension_numbers<[1], [0], [0], [1], [0, 0, 1, 1], [], []>} : vector<16x128xbf16>, vector<128x128xbf16>, vector<16x128xf32> -> vector<16x128xf32>
    %29 = vector.shape_cast %28 : vector<16x128xf32> to vector<2x8x128xf32>
    %c0_13 = arith.constant 0 : index
    %c0_14 = arith.constant 0 : index
    %c0_15 = arith.constant 0 : index
    %30 = vector.load %arg6[%c0_13, %c0_14, %c0_15] : memref<2x8x128xf32, #tpu.memory_space<vmem>>, vector<2x8x128xf32>
    tpu.vector_store %arg6[%c0_13, %c0_14, %c0_15], %29 {strides = array<i32>} : memref<2x8x128xf32, #tpu.memory_space<vmem>>, vector<2x8x128xf32>,
    return
  }
  func.func @transform_0(%arg0: i32, %arg1: i32) -> (i32, i32, i32) {
    %c0_i32 = arith.constant 0 : i32
    %c0_i32_0 = arith.constant 0 : i32
    %c0_i32_1 = arith.constant 0 : i32
    return %arg0, %c0_i32, %c0_i32_0 : i32, i32, i32
  }
  func.func @transform_1(%arg0: i32, %arg1: i32) -> (i32, i32) {
    %c0_i32 = arith.constant 0 : i32
    %c0_i32_0 = arith.constant 0 : i32
    %c0_i32_1 = arith.constant 0 : i32
    return %c0_i32, %c0_i32_0 : i32, i32
  }
  func.func @transform_2(%arg0: i32, %arg1: i32) -> (i32, i32) {
    %c0_i32 = arith.constant 0 : i32
    %c0_i32_0 = arith.constant 0 : i32
    %c0_i32_1 = arith.constant 0 : i32
    return %c0_i32, %c0_i32_0 : i32, i32
  }
  func.func @transform_3(%arg0: i32, %arg1: i32) -> (i32, i32) {
    %c0_i32 = arith.constant 0 : i32
    %c0_i32_0 = arith.constant 0 : i32
    return %c0_i32, %arg1 : i32, i32
  }
  func.func @transform_4(%arg0: i32, %arg1: i32) -> (i32, i32, i32) {
    %c0_i32 = arith.constant 0 : i32
    %c0_i32_0 = arith.constant 0 : i32
    return %arg0, %c0_i32, %arg1 : i32, i32, i32
  }
}

module attributes {stable_mosaic.version = 11 : i64} {
  func.func @decoder_block_kernel(%arg0: i32, %arg1: memref<2x8x128xf32, #tpu.memory_space<vmem>>, %arg2: memref<2x16x128xf32, #tpu.memory_space<vmem>>, %arg3: memref<1x128xf32, #tpu.memory_space<vmem>>, %arg4: memref<1x128xf32, #tpu.memory_space<vmem>>, %arg5: memref<128x384xbf16, #tpu.memory_space<vmem>>, %arg6: memref<1x384xf32, #tpu.memory_space<vmem>>, %arg7: memref<128x128xbf16, #tpu.memory_space<vmem>>, %arg8: memref<1x128xf32, #tpu.memory_space<vmem>>, %arg9: memref<1x128xf32, #tpu.memory_space<vmem>>, %arg10: memref<1x128xf32, #tpu.memory_space<vmem>>, %arg11: memref<128x128xbf16, #tpu.memory_space<vmem>>, %arg12: memref<1x128xf32, #tpu.memory_space<vmem>>, %arg13: memref<128x256xbf16, #tpu.memory_space<vmem>>, %arg14: memref<1x256xf32, #tpu.memory_space<vmem>>, %arg15: memref<128x128xbf16, #tpu.memory_space<vmem>>, %arg16: memref<1x128xf32, #tpu.memory_space<vmem>>, %arg17: memref<1x128xf32, #tpu.memory_space<vmem>>, %arg18: memref<1x128xf32, #tpu.memory_space<vmem>>, %arg19: memref<128x512xbf16, #tpu.memory_space<vmem>>, %arg20: memref<1x512xf32, #tpu.memory_space<vmem>>, %arg21: memref<512x128xbf16, #tpu.memory_space<vmem>>, %arg22: memref<1x128xf32, #tpu.memory_space<vmem>>, %arg23: memref<2x8x128xf32, #tpu.memory_space<vmem>>) attributes {dimension_semantics = [#tpu.dimension_semantics<parallel>], iteration_bounds = array<i64: 1>, scalar_prefetch = 0 : i64, scratch_operands = 0 : i64, tpu.core_type = #tpu.core_type<tc>, window_params = [{transform_indices = @transform_0, window_bounds = array<i64: 2, 8, 128>}, {transform_indices = @transform_1, window_bounds = array<i64: 2, 16, 128>}, {pipeline_mode = #tpu.pipeline_mode<synchronous>, transform_indices = @transform_2, window_bounds = array<i64: 1, 128>}, {pipeline_mode = #tpu.pipeline_mode<synchronous>, transform_indices = @transform_3, window_bounds = array<i64: 1, 128>}, {pipeline_mode = #tpu.pipeline_mode<synchronous>, transform_indices = @transform_4, window_bounds = array<i64: 128, 384>}, {pipeline_mode = #tpu.pipeline_mode<synchronous>, transform_indices = @transform_5, window_bounds = array<i64: 1, 384>}, {pipeline_mode = #tpu.pipeline_mode<synchronous>, transform_indices = @transform_6, window_bounds = array<i64: 128, 128>}, {pipeline_mode = #tpu.pipeline_mode<synchronous>, transform_indices = @transform_7, window_bounds = array<i64: 1, 128>}, {pipeline_mode = #tpu.pipeline_mode<synchronous>, transform_indices = @transform_8, window_bounds = array<i64: 1, 128>}, {pipeline_mode = #tpu.pipeline_mode<synchronous>, transform_indices = @transform_9, window_bounds = array<i64: 1, 128>}, {pipeline_mode = #tpu.pipeline_mode<synchronous>, transform_indices = @transform_10, window_bounds = array<i64: 128, 128>}, {pipeline_mode = #tpu.pipeline_mode<synchronous>, transform_indices = @transform_11, window_bounds = array<i64: 1, 128>}, {pipeline_mode = #tpu.pipeline_mode<synchronous>, transform_indices = @transform_12, window_bounds = array<i64: 128, 256>}, {pipeline_mode = #tpu.pipeline_mode<synchronous>, transform_indices = @transform_13, window_bounds = array<i64: 1, 256>}, {pipeline_mode = #tpu.pipeline_mode<synchronous>, transform_indices = @transform_14, window_bounds = array<i64: 128, 128>}, {pipeline_mode = #tpu.pipeline_mode<synchronous>, transform_indices = @transform_15, window_bounds = array<i64: 1, 128>}, {pipeline_mode = #tpu.pipeline_mode<synchronous>, transform_indices = @transform_16, window_bounds = array<i64: 1, 128>}, {pipeline_mode = #tpu.pipeline_mode<synchronous>, transform_indices = @transform_17, window_bounds = array<i64: 1, 128>}, {pipeline_mode = #tpu.pipeline_mode<synchronous>, transform_indices = @transform_18, window_bounds = array<i64: 128, 512>}, {pipeline_mode = #tpu.pipeline_mode<synchronous>, transform_indices = @transform_19, window_bounds = array<i64: 1, 512>}, {pipeline_mode = #tpu.pipeline_mode<synchronous>, transform_indices = @transform_20, window_bounds = array<i64: 512, 128>}, {pipeline_mode = #tpu.pipeline_mode<synchronous>, transform_indices = @transform_21, window_bounds = array<i64: 1, 128>}, {transform_indices = @transform_22, window_bounds = array<i64: 2, 8, 128>}]} {
    %c0 = arith.constant 0 : index
    %c0_0 = arith.constant 0 : index
    %c0_1 = arith.constant 0 : index
    %0 = vector.load %arg1[%c0, %c0_0, %c0_1] : memref<2x8x128xf32, #tpu.memory_space<vmem>>, vector<2x8x128xf32>
    %1 = vector.shape_cast %0 : vector<2x8x128xf32> to vector<16x128xf32>
    %c0_2 = arith.constant 0 : index
    %c0_3 = arith.constant 0 : index
    %c0_4 = arith.constant 0 : index
    %2 = vector.load %arg2[%c0_2, %c0_3, %c0_4] : memref<2x16x128xf32, #tpu.memory_space<vmem>>, vector<2x16x128xf32>
    %3 = vector.shape_cast %2 : vector<2x16x128xf32> to vector<32x128xf32>
    %cst = arith.constant dense<0.000000e+00> : vector<16xf32>
    %4 = vector.multi_reduction <add>, %1, %cst [1] : vector<16x128xf32> to vector<16xf32>
    %5 = vector.shape_cast %4 : vector<16xf32> to vector<16x1xf32>
    %cst_5 = arith.constant 1.280000e+02 : f32
    %6 = vector.broadcast %cst_5 : f32 to vector<16x1xf32>
    %7 = arith.divf %5, %6 : vector<16x1xf32>
    %8 = vector.broadcast %7 : vector<16x1xf32> to vector<16x128xf32>
    %9 = arith.subf %1, %8 : vector<16x128xf32>
    %10 = arith.mulf %9, %9 : vector<16x128xf32>
    %cst_6 = arith.constant dense<0.000000e+00> : vector<16xf32>
    %11 = vector.multi_reduction <add>, %10, %cst_6 [1] : vector<16x128xf32> to vector<16xf32>
    %12 = vector.shape_cast %11 : vector<16xf32> to vector<16x1xf32>
    %cst_7 = arith.constant 1.280000e+02 : f32
    %13 = vector.broadcast %cst_7 : f32 to vector<16x1xf32>
    %14 = arith.divf %12, %13 : vector<16x1xf32>
    %15 = vector.broadcast %7 : vector<16x1xf32> to vector<16x128xf32>
    %16 = arith.subf %1, %15 : vector<16x128xf32>
    %cst_8 = arith.constant 9.99999974E-6 : f32
    %17 = vector.broadcast %cst_8 : f32 to vector<16x1xf32>
    %18 = arith.addf %14, %17 : vector<16x1xf32>
    %19 = math.rsqrt %18 : vector<16x1xf32>
    %20 = vector.broadcast %19 : vector<16x1xf32> to vector<16x128xf32>
    %21 = arith.mulf %16, %20 : vector<16x128xf32>
    %c0_9 = arith.constant 0 : index
    %c0_10 = arith.constant 0 : index
    %22 = vector.load %arg3[%c0_9, %c0_10] : memref<1x128xf32, #tpu.memory_space<vmem>>, vector<1x128xf32>
    %23 = vector.broadcast %22 : vector<1x128xf32> to vector<16x128xf32>
    %24 = arith.mulf %21, %23 : vector<16x128xf32>
    %c0_11 = arith.constant 0 : index
    %c0_12 = arith.constant 0 : index
    %25 = vector.load %arg4[%c0_11, %c0_12] : memref<1x128xf32, #tpu.memory_space<vmem>>, vector<1x128xf32>
    %26 = vector.broadcast %25 : vector<1x128xf32> to vector<16x128xf32>
    %27 = arith.addf %24, %26 : vector<16x128xf32>
    %28 = arith.truncf %27 : vector<16x128xf32> to vector<16x128xbf16>
    %c0_13 = arith.constant 0 : index
    %c0_14 = arith.constant 0 : index
    %29 = vector.load %arg5[%c0_13, %c0_14] : memref<128x384xbf16, #tpu.memory_space<vmem>>, vector<128x384xbf16>
    %cst_15 = arith.constant dense<0.000000e+00> : vector<16x384xf32>
    %30 = tpu.matmul %28, %29, %cst_15 {dimension_numbers = #tpu.dot_dimension_numbers<[1], [0], [0], [1], [0, 0, 1, 1], [], []>} : vector<16x128xbf16>, vector<128x384xbf16>, vector<16x384xf32> -> vector<16x384xf32>
    %c0_16 = arith.constant 0 : index
    %c0_17 = arith.constant 0 : index
    %31 = vector.load %arg6[%c0_16, %c0_17] : memref<1x384xf32, #tpu.memory_space<vmem>>, vector<1x384xf32>
    %32 = vector.broadcast %31 : vector<1x384xf32> to vector<16x384xf32>
    %33 = arith.addf %30, %32 : vector<16x384xf32>
    %34 = vector.extract_strided_slice %33 {offsets = [0, 0], sizes = [16, 128], strides = [1, 1]} : vector<16x384xf32> to vector<16x128xf32>
    %35 = vector.extract_strided_slice %33 {offsets = [0, 128], sizes = [16, 128], strides = [1, 1]} : vector<16x384xf32> to vector<16x128xf32>
    %36 = vector.extract_strided_slice %33 {offsets = [0, 256], sizes = [16, 128], strides = [1, 1]} : vector<16x384xf32> to vector<16x128xf32>
    %37 = tpu.iota {dimensions = array<i32: 0>} : vector<8x8xi32>
    %38 = tpu.iota {dimensions = array<i32: 1>} : vector<8x8xi32>
    %39 = arith.cmpi sle, %38, %37 : vector<8x8xi32>
    %40 = vector.extract_strided_slice %34 {offsets = [0, 0], sizes = [8, 128], strides = [1, 1]} : vector<16x128xf32> to vector<8x128xf32>
    %41 = vector.extract_strided_slice %35 {offsets = [0, 0], sizes = [8, 128], strides = [1, 1]} : vector<16x128xf32> to vector<8x128xf32>
    %42 = vector.extract_strided_slice %36 {offsets = [0, 0], sizes = [8, 128], strides = [1, 1]} : vector<16x128xf32> to vector<8x128xf32>
    %43 = vector.extract_strided_slice %40 {offsets = [0, 0], sizes = [8, 32], strides = [1, 1]} : vector<8x128xf32> to vector<8x32xf32>
    %44 = arith.truncf %43 : vector<8x32xf32> to vector<8x32xbf16>
    %45 = vector.extract_strided_slice %41 {offsets = [0, 0], sizes = [8, 32], strides = [1, 1]} : vector<8x128xf32> to vector<8x32xf32>
    %46 = arith.truncf %45 : vector<8x32xf32> to vector<8x32xbf16>
    %47 = vector.extract_strided_slice %42 {offsets = [0, 0], sizes = [8, 32], strides = [1, 1]} : vector<8x128xf32> to vector<8x32xf32>
    %48 = arith.truncf %47 : vector<8x32xf32> to vector<8x32xbf16>
    %cst_18 = arith.constant dense<0.000000e+00> : vector<8x8xf32>
    %49 = tpu.matmul %44, %46, %cst_18 {dimension_numbers = #tpu.dot_dimension_numbers<[1], [1], [0], [0], [0, 0, 1, 0], [], []>} : vector<8x32xbf16>, vector<8x32xbf16>, vector<8x8xf32> -> vector<8x8xf32>
    %cst_19 = arith.constant 0.176776692 : f32
    %50 = vector.broadcast %cst_19 : f32 to vector<8x8xf32>
    %51 = arith.mulf %49, %50 : vector<8x8xf32>
    %cst_20 = arith.constant -1.000000e+30 : f32
    %52 = vector.broadcast %cst_20 : f32 to vector<8x8xf32>
    %53 = arith.select %39, %51, %52 : vector<8x8xi1>, vector<8x8xf32>
    %cst_21 = arith.constant dense<0xFF800000> : vector<8xf32>
    %54 = vector.multi_reduction <maximumf>, %53, %cst_21 [1] : vector<8x8xf32> to vector<8xf32>
    %55 = vector.shape_cast %54 : vector<8xf32> to vector<8x1xf32>
    %56 = vector.broadcast %55 : vector<8x1xf32> to vector<8x8xf32>
    %57 = arith.subf %53, %56 : vector<8x8xf32>
    %58 = math.exp %57 : vector<8x8xf32>
    %cst_22 = arith.constant dense<0.000000e+00> : vector<8xf32>
    %59 = vector.multi_reduction <add>, %58, %cst_22 [1] : vector<8x8xf32> to vector<8xf32>
    %60 = vector.shape_cast %59 : vector<8xf32> to vector<8x1xf32>
    %61 = vector.broadcast %60 : vector<8x1xf32> to vector<8x8xf32>
    %62 = arith.divf %58, %61 : vector<8x8xf32>
    %63 = arith.truncf %62 : vector<8x8xf32> to vector<8x8xbf16>
    %cst_23 = arith.constant dense<0.000000e+00> : vector<8x32xf32>
    %64 = tpu.matmul %63, %48, %cst_23 {dimension_numbers = #tpu.dot_dimension_numbers<[1], [0], [0], [1], [0, 0, 1, 1], [], []>} : vector<8x8xbf16>, vector<8x32xbf16>, vector<8x32xf32> -> vector<8x32xf32>
    %65 = vector.extract_strided_slice %40 {offsets = [0, 32], sizes = [8, 32], strides = [1, 1]} : vector<8x128xf32> to vector<8x32xf32>
    %66 = arith.truncf %65 : vector<8x32xf32> to vector<8x32xbf16>
    %67 = vector.extract_strided_slice %41 {offsets = [0, 32], sizes = [8, 32], strides = [1, 1]} : vector<8x128xf32> to vector<8x32xf32>
    %68 = arith.truncf %67 : vector<8x32xf32> to vector<8x32xbf16>
    %69 = vector.extract_strided_slice %42 {offsets = [0, 32], sizes = [8, 32], strides = [1, 1]} : vector<8x128xf32> to vector<8x32xf32>
    %70 = arith.truncf %69 : vector<8x32xf32> to vector<8x32xbf16>
    %cst_24 = arith.constant dense<0.000000e+00> : vector<8x8xf32>
    %71 = tpu.matmul %66, %68, %cst_24 {dimension_numbers = #tpu.dot_dimension_numbers<[1], [1], [0], [0], [0, 0, 1, 0], [], []>} : vector<8x32xbf16>, vector<8x32xbf16>, vector<8x8xf32> -> vector<8x8xf32>
    %cst_25 = arith.constant 0.176776692 : f32
    %72 = vector.broadcast %cst_25 : f32 to vector<8x8xf32>
    %73 = arith.mulf %71, %72 : vector<8x8xf32>
    %cst_26 = arith.constant -1.000000e+30 : f32
    %74 = vector.broadcast %cst_26 : f32 to vector<8x8xf32>
    %75 = arith.select %39, %73, %74 : vector<8x8xi1>, vector<8x8xf32>
    %cst_27 = arith.constant dense<0xFF800000> : vector<8xf32>
    %76 = vector.multi_reduction <maximumf>, %75, %cst_27 [1] : vector<8x8xf32> to vector<8xf32>
    %77 = vector.shape_cast %76 : vector<8xf32> to vector<8x1xf32>
    %78 = vector.broadcast %77 : vector<8x1xf32> to vector<8x8xf32>
    %79 = arith.subf %75, %78 : vector<8x8xf32>
    %80 = math.exp %79 : vector<8x8xf32>
    %cst_28 = arith.constant dense<0.000000e+00> : vector<8xf32>
    %81 = vector.multi_reduction <add>, %80, %cst_28 [1] : vector<8x8xf32> to vector<8xf32>
    %82 = vector.shape_cast %81 : vector<8xf32> to vector<8x1xf32>
    %83 = vector.broadcast %82 : vector<8x1xf32> to vector<8x8xf32>
    %84 = arith.divf %80, %83 : vector<8x8xf32>
    %85 = arith.truncf %84 : vector<8x8xf32> to vector<8x8xbf16>
    %cst_29 = arith.constant dense<0.000000e+00> : vector<8x32xf32>
    %86 = tpu.matmul %85, %70, %cst_29 {dimension_numbers = #tpu.dot_dimension_numbers<[1], [0], [0], [1], [0, 0, 1, 1], [], []>} : vector<8x8xbf16>, vector<8x32xbf16>, vector<8x32xf32> -> vector<8x32xf32>
    %87 = vector.extract_strided_slice %40 {offsets = [0, 64], sizes = [8, 32], strides = [1, 1]} : vector<8x128xf32> to vector<8x32xf32>
    %88 = arith.truncf %87 : vector<8x32xf32> to vector<8x32xbf16>
    %89 = vector.extract_strided_slice %41 {offsets = [0, 64], sizes = [8, 32], strides = [1, 1]} : vector<8x128xf32> to vector<8x32xf32>
    %90 = arith.truncf %89 : vector<8x32xf32> to vector<8x32xbf16>
    %91 = vector.extract_strided_slice %42 {offsets = [0, 64], sizes = [8, 32], strides = [1, 1]} : vector<8x128xf32> to vector<8x32xf32>
    %92 = arith.truncf %91 : vector<8x32xf32> to vector<8x32xbf16>
    %cst_30 = arith.constant dense<0.000000e+00> : vector<8x8xf32>
    %93 = tpu.matmul %88, %90, %cst_30 {dimension_numbers = #tpu.dot_dimension_numbers<[1], [1], [0], [0], [0, 0, 1, 0], [], []>} : vector<8x32xbf16>, vector<8x32xbf16>, vector<8x8xf32> -> vector<8x8xf32>
    %cst_31 = arith.constant 0.176776692 : f32
    %94 = vector.broadcast %cst_31 : f32 to vector<8x8xf32>
    %95 = arith.mulf %93, %94 : vector<8x8xf32>
    %cst_32 = arith.constant -1.000000e+30 : f32
    %96 = vector.broadcast %cst_32 : f32 to vector<8x8xf32>
    %97 = arith.select %39, %95, %96 : vector<8x8xi1>, vector<8x8xf32>
    %cst_33 = arith.constant dense<0xFF800000> : vector<8xf32>
    %98 = vector.multi_reduction <maximumf>, %97, %cst_33 [1] : vector<8x8xf32> to vector<8xf32>
    %99 = vector.shape_cast %98 : vector<8xf32> to vector<8x1xf32>
    %100 = vector.broadcast %99 : vector<8x1xf32> to vector<8x8xf32>
    %101 = arith.subf %97, %100 : vector<8x8xf32>
    %102 = math.exp %101 : vector<8x8xf32>
    %cst_34 = arith.constant dense<0.000000e+00> : vector<8xf32>
    %103 = vector.multi_reduction <add>, %102, %cst_34 [1] : vector<8x8xf32> to vector<8xf32>
    %104 = vector.shape_cast %103 : vector<8xf32> to vector<8x1xf32>
    %105 = vector.broadcast %104 : vector<8x1xf32> to vector<8x8xf32>
    %106 = arith.divf %102, %105 : vector<8x8xf32>
    %107 = arith.truncf %106 : vector<8x8xf32> to vector<8x8xbf16>
    %cst_35 = arith.constant dense<0.000000e+00> : vector<8x32xf32>
    %108 = tpu.matmul %107, %92, %cst_35 {dimension_numbers = #tpu.dot_dimension_numbers<[1], [0], [0], [1], [0, 0, 1, 1], [], []>} : vector<8x8xbf16>, vector<8x32xbf16>, vector<8x32xf32> -> vector<8x32xf32>
    %109 = vector.extract_strided_slice %40 {offsets = [0, 96], sizes = [8, 32], strides = [1, 1]} : vector<8x128xf32> to vector<8x32xf32>
    %110 = arith.truncf %109 : vector<8x32xf32> to vector<8x32xbf16>
    %111 = vector.extract_strided_slice %41 {offsets = [0, 96], sizes = [8, 32], strides = [1, 1]} : vector<8x128xf32> to vector<8x32xf32>
    %112 = arith.truncf %111 : vector<8x32xf32> to vector<8x32xbf16>
    %113 = vector.extract_strided_slice %42 {offsets = [0, 96], sizes = [8, 32], strides = [1, 1]} : vector<8x128xf32> to vector<8x32xf32>
    %114 = arith.truncf %113 : vector<8x32xf32> to vector<8x32xbf16>
    %cst_36 = arith.constant dense<0.000000e+00> : vector<8x8xf32>
    %115 = tpu.matmul %110, %112, %cst_36 {dimension_numbers = #tpu.dot_dimension_numbers<[1], [1], [0], [0], [0, 0, 1, 0], [], []>} : vector<8x32xbf16>, vector<8x32xbf16>, vector<8x8xf32> -> vector<8x8xf32>
    %cst_37 = arith.constant 0.176776692 : f32
    %116 = vector.broadcast %cst_37 : f32 to vector<8x8xf32>
    %117 = arith.mulf %115, %116 : vector<8x8xf32>
    %cst_38 = arith.constant -1.000000e+30 : f32
    %118 = vector.broadcast %cst_38 : f32 to vector<8x8xf32>
    %119 = arith.select %39, %117, %118 : vector<8x8xi1>, vector<8x8xf32>
    %cst_39 = arith.constant dense<0xFF800000> : vector<8xf32>
    %120 = vector.multi_reduction <maximumf>, %119, %cst_39 [1] : vector<8x8xf32> to vector<8xf32>
    %121 = vector.shape_cast %120 : vector<8xf32> to vector<8x1xf32>
    %122 = vector.broadcast %121 : vector<8x1xf32> to vector<8x8xf32>
    %123 = arith.subf %119, %122 : vector<8x8xf32>
    %124 = math.exp %123 : vector<8x8xf32>
    %cst_40 = arith.constant dense<0.000000e+00> : vector<8xf32>
    %125 = vector.multi_reduction <add>, %124, %cst_40 [1] : vector<8x8xf32> to vector<8xf32>
    %126 = vector.shape_cast %125 : vector<8xf32> to vector<8x1xf32>
    %127 = vector.broadcast %126 : vector<8x1xf32> to vector<8x8xf32>
    %128 = arith.divf %124, %127 : vector<8x8xf32>
    %129 = arith.truncf %128 : vector<8x8xf32> to vector<8x8xbf16>
    %cst_41 = arith.constant dense<0.000000e+00> : vector<8x32xf32>
    %130 = tpu.matmul %129, %114, %cst_41 {dimension_numbers = #tpu.dot_dimension_numbers<[1], [0], [0], [1], [0, 0, 1, 1], [], []>} : vector<8x8xbf16>, vector<8x32xbf16>, vector<8x32xf32> -> vector<8x32xf32>
    %131 = tpu.concatenate %64, %86, %108, %130 in 1 : vector<8x32xf32>, vector<8x32xf32>, vector<8x32xf32>, vector<8x32xf32> -> vector<8x128xf32>
    %132 = vector.extract_strided_slice %34 {offsets = [8, 0], sizes = [8, 128], strides = [1, 1]} : vector<16x128xf32> to vector<8x128xf32>
    %133 = vector.extract_strided_slice %35 {offsets = [8, 0], sizes = [8, 128], strides = [1, 1]} : vector<16x128xf32> to vector<8x128xf32>
    %134 = vector.extract_strided_slice %36 {offsets = [8, 0], sizes = [8, 128], strides = [1, 1]} : vector<16x128xf32> to vector<8x128xf32>
    %135 = vector.extract_strided_slice %132 {offsets = [0, 0], sizes = [8, 32], strides = [1, 1]} : vector<8x128xf32> to vector<8x32xf32>
    %136 = arith.truncf %135 : vector<8x32xf32> to vector<8x32xbf16>
    %137 = vector.extract_strided_slice %133 {offsets = [0, 0], sizes = [8, 32], strides = [1, 1]} : vector<8x128xf32> to vector<8x32xf32>
    %138 = arith.truncf %137 : vector<8x32xf32> to vector<8x32xbf16>
    %139 = vector.extract_strided_slice %134 {offsets = [0, 0], sizes = [8, 32], strides = [1, 1]} : vector<8x128xf32> to vector<8x32xf32>
    %140 = arith.truncf %139 : vector<8x32xf32> to vector<8x32xbf16>
    %cst_42 = arith.constant dense<0.000000e+00> : vector<8x8xf32>
    %141 = tpu.matmul %136, %138, %cst_42 {dimension_numbers = #tpu.dot_dimension_numbers<[1], [1], [0], [0], [0, 0, 1, 0], [], []>} : vector<8x32xbf16>, vector<8x32xbf16>, vector<8x8xf32> -> vector<8x8xf32>
    %cst_43 = arith.constant 0.176776692 : f32
    %142 = vector.broadcast %cst_43 : f32 to vector<8x8xf32>
    %143 = arith.mulf %141, %142 : vector<8x8xf32>
    %cst_44 = arith.constant -1.000000e+30 : f32
    %144 = vector.broadcast %cst_44 : f32 to vector<8x8xf32>
    %145 = arith.select %39, %143, %144 : vector<8x8xi1>, vector<8x8xf32>
    %cst_45 = arith.constant dense<0xFF800000> : vector<8xf32>
    %146 = vector.multi_reduction <maximumf>, %145, %cst_45 [1] : vector<8x8xf32> to vector<8xf32>
    %147 = vector.shape_cast %146 : vector<8xf32> to vector<8x1xf32>
    %148 = vector.broadcast %147 : vector<8x1xf32> to vector<8x8xf32>
    %149 = arith.subf %145, %148 : vector<8x8xf32>
    %150 = math.exp %149 : vector<8x8xf32>
    %cst_46 = arith.constant dense<0.000000e+00> : vector<8xf32>
    %151 = vector.multi_reduction <add>, %150, %cst_46 [1] : vector<8x8xf32> to vector<8xf32>
    %152 = vector.shape_cast %151 : vector<8xf32> to vector<8x1xf32>
    %153 = vector.broadcast %152 : vector<8x1xf32> to vector<8x8xf32>
    %154 = arith.divf %150, %153 : vector<8x8xf32>
    %155 = arith.truncf %154 : vector<8x8xf32> to vector<8x8xbf16>
    %cst_47 = arith.constant dense<0.000000e+00> : vector<8x32xf32>
    %156 = tpu.matmul %155, %140, %cst_47 {dimension_numbers = #tpu.dot_dimension_numbers<[1], [0], [0], [1], [0, 0, 1, 1], [], []>} : vector<8x8xbf16>, vector<8x32xbf16>, vector<8x32xf32> -> vector<8x32xf32>
    %157 = vector.extract_strided_slice %132 {offsets = [0, 32], sizes = [8, 32], strides = [1, 1]} : vector<8x128xf32> to vector<8x32xf32>
    %158 = arith.truncf %157 : vector<8x32xf32> to vector<8x32xbf16>
    %159 = vector.extract_strided_slice %133 {offsets = [0, 32], sizes = [8, 32], strides = [1, 1]} : vector<8x128xf32> to vector<8x32xf32>
    %160 = arith.truncf %159 : vector<8x32xf32> to vector<8x32xbf16>
    %161 = vector.extract_strided_slice %134 {offsets = [0, 32], sizes = [8, 32], strides = [1, 1]} : vector<8x128xf32> to vector<8x32xf32>
    %162 = arith.truncf %161 : vector<8x32xf32> to vector<8x32xbf16>
    %cst_48 = arith.constant dense<0.000000e+00> : vector<8x8xf32>
    %163 = tpu.matmul %158, %160, %cst_48 {dimension_numbers = #tpu.dot_dimension_numbers<[1], [1], [0], [0], [0, 0, 1, 0], [], []>} : vector<8x32xbf16>, vector<8x32xbf16>, vector<8x8xf32> -> vector<8x8xf32>
    %cst_49 = arith.constant 0.176776692 : f32
    %164 = vector.broadcast %cst_49 : f32 to vector<8x8xf32>
    %165 = arith.mulf %163, %164 : vector<8x8xf32>
    %cst_50 = arith.constant -1.000000e+30 : f32
    %166 = vector.broadcast %cst_50 : f32 to vector<8x8xf32>
    %167 = arith.select %39, %165, %166 : vector<8x8xi1>, vector<8x8xf32>
    %cst_51 = arith.constant dense<0xFF800000> : vector<8xf32>
    %168 = vector.multi_reduction <maximumf>, %167, %cst_51 [1] : vector<8x8xf32> to vector<8xf32>
    %169 = vector.shape_cast %168 : vector<8xf32> to vector<8x1xf32>
    %170 = vector.broadcast %169 : vector<8x1xf32> to vector<8x8xf32>
    %171 = arith.subf %167, %170 : vector<8x8xf32>
    %172 = math.exp %171 : vector<8x8xf32>
    %cst_52 = arith.constant dense<0.000000e+00> : vector<8xf32>
    %173 = vector.multi_reduction <add>, %172, %cst_52 [1] : vector<8x8xf32> to vector<8xf32>
    %174 = vector.shape_cast %173 : vector<8xf32> to vector<8x1xf32>
    %175 = vector.broadcast %174 : vector<8x1xf32> to vector<8x8xf32>
    %176 = arith.divf %172, %175 : vector<8x8xf32>
    %177 = arith.truncf %176 : vector<8x8xf32> to vector<8x8xbf16>
    %cst_53 = arith.constant dense<0.000000e+00> : vector<8x32xf32>
    %178 = tpu.matmul %177, %162, %cst_53 {dimension_numbers = #tpu.dot_dimension_numbers<[1], [0], [0], [1], [0, 0, 1, 1], [], []>} : vector<8x8xbf16>, vector<8x32xbf16>, vector<8x32xf32> -> vector<8x32xf32>
    %179 = vector.extract_strided_slice %132 {offsets = [0, 64], sizes = [8, 32], strides = [1, 1]} : vector<8x128xf32> to vector<8x32xf32>
    %180 = arith.truncf %179 : vector<8x32xf32> to vector<8x32xbf16>
    %181 = vector.extract_strided_slice %133 {offsets = [0, 64], sizes = [8, 32], strides = [1, 1]} : vector<8x128xf32> to vector<8x32xf32>
    %182 = arith.truncf %181 : vector<8x32xf32> to vector<8x32xbf16>
    %183 = vector.extract_strided_slice %134 {offsets = [0, 64], sizes = [8, 32], strides = [1, 1]} : vector<8x128xf32> to vector<8x32xf32>
    %184 = arith.truncf %183 : vector<8x32xf32> to vector<8x32xbf16>
    %cst_54 = arith.constant dense<0.000000e+00> : vector<8x8xf32>
    %185 = tpu.matmul %180, %182, %cst_54 {dimension_numbers = #tpu.dot_dimension_numbers<[1], [1], [0], [0], [0, 0, 1, 0], [], []>} : vector<8x32xbf16>, vector<8x32xbf16>, vector<8x8xf32> -> vector<8x8xf32>
    %cst_55 = arith.constant 0.176776692 : f32
    %186 = vector.broadcast %cst_55 : f32 to vector<8x8xf32>
    %187 = arith.mulf %185, %186 : vector<8x8xf32>
    %cst_56 = arith.constant -1.000000e+30 : f32
    %188 = vector.broadcast %cst_56 : f32 to vector<8x8xf32>
    %189 = arith.select %39, %187, %188 : vector<8x8xi1>, vector<8x8xf32>
    %cst_57 = arith.constant dense<0xFF800000> : vector<8xf32>
    %190 = vector.multi_reduction <maximumf>, %189, %cst_57 [1] : vector<8x8xf32> to vector<8xf32>
    %191 = vector.shape_cast %190 : vector<8xf32> to vector<8x1xf32>
    %192 = vector.broadcast %191 : vector<8x1xf32> to vector<8x8xf32>
    %193 = arith.subf %189, %192 : vector<8x8xf32>
    %194 = math.exp %193 : vector<8x8xf32>
    %cst_58 = arith.constant dense<0.000000e+00> : vector<8xf32>
    %195 = vector.multi_reduction <add>, %194, %cst_58 [1] : vector<8x8xf32> to vector<8xf32>
    %196 = vector.shape_cast %195 : vector<8xf32> to vector<8x1xf32>
    %197 = vector.broadcast %196 : vector<8x1xf32> to vector<8x8xf32>
    %198 = arith.divf %194, %197 : vector<8x8xf32>
    %199 = arith.truncf %198 : vector<8x8xf32> to vector<8x8xbf16>
    %cst_59 = arith.constant dense<0.000000e+00> : vector<8x32xf32>
    %200 = tpu.matmul %199, %184, %cst_59 {dimension_numbers = #tpu.dot_dimension_numbers<[1], [0], [0], [1], [0, 0, 1, 1], [], []>} : vector<8x8xbf16>, vector<8x32xbf16>, vector<8x32xf32> -> vector<8x32xf32>
    %201 = vector.extract_strided_slice %132 {offsets = [0, 96], sizes = [8, 32], strides = [1, 1]} : vector<8x128xf32> to vector<8x32xf32>
    %202 = arith.truncf %201 : vector<8x32xf32> to vector<8x32xbf16>
    %203 = vector.extract_strided_slice %133 {offsets = [0, 96], sizes = [8, 32], strides = [1, 1]} : vector<8x128xf32> to vector<8x32xf32>
    %204 = arith.truncf %203 : vector<8x32xf32> to vector<8x32xbf16>
    %205 = vector.extract_strided_slice %134 {offsets = [0, 96], sizes = [8, 32], strides = [1, 1]} : vector<8x128xf32> to vector<8x32xf32>
    %206 = arith.truncf %205 : vector<8x32xf32> to vector<8x32xbf16>
    %cst_60 = arith.constant dense<0.000000e+00> : vector<8x8xf32>
    %207 = tpu.matmul %202, %204, %cst_60 {dimension_numbers = #tpu.dot_dimension_numbers<[1], [1], [0], [0], [0, 0, 1, 0], [], []>} : vector<8x32xbf16>, vector<8x32xbf16>, vector<8x8xf32> -> vector<8x8xf32>
    %cst_61 = arith.constant 0.176776692 : f32
    %208 = vector.broadcast %cst_61 : f32 to vector<8x8xf32>
    %209 = arith.mulf %207, %208 : vector<8x8xf32>
    %cst_62 = arith.constant -1.000000e+30 : f32
    %210 = vector.broadcast %cst_62 : f32 to vector<8x8xf32>
    %211 = arith.select %39, %209, %210 : vector<8x8xi1>, vector<8x8xf32>
    %cst_63 = arith.constant dense<0xFF800000> : vector<8xf32>
    %212 = vector.multi_reduction <maximumf>, %211, %cst_63 [1] : vector<8x8xf32> to vector<8xf32>
    %213 = vector.shape_cast %212 : vector<8xf32> to vector<8x1xf32>
    %214 = vector.broadcast %213 : vector<8x1xf32> to vector<8x8xf32>
    %215 = arith.subf %211, %214 : vector<8x8xf32>
    %216 = math.exp %215 : vector<8x8xf32>
    %cst_64 = arith.constant dense<0.000000e+00> : vector<8xf32>
    %217 = vector.multi_reduction <add>, %216, %cst_64 [1] : vector<8x8xf32> to vector<8xf32>
    %218 = vector.shape_cast %217 : vector<8xf32> to vector<8x1xf32>
    %219 = vector.broadcast %218 : vector<8x1xf32> to vector<8x8xf32>
    %220 = arith.divf %216, %219 : vector<8x8xf32>
    %221 = arith.truncf %220 : vector<8x8xf32> to vector<8x8xbf16>
    %cst_65 = arith.constant dense<0.000000e+00> : vector<8x32xf32>
    %222 = tpu.matmul %221, %206, %cst_65 {dimension_numbers = #tpu.dot_dimension_numbers<[1], [0], [0], [1], [0, 0, 1, 1], [], []>} : vector<8x8xbf16>, vector<8x32xbf16>, vector<8x32xf32> -> vector<8x32xf32>
    %223 = tpu.concatenate %156, %178, %200, %222 in 1 : vector<8x32xf32>, vector<8x32xf32>, vector<8x32xf32>, vector<8x32xf32> -> vector<8x128xf32>
    %224 = tpu.concatenate %131, %223 in 0 : vector<8x128xf32>, vector<8x128xf32> -> vector<16x128xf32>
    %225 = arith.truncf %224 : vector<16x128xf32> to vector<16x128xbf16>
    %c0_66 = arith.constant 0 : index
    %c0_67 = arith.constant 0 : index
    %226 = vector.load %arg7[%c0_66, %c0_67] : memref<128x128xbf16, #tpu.memory_space<vmem>>, vector<128x128xbf16>
    %cst_68 = arith.constant dense<0.000000e+00> : vector<16x128xf32>
    %227 = tpu.matmul %225, %226, %cst_68 {dimension_numbers = #tpu.dot_dimension_numbers<[1], [0], [0], [1], [0, 0, 1, 1], [], []>} : vector<16x128xbf16>, vector<128x128xbf16>, vector<16x128xf32> -> vector<16x128xf32>
    %228 = arith.addf %1, %227 : vector<16x128xf32>
    %c0_69 = arith.constant 0 : index
    %c0_70 = arith.constant 0 : index
    %229 = vector.load %arg8[%c0_69, %c0_70] : memref<1x128xf32, #tpu.memory_space<vmem>>, vector<1x128xf32>
    %230 = vector.broadcast %229 : vector<1x128xf32> to vector<16x128xf32>
    %231 = arith.addf %228, %230 : vector<16x128xf32>
    %cst_71 = arith.constant dense<0.000000e+00> : vector<16xf32>
    %232 = vector.multi_reduction <add>, %231, %cst_71 [1] : vector<16x128xf32> to vector<16xf32>
    %233 = vector.shape_cast %232 : vector<16xf32> to vector<16x1xf32>
    %cst_72 = arith.constant 1.280000e+02 : f32
    %234 = vector.broadcast %cst_72 : f32 to vector<16x1xf32>
    %235 = arith.divf %233, %234 : vector<16x1xf32>
    %236 = vector.broadcast %235 : vector<16x1xf32> to vector<16x128xf32>
    %237 = arith.subf %231, %236 : vector<16x128xf32>
    %238 = arith.mulf %237, %237 : vector<16x128xf32>
    %cst_73 = arith.constant dense<0.000000e+00> : vector<16xf32>
    %239 = vector.multi_reduction <add>, %238, %cst_73 [1] : vector<16x128xf32> to vector<16xf32>
    %240 = vector.shape_cast %239 : vector<16xf32> to vector<16x1xf32>
    %cst_74 = arith.constant 1.280000e+02 : f32
    %241 = vector.broadcast %cst_74 : f32 to vector<16x1xf32>
    %242 = arith.divf %240, %241 : vector<16x1xf32>
    %243 = vector.broadcast %235 : vector<16x1xf32> to vector<16x128xf32>
    %244 = arith.subf %231, %243 : vector<16x128xf32>
    %cst_75 = arith.constant 9.99999974E-6 : f32
    %245 = vector.broadcast %cst_75 : f32 to vector<16x1xf32>
    %246 = arith.addf %242, %245 : vector<16x1xf32>
    %247 = math.rsqrt %246 : vector<16x1xf32>
    %248 = vector.broadcast %247 : vector<16x1xf32> to vector<16x128xf32>
    %249 = arith.mulf %244, %248 : vector<16x128xf32>
    %c0_76 = arith.constant 0 : index
    %c0_77 = arith.constant 0 : index
    %250 = vector.load %arg9[%c0_76, %c0_77] : memref<1x128xf32, #tpu.memory_space<vmem>>, vector<1x128xf32>
    %251 = vector.broadcast %250 : vector<1x128xf32> to vector<16x128xf32>
    %252 = arith.mulf %249, %251 : vector<16x128xf32>
    %c0_78 = arith.constant 0 : index
    %c0_79 = arith.constant 0 : index
    %253 = vector.load %arg10[%c0_78, %c0_79] : memref<1x128xf32, #tpu.memory_space<vmem>>, vector<1x128xf32>
    %254 = vector.broadcast %253 : vector<1x128xf32> to vector<16x128xf32>
    %255 = arith.addf %252, %254 : vector<16x128xf32>
    %256 = arith.truncf %255 : vector<16x128xf32> to vector<16x128xbf16>
    %c0_80 = arith.constant 0 : index
    %c0_81 = arith.constant 0 : index
    %257 = vector.load %arg11[%c0_80, %c0_81] : memref<128x128xbf16, #tpu.memory_space<vmem>>, vector<128x128xbf16>
    %cst_82 = arith.constant dense<0.000000e+00> : vector<16x128xf32>
    %258 = tpu.matmul %256, %257, %cst_82 {dimension_numbers = #tpu.dot_dimension_numbers<[1], [0], [0], [1], [0, 0, 1, 1], [], []>} : vector<16x128xbf16>, vector<128x128xbf16>, vector<16x128xf32> -> vector<16x128xf32>
    %c0_83 = arith.constant 0 : index
    %c0_84 = arith.constant 0 : index
    %259 = vector.load %arg12[%c0_83, %c0_84] : memref<1x128xf32, #tpu.memory_space<vmem>>, vector<1x128xf32>
    %260 = vector.broadcast %259 : vector<1x128xf32> to vector<16x128xf32>
    %261 = arith.addf %258, %260 : vector<16x128xf32>
    %262 = arith.truncf %3 : vector<32x128xf32> to vector<32x128xbf16>
    %c0_85 = arith.constant 0 : index
    %c0_86 = arith.constant 0 : index
    %263 = vector.load %arg13[%c0_85, %c0_86] : memref<128x256xbf16, #tpu.memory_space<vmem>>, vector<128x256xbf16>
    %cst_87 = arith.constant dense<0.000000e+00> : vector<32x256xf32>
    %264 = tpu.matmul %262, %263, %cst_87 {dimension_numbers = #tpu.dot_dimension_numbers<[1], [0], [0], [1], [0, 0, 1, 1], [], []>} : vector<32x128xbf16>, vector<128x256xbf16>, vector<32x256xf32> -> vector<32x256xf32>
    %c0_88 = arith.constant 0 : index
    %c0_89 = arith.constant 0 : index
    %265 = vector.load %arg14[%c0_88, %c0_89] : memref<1x256xf32, #tpu.memory_space<vmem>>, vector<1x256xf32>
    %266 = vector.broadcast %265 : vector<1x256xf32> to vector<32x256xf32>
    %267 = arith.addf %264, %266 : vector<32x256xf32>
    %268 = vector.extract_strided_slice %267 {offsets = [0, 0], sizes = [32, 128], strides = [1, 1]} : vector<32x256xf32> to vector<32x128xf32>
    %269 = vector.extract_strided_slice %267 {offsets = [0, 128], sizes = [32, 128], strides = [1, 1]} : vector<32x256xf32> to vector<32x128xf32>
    %270 = vector.extract_strided_slice %261 {offsets = [0, 0], sizes = [8, 128], strides = [1, 1]} : vector<16x128xf32> to vector<8x128xf32>
    %271 = vector.extract_strided_slice %268 {offsets = [0, 0], sizes = [16, 128], strides = [1, 1]} : vector<32x128xf32> to vector<16x128xf32>
    %272 = vector.extract_strided_slice %269 {offsets = [0, 0], sizes = [16, 128], strides = [1, 1]} : vector<32x128xf32> to vector<16x128xf32>
    %273 = vector.extract_strided_slice %270 {offsets = [0, 0], sizes = [8, 32], strides = [1, 1]} : vector<8x128xf32> to vector<8x32xf32>
    %274 = arith.truncf %273 : vector<8x32xf32> to vector<8x32xbf16>
    %275 = vector.extract_strided_slice %271 {offsets = [0, 0], sizes = [16, 32], strides = [1, 1]} : vector<16x128xf32> to vector<16x32xf32>
    %276 = arith.truncf %275 : vector<16x32xf32> to vector<16x32xbf16>
    %277 = vector.extract_strided_slice %272 {offsets = [0, 0], sizes = [16, 32], strides = [1, 1]} : vector<16x128xf32> to vector<16x32xf32>
    %278 = arith.truncf %277 : vector<16x32xf32> to vector<16x32xbf16>
    %cst_90 = arith.constant dense<0.000000e+00> : vector<8x16xf32>
    %279 = tpu.matmul %274, %276, %cst_90 {dimension_numbers = #tpu.dot_dimension_numbers<[1], [1], [0], [0], [0, 0, 1, 0], [], []>} : vector<8x32xbf16>, vector<16x32xbf16>, vector<8x16xf32> -> vector<8x16xf32>
    %cst_91 = arith.constant 0.176776692 : f32
    %280 = vector.broadcast %cst_91 : f32 to vector<8x16xf32>
    %281 = arith.mulf %279, %280 : vector<8x16xf32>
    %cst_92 = arith.constant dense<0xFF800000> : vector<8xf32>
    %282 = vector.multi_reduction <maximumf>, %281, %cst_92 [1] : vector<8x16xf32> to vector<8xf32>
    %283 = vector.shape_cast %282 : vector<8xf32> to vector<8x1xf32>
    %284 = vector.broadcast %283 : vector<8x1xf32> to vector<8x16xf32>
    %285 = arith.subf %281, %284 : vector<8x16xf32>
    %286 = math.exp %285 : vector<8x16xf32>
    %cst_93 = arith.constant dense<0.000000e+00> : vector<8xf32>
    %287 = vector.multi_reduction <add>, %286, %cst_93 [1] : vector<8x16xf32> to vector<8xf32>
    %288 = vector.shape_cast %287 : vector<8xf32> to vector<8x1xf32>
    %289 = vector.broadcast %288 : vector<8x1xf32> to vector<8x16xf32>
    %290 = arith.divf %286, %289 : vector<8x16xf32>
    %291 = arith.truncf %290 : vector<8x16xf32> to vector<8x16xbf16>
    %cst_94 = arith.constant dense<0.000000e+00> : vector<8x32xf32>
    %292 = tpu.matmul %291, %278, %cst_94 {dimension_numbers = #tpu.dot_dimension_numbers<[1], [0], [0], [1], [0, 0, 1, 1], [], []>} : vector<8x16xbf16>, vector<16x32xbf16>, vector<8x32xf32> -> vector<8x32xf32>
    %293 = vector.extract_strided_slice %270 {offsets = [0, 32], sizes = [8, 32], strides = [1, 1]} : vector<8x128xf32> to vector<8x32xf32>
    %294 = arith.truncf %293 : vector<8x32xf32> to vector<8x32xbf16>
    %295 = vector.extract_strided_slice %271 {offsets = [0, 32], sizes = [16, 32], strides = [1, 1]} : vector<16x128xf32> to vector<16x32xf32>
    %296 = arith.truncf %295 : vector<16x32xf32> to vector<16x32xbf16>
    %297 = vector.extract_strided_slice %272 {offsets = [0, 32], sizes = [16, 32], strides = [1, 1]} : vector<16x128xf32> to vector<16x32xf32>
    %298 = arith.truncf %297 : vector<16x32xf32> to vector<16x32xbf16>
    %cst_95 = arith.constant dense<0.000000e+00> : vector<8x16xf32>
    %299 = tpu.matmul %294, %296, %cst_95 {dimension_numbers = #tpu.dot_dimension_numbers<[1], [1], [0], [0], [0, 0, 1, 0], [], []>} : vector<8x32xbf16>, vector<16x32xbf16>, vector<8x16xf32> -> vector<8x16xf32>
    %cst_96 = arith.constant 0.176776692 : f32
    %300 = vector.broadcast %cst_96 : f32 to vector<8x16xf32>
    %301 = arith.mulf %299, %300 : vector<8x16xf32>
    %cst_97 = arith.constant dense<0xFF800000> : vector<8xf32>
    %302 = vector.multi_reduction <maximumf>, %301, %cst_97 [1] : vector<8x16xf32> to vector<8xf32>
    %303 = vector.shape_cast %302 : vector<8xf32> to vector<8x1xf32>
    %304 = vector.broadcast %303 : vector<8x1xf32> to vector<8x16xf32>
    %305 = arith.subf %301, %304 : vector<8x16xf32>
    %306 = math.exp %305 : vector<8x16xf32>
    %cst_98 = arith.constant dense<0.000000e+00> : vector<8xf32>
    %307 = vector.multi_reduction <add>, %306, %cst_98 [1] : vector<8x16xf32> to vector<8xf32>
    %308 = vector.shape_cast %307 : vector<8xf32> to vector<8x1xf32>
    %309 = vector.broadcast %308 : vector<8x1xf32> to vector<8x16xf32>
    %310 = arith.divf %306, %309 : vector<8x16xf32>
    %311 = arith.truncf %310 : vector<8x16xf32> to vector<8x16xbf16>
    %cst_99 = arith.constant dense<0.000000e+00> : vector<8x32xf32>
    %312 = tpu.matmul %311, %298, %cst_99 {dimension_numbers = #tpu.dot_dimension_numbers<[1], [0], [0], [1], [0, 0, 1, 1], [], []>} : vector<8x16xbf16>, vector<16x32xbf16>, vector<8x32xf32> -> vector<8x32xf32>
    %313 = vector.extract_strided_slice %270 {offsets = [0, 64], sizes = [8, 32], strides = [1, 1]} : vector<8x128xf32> to vector<8x32xf32>
    %314 = arith.truncf %313 : vector<8x32xf32> to vector<8x32xbf16>
    %315 = vector.extract_strided_slice %271 {offsets = [0, 64], sizes = [16, 32], strides = [1, 1]} : vector<16x128xf32> to vector<16x32xf32>
    %316 = arith.truncf %315 : vector<16x32xf32> to vector<16x32xbf16>
    %317 = vector.extract_strided_slice %272 {offsets = [0, 64], sizes = [16, 32], strides = [1, 1]} : vector<16x128xf32> to vector<16x32xf32>
    %318 = arith.truncf %317 : vector<16x32xf32> to vector<16x32xbf16>
    %cst_100 = arith.constant dense<0.000000e+00> : vector<8x16xf32>
    %319 = tpu.matmul %314, %316, %cst_100 {dimension_numbers = #tpu.dot_dimension_numbers<[1], [1], [0], [0], [0, 0, 1, 0], [], []>} : vector<8x32xbf16>, vector<16x32xbf16>, vector<8x16xf32> -> vector<8x16xf32>
    %cst_101 = arith.constant 0.176776692 : f32
    %320 = vector.broadcast %cst_101 : f32 to vector<8x16xf32>
    %321 = arith.mulf %319, %320 : vector<8x16xf32>
    %cst_102 = arith.constant dense<0xFF800000> : vector<8xf32>
    %322 = vector.multi_reduction <maximumf>, %321, %cst_102 [1] : vector<8x16xf32> to vector<8xf32>
    %323 = vector.shape_cast %322 : vector<8xf32> to vector<8x1xf32>
    %324 = vector.broadcast %323 : vector<8x1xf32> to vector<8x16xf32>
    %325 = arith.subf %321, %324 : vector<8x16xf32>
    %326 = math.exp %325 : vector<8x16xf32>
    %cst_103 = arith.constant dense<0.000000e+00> : vector<8xf32>
    %327 = vector.multi_reduction <add>, %326, %cst_103 [1] : vector<8x16xf32> to vector<8xf32>
    %328 = vector.shape_cast %327 : vector<8xf32> to vector<8x1xf32>
    %329 = vector.broadcast %328 : vector<8x1xf32> to vector<8x16xf32>
    %330 = arith.divf %326, %329 : vector<8x16xf32>
    %331 = arith.truncf %330 : vector<8x16xf32> to vector<8x16xbf16>
    %cst_104 = arith.constant dense<0.000000e+00> : vector<8x32xf32>
    %332 = tpu.matmul %331, %318, %cst_104 {dimension_numbers = #tpu.dot_dimension_numbers<[1], [0], [0], [1], [0, 0, 1, 1], [], []>} : vector<8x16xbf16>, vector<16x32xbf16>, vector<8x32xf32> -> vector<8x32xf32>
    %333 = vector.extract_strided_slice %270 {offsets = [0, 96], sizes = [8, 32], strides = [1, 1]} : vector<8x128xf32> to vector<8x32xf32>
    %334 = arith.truncf %333 : vector<8x32xf32> to vector<8x32xbf16>
    %335 = vector.extract_strided_slice %271 {offsets = [0, 96], sizes = [16, 32], strides = [1, 1]} : vector<16x128xf32> to vector<16x32xf32>
    %336 = arith.truncf %335 : vector<16x32xf32> to vector<16x32xbf16>
    %337 = vector.extract_strided_slice %272 {offsets = [0, 96], sizes = [16, 32], strides = [1, 1]} : vector<16x128xf32> to vector<16x32xf32>
    %338 = arith.truncf %337 : vector<16x32xf32> to vector<16x32xbf16>
    %cst_105 = arith.constant dense<0.000000e+00> : vector<8x16xf32>
    %339 = tpu.matmul %334, %336, %cst_105 {dimension_numbers = #tpu.dot_dimension_numbers<[1], [1], [0], [0], [0, 0, 1, 0], [], []>} : vector<8x32xbf16>, vector<16x32xbf16>, vector<8x16xf32> -> vector<8x16xf32>
    %cst_106 = arith.constant 0.176776692 : f32
    %340 = vector.broadcast %cst_106 : f32 to vector<8x16xf32>
    %341 = arith.mulf %339, %340 : vector<8x16xf32>
    %cst_107 = arith.constant dense<0xFF800000> : vector<8xf32>
    %342 = vector.multi_reduction <maximumf>, %341, %cst_107 [1] : vector<8x16xf32> to vector<8xf32>
    %343 = vector.shape_cast %342 : vector<8xf32> to vector<8x1xf32>
    %344 = vector.broadcast %343 : vector<8x1xf32> to vector<8x16xf32>
    %345 = arith.subf %341, %344 : vector<8x16xf32>
    %346 = math.exp %345 : vector<8x16xf32>
    %cst_108 = arith.constant dense<0.000000e+00> : vector<8xf32>
    %347 = vector.multi_reduction <add>, %346, %cst_108 [1] : vector<8x16xf32> to vector<8xf32>
    %348 = vector.shape_cast %347 : vector<8xf32> to vector<8x1xf32>
    %349 = vector.broadcast %348 : vector<8x1xf32> to vector<8x16xf32>
    %350 = arith.divf %346, %349 : vector<8x16xf32>
    %351 = arith.truncf %350 : vector<8x16xf32> to vector<8x16xbf16>
    %cst_109 = arith.constant dense<0.000000e+00> : vector<8x32xf32>
    %352 = tpu.matmul %351, %338, %cst_109 {dimension_numbers = #tpu.dot_dimension_numbers<[1], [0], [0], [1], [0, 0, 1, 1], [], []>} : vector<8x16xbf16>, vector<16x32xbf16>, vector<8x32xf32> -> vector<8x32xf32>
    %353 = tpu.concatenate %292, %312, %332, %352 in 1 : vector<8x32xf32>, vector<8x32xf32>, vector<8x32xf32>, vector<8x32xf32> -> vector<8x128xf32>
    %354 = vector.extract_strided_slice %261 {offsets = [8, 0], sizes = [8, 128], strides = [1, 1]} : vector<16x128xf32> to vector<8x128xf32>
    %355 = vector.extract_strided_slice %268 {offsets = [16, 0], sizes = [16, 128], strides = [1, 1]} : vector<32x128xf32> to vector<16x128xf32>
    %356 = vector.extract_strided_slice %269 {offsets = [16, 0], sizes = [16, 128], strides = [1, 1]} : vector<32x128xf32> to vector<16x128xf32>
    %357 = vector.extract_strided_slice %354 {offsets = [0, 0], sizes = [8, 32], strides = [1, 1]} : vector<8x128xf32> to vector<8x32xf32>
    %358 = arith.truncf %357 : vector<8x32xf32> to vector<8x32xbf16>
    %359 = vector.extract_strided_slice %355 {offsets = [0, 0], sizes = [16, 32], strides = [1, 1]} : vector<16x128xf32> to vector<16x32xf32>
    %360 = arith.truncf %359 : vector<16x32xf32> to vector<16x32xbf16>
    %361 = vector.extract_strided_slice %356 {offsets = [0, 0], sizes = [16, 32], strides = [1, 1]} : vector<16x128xf32> to vector<16x32xf32>
    %362 = arith.truncf %361 : vector<16x32xf32> to vector<16x32xbf16>
    %cst_110 = arith.constant dense<0.000000e+00> : vector<8x16xf32>
    %363 = tpu.matmul %358, %360, %cst_110 {dimension_numbers = #tpu.dot_dimension_numbers<[1], [1], [0], [0], [0, 0, 1, 0], [], []>} : vector<8x32xbf16>, vector<16x32xbf16>, vector<8x16xf32> -> vector<8x16xf32>
    %cst_111 = arith.constant 0.176776692 : f32
    %364 = vector.broadcast %cst_111 : f32 to vector<8x16xf32>
    %365 = arith.mulf %363, %364 : vector<8x16xf32>
    %cst_112 = arith.constant dense<0xFF800000> : vector<8xf32>
    %366 = vector.multi_reduction <maximumf>, %365, %cst_112 [1] : vector<8x16xf32> to vector<8xf32>
    %367 = vector.shape_cast %366 : vector<8xf32> to vector<8x1xf32>
    %368 = vector.broadcast %367 : vector<8x1xf32> to vector<8x16xf32>
    %369 = arith.subf %365, %368 : vector<8x16xf32>
    %370 = math.exp %369 : vector<8x16xf32>
    %cst_113 = arith.constant dense<0.000000e+00> : vector<8xf32>
    %371 = vector.multi_reduction <add>, %370, %cst_113 [1] : vector<8x16xf32> to vector<8xf32>
    %372 = vector.shape_cast %371 : vector<8xf32> to vector<8x1xf32>
    %373 = vector.broadcast %372 : vector<8x1xf32> to vector<8x16xf32>
    %374 = arith.divf %370, %373 : vector<8x16xf32>
    %375 = arith.truncf %374 : vector<8x16xf32> to vector<8x16xbf16>
    %cst_114 = arith.constant dense<0.000000e+00> : vector<8x32xf32>
    %376 = tpu.matmul %375, %362, %cst_114 {dimension_numbers = #tpu.dot_dimension_numbers<[1], [0], [0], [1], [0, 0, 1, 1], [], []>} : vector<8x16xbf16>, vector<16x32xbf16>, vector<8x32xf32> -> vector<8x32xf32>
    %377 = vector.extract_strided_slice %354 {offsets = [0, 32], sizes = [8, 32], strides = [1, 1]} : vector<8x128xf32> to vector<8x32xf32>
    %378 = arith.truncf %377 : vector<8x32xf32> to vector<8x32xbf16>
    %379 = vector.extract_strided_slice %355 {offsets = [0, 32], sizes = [16, 32], strides = [1, 1]} : vector<16x128xf32> to vector<16x32xf32>
    %380 = arith.truncf %379 : vector<16x32xf32> to vector<16x32xbf16>
    %381 = vector.extract_strided_slice %356 {offsets = [0, 32], sizes = [16, 32], strides = [1, 1]} : vector<16x128xf32> to vector<16x32xf32>
    %382 = arith.truncf %381 : vector<16x32xf32> to vector<16x32xbf16>
    %cst_115 = arith.constant dense<0.000000e+00> : vector<8x16xf32>
    %383 = tpu.matmul %378, %380, %cst_115 {dimension_numbers = #tpu.dot_dimension_numbers<[1], [1], [0], [0], [0, 0, 1, 0], [], []>} : vector<8x32xbf16>, vector<16x32xbf16>, vector<8x16xf32> -> vector<8x16xf32>
    %cst_116 = arith.constant 0.176776692 : f32
    %384 = vector.broadcast %cst_116 : f32 to vector<8x16xf32>
    %385 = arith.mulf %383, %384 : vector<8x16xf32>
    %cst_117 = arith.constant dense<0xFF800000> : vector<8xf32>
    %386 = vector.multi_reduction <maximumf>, %385, %cst_117 [1] : vector<8x16xf32> to vector<8xf32>
    %387 = vector.shape_cast %386 : vector<8xf32> to vector<8x1xf32>
    %388 = vector.broadcast %387 : vector<8x1xf32> to vector<8x16xf32>
    %389 = arith.subf %385, %388 : vector<8x16xf32>
    %390 = math.exp %389 : vector<8x16xf32>
    %cst_118 = arith.constant dense<0.000000e+00> : vector<8xf32>
    %391 = vector.multi_reduction <add>, %390, %cst_118 [1] : vector<8x16xf32> to vector<8xf32>
    %392 = vector.shape_cast %391 : vector<8xf32> to vector<8x1xf32>
    %393 = vector.broadcast %392 : vector<8x1xf32> to vector<8x16xf32>
    %394 = arith.divf %390, %393 : vector<8x16xf32>
    %395 = arith.truncf %394 : vector<8x16xf32> to vector<8x16xbf16>
    %cst_119 = arith.constant dense<0.000000e+00> : vector<8x32xf32>
    %396 = tpu.matmul %395, %382, %cst_119 {dimension_numbers = #tpu.dot_dimension_numbers<[1], [0], [0], [1], [0, 0, 1, 1], [], []>} : vector<8x16xbf16>, vector<16x32xbf16>, vector<8x32xf32> -> vector<8x32xf32>
    %397 = vector.extract_strided_slice %354 {offsets = [0, 64], sizes = [8, 32], strides = [1, 1]} : vector<8x128xf32> to vector<8x32xf32>
    %398 = arith.truncf %397 : vector<8x32xf32> to vector<8x32xbf16>
    %399 = vector.extract_strided_slice %355 {offsets = [0, 64], sizes = [16, 32], strides = [1, 1]} : vector<16x128xf32> to vector<16x32xf32>
    %400 = arith.truncf %399 : vector<16x32xf32> to vector<16x32xbf16>
    %401 = vector.extract_strided_slice %356 {offsets = [0, 64], sizes = [16, 32], strides = [1, 1]} : vector<16x128xf32> to vector<16x32xf32>
    %402 = arith.truncf %401 : vector<16x32xf32> to vector<16x32xbf16>
    %cst_120 = arith.constant dense<0.000000e+00> : vector<8x16xf32>
    %403 = tpu.matmul %398, %400, %cst_120 {dimension_numbers = #tpu.dot_dimension_numbers<[1], [1], [0], [0], [0, 0, 1, 0], [], []>} : vector<8x32xbf16>, vector<16x32xbf16>, vector<8x16xf32> -> vector<8x16xf32>
    %cst_121 = arith.constant 0.176776692 : f32
    %404 = vector.broadcast %cst_121 : f32 to vector<8x16xf32>
    %405 = arith.mulf %403, %404 : vector<8x16xf32>
    %cst_122 = arith.constant dense<0xFF800000> : vector<8xf32>
    %406 = vector.multi_reduction <maximumf>, %405, %cst_122 [1] : vector<8x16xf32> to vector<8xf32>
    %407 = vector.shape_cast %406 : vector<8xf32> to vector<8x1xf32>
    %408 = vector.broadcast %407 : vector<8x1xf32> to vector<8x16xf32>
    %409 = arith.subf %405, %408 : vector<8x16xf32>
    %410 = math.exp %409 : vector<8x16xf32>
    %cst_123 = arith.constant dense<0.000000e+00> : vector<8xf32>
    %411 = vector.multi_reduction <add>, %410, %cst_123 [1] : vector<8x16xf32> to vector<8xf32>
    %412 = vector.shape_cast %411 : vector<8xf32> to vector<8x1xf32>
    %413 = vector.broadcast %412 : vector<8x1xf32> to vector<8x16xf32>
    %414 = arith.divf %410, %413 : vector<8x16xf32>
    %415 = arith.truncf %414 : vector<8x16xf32> to vector<8x16xbf16>
    %cst_124 = arith.constant dense<0.000000e+00> : vector<8x32xf32>
    %416 = tpu.matmul %415, %402, %cst_124 {dimension_numbers = #tpu.dot_dimension_numbers<[1], [0], [0], [1], [0, 0, 1, 1], [], []>} : vector<8x16xbf16>, vector<16x32xbf16>, vector<8x32xf32> -> vector<8x32xf32>
    %417 = vector.extract_strided_slice %354 {offsets = [0, 96], sizes = [8, 32], strides = [1, 1]} : vector<8x128xf32> to vector<8x32xf32>
    %418 = arith.truncf %417 : vector<8x32xf32> to vector<8x32xbf16>
    %419 = vector.extract_strided_slice %355 {offsets = [0, 96], sizes = [16, 32], strides = [1, 1]} : vector<16x128xf32> to vector<16x32xf32>
    %420 = arith.truncf %419 : vector<16x32xf32> to vector<16x32xbf16>
    %421 = vector.extract_strided_slice %356 {offsets = [0, 96], sizes = [16, 32], strides = [1, 1]} : vector<16x128xf32> to vector<16x32xf32>
    %422 = arith.truncf %421 : vector<16x32xf32> to vector<16x32xbf16>
    %cst_125 = arith.constant dense<0.000000e+00> : vector<8x16xf32>
    %423 = tpu.matmul %418, %420, %cst_125 {dimension_numbers = #tpu.dot_dimension_numbers<[1], [1], [0], [0], [0, 0, 1, 0], [], []>} : vector<8x32xbf16>, vector<16x32xbf16>, vector<8x16xf32> -> vector<8x16xf32>
    %cst_126 = arith.constant 0.176776692 : f32
    %424 = vector.broadcast %cst_126 : f32 to vector<8x16xf32>
    %425 = arith.mulf %423, %424 : vector<8x16xf32>
    %cst_127 = arith.constant dense<0xFF800000> : vector<8xf32>
    %426 = vector.multi_reduction <maximumf>, %425, %cst_127 [1] : vector<8x16xf32> to vector<8xf32>
    %427 = vector.shape_cast %426 : vector<8xf32> to vector<8x1xf32>
    %428 = vector.broadcast %427 : vector<8x1xf32> to vector<8x16xf32>
    %429 = arith.subf %425, %428 : vector<8x16xf32>
    %430 = math.exp %429 : vector<8x16xf32>
    %cst_128 = arith.constant dense<0.000000e+00> : vector<8xf32>
    %431 = vector.multi_reduction <add>, %430, %cst_128 [1] : vector<8x16xf32> to vector<8xf32>
    %432 = vector.shape_cast %431 : vector<8xf32> to vector<8x1xf32>
    %433 = vector.broadcast %432 : vector<8x1xf32> to vector<8x16xf32>
    %434 = arith.divf %430, %433 : vector<8x16xf32>
    %435 = arith.truncf %434 : vector<8x16xf32> to vector<8x16xbf16>
    %cst_129 = arith.constant dense<0.000000e+00> : vector<8x32xf32>
    %436 = tpu.matmul %435, %422, %cst_129 {dimension_numbers = #tpu.dot_dimension_numbers<[1], [0], [0], [1], [0, 0, 1, 1], [], []>} : vector<8x16xbf16>, vector<16x32xbf16>, vector<8x32xf32> -> vector<8x32xf32>
    %437 = tpu.concatenate %376, %396, %416, %436 in 1 : vector<8x32xf32>, vector<8x32xf32>, vector<8x32xf32>, vector<8x32xf32> -> vector<8x128xf32>
    %438 = tpu.concatenate %353, %437 in 0 : vector<8x128xf32>, vector<8x128xf32> -> vector<16x128xf32>
    %439 = arith.truncf %438 : vector<16x128xf32> to vector<16x128xbf16>
    %c0_130 = arith.constant 0 : index
    %c0_131 = arith.constant 0 : index
    %440 = vector.load %arg15[%c0_130, %c0_131] : memref<128x128xbf16, #tpu.memory_space<vmem>>, vector<128x128xbf16>
    %cst_132 = arith.constant dense<0.000000e+00> : vector<16x128xf32>
    %441 = tpu.matmul %439, %440, %cst_132 {dimension_numbers = #tpu.dot_dimension_numbers<[1], [0], [0], [1], [0, 0, 1, 1], [], []>} : vector<16x128xbf16>, vector<128x128xbf16>, vector<16x128xf32> -> vector<16x128xf32>
    %442 = arith.addf %231, %441 : vector<16x128xf32>
    %c0_133 = arith.constant 0 : index
    %c0_134 = arith.constant 0 : index
    %443 = vector.load %arg16[%c0_133, %c0_134] : memref<1x128xf32, #tpu.memory_space<vmem>>, vector<1x128xf32>
    %444 = vector.broadcast %443 : vector<1x128xf32> to vector<16x128xf32>
    %445 = arith.addf %442, %444 : vector<16x128xf32>
    %cst_135 = arith.constant dense<0.000000e+00> : vector<16xf32>
    %446 = vector.multi_reduction <add>, %445, %cst_135 [1] : vector<16x128xf32> to vector<16xf32>
    %447 = vector.shape_cast %446 : vector<16xf32> to vector<16x1xf32>
    %cst_136 = arith.constant 1.280000e+02 : f32
    %448 = vector.broadcast %cst_136 : f32 to vector<16x1xf32>
    %449 = arith.divf %447, %448 : vector<16x1xf32>
    %450 = vector.broadcast %449 : vector<16x1xf32> to vector<16x128xf32>
    %451 = arith.subf %445, %450 : vector<16x128xf32>
    %452 = arith.mulf %451, %451 : vector<16x128xf32>
    %cst_137 = arith.constant dense<0.000000e+00> : vector<16xf32>
    %453 = vector.multi_reduction <add>, %452, %cst_137 [1] : vector<16x128xf32> to vector<16xf32>
    %454 = vector.shape_cast %453 : vector<16xf32> to vector<16x1xf32>
    %cst_138 = arith.constant 1.280000e+02 : f32
    %455 = vector.broadcast %cst_138 : f32 to vector<16x1xf32>
    %456 = arith.divf %454, %455 : vector<16x1xf32>
    %457 = vector.broadcast %449 : vector<16x1xf32> to vector<16x128xf32>
    %458 = arith.subf %445, %457 : vector<16x128xf32>
    %cst_139 = arith.constant 9.99999974E-6 : f32
    %459 = vector.broadcast %cst_139 : f32 to vector<16x1xf32>
    %460 = arith.addf %456, %459 : vector<16x1xf32>
    %461 = math.rsqrt %460 : vector<16x1xf32>
    %462 = vector.broadcast %461 : vector<16x1xf32> to vector<16x128xf32>
    %463 = arith.mulf %458, %462 : vector<16x128xf32>
    %c0_140 = arith.constant 0 : index
    %c0_141 = arith.constant 0 : index
    %464 = vector.load %arg17[%c0_140, %c0_141] : memref<1x128xf32, #tpu.memory_space<vmem>>, vector<1x128xf32>
    %465 = vector.broadcast %464 : vector<1x128xf32> to vector<16x128xf32>
    %466 = arith.mulf %463, %465 : vector<16x128xf32>
    %c0_142 = arith.constant 0 : index
    %c0_143 = arith.constant 0 : index
    %467 = vector.load %arg18[%c0_142, %c0_143] : memref<1x128xf32, #tpu.memory_space<vmem>>, vector<1x128xf32>
    %468 = vector.broadcast %467 : vector<1x128xf32> to vector<16x128xf32>
    %469 = arith.addf %466, %468 : vector<16x128xf32>
    %470 = arith.truncf %469 : vector<16x128xf32> to vector<16x128xbf16>
    %c0_144 = arith.constant 0 : index
    %c0_145 = arith.constant 0 : index
    %471 = vector.load %arg19[%c0_144, %c0_145] : memref<128x512xbf16, #tpu.memory_space<vmem>>, vector<128x512xbf16>
    %cst_146 = arith.constant dense<0.000000e+00> : vector<16x512xf32>
    %472 = tpu.matmul %470, %471, %cst_146 {dimension_numbers = #tpu.dot_dimension_numbers<[1], [0], [0], [1], [0, 0, 1, 1], [], []>} : vector<16x128xbf16>, vector<128x512xbf16>, vector<16x512xf32> -> vector<16x512xf32>
    %c0_147 = arith.constant 0 : index
    %c0_148 = arith.constant 0 : index
    %473 = vector.load %arg20[%c0_147, %c0_148] : memref<1x512xf32, #tpu.memory_space<vmem>>, vector<1x512xf32>
    %474 = vector.broadcast %473 : vector<1x512xf32> to vector<16x512xf32>
    %475 = arith.addf %472, %474 : vector<16x512xf32>
    %cst_149 = arith.constant 5.000000e-01 : f32
    %476 = vector.broadcast %cst_149 : f32 to vector<16x512xf32>
    %477 = arith.mulf %476, %475 : vector<16x512xf32>
    %cst_150 = arith.constant 0.707106769 : f32
    %478 = vector.broadcast %cst_150 : f32 to vector<16x512xf32>
    %479 = arith.mulf %475, %478 : vector<16x512xf32>
    %480 = math.erf %479 : vector<16x512xf32>
    %cst_151 = arith.constant 1.000000e+00 : f32
    %481 = vector.broadcast %cst_151 : f32 to vector<16x512xf32>
    %482 = arith.addf %481, %480 : vector<16x512xf32>
    %483 = arith.mulf %477, %482 : vector<16x512xf32>
    %484 = arith.truncf %483 : vector<16x512xf32> to vector<16x512xbf16>
    %c0_152 = arith.constant 0 : index
    %c0_153 = arith.constant 0 : index
    %485 = vector.load %arg21[%c0_152, %c0_153] : memref<512x128xbf16, #tpu.memory_space<vmem>>, vector<512x128xbf16>
    %cst_154 = arith.constant dense<0.000000e+00> : vector<16x128xf32>
    %486 = tpu.matmul %484, %485, %cst_154 {dimension_numbers = #tpu.dot_dimension_numbers<[1], [0], [0], [1], [0, 0, 1, 1], [], []>} : vector<16x512xbf16>, vector<512x128xbf16>, vector<16x128xf32> -> vector<16x128xf32>
    %487 = arith.addf %445, %486 : vector<16x128xf32>
    %c0_155 = arith.constant 0 : index
    %c0_156 = arith.constant 0 : index
    %488 = vector.load %arg22[%c0_155, %c0_156] : memref<1x128xf32, #tpu.memory_space<vmem>>, vector<1x128xf32>
    %489 = vector.broadcast %488 : vector<1x128xf32> to vector<16x128xf32>
    %490 = arith.addf %487, %489 : vector<16x128xf32>
    %491 = vector.shape_cast %490 : vector<16x128xf32> to vector<2x8x128xf32>
    %c0_157 = arith.constant 0 : index
    %c0_158 = arith.constant 0 : index
    %c0_159 = arith.constant 0 : index
    %492 = vector.load %arg23[%c0_157, %c0_158, %c0_159] : memref<2x8x128xf32, #tpu.memory_space<vmem>>, vector<2x8x128xf32>
    tpu.vector_store %arg23[%c0_157, %c0_158, %c0_159], %491 {strides = array<i32>} : memref<2x8x128xf32, #tpu.memory_space<vmem>>, vector<2x8x128xf32>,
    return
  }
  func.func @transform_0(%arg0: i32) -> (i32, i32, i32) {
    %c0_i32 = arith.constant 0 : i32
    %c0_i32_0 = arith.constant 0 : i32
    %c0_i32_1 = arith.constant 0 : i32
    return %arg0, %c0_i32, %c0_i32_0 : i32, i32, i32
  }
  func.func @transform_1(%arg0: i32) -> (i32, i32, i32) {
    %c0_i32 = arith.constant 0 : i32
    %c0_i32_0 = arith.constant 0 : i32
    %c0_i32_1 = arith.constant 0 : i32
    return %arg0, %c0_i32, %c0_i32_0 : i32, i32, i32
  }
  func.func @transform_2(%arg0: i32) -> (i32, i32) {
    %c0_i32 = arith.constant 0 : i32
    %c0_i32_0 = arith.constant 0 : i32
    %c0_i32_1 = arith.constant 0 : i32
    return %c0_i32, %c0_i32_0 : i32, i32
  }
  func.func @transform_3(%arg0: i32) -> (i32, i32) {
    %c0_i32 = arith.constant 0 : i32
    %c0_i32_0 = arith.constant 0 : i32
    %c0_i32_1 = arith.constant 0 : i32
    return %c0_i32, %c0_i32_0 : i32, i32
  }
  func.func @transform_4(%arg0: i32) -> (i32, i32) {
    %c0_i32 = arith.constant 0 : i32
    %c0_i32_0 = arith.constant 0 : i32
    %c0_i32_1 = arith.constant 0 : i32
    return %c0_i32, %c0_i32_0 : i32, i32
  }
  func.func @transform_5(%arg0: i32) -> (i32, i32) {
    %c0_i32 = arith.constant 0 : i32
    %c0_i32_0 = arith.constant 0 : i32
    %c0_i32_1 = arith.constant 0 : i32
    return %c0_i32, %c0_i32_0 : i32, i32
  }
  func.func @transform_6(%arg0: i32) -> (i32, i32) {
    %c0_i32 = arith.constant 0 : i32
    %c0_i32_0 = arith.constant 0 : i32
    %c0_i32_1 = arith.constant 0 : i32
    return %c0_i32, %c0_i32_0 : i32, i32
  }
  func.func @transform_7(%arg0: i32) -> (i32, i32) {
    %c0_i32 = arith.constant 0 : i32
    %c0_i32_0 = arith.constant 0 : i32
    %c0_i32_1 = arith.constant 0 : i32
    return %c0_i32, %c0_i32_0 : i32, i32
  }
  func.func @transform_8(%arg0: i32) -> (i32, i32) {
    %c0_i32 = arith.constant 0 : i32
    %c0_i32_0 = arith.constant 0 : i32
    %c0_i32_1 = arith.constant 0 : i32
    return %c0_i32, %c0_i32_0 : i32, i32
  }
  func.func @transform_9(%arg0: i32) -> (i32, i32) {
    %c0_i32 = arith.constant 0 : i32
    %c0_i32_0 = arith.constant 0 : i32
    %c0_i32_1 = arith.constant 0 : i32
    return %c0_i32, %c0_i32_0 : i32, i32
  }
  func.func @transform_10(%arg0: i32) -> (i32, i32) {
    %c0_i32 = arith.constant 0 : i32
    %c0_i32_0 = arith.constant 0 : i32
    %c0_i32_1 = arith.constant 0 : i32
    return %c0_i32, %c0_i32_0 : i32, i32
  }
  func.func @transform_11(%arg0: i32) -> (i32, i32) {
    %c0_i32 = arith.constant 0 : i32
    %c0_i32_0 = arith.constant 0 : i32
    %c0_i32_1 = arith.constant 0 : i32
    return %c0_i32, %c0_i32_0 : i32, i32
  }
  func.func @transform_12(%arg0: i32) -> (i32, i32) {
    %c0_i32 = arith.constant 0 : i32
    %c0_i32_0 = arith.constant 0 : i32
    %c0_i32_1 = arith.constant 0 : i32
    return %c0_i32, %c0_i32_0 : i32, i32
  }
  func.func @transform_13(%arg0: i32) -> (i32, i32) {
    %c0_i32 = arith.constant 0 : i32
    %c0_i32_0 = arith.constant 0 : i32
    %c0_i32_1 = arith.constant 0 : i32
    return %c0_i32, %c0_i32_0 : i32, i32
  }
  func.func @transform_14(%arg0: i32) -> (i32, i32) {
    %c0_i32 = arith.constant 0 : i32
    %c0_i32_0 = arith.constant 0 : i32
    %c0_i32_1 = arith.constant 0 : i32
    return %c0_i32, %c0_i32_0 : i32, i32
  }
  func.func @transform_15(%arg0: i32) -> (i32, i32) {
    %c0_i32 = arith.constant 0 : i32
    %c0_i32_0 = arith.constant 0 : i32
    %c0_i32_1 = arith.constant 0 : i32
    return %c0_i32, %c0_i32_0 : i32, i32
  }
  func.func @transform_16(%arg0: i32) -> (i32, i32) {
    %c0_i32 = arith.constant 0 : i32
    %c0_i32_0 = arith.constant 0 : i32
    %c0_i32_1 = arith.constant 0 : i32
    return %c0_i32, %c0_i32_0 : i32, i32
  }
  func.func @transform_17(%arg0: i32) -> (i32, i32) {
    %c0_i32 = arith.constant 0 : i32
    %c0_i32_0 = arith.constant 0 : i32
    %c0_i32_1 = arith.constant 0 : i32
    return %c0_i32, %c0_i32_0 : i32, i32
  }
  func.func @transform_18(%arg0: i32) -> (i32, i32) {
    %c0_i32 = arith.constant 0 : i32
    %c0_i32_0 = arith.constant 0 : i32
    %c0_i32_1 = arith.constant 0 : i32
    return %c0_i32, %c0_i32_0 : i32, i32
  }
  func.func @transform_19(%arg0: i32) -> (i32, i32) {
    %c0_i32 = arith.constant 0 : i32
    %c0_i32_0 = arith.constant 0 : i32
    %c0_i32_1 = arith.constant 0 : i32
    return %c0_i32, %c0_i32_0 : i32, i32
  }
  func.func @transform_20(%arg0: i32) -> (i32, i32) {
    %c0_i32 = arith.constant 0 : i32
    %c0_i32_0 = arith.constant 0 : i32
    %c0_i32_1 = arith.constant 0 : i32
    return %c0_i32, %c0_i32_0 : i32, i32
  }
  func.func @transform_21(%arg0: i32) -> (i32, i32) {
    %c0_i32 = arith.constant 0 : i32
    %c0_i32_0 = arith.constant 0 : i32
    %c0_i32_1 = arith.constant 0 : i32
    return %c0_i32, %c0_i32_0 : i32, i32
  }
  func.func @transform_22(%arg0: i32) -> (i32, i32, i32) {
    %c0_i32 = arith.constant 0 : i32
    %c0_i32_0 = arith.constant 0 : i32
    %c0_i32_1 = arith.constant 0 : i32
    return %arg0, %c0_i32, %c0_i32_0 : i32, i32, i32
  }
}

module attributes {stable_mosaic.version = 11 : i64} {
  func.func @decoder_block_kernel(%arg0: i32, %arg1: memref<2x8x128xf32, #tpu.memory_space<vmem>>, %arg2: memref<2x16x128xf32, #tpu.memory_space<vmem>>, %arg3: memref<1x128xf32, #tpu.memory_space<vmem>>, %arg4: memref<1x128xf32, #tpu.memory_space<vmem>>, %arg5: memref<128x384xbf16, #tpu.memory_space<vmem>>, %arg6: memref<1x384xf32, #tpu.memory_space<vmem>>, %arg7: memref<128x128xbf16, #tpu.memory_space<vmem>>, %arg8: memref<1x128xf32, #tpu.memory_space<vmem>>, %arg9: memref<1x128xf32, #tpu.memory_space<vmem>>, %arg10: memref<1x128xf32, #tpu.memory_space<vmem>>, %arg11: memref<128x128xbf16, #tpu.memory_space<vmem>>, %arg12: memref<1x128xf32, #tpu.memory_space<vmem>>, %arg13: memref<128x256xbf16, #tpu.memory_space<vmem>>, %arg14: memref<1x256xf32, #tpu.memory_space<vmem>>, %arg15: memref<128x128xbf16, #tpu.memory_space<vmem>>, %arg16: memref<1x128xf32, #tpu.memory_space<vmem>>, %arg17: memref<1x128xf32, #tpu.memory_space<vmem>>, %arg18: memref<1x128xf32, #tpu.memory_space<vmem>>, %arg19: memref<128x512xbf16, #tpu.memory_space<vmem>>, %arg20: memref<1x512xf32, #tpu.memory_space<vmem>>, %arg21: memref<512x128xbf16, #tpu.memory_space<vmem>>, %arg22: memref<1x128xf32, #tpu.memory_space<vmem>>, %arg23: memref<2x8x128xf32, #tpu.memory_space<vmem>>) attributes {dimension_semantics = [#tpu.dimension_semantics<parallel>], iteration_bounds = array<i64: 1>, scalar_prefetch = 0 : i64, scratch_operands = 0 : i64, tpu.core_type = #tpu.core_type<tc>, window_params = [{transform_indices = @transform_0, window_bounds = array<i64: 2, 8, 128>}, {transform_indices = @transform_1, window_bounds = array<i64: 2, 16, 128>}, {pipeline_mode = #tpu.pipeline_mode<synchronous>, transform_indices = @transform_2, window_bounds = array<i64: 1, 128>}, {pipeline_mode = #tpu.pipeline_mode<synchronous>, transform_indices = @transform_3, window_bounds = array<i64: 1, 128>}, {pipeline_mode = #tpu.pipeline_mode<synchronous>, transform_indices = @transform_4, window_bounds = array<i64: 128, 384>}, {pipeline_mode = #tpu.pipeline_mode<synchronous>, transform_indices = @transform_5, window_bounds = array<i64: 1, 384>}, {pipeline_mode = #tpu.pipeline_mode<synchronous>, transform_indices = @transform_6, window_bounds = array<i64: 128, 128>}, {pipeline_mode = #tpu.pipeline_mode<synchronous>, transform_indices = @transform_7, window_bounds = array<i64: 1, 128>}, {pipeline_mode = #tpu.pipeline_mode<synchronous>, transform_indices = @transform_8, window_bounds = array<i64: 1, 128>}, {pipeline_mode = #tpu.pipeline_mode<synchronous>, transform_indices = @transform_9, window_bounds = array<i64: 1, 128>}, {pipeline_mode = #tpu.pipeline_mode<synchronous>, transform_indices = @transform_10, window_bounds = array<i64: 128, 128>}, {pipeline_mode = #tpu.pipeline_mode<synchronous>, transform_indices = @transform_11, window_bounds = array<i64: 1, 128>}, {pipeline_mode = #tpu.pipeline_mode<synchronous>, transform_indices = @transform_12, window_bounds = array<i64: 128, 256>}, {pipeline_mode = #tpu.pipeline_mode<synchronous>, transform_indices = @transform_13, window_bounds = array<i64: 1, 256>}, {pipeline_mode = #tpu.pipeline_mode<synchronous>, transform_indices = @transform_14, window_bounds = array<i64: 128, 128>}, {pipeline_mode = #tpu.pipeline_mode<synchronous>, transform_indices = @transform_15, window_bounds = array<i64: 1, 128>}, {pipeline_mode = #tpu.pipeline_mode<synchronous>, transform_indices = @transform_16, window_bounds = array<i64: 1, 128>}, {pipeline_mode = #tpu.pipeline_mode<synchronous>, transform_indices = @transform_17, window_bounds = array<i64: 1, 128>}, {pipeline_mode = #tpu.pipeline_mode<synchronous>, transform_indices = @transform_18, window_bounds = array<i64: 128, 512>}, {pipeline_mode = #tpu.pipeline_mode<synchronous>, transform_indices = @transform_19, window_bounds = array<i64: 1, 512>}, {pipeline_mode = #tpu.pipeline_mode<synchronous>, transform_indices = @transform_20, window_bounds = array<i64: 512, 128>}, {pipeline_mode = #tpu.pipeline_mode<synchronous>, transform_indices = @transform_21, window_bounds = array<i64: 1, 128>}, {transform_indices = @transform_22, window_bounds = array<i64: 2, 8, 128>}]} {
    %c0 = arith.constant 0 : index
    %c0_0 = arith.constant 0 : index
    %c0_1 = arith.constant 0 : index
    %0 = vector.load %arg1[%c0, %c0_0, %c0_1] : memref<2x8x128xf32, #tpu.memory_space<vmem>>, vector<2x8x128xf32>
    %1 = vector.shape_cast %0 : vector<2x8x128xf32> to vector<16x128xf32>
    %c0_2 = arith.constant 0 : index
    %c0_3 = arith.constant 0 : index
    %c0_4 = arith.constant 0 : index
    %2 = vector.load %arg2[%c0_2, %c0_3, %c0_4] : memref<2x16x128xf32, #tpu.memory_space<vmem>>, vector<2x16x128xf32>
    %3 = vector.shape_cast %2 : vector<2x16x128xf32> to vector<32x128xf32>
    %cst = arith.constant dense<0.000000e+00> : vector<16xf32>
    %4 = vector.multi_reduction <add>, %1, %cst [1] : vector<16x128xf32> to vector<16xf32>
    %5 = vector.shape_cast %4 : vector<16xf32> to vector<16x1xf32>
    %cst_5 = arith.constant 1.280000e+02 : f32
    %6 = vector.broadcast %cst_5 : f32 to vector<16x1xf32>
    %7 = arith.divf %5, %6 : vector<16x1xf32>
    %8 = vector.broadcast %7 : vector<16x1xf32> to vector<16x128xf32>
    %9 = arith.subf %1, %8 : vector<16x128xf32>
    %10 = arith.mulf %9, %9 : vector<16x128xf32>
    %cst_6 = arith.constant dense<0.000000e+00> : vector<16xf32>
    %11 = vector.multi_reduction <add>, %10, %cst_6 [1] : vector<16x128xf32> to vector<16xf32>
    %12 = vector.shape_cast %11 : vector<16xf32> to vector<16x1xf32>
    %cst_7 = arith.constant 1.280000e+02 : f32
    %13 = vector.broadcast %cst_7 : f32 to vector<16x1xf32>
    %14 = arith.divf %12, %13 : vector<16x1xf32>
    %15 = vector.broadcast %7 : vector<16x1xf32> to vector<16x128xf32>
    %16 = arith.subf %1, %15 : vector<16x128xf32>
    %cst_8 = arith.constant 9.99999974E-6 : f32
    %17 = vector.broadcast %cst_8 : f32 to vector<16x1xf32>
    %18 = arith.addf %14, %17 : vector<16x1xf32>
    %19 = math.rsqrt %18 : vector<16x1xf32>
    %20 = vector.broadcast %19 : vector<16x1xf32> to vector<16x128xf32>
    %21 = arith.mulf %16, %20 : vector<16x128xf32>
    %c0_9 = arith.constant 0 : index
    %c0_10 = arith.constant 0 : index
    %22 = vector.load %arg3[%c0_9, %c0_10] : memref<1x128xf32, #tpu.memory_space<vmem>>, vector<1x128xf32>
    %23 = vector.broadcast %22 : vector<1x128xf32> to vector<16x128xf32>
    %24 = arith.mulf %21, %23 : vector<16x128xf32>
    %c0_11 = arith.constant 0 : index
    %c0_12 = arith.constant 0 : index
    %25 = vector.load %arg4[%c0_11, %c0_12] : memref<1x128xf32, #tpu.memory_space<vmem>>, vector<1x128xf32>
    %26 = vector.broadcast %25 : vector<1x128xf32> to vector<16x128xf32>
    %27 = arith.addf %24, %26 : vector<16x128xf32>
    %28 = arith.truncf %27 : vector<16x128xf32> to vector<16x128xbf16>
    %c0_13 = arith.constant 0 : index
    %c0_14 = arith.constant 0 : index
    %29 = vector.load %arg5[%c0_13, %c0_14] : memref<128x384xbf16, #tpu.memory_space<vmem>>, vector<128x384xbf16>
    %cst_15 = arith.constant dense<0.000000e+00> : vector<16x384xf32>
    %30 = tpu.matmul %28, %29, %cst_15 {dimension_numbers = #tpu.dot_dimension_numbers<[1], [0], [0], [1], [0, 0, 1, 1], [], []>} : vector<16x128xbf16>, vector<128x384xbf16>, vector<16x384xf32> -> vector<16x384xf32>
    %c0_16 = arith.constant 0 : index
    %c0_17 = arith.constant 0 : index
    %31 = vector.load %arg6[%c0_16, %c0_17] : memref<1x384xf32, #tpu.memory_space<vmem>>, vector<1x384xf32>
    %32 = vector.broadcast %31 : vector<1x384xf32> to vector<16x384xf32>
    %33 = arith.addf %30, %32 : vector<16x384xf32>
    %34 = vector.extract_strided_slice %33 {offsets = [0, 0], sizes = [16, 128], strides = [1, 1]} : vector<16x384xf32> to vector<16x128xf32>
    %35 = vector.extract_strided_slice %33 {offsets = [0, 128], sizes = [16, 128], strides = [1, 1]} : vector<16x384xf32> to vector<16x128xf32>
    %36 = vector.extract_strided_slice %33 {offsets = [0, 256], sizes = [16, 128], strides = [1, 1]} : vector<16x384xf32> to vector<16x128xf32>
    %37 = tpu.iota {dimensions = array<i32: 0>} : vector<8x8xi32>
    %38 = tpu.iota {dimensions = array<i32: 1>} : vector<8x8xi32>
    %39 = arith.cmpi sle, %38, %37 : vector<8x8xi32>
    %40 = vector.extract_strided_slice %34 {offsets = [0, 0], sizes = [8, 128], strides = [1, 1]} : vector<16x128xf32> to vector<8x128xf32>
    %41 = vector.extract_strided_slice %35 {offsets = [0, 0], sizes = [8, 128], strides = [1, 1]} : vector<16x128xf32> to vector<8x128xf32>
    %42 = vector.extract_strided_slice %36 {offsets = [0, 0], sizes = [8, 128], strides = [1, 1]} : vector<16x128xf32> to vector<8x128xf32>
    %43 = vector.extract_strided_slice %40 {offsets = [0, 0], sizes = [8, 32], strides = [1, 1]} : vector<8x128xf32> to vector<8x32xf32>
    %44 = arith.truncf %43 : vector<8x32xf32> to vector<8x32xbf16>
    %45 = vector.extract_strided_slice %41 {offsets = [0, 0], sizes = [8, 32], strides = [1, 1]} : vector<8x128xf32> to vector<8x32xf32>
    %46 = arith.truncf %45 : vector<8x32xf32> to vector<8x32xbf16>
    %47 = vector.extract_strided_slice %42 {offsets = [0, 0], sizes = [8, 32], strides = [1, 1]} : vector<8x128xf32> to vector<8x32xf32>
    %48 = arith.truncf %47 : vector<8x32xf32> to vector<8x32xbf16>
    %cst_18 = arith.constant dense<0.000000e+00> : vector<8x8xf32>
    %49 = tpu.matmul %44, %46, %cst_18 {dimension_numbers = #tpu.dot_dimension_numbers<[1], [1], [0], [0], [0, 0, 1, 0], [], []>} : vector<8x32xbf16>, vector<8x32xbf16>, vector<8x8xf32> -> vector<8x8xf32>
    %cst_19 = arith.constant 0.176776692 : f32
    %50 = vector.broadcast %cst_19 : f32 to vector<8x8xf32>
    %51 = arith.mulf %49, %50 : vector<8x8xf32>
    %cst_20 = arith.constant -1.000000e+30 : f32
    %52 = vector.broadcast %cst_20 : f32 to vector<8x8xf32>
    %53 = arith.select %39, %51, %52 : vector<8x8xi1>, vector<8x8xf32>
    %cst_21 = arith.constant dense<0xFF800000> : vector<8xf32>
    %54 = vector.multi_reduction <maximumf>, %53, %cst_21 [1] : vector<8x8xf32> to vector<8xf32>
    %55 = vector.shape_cast %54 : vector<8xf32> to vector<8x1xf32>
    %56 = vector.broadcast %55 : vector<8x1xf32> to vector<8x8xf32>
    %57 = arith.subf %53, %56 : vector<8x8xf32>
    %58 = math.exp %57 : vector<8x8xf32>
    %cst_22 = arith.constant dense<0.000000e+00> : vector<8xf32>
    %59 = vector.multi_reduction <add>, %58, %cst_22 [1] : vector<8x8xf32> to vector<8xf32>
    %60 = vector.shape_cast %59 : vector<8xf32> to vector<8x1xf32>
    %61 = vector.broadcast %60 : vector<8x1xf32> to vector<8x8xf32>
    %62 = arith.divf %58, %61 : vector<8x8xf32>
    %63 = arith.truncf %62 : vector<8x8xf32> to vector<8x8xbf16>
    %cst_23 = arith.constant dense<0.000000e+00> : vector<8x32xf32>
    %64 = tpu.matmul %63, %48, %cst_23 {dimension_numbers = #tpu.dot_dimension_numbers<[1], [0], [0], [1], [0, 0, 1, 1], [], []>} : vector<8x8xbf16>, vector<8x32xbf16>, vector<8x32xf32> -> vector<8x32xf32>
    %65 = vector.extract_strided_slice %40 {offsets = [0, 32], sizes = [8, 32], strides = [1, 1]} : vector<8x128xf32> to vector<8x32xf32>
    %66 = arith.truncf %65 : vector<8x32xf32> to vector<8x32xbf16>
    %67 = vector.extract_strided_slice %41 {offsets = [0, 32], sizes = [8, 32], strides = [1, 1]} : vector<8x128xf32> to vector<8x32xf32>
    %68 = arith.truncf %67 : vector<8x32xf32> to vector<8x32xbf16>
    %69 = vector.extract_strided_slice %42 {offsets = [0, 32], sizes = [8, 32], strides = [1, 1]} : vector<8x128xf32> to vector<8x32xf32>
    %70 = arith.truncf %69 : vector<8x32xf32> to vector<8x32xbf16>
    %cst_24 = arith.constant dense<0.000000e+00> : vector<8x8xf32>
    %71 = tpu.matmul %66, %68, %cst_24 {dimension_numbers = #tpu.dot_dimension_numbers<[1], [1], [0], [0], [0, 0, 1, 0], [], []>} : vector<8x32xbf16>, vector<8x32xbf16>, vector<8x8xf32> -> vector<8x8xf32>
    %cst_25 = arith.constant 0.176776692 : f32
    %72 = vector.broadcast %cst_25 : f32 to vector<8x8xf32>
    %73 = arith.mulf %71, %72 : vector<8x8xf32>
    %cst_26 = arith.constant -1.000000e+30 : f32
    %74 = vector.broadcast %cst_26 : f32 to vector<8x8xf32>
    %75 = arith.select %39, %73, %74 : vector<8x8xi1>, vector<8x8xf32>
    %cst_27 = arith.constant dense<0xFF800000> : vector<8xf32>
    %76 = vector.multi_reduction <maximumf>, %75, %cst_27 [1] : vector<8x8xf32> to vector<8xf32>
    %77 = vector.shape_cast %76 : vector<8xf32> to vector<8x1xf32>
    %78 = vector.broadcast %77 : vector<8x1xf32> to vector<8x8xf32>
    %79 = arith.subf %75, %78 : vector<8x8xf32>
    %80 = math.exp %79 : vector<8x8xf32>
    %cst_28 = arith.constant dense<0.000000e+00> : vector<8xf32>
    %81 = vector.multi_reduction <add>, %80, %cst_28 [1] : vector<8x8xf32> to vector<8xf32>
    %82 = vector.shape_cast %81 : vector<8xf32> to vector<8x1xf32>
    %83 = vector.broadcast %82 : vector<8x1xf32> to vector<8x8xf32>
    %84 = arith.divf %80, %83 : vector<8x8xf32>
    %85 = arith.truncf %84 : vector<8x8xf32> to vector<8x8xbf16>
    %cst_29 = arith.constant dense<0.000000e+00> : vector<8x32xf32>
    %86 = tpu.matmul %85, %70, %cst_29 {dimension_numbers = #tpu.dot_dimension_numbers<[1], [0], [0], [1], [0, 0, 1, 1], [], []>} : vector<8x8xbf16>, vector<8x32xbf16>, vector<8x32xf32> -> vector<8x32xf32>
    %87 = vector.extract_strided_slice %40 {offsets = [0, 64], sizes = [8, 32], strides = [1, 1]} : vector<8x128xf32> to vector<8x32xf32>
    %88 = arith.truncf %87 : vector<8x32xf32> to vector<8x32xbf16>
    %89 = vector.extract_strided_slice %41 {offsets = [0, 64], sizes = [8, 32], strides = [1, 1]} : vector<8x128xf32> to vector<8x32xf32>
    %90 = arith.truncf %89 : vector<8x32xf32> to vector<8x32xbf16>
    %91 = vector.extract_strided_slice %42 {offsets = [0, 64], sizes = [8, 32], strides = [1, 1]} : vector<8x128xf32> to vector<8x32xf32>
    %92 = arith.truncf %91 : vector<8x32xf32> to vector<8x32xbf16>
    %cst_30 = arith.constant dense<0.000000e+00> : vector<8x8xf32>
    %93 = tpu.matmul %88, %90, %cst_30 {dimension_numbers = #tpu.dot_dimension_numbers<[1], [1], [0], [0], [0, 0, 1, 0], [], []>} : vector<8x32xbf16>, vector<8x32xbf16>, vector<8x8xf32> -> vector<8x8xf32>
    %cst_31 = arith.constant 0.176776692 : f32
    %94 = vector.broadcast %cst_31 : f32 to vector<8x8xf32>
    %95 = arith.mulf %93, %94 : vector<8x8xf32>
    %cst_32 = arith.constant -1.000000e+30 : f32
    %96 = vector.broadcast %cst_32 : f32 to vector<8x8xf32>
    %97 = arith.select %39, %95, %96 : vector<8x8xi1>, vector<8x8xf32>
    %cst_33 = arith.constant dense<0xFF800000> : vector<8xf32>
    %98 = vector.multi_reduction <maximumf>, %97, %cst_33 [1] : vector<8x8xf32> to vector<8xf32>
    %99 = vector.shape_cast %98 : vector<8xf32> to vector<8x1xf32>
    %100 = vector.broadcast %99 : vector<8x1xf32> to vector<8x8xf32>
    %101 = arith.subf %97, %100 : vector<8x8xf32>
    %102 = math.exp %101 : vector<8x8xf32>
    %cst_34 = arith.constant dense<0.000000e+00> : vector<8xf32>
    %103 = vector.multi_reduction <add>, %102, %cst_34 [1] : vector<8x8xf32> to vector<8xf32>
    %104 = vector.shape_cast %103 : vector<8xf32> to vector<8x1xf32>
    %105 = vector.broadcast %104 : vector<8x1xf32> to vector<8x8xf32>
    %106 = arith.divf %102, %105 : vector<8x8xf32>
    %107 = arith.truncf %106 : vector<8x8xf32> to vector<8x8xbf16>
    %cst_35 = arith.constant dense<0.000000e+00> : vector<8x32xf32>
    %108 = tpu.matmul %107, %92, %cst_35 {dimension_numbers = #tpu.dot_dimension_numbers<[1], [0], [0], [1], [0, 0, 1, 1], [], []>} : vector<8x8xbf16>, vector<8x32xbf16>, vector<8x32xf32> -> vector<8x32xf32>
    %109 = vector.extract_strided_slice %40 {offsets = [0, 96], sizes = [8, 32], strides = [1, 1]} : vector<8x128xf32> to vector<8x32xf32>
    %110 = arith.truncf %109 : vector<8x32xf32> to vector<8x32xbf16>
    %111 = vector.extract_strided_slice %41 {offsets = [0, 96], sizes = [8, 32], strides = [1, 1]} : vector<8x128xf32> to vector<8x32xf32>
    %112 = arith.truncf %111 : vector<8x32xf32> to vector<8x32xbf16>
    %113 = vector.extract_strided_slice %42 {offsets = [0, 96], sizes = [8, 32], strides = [1, 1]} : vector<8x128xf32> to vector<8x32xf32>
    %114 = arith.truncf %113 : vector<8x32xf32> to vector<8x32xbf16>
    %cst_36 = arith.constant dense<0.000000e+00> : vector<8x8xf32>
    %115 = tpu.matmul %110, %112, %cst_36 {dimension_numbers = #tpu.dot_dimension_numbers<[1], [1], [0], [0], [0, 0, 1, 0], [], []>} : vector<8x32xbf16>, vector<8x32xbf16>, vector<8x8xf32> -> vector<8x8xf32>
    %cst_37 = arith.constant 0.176776692 : f32
    %116 = vector.broadcast %cst_37 : f32 to vector<8x8xf32>
    %117 = arith.mulf %115, %116 : vector<8x8xf32>
    %cst_38 = arith.constant -1.000000e+30 : f32
    %118 = vector.broadcast %cst_38 : f32 to vector<8x8xf32>
    %119 = arith.select %39, %117, %118 : vector<8x8xi1>, vector<8x8xf32>
    %cst_39 = arith.constant dense<0xFF800000> : vector<8xf32>
    %120 = vector.multi_reduction <maximumf>, %119, %cst_39 [1] : vector<8x8xf32> to vector<8xf32>
    %121 = vector.shape_cast %120 : vector<8xf32> to vector<8x1xf32>
    %122 = vector.broadcast %121 : vector<8x1xf32> to vector<8x8xf32>
    %123 = arith.subf %119, %122 : vector<8x8xf32>
    %124 = math.exp %123 : vector<8x8xf32>
    %cst_40 = arith.constant dense<0.000000e+00> : vector<8xf32>
    %125 = vector.multi_reduction <add>, %124, %cst_40 [1] : vector<8x8xf32> to vector<8xf32>
    %126 = vector.shape_cast %125 : vector<8xf32> to vector<8x1xf32>
    %127 = vector.broadcast %126 : vector<8x1xf32> to vector<8x8xf32>
    %128 = arith.divf %124, %127 : vector<8x8xf32>
    %129 = arith.truncf %128 : vector<8x8xf32> to vector<8x8xbf16>
    %cst_41 = arith.constant dense<0.000000e+00> : vector<8x32xf32>
    %130 = tpu.matmul %129, %114, %cst_41 {dimension_numbers = #tpu.dot_dimension_numbers<[1], [0], [0], [1], [0, 0, 1, 1], [], []>} : vector<8x8xbf16>, vector<8x32xbf16>, vector<8x32xf32> -> vector<8x32xf32>
    %131 = tpu.concatenate %64, %86, %108, %130 in 1 : vector<8x32xf32>, vector<8x32xf32>, vector<8x32xf32>, vector<8x32xf32> -> vector<8x128xf32>
    %132 = vector.extract_strided_slice %34 {offsets = [8, 0], sizes = [8, 128], strides = [1, 1]} : vector<16x128xf32> to vector<8x128xf32>
    %133 = vector.extract_strided_slice %35 {offsets = [8, 0], sizes = [8, 128], strides = [1, 1]} : vector<16x128xf32> to vector<8x128xf32>
    %134 = vector.extract_strided_slice %36 {offsets = [8, 0], sizes = [8, 128], strides = [1, 1]} : vector<16x128xf32> to vector<8x128xf32>
    %135 = vector.extract_strided_slice %132 {offsets = [0, 0], sizes = [8, 32], strides = [1, 1]} : vector<8x128xf32> to vector<8x32xf32>
    %136 = arith.truncf %135 : vector<8x32xf32> to vector<8x32xbf16>
    %137 = vector.extract_strided_slice %133 {offsets = [0, 0], sizes = [8, 32], strides = [1, 1]} : vector<8x128xf32> to vector<8x32xf32>
    %138 = arith.truncf %137 : vector<8x32xf32> to vector<8x32xbf16>
    %139 = vector.extract_strided_slice %134 {offsets = [0, 0], sizes = [8, 32], strides = [1, 1]} : vector<8x128xf32> to vector<8x32xf32>
    %140 = arith.truncf %139 : vector<8x32xf32> to vector<8x32xbf16>
    %cst_42 = arith.constant dense<0.000000e+00> : vector<8x8xf32>
    %141 = tpu.matmul %136, %138, %cst_42 {dimension_numbers = #tpu.dot_dimension_numbers<[1], [1], [0], [0], [0, 0, 1, 0], [], []>} : vector<8x32xbf16>, vector<8x32xbf16>, vector<8x8xf32> -> vector<8x8xf32>
    %cst_43 = arith.constant 0.176776692 : f32
    %142 = vector.broadcast %cst_43 : f32 to vector<8x8xf32>
    %143 = arith.mulf %141, %142 : vector<8x8xf32>
    %cst_44 = arith.constant -1.000000e+30 : f32
    %144 = vector.broadcast %cst_44 : f32 to vector<8x8xf32>
    %145 = arith.select %39, %143, %144 : vector<8x8xi1>, vector<8x8xf32>
    %cst_45 = arith.constant dense<0xFF800000> : vector<8xf32>
    %146 = vector.multi_reduction <maximumf>, %145, %cst_45 [1] : vector<8x8xf32> to vector<8xf32>
    %147 = vector.shape_cast %146 : vector<8xf32> to vector<8x1xf32>
    %148 = vector.broadcast %147 : vector<8x1xf32> to vector<8x8xf32>
    %149 = arith.subf %145, %148 : vector<8x8xf32>
    %150 = math.exp %149 : vector<8x8xf32>
    %cst_46 = arith.constant dense<0.000000e+00> : vector<8xf32>
    %151 = vector.multi_reduction <add>, %150, %cst_46 [1] : vector<8x8xf32> to vector<8xf32>
    %152 = vector.shape_cast %151 : vector<8xf32> to vector<8x1xf32>
    %153 = vector.broadcast %152 : vector<8x1xf32> to vector<8x8xf32>
    %154 = arith.divf %150, %153 : vector<8x8xf32>
    %155 = arith.truncf %154 : vector<8x8xf32> to vector<8x8xbf16>
    %cst_47 = arith.constant dense<0.000000e+00> : vector<8x32xf32>
    %156 = tpu.matmul %155, %140, %cst_47 {dimension_numbers = #tpu.dot_dimension_numbers<[1], [0], [0], [1], [0, 0, 1, 1], [], []>} : vector<8x8xbf16>, vector<8x32xbf16>, vector<8x32xf32> -> vector<8x32xf32>
    %157 = vector.extract_strided_slice %132 {offsets = [0, 32], sizes = [8, 32], strides = [1, 1]} : vector<8x128xf32> to vector<8x32xf32>
    %158 = arith.truncf %157 : vector<8x32xf32> to vector<8x32xbf16>
    %159 = vector.extract_strided_slice %133 {offsets = [0, 32], sizes = [8, 32], strides = [1, 1]} : vector<8x128xf32> to vector<8x32xf32>
    %160 = arith.truncf %159 : vector<8x32xf32> to vector<8x32xbf16>
    %161 = vector.extract_strided_slice %134 {offsets = [0, 32], sizes = [8, 32], strides = [1, 1]} : vector<8x128xf32> to vector<8x32xf32>
    %162 = arith.truncf %161 : vector<8x32xf32> to vector<8x32xbf16>
    %cst_48 = arith.constant dense<0.000000e+00> : vector<8x8xf32>
    %163 = tpu.matmul %158, %160, %cst_48 {dimension_numbers = #tpu.dot_dimension_numbers<[1], [1], [0], [0], [0, 0, 1, 0], [], []>} : vector<8x32xbf16>, vector<8x32xbf16>, vector<8x8xf32> -> vector<8x8xf32>
    %cst_49 = arith.constant 0.176776692 : f32
    %164 = vector.broadcast %cst_49 : f32 to vector<8x8xf32>
    %165 = arith.mulf %163, %164 : vector<8x8xf32>
    %cst_50 = arith.constant -1.000000e+30 : f32
    %166 = vector.broadcast %cst_50 : f32 to vector<8x8xf32>
    %167 = arith.select %39, %165, %166 : vector<8x8xi1>, vector<8x8xf32>
    %cst_51 = arith.constant dense<0xFF800000> : vector<8xf32>
    %168 = vector.multi_reduction <maximumf>, %167, %cst_51 [1] : vector<8x8xf32> to vector<8xf32>
    %169 = vector.shape_cast %168 : vector<8xf32> to vector<8x1xf32>
    %170 = vector.broadcast %169 : vector<8x1xf32> to vector<8x8xf32>
    %171 = arith.subf %167, %170 : vector<8x8xf32>
    %172 = math.exp %171 : vector<8x8xf32>
    %cst_52 = arith.constant dense<0.000000e+00> : vector<8xf32>
    %173 = vector.multi_reduction <add>, %172, %cst_52 [1] : vector<8x8xf32> to vector<8xf32>
    %174 = vector.shape_cast %173 : vector<8xf32> to vector<8x1xf32>
    %175 = vector.broadcast %174 : vector<8x1xf32> to vector<8x8xf32>
    %176 = arith.divf %172, %175 : vector<8x8xf32>
    %177 = arith.truncf %176 : vector<8x8xf32> to vector<8x8xbf16>
    %cst_53 = arith.constant dense<0.000000e+00> : vector<8x32xf32>
    %178 = tpu.matmul %177, %162, %cst_53 {dimension_numbers = #tpu.dot_dimension_numbers<[1], [0], [0], [1], [0, 0, 1, 1], [], []>} : vector<8x8xbf16>, vector<8x32xbf16>, vector<8x32xf32> -> vector<8x32xf32>
    %179 = vector.extract_strided_slice %132 {offsets = [0, 64], sizes = [8, 32], strides = [1, 1]} : vector<8x128xf32> to vector<8x32xf32>
    %180 = arith.truncf %179 : vector<8x32xf32> to vector<8x32xbf16>
    %181 = vector.extract_strided_slice %133 {offsets = [0, 64], sizes = [8, 32], strides = [1, 1]} : vector<8x128xf32> to vector<8x32xf32>
    %182 = arith.truncf %181 : vector<8x32xf32> to vector<8x32xbf16>
    %183 = vector.extract_strided_slice %134 {offsets = [0, 64], sizes = [8, 32], strides = [1, 1]} : vector<8x128xf32> to vector<8x32xf32>
    %184 = arith.truncf %183 : vector<8x32xf32> to vector<8x32xbf16>
    %cst_54 = arith.constant dense<0.000000e+00> : vector<8x8xf32>
    %185 = tpu.matmul %180, %182, %cst_54 {dimension_numbers = #tpu.dot_dimension_numbers<[1], [1], [0], [0], [0, 0, 1, 0], [], []>} : vector<8x32xbf16>, vector<8x32xbf16>, vector<8x8xf32> -> vector<8x8xf32>
    %cst_55 = arith.constant 0.176776692 : f32
    %186 = vector.broadcast %cst_55 : f32 to vector<8x8xf32>
    %187 = arith.mulf %185, %186 : vector<8x8xf32>
    %cst_56 = arith.constant -1.000000e+30 : f32
    %188 = vector.broadcast %cst_56 : f32 to vector<8x8xf32>
    %189 = arith.select %39, %187, %188 : vector<8x8xi1>, vector<8x8xf32>
    %cst_57 = arith.constant dense<0xFF800000> : vector<8xf32>
    %190 = vector.multi_reduction <maximumf>, %189, %cst_57 [1] : vector<8x8xf32> to vector<8xf32>
    %191 = vector.shape_cast %190 : vector<8xf32> to vector<8x1xf32>
    %192 = vector.broadcast %191 : vector<8x1xf32> to vector<8x8xf32>
    %193 = arith.subf %189, %192 : vector<8x8xf32>
    %194 = math.exp %193 : vector<8x8xf32>
    %cst_58 = arith.constant dense<0.000000e+00> : vector<8xf32>
    %195 = vector.multi_reduction <add>, %194, %cst_58 [1] : vector<8x8xf32> to vector<8xf32>
    %196 = vector.shape_cast %195 : vector<8xf32> to vector<8x1xf32>
    %197 = vector.broadcast %196 : vector<8x1xf32> to vector<8x8xf32>
    %198 = arith.divf %194, %197 : vector<8x8xf32>
    %199 = arith.truncf %198 : vector<8x8xf32> to vector<8x8xbf16>
    %cst_59 = arith.constant dense<0.000000e+00> : vector<8x32xf32>
    %200 = tpu.matmul %199, %184, %cst_59 {dimension_numbers = #tpu.dot_dimension_numbers<[1], [0], [0], [1], [0, 0, 1, 1], [], []>} : vector<8x8xbf16>, vector<8x32xbf16>, vector<8x32xf32> -> vector<8x32xf32>
    %201 = vector.extract_strided_slice %132 {offsets = [0, 96], sizes = [8, 32], strides = [1, 1]} : vector<8x128xf32> to vector<8x32xf32>
    %202 = arith.truncf %201 : vector<8x32xf32> to vector<8x32xbf16>
    %203 = vector.extract_strided_slice %133 {offsets = [0, 96], sizes = [8, 32], strides = [1, 1]} : vector<8x128xf32> to vector<8x32xf32>
    %204 = arith.truncf %203 : vector<8x32xf32> to vector<8x32xbf16>
    %205 = vector.extract_strided_slice %134 {offsets = [0, 96], sizes = [8, 32], strides = [1, 1]} : vector<8x128xf32> to vector<8x32xf32>
    %206 = arith.truncf %205 : vector<8x32xf32> to vector<8x32xbf16>
    %cst_60 = arith.constant dense<0.000000e+00> : vector<8x8xf32>
    %207 = tpu.matmul %202, %204, %cst_60 {dimension_numbers = #tpu.dot_dimension_numbers<[1], [1], [0], [0], [0, 0, 1, 0], [], []>} : vector<8x32xbf16>, vector<8x32xbf16>, vector<8x8xf32> -> vector<8x8xf32>
    %cst_61 = arith.constant 0.176776692 : f32
    %208 = vector.broadcast %cst_61 : f32 to vector<8x8xf32>
    %209 = arith.mulf %207, %208 : vector<8x8xf32>
    %cst_62 = arith.constant -1.000000e+30 : f32
    %210 = vector.broadcast %cst_62 : f32 to vector<8x8xf32>
    %211 = arith.select %39, %209, %210 : vector<8x8xi1>, vector<8x8xf32>
    %cst_63 = arith.constant dense<0xFF800000> : vector<8xf32>
    %212 = vector.multi_reduction <maximumf>, %211, %cst_63 [1] : vector<8x8xf32> to vector<8xf32>
    %213 = vector.shape_cast %212 : vector<8xf32> to vector<8x1xf32>
    %214 = vector.broadcast %213 : vector<8x1xf32> to vector<8x8xf32>
    %215 = arith.subf %211, %214 : vector<8x8xf32>
    %216 = math.exp %215 : vector<8x8xf32>
    %cst_64 = arith.constant dense<0.000000e+00> : vector<8xf32>
    %217 = vector.multi_reduction <add>, %216, %cst_64 [1] : vector<8x8xf32> to vector<8xf32>
    %218 = vector.shape_cast %217 : vector<8xf32> to vector<8x1xf32>
    %219 = vector.broadcast %218 : vector<8x1xf32> to vector<8x8xf32>
    %220 = arith.divf %216, %219 : vector<8x8xf32>
    %221 = arith.truncf %220 : vector<8x8xf32> to vector<8x8xbf16>
    %cst_65 = arith.constant dense<0.000000e+00> : vector<8x32xf32>
    %222 = tpu.matmul %221, %206, %cst_65 {dimension_numbers = #tpu.dot_dimension_numbers<[1], [0], [0], [1], [0, 0, 1, 1], [], []>} : vector<8x8xbf16>, vector<8x32xbf16>, vector<8x32xf32> -> vector<8x32xf32>
    %223 = tpu.concatenate %156, %178, %200, %222 in 1 : vector<8x32xf32>, vector<8x32xf32>, vector<8x32xf32>, vector<8x32xf32> -> vector<8x128xf32>
    %224 = tpu.concatenate %131, %223 in 0 : vector<8x128xf32>, vector<8x128xf32> -> vector<16x128xf32>
    %225 = arith.truncf %224 : vector<16x128xf32> to vector<16x128xbf16>
    %c0_66 = arith.constant 0 : index
    %c0_67 = arith.constant 0 : index
    %226 = vector.load %arg7[%c0_66, %c0_67] : memref<128x128xbf16, #tpu.memory_space<vmem>>, vector<128x128xbf16>
    %cst_68 = arith.constant dense<0.000000e+00> : vector<16x128xf32>
    %227 = tpu.matmul %225, %226, %cst_68 {dimension_numbers = #tpu.dot_dimension_numbers<[1], [0], [0], [1], [0, 0, 1, 1], [], []>} : vector<16x128xbf16>, vector<128x128xbf16>, vector<16x128xf32> -> vector<16x128xf32>
    %228 = arith.addf %1, %227 : vector<16x128xf32>
    %c0_69 = arith.constant 0 : index
    %c0_70 = arith.constant 0 : index
    %229 = vector.load %arg8[%c0_69, %c0_70] : memref<1x128xf32, #tpu.memory_space<vmem>>, vector<1x128xf32>
    %230 = vector.broadcast %229 : vector<1x128xf32> to vector<16x128xf32>
    %231 = arith.addf %228, %230 : vector<16x128xf32>
    %cst_71 = arith.constant dense<0.000000e+00> : vector<16xf32>
    %232 = vector.multi_reduction <add>, %231, %cst_71 [1] : vector<16x128xf32> to vector<16xf32>
    %233 = vector.shape_cast %232 : vector<16xf32> to vector<16x1xf32>
    %cst_72 = arith.constant 1.280000e+02 : f32
    %234 = vector.broadcast %cst_72 : f32 to vector<16x1xf32>
    %235 = arith.divf %233, %234 : vector<16x1xf32>
    %236 = vector.broadcast %235 : vector<16x1xf32> to vector<16x128xf32>
    %237 = arith.subf %231, %236 : vector<16x128xf32>
    %238 = arith.mulf %237, %237 : vector<16x128xf32>
    %cst_73 = arith.constant dense<0.000000e+00> : vector<16xf32>
    %239 = vector.multi_reduction <add>, %238, %cst_73 [1] : vector<16x128xf32> to vector<16xf32>
    %240 = vector.shape_cast %239 : vector<16xf32> to vector<16x1xf32>
    %cst_74 = arith.constant 1.280000e+02 : f32
    %241 = vector.broadcast %cst_74 : f32 to vector<16x1xf32>
    %242 = arith.divf %240, %241 : vector<16x1xf32>
    %243 = vector.broadcast %235 : vector<16x1xf32> to vector<16x128xf32>
    %244 = arith.subf %231, %243 : vector<16x128xf32>
    %cst_75 = arith.constant 9.99999974E-6 : f32
    %245 = vector.broadcast %cst_75 : f32 to vector<16x1xf32>
    %246 = arith.addf %242, %245 : vector<16x1xf32>
    %247 = math.rsqrt %246 : vector<16x1xf32>
    %248 = vector.broadcast %247 : vector<16x1xf32> to vector<16x128xf32>
    %249 = arith.mulf %244, %248 : vector<16x128xf32>
    %c0_76 = arith.constant 0 : index
    %c0_77 = arith.constant 0 : index
    %250 = vector.load %arg9[%c0_76, %c0_77] : memref<1x128xf32, #tpu.memory_space<vmem>>, vector<1x128xf32>
    %251 = vector.broadcast %250 : vector<1x128xf32> to vector<16x128xf32>
    %252 = arith.mulf %249, %251 : vector<16x128xf32>
    %c0_78 = arith.constant 0 : index
    %c0_79 = arith.constant 0 : index
    %253 = vector.load %arg10[%c0_78, %c0_79] : memref<1x128xf32, #tpu.memory_space<vmem>>, vector<1x128xf32>
    %254 = vector.broadcast %253 : vector<1x128xf32> to vector<16x128xf32>
    %255 = arith.addf %252, %254 : vector<16x128xf32>
    %256 = arith.truncf %255 : vector<16x128xf32> to vector<16x128xbf16>
    %c0_80 = arith.constant 0 : index
    %c0_81 = arith.constant 0 : index
    %257 = vector.load %arg11[%c0_80, %c0_81] : memref<128x128xbf16, #tpu.memory_space<vmem>>, vector<128x128xbf16>
    %cst_82 = arith.constant dense<0.000000e+00> : vector<16x128xf32>
    %258 = tpu.matmul %256, %257, %cst_82 {dimension_numbers = #tpu.dot_dimension_numbers<[1], [0], [0], [1], [0, 0, 1, 1], [], []>} : vector<16x128xbf16>, vector<128x128xbf16>, vector<16x128xf32> -> vector<16x128xf32>
    %c0_83 = arith.constant 0 : index
    %c0_84 = arith.constant 0 : index
    %259 = vector.load %arg12[%c0_83, %c0_84] : memref<1x128xf32, #tpu.memory_space<vmem>>, vector<1x128xf32>
    %260 = vector.broadcast %259 : vector<1x128xf32> to vector<16x128xf32>
    %261 = arith.addf %258, %260 : vector<16x128xf32>
    %262 = arith.truncf %3 : vector<32x128xf32> to vector<32x128xbf16>
    %c0_85 = arith.constant 0 : index
    %c0_86 = arith.constant 0 : index
    %263 = vector.load %arg13[%c0_85, %c0_86] : memref<128x256xbf16, #tpu.memory_space<vmem>>, vector<128x256xbf16>
    %cst_87 = arith.constant dense<0.000000e+00> : vector<32x256xf32>
    %264 = tpu.matmul %262, %263, %cst_87 {dimension_numbers = #tpu.dot_dimension_numbers<[1], [0], [0], [1], [0, 0, 1, 1], [], []>} : vector<32x128xbf16>, vector<128x256xbf16>, vector<32x256xf32> -> vector<32x256xf32>
    %c0_88 = arith.constant 0 : index
    %c0_89 = arith.constant 0 : index
    %265 = vector.load %arg14[%c0_88, %c0_89] : memref<1x256xf32, #tpu.memory_space<vmem>>, vector<1x256xf32>
    %266 = vector.broadcast %265 : vector<1x256xf32> to vector<32x256xf32>
    %267 = arith.addf %264, %266 : vector<32x256xf32>
    %268 = vector.extract_strided_slice %267 {offsets = [0, 0], sizes = [32, 128], strides = [1, 1]} : vector<32x256xf32> to vector<32x128xf32>
    %269 = vector.extract_strided_slice %267 {offsets = [0, 128], sizes = [32, 128], strides = [1, 1]} : vector<32x256xf32> to vector<32x128xf32>
    %270 = vector.extract_strided_slice %261 {offsets = [0, 0], sizes = [8, 128], strides = [1, 1]} : vector<16x128xf32> to vector<8x128xf32>
    %271 = vector.extract_strided_slice %268 {offsets = [0, 0], sizes = [16, 128], strides = [1, 1]} : vector<32x128xf32> to vector<16x128xf32>
    %272 = vector.extract_strided_slice %269 {offsets = [0, 0], sizes = [16, 128], strides = [1, 1]} : vector<32x128xf32> to vector<16x128xf32>
    %273 = vector.extract_strided_slice %270 {offsets = [0, 0], sizes = [8, 32], strides = [1, 1]} : vector<8x128xf32> to vector<8x32xf32>
    %274 = arith.truncf %273 : vector<8x32xf32> to vector<8x32xbf16>
    %275 = vector.extract_strided_slice %271 {offsets = [0, 0], sizes = [16, 32], strides = [1, 1]} : vector<16x128xf32> to vector<16x32xf32>
    %276 = arith.truncf %275 : vector<16x32xf32> to vector<16x32xbf16>
    %277 = vector.extract_strided_slice %272 {offsets = [0, 0], sizes = [16, 32], strides = [1, 1]} : vector<16x128xf32> to vector<16x32xf32>
    %278 = arith.truncf %277 : vector<16x32xf32> to vector<16x32xbf16>
    %cst_90 = arith.constant dense<0.000000e+00> : vector<8x16xf32>
    %279 = tpu.matmul %274, %276, %cst_90 {dimension_numbers = #tpu.dot_dimension_numbers<[1], [1], [0], [0], [0, 0, 1, 0], [], []>} : vector<8x32xbf16>, vector<16x32xbf16>, vector<8x16xf32> -> vector<8x16xf32>
    %cst_91 = arith.constant 0.176776692 : f32
    %280 = vector.broadcast %cst_91 : f32 to vector<8x16xf32>
    %281 = arith.mulf %279, %280 : vector<8x16xf32>
    %cst_92 = arith.constant dense<0xFF800000> : vector<8xf32>
    %282 = vector.multi_reduction <maximumf>, %281, %cst_92 [1] : vector<8x16xf32> to vector<8xf32>
    %283 = vector.shape_cast %282 : vector<8xf32> to vector<8x1xf32>
    %284 = vector.broadcast %283 : vector<8x1xf32> to vector<8x16xf32>
    %285 = arith.subf %281, %284 : vector<8x16xf32>
    %286 = math.exp %285 : vector<8x16xf32>
    %cst_93 = arith.constant dense<0.000000e+00> : vector<8xf32>
    %287 = vector.multi_reduction <add>, %286, %cst_93 [1] : vector<8x16xf32> to vector<8xf32>
    %288 = vector.shape_cast %287 : vector<8xf32> to vector<8x1xf32>
    %289 = vector.broadcast %288 : vector<8x1xf32> to vector<8x16xf32>
    %290 = arith.divf %286, %289 : vector<8x16xf32>
    %291 = arith.truncf %290 : vector<8x16xf32> to vector<8x16xbf16>
    %cst_94 = arith.constant dense<0.000000e+00> : vector<8x32xf32>
    %292 = tpu.matmul %291, %278, %cst_94 {dimension_numbers = #tpu.dot_dimension_numbers<[1], [0], [0], [1], [0, 0, 1, 1], [], []>} : vector<8x16xbf16>, vector<16x32xbf16>, vector<8x32xf32> -> vector<8x32xf32>
    %293 = vector.extract_strided_slice %270 {offsets = [0, 32], sizes = [8, 32], strides = [1, 1]} : vector<8x128xf32> to vector<8x32xf32>
    %294 = arith.truncf %293 : vector<8x32xf32> to vector<8x32xbf16>
    %295 = vector.extract_strided_slice %271 {offsets = [0, 32], sizes = [16, 32], strides = [1, 1]} : vector<16x128xf32> to vector<16x32xf32>
    %296 = arith.truncf %295 : vector<16x32xf32> to vector<16x32xbf16>
    %297 = vector.extract_strided_slice %272 {offsets = [0, 32], sizes = [16, 32], strides = [1, 1]} : vector<16x128xf32> to vector<16x32xf32>
    %298 = arith.truncf %297 : vector<16x32xf32> to vector<16x32xbf16>
    %cst_95 = arith.constant dense<0.000000e+00> : vector<8x16xf32>
    %299 = tpu.matmul %294, %296, %cst_95 {dimension_numbers = #tpu.dot_dimension_numbers<[1], [1], [0], [0], [0, 0, 1, 0], [], []>} : vector<8x32xbf16>, vector<16x32xbf16>, vector<8x16xf32> -> vector<8x16xf32>
    %cst_96 = arith.constant 0.176776692 : f32
    %300 = vector.broadcast %cst_96 : f32 to vector<8x16xf32>
    %301 = arith.mulf %299, %300 : vector<8x16xf32>
    %cst_97 = arith.constant dense<0xFF800000> : vector<8xf32>
    %302 = vector.multi_reduction <maximumf>, %301, %cst_97 [1] : vector<8x16xf32> to vector<8xf32>
    %303 = vector.shape_cast %302 : vector<8xf32> to vector<8x1xf32>
    %304 = vector.broadcast %303 : vector<8x1xf32> to vector<8x16xf32>
    %305 = arith.subf %301, %304 : vector<8x16xf32>
    %306 = math.exp %305 : vector<8x16xf32>
    %cst_98 = arith.constant dense<0.000000e+00> : vector<8xf32>
    %307 = vector.multi_reduction <add>, %306, %cst_98 [1] : vector<8x16xf32> to vector<8xf32>
    %308 = vector.shape_cast %307 : vector<8xf32> to vector<8x1xf32>
    %309 = vector.broadcast %308 : vector<8x1xf32> to vector<8x16xf32>
    %310 = arith.divf %306, %309 : vector<8x16xf32>
    %311 = arith.truncf %310 : vector<8x16xf32> to vector<8x16xbf16>
    %cst_99 = arith.constant dense<0.000000e+00> : vector<8x32xf32>
    %312 = tpu.matmul %311, %298, %cst_99 {dimension_numbers = #tpu.dot_dimension_numbers<[1], [0], [0], [1], [0, 0, 1, 1], [], []>} : vector<8x16xbf16>, vector<16x32xbf16>, vector<8x32xf32> -> vector<8x32xf32>
    %313 = vector.extract_strided_slice %270 {offsets = [0, 64], sizes = [8, 32], strides = [1, 1]} : vector<8x128xf32> to vector<8x32xf32>
    %314 = arith.truncf %313 : vector<8x32xf32> to vector<8x32xbf16>
    %315 = vector.extract_strided_slice %271 {offsets = [0, 64], sizes = [16, 32], strides = [1, 1]} : vector<16x128xf32> to vector<16x32xf32>
    %316 = arith.truncf %315 : vector<16x32xf32> to vector<16x32xbf16>
    %317 = vector.extract_strided_slice %272 {offsets = [0, 64], sizes = [16, 32], strides = [1, 1]} : vector<16x128xf32> to vector<16x32xf32>
    %318 = arith.truncf %317 : vector<16x32xf32> to vector<16x32xbf16>
    %cst_100 = arith.constant dense<0.000000e+00> : vector<8x16xf32>
    %319 = tpu.matmul %314, %316, %cst_100 {dimension_numbers = #tpu.dot_dimension_numbers<[1], [1], [0], [0], [0, 0, 1, 0], [], []>} : vector<8x32xbf16>, vector<16x32xbf16>, vector<8x16xf32> -> vector<8x16xf32>
    %cst_101 = arith.constant 0.176776692 : f32
    %320 = vector.broadcast %cst_101 : f32 to vector<8x16xf32>
    %321 = arith.mulf %319, %320 : vector<8x16xf32>
    %cst_102 = arith.constant dense<0xFF800000> : vector<8xf32>
    %322 = vector.multi_reduction <maximumf>, %321, %cst_102 [1] : vector<8x16xf32> to vector<8xf32>
    %323 = vector.shape_cast %322 : vector<8xf32> to vector<8x1xf32>
    %324 = vector.broadcast %323 : vector<8x1xf32> to vector<8x16xf32>
    %325 = arith.subf %321, %324 : vector<8x16xf32>
    %326 = math.exp %325 : vector<8x16xf32>
    %cst_103 = arith.constant dense<0.000000e+00> : vector<8xf32>
    %327 = vector.multi_reduction <add>, %326, %cst_103 [1] : vector<8x16xf32> to vector<8xf32>
    %328 = vector.shape_cast %327 : vector<8xf32> to vector<8x1xf32>
    %329 = vector.broadcast %328 : vector<8x1xf32> to vector<8x16xf32>
    %330 = arith.divf %326, %329 : vector<8x16xf32>
    %331 = arith.truncf %330 : vector<8x16xf32> to vector<8x16xbf16>
    %cst_104 = arith.constant dense<0.000000e+00> : vector<8x32xf32>
    %332 = tpu.matmul %331, %318, %cst_104 {dimension_numbers = #tpu.dot_dimension_numbers<[1], [0], [0], [1], [0, 0, 1, 1], [], []>} : vector<8x16xbf16>, vector<16x32xbf16>, vector<8x32xf32> -> vector<8x32xf32>
    %333 = vector.extract_strided_slice %270 {offsets = [0, 96], sizes = [8, 32], strides = [1, 1]} : vector<8x128xf32> to vector<8x32xf32>
    %334 = arith.truncf %333 : vector<8x32xf32> to vector<8x32xbf16>
    %335 = vector.extract_strided_slice %271 {offsets = [0, 96], sizes = [16, 32], strides = [1, 1]} : vector<16x128xf32> to vector<16x32xf32>
    %336 = arith.truncf %335 : vector<16x32xf32> to vector<16x32xbf16>
    %337 = vector.extract_strided_slice %272 {offsets = [0, 96], sizes = [16, 32], strides = [1, 1]} : vector<16x128xf32> to vector<16x32xf32>
    %338 = arith.truncf %337 : vector<16x32xf32> to vector<16x32xbf16>
    %cst_105 = arith.constant dense<0.000000e+00> : vector<8x16xf32>
    %339 = tpu.matmul %334, %336, %cst_105 {dimension_numbers = #tpu.dot_dimension_numbers<[1], [1], [0], [0], [0, 0, 1, 0], [], []>} : vector<8x32xbf16>, vector<16x32xbf16>, vector<8x16xf32> -> vector<8x16xf32>
    %cst_106 = arith.constant 0.176776692 : f32
    %340 = vector.broadcast %cst_106 : f32 to vector<8x16xf32>
    %341 = arith.mulf %339, %340 : vector<8x16xf32>
    %cst_107 = arith.constant dense<0xFF800000> : vector<8xf32>
    %342 = vector.multi_reduction <maximumf>, %341, %cst_107 [1] : vector<8x16xf32> to vector<8xf32>
    %343 = vector.shape_cast %342 : vector<8xf32> to vector<8x1xf32>
    %344 = vector.broadcast %343 : vector<8x1xf32> to vector<8x16xf32>
    %345 = arith.subf %341, %344 : vector<8x16xf32>
    %346 = math.exp %345 : vector<8x16xf32>
    %cst_108 = arith.constant dense<0.000000e+00> : vector<8xf32>
    %347 = vector.multi_reduction <add>, %346, %cst_108 [1] : vector<8x16xf32> to vector<8xf32>
    %348 = vector.shape_cast %347 : vector<8xf32> to vector<8x1xf32>
    %349 = vector.broadcast %348 : vector<8x1xf32> to vector<8x16xf32>
    %350 = arith.divf %346, %349 : vector<8x16xf32>
    %351 = arith.truncf %350 : vector<8x16xf32> to vector<8x16xbf16>
    %cst_109 = arith.constant dense<0.000000e+00> : vector<8x32xf32>
    %352 = tpu.matmul %351, %338, %cst_109 {dimension_numbers = #tpu.dot_dimension_numbers<[1], [0], [0], [1], [0, 0, 1, 1], [], []>} : vector<8x16xbf16>, vector<16x32xbf16>, vector<8x32xf32> -> vector<8x32xf32>
    %353 = tpu.concatenate %292, %312, %332, %352 in 1 : vector<8x32xf32>, vector<8x32xf32>, vector<8x32xf32>, vector<8x32xf32> -> vector<8x128xf32>
    %354 = vector.extract_strided_slice %261 {offsets = [8, 0], sizes = [8, 128], strides = [1, 1]} : vector<16x128xf32> to vector<8x128xf32>
    %355 = vector.extract_strided_slice %268 {offsets = [16, 0], sizes = [16, 128], strides = [1, 1]} : vector<32x128xf32> to vector<16x128xf32>
    %356 = vector.extract_strided_slice %269 {offsets = [16, 0], sizes = [16, 128], strides = [1, 1]} : vector<32x128xf32> to vector<16x128xf32>
    %357 = vector.extract_strided_slice %354 {offsets = [0, 0], sizes = [8, 32], strides = [1, 1]} : vector<8x128xf32> to vector<8x32xf32>
    %358 = arith.truncf %357 : vector<8x32xf32> to vector<8x32xbf16>
    %359 = vector.extract_strided_slice %355 {offsets = [0, 0], sizes = [16, 32], strides = [1, 1]} : vector<16x128xf32> to vector<16x32xf32>
    %360 = arith.truncf %359 : vector<16x32xf32> to vector<16x32xbf16>
    %361 = vector.extract_strided_slice %356 {offsets = [0, 0], sizes = [16, 32], strides = [1, 1]} : vector<16x128xf32> to vector<16x32xf32>
    %362 = arith.truncf %361 : vector<16x32xf32> to vector<16x32xbf16>
    %cst_110 = arith.constant dense<0.000000e+00> : vector<8x16xf32>
    %363 = tpu.matmul %358, %360, %cst_110 {dimension_numbers = #tpu.dot_dimension_numbers<[1], [1], [0], [0], [0, 0, 1, 0], [], []>} : vector<8x32xbf16>, vector<16x32xbf16>, vector<8x16xf32> -> vector<8x16xf32>
    %cst_111 = arith.constant 0.176776692 : f32
    %364 = vector.broadcast %cst_111 : f32 to vector<8x16xf32>
    %365 = arith.mulf %363, %364 : vector<8x16xf32>
    %cst_112 = arith.constant dense<0xFF800000> : vector<8xf32>
    %366 = vector.multi_reduction <maximumf>, %365, %cst_112 [1] : vector<8x16xf32> to vector<8xf32>
    %367 = vector.shape_cast %366 : vector<8xf32> to vector<8x1xf32>
    %368 = vector.broadcast %367 : vector<8x1xf32> to vector<8x16xf32>
    %369 = arith.subf %365, %368 : vector<8x16xf32>
    %370 = math.exp %369 : vector<8x16xf32>
    %cst_113 = arith.constant dense<0.000000e+00> : vector<8xf32>
    %371 = vector.multi_reduction <add>, %370, %cst_113 [1] : vector<8x16xf32> to vector<8xf32>
    %372 = vector.shape_cast %371 : vector<8xf32> to vector<8x1xf32>
    %373 = vector.broadcast %372 : vector<8x1xf32> to vector<8x16xf32>
    %374 = arith.divf %370, %373 : vector<8x16xf32>
    %375 = arith.truncf %374 : vector<8x16xf32> to vector<8x16xbf16>
    %cst_114 = arith.constant dense<0.000000e+00> : vector<8x32xf32>
    %376 = tpu.matmul %375, %362, %cst_114 {dimension_numbers = #tpu.dot_dimension_numbers<[1], [0], [0], [1], [0, 0, 1, 1], [], []>} : vector<8x16xbf16>, vector<16x32xbf16>, vector<8x32xf32> -> vector<8x32xf32>
    %377 = vector.extract_strided_slice %354 {offsets = [0, 32], sizes = [8, 32], strides = [1, 1]} : vector<8x128xf32> to vector<8x32xf32>
    %378 = arith.truncf %377 : vector<8x32xf32> to vector<8x32xbf16>
    %379 = vector.extract_strided_slice %355 {offsets = [0, 32], sizes = [16, 32], strides = [1, 1]} : vector<16x128xf32> to vector<16x32xf32>
    %380 = arith.truncf %379 : vector<16x32xf32> to vector<16x32xbf16>
    %381 = vector.extract_strided_slice %356 {offsets = [0, 32], sizes = [16, 32], strides = [1, 1]} : vector<16x128xf32> to vector<16x32xf32>
    %382 = arith.truncf %381 : vector<16x32xf32> to vector<16x32xbf16>
    %cst_115 = arith.constant dense<0.000000e+00> : vector<8x16xf32>
    %383 = tpu.matmul %378, %380, %cst_115 {dimension_numbers = #tpu.dot_dimension_numbers<[1], [1], [0], [0], [0, 0, 1, 0], [], []>} : vector<8x32xbf16>, vector<16x32xbf16>, vector<8x16xf32> -> vector<8x16xf32>
    %cst_116 = arith.constant 0.176776692 : f32
    %384 = vector.broadcast %cst_116 : f32 to vector<8x16xf32>
    %385 = arith.mulf %383, %384 : vector<8x16xf32>
    %cst_117 = arith.constant dense<0xFF800000> : vector<8xf32>
    %386 = vector.multi_reduction <maximumf>, %385, %cst_117 [1] : vector<8x16xf32> to vector<8xf32>
    %387 = vector.shape_cast %386 : vector<8xf32> to vector<8x1xf32>
    %388 = vector.broadcast %387 : vector<8x1xf32> to vector<8x16xf32>
    %389 = arith.subf %385, %388 : vector<8x16xf32>
    %390 = math.exp %389 : vector<8x16xf32>
    %cst_118 = arith.constant dense<0.000000e+00> : vector<8xf32>
    %391 = vector.multi_reduction <add>, %390, %cst_118 [1] : vector<8x16xf32> to vector<8xf32>
    %392 = vector.shape_cast %391 : vector<8xf32> to vector<8x1xf32>
    %393 = vector.broadcast %392 : vector<8x1xf32> to vector<8x16xf32>
    %394 = arith.divf %390, %393 : vector<8x16xf32>
    %395 = arith.truncf %394 : vector<8x16xf32> to vector<8x16xbf16>
    %cst_119 = arith.constant dense<0.000000e+00> : vector<8x32xf32>
    %396 = tpu.matmul %395, %382, %cst_119 {dimension_numbers = #tpu.dot_dimension_numbers<[1], [0], [0], [1], [0, 0, 1, 1], [], []>} : vector<8x16xbf16>, vector<16x32xbf16>, vector<8x32xf32> -> vector<8x32xf32>
    %397 = vector.extract_strided_slice %354 {offsets = [0, 64], sizes = [8, 32], strides = [1, 1]} : vector<8x128xf32> to vector<8x32xf32>
    %398 = arith.truncf %397 : vector<8x32xf32> to vector<8x32xbf16>
    %399 = vector.extract_strided_slice %355 {offsets = [0, 64], sizes = [16, 32], strides = [1, 1]} : vector<16x128xf32> to vector<16x32xf32>
    %400 = arith.truncf %399 : vector<16x32xf32> to vector<16x32xbf16>
    %401 = vector.extract_strided_slice %356 {offsets = [0, 64], sizes = [16, 32], strides = [1, 1]} : vector<16x128xf32> to vector<16x32xf32>
    %402 = arith.truncf %401 : vector<16x32xf32> to vector<16x32xbf16>
    %cst_120 = arith.constant dense<0.000000e+00> : vector<8x16xf32>
    %403 = tpu.matmul %398, %400, %cst_120 {dimension_numbers = #tpu.dot_dimension_numbers<[1], [1], [0], [0], [0, 0, 1, 0], [], []>} : vector<8x32xbf16>, vector<16x32xbf16>, vector<8x16xf32> -> vector<8x16xf32>
    %cst_121 = arith.constant 0.176776692 : f32
    %404 = vector.broadcast %cst_121 : f32 to vector<8x16xf32>
    %405 = arith.mulf %403, %404 : vector<8x16xf32>
    %cst_122 = arith.constant dense<0xFF800000> : vector<8xf32>
    %406 = vector.multi_reduction <maximumf>, %405, %cst_122 [1] : vector<8x16xf32> to vector<8xf32>
    %407 = vector.shape_cast %406 : vector<8xf32> to vector<8x1xf32>
    %408 = vector.broadcast %407 : vector<8x1xf32> to vector<8x16xf32>
    %409 = arith.subf %405, %408 : vector<8x16xf32>
    %410 = math.exp %409 : vector<8x16xf32>
    %cst_123 = arith.constant dense<0.000000e+00> : vector<8xf32>
    %411 = vector.multi_reduction <add>, %410, %cst_123 [1] : vector<8x16xf32> to vector<8xf32>
    %412 = vector.shape_cast %411 : vector<8xf32> to vector<8x1xf32>
    %413 = vector.broadcast %412 : vector<8x1xf32> to vector<8x16xf32>
    %414 = arith.divf %410, %413 : vector<8x16xf32>
    %415 = arith.truncf %414 : vector<8x16xf32> to vector<8x16xbf16>
    %cst_124 = arith.constant dense<0.000000e+00> : vector<8x32xf32>
    %416 = tpu.matmul %415, %402, %cst_124 {dimension_numbers = #tpu.dot_dimension_numbers<[1], [0], [0], [1], [0, 0, 1, 1], [], []>} : vector<8x16xbf16>, vector<16x32xbf16>, vector<8x32xf32> -> vector<8x32xf32>
    %417 = vector.extract_strided_slice %354 {offsets = [0, 96], sizes = [8, 32], strides = [1, 1]} : vector<8x128xf32> to vector<8x32xf32>
    %418 = arith.truncf %417 : vector<8x32xf32> to vector<8x32xbf16>
    %419 = vector.extract_strided_slice %355 {offsets = [0, 96], sizes = [16, 32], strides = [1, 1]} : vector<16x128xf32> to vector<16x32xf32>
    %420 = arith.truncf %419 : vector<16x32xf32> to vector<16x32xbf16>
    %421 = vector.extract_strided_slice %356 {offsets = [0, 96], sizes = [16, 32], strides = [1, 1]} : vector<16x128xf32> to vector<16x32xf32>
    %422 = arith.truncf %421 : vector<16x32xf32> to vector<16x32xbf16>
    %cst_125 = arith.constant dense<0.000000e+00> : vector<8x16xf32>
    %423 = tpu.matmul %418, %420, %cst_125 {dimension_numbers = #tpu.dot_dimension_numbers<[1], [1], [0], [0], [0, 0, 1, 0], [], []>} : vector<8x32xbf16>, vector<16x32xbf16>, vector<8x16xf32> -> vector<8x16xf32>
    %cst_126 = arith.constant 0.176776692 : f32
    %424 = vector.broadcast %cst_126 : f32 to vector<8x16xf32>
    %425 = arith.mulf %423, %424 : vector<8x16xf32>
    %cst_127 = arith.constant dense<0xFF800000> : vector<8xf32>
    %426 = vector.multi_reduction <maximumf>, %425, %cst_127 [1] : vector<8x16xf32> to vector<8xf32>
    %427 = vector.shape_cast %426 : vector<8xf32> to vector<8x1xf32>
    %428 = vector.broadcast %427 : vector<8x1xf32> to vector<8x16xf32>
    %429 = arith.subf %425, %428 : vector<8x16xf32>
    %430 = math.exp %429 : vector<8x16xf32>
    %cst_128 = arith.constant dense<0.000000e+00> : vector<8xf32>
    %431 = vector.multi_reduction <add>, %430, %cst_128 [1] : vector<8x16xf32> to vector<8xf32>
    %432 = vector.shape_cast %431 : vector<8xf32> to vector<8x1xf32>
    %433 = vector.broadcast %432 : vector<8x1xf32> to vector<8x16xf32>
    %434 = arith.divf %430, %433 : vector<8x16xf32>
    %435 = arith.truncf %434 : vector<8x16xf32> to vector<8x16xbf16>
    %cst_129 = arith.constant dense<0.000000e+00> : vector<8x32xf32>
    %436 = tpu.matmul %435, %422, %cst_129 {dimension_numbers = #tpu.dot_dimension_numbers<[1], [0], [0], [1], [0, 0, 1, 1], [], []>} : vector<8x16xbf16>, vector<16x32xbf16>, vector<8x32xf32> -> vector<8x32xf32>
    %437 = tpu.concatenate %376, %396, %416, %436 in 1 : vector<8x32xf32>, vector<8x32xf32>, vector<8x32xf32>, vector<8x32xf32> -> vector<8x128xf32>
    %438 = tpu.concatenate %353, %437 in 0 : vector<8x128xf32>, vector<8x128xf32> -> vector<16x128xf32>
    %439 = arith.truncf %438 : vector<16x128xf32> to vector<16x128xbf16>
    %c0_130 = arith.constant 0 : index
    %c0_131 = arith.constant 0 : index
    %440 = vector.load %arg15[%c0_130, %c0_131] : memref<128x128xbf16, #tpu.memory_space<vmem>>, vector<128x128xbf16>
    %cst_132 = arith.constant dense<0.000000e+00> : vector<16x128xf32>
    %441 = tpu.matmul %439, %440, %cst_132 {dimension_numbers = #tpu.dot_dimension_numbers<[1], [0], [0], [1], [0, 0, 1, 1], [], []>} : vector<16x128xbf16>, vector<128x128xbf16>, vector<16x128xf32> -> vector<16x128xf32>
    %442 = arith.addf %231, %441 : vector<16x128xf32>
    %c0_133 = arith.constant 0 : index
    %c0_134 = arith.constant 0 : index
    %443 = vector.load %arg16[%c0_133, %c0_134] : memref<1x128xf32, #tpu.memory_space<vmem>>, vector<1x128xf32>
    %444 = vector.broadcast %443 : vector<1x128xf32> to vector<16x128xf32>
    %445 = arith.addf %442, %444 : vector<16x128xf32>
    %cst_135 = arith.constant dense<0.000000e+00> : vector<16xf32>
    %446 = vector.multi_reduction <add>, %445, %cst_135 [1] : vector<16x128xf32> to vector<16xf32>
    %447 = vector.shape_cast %446 : vector<16xf32> to vector<16x1xf32>
    %cst_136 = arith.constant 1.280000e+02 : f32
    %448 = vector.broadcast %cst_136 : f32 to vector<16x1xf32>
    %449 = arith.divf %447, %448 : vector<16x1xf32>
    %450 = vector.broadcast %449 : vector<16x1xf32> to vector<16x128xf32>
    %451 = arith.subf %445, %450 : vector<16x128xf32>
    %452 = arith.mulf %451, %451 : vector<16x128xf32>
    %cst_137 = arith.constant dense<0.000000e+00> : vector<16xf32>
    %453 = vector.multi_reduction <add>, %452, %cst_137 [1] : vector<16x128xf32> to vector<16xf32>
    %454 = vector.shape_cast %453 : vector<16xf32> to vector<16x1xf32>
    %cst_138 = arith.constant 1.280000e+02 : f32
    %455 = vector.broadcast %cst_138 : f32 to vector<16x1xf32>
    %456 = arith.divf %454, %455 : vector<16x1xf32>
    %457 = vector.broadcast %449 : vector<16x1xf32> to vector<16x128xf32>
    %458 = arith.subf %445, %457 : vector<16x128xf32>
    %cst_139 = arith.constant 9.99999974E-6 : f32
    %459 = vector.broadcast %cst_139 : f32 to vector<16x1xf32>
    %460 = arith.addf %456, %459 : vector<16x1xf32>
    %461 = math.rsqrt %460 : vector<16x1xf32>
    %462 = vector.broadcast %461 : vector<16x1xf32> to vector<16x128xf32>
    %463 = arith.mulf %458, %462 : vector<16x128xf32>
    %c0_140 = arith.constant 0 : index
    %c0_141 = arith.constant 0 : index
    %464 = vector.load %arg17[%c0_140, %c0_141] : memref<1x128xf32, #tpu.memory_space<vmem>>, vector<1x128xf32>
    %465 = vector.broadcast %464 : vector<1x128xf32> to vector<16x128xf32>
    %466 = arith.mulf %463, %465 : vector<16x128xf32>
    %c0_142 = arith.constant 0 : index
    %c0_143 = arith.constant 0 : index
    %467 = vector.load %arg18[%c0_142, %c0_143] : memref<1x128xf32, #tpu.memory_space<vmem>>, vector<1x128xf32>
    %468 = vector.broadcast %467 : vector<1x128xf32> to vector<16x128xf32>
    %469 = arith.addf %466, %468 : vector<16x128xf32>
    %470 = arith.truncf %469 : vector<16x128xf32> to vector<16x128xbf16>
    %c0_144 = arith.constant 0 : index
    %c0_145 = arith.constant 0 : index
    %471 = vector.load %arg19[%c0_144, %c0_145] : memref<128x512xbf16, #tpu.memory_space<vmem>>, vector<128x512xbf16>
    %cst_146 = arith.constant dense<0.000000e+00> : vector<16x512xf32>
    %472 = tpu.matmul %470, %471, %cst_146 {dimension_numbers = #tpu.dot_dimension_numbers<[1], [0], [0], [1], [0, 0, 1, 1], [], []>} : vector<16x128xbf16>, vector<128x512xbf16>, vector<16x512xf32> -> vector<16x512xf32>
    %c0_147 = arith.constant 0 : index
    %c0_148 = arith.constant 0 : index
    %473 = vector.load %arg20[%c0_147, %c0_148] : memref<1x512xf32, #tpu.memory_space<vmem>>, vector<1x512xf32>
    %474 = vector.broadcast %473 : vector<1x512xf32> to vector<16x512xf32>
    %475 = arith.addf %472, %474 : vector<16x512xf32>
    %cst_149 = arith.constant 5.000000e-01 : f32
    %476 = vector.broadcast %cst_149 : f32 to vector<16x512xf32>
    %477 = arith.mulf %476, %475 : vector<16x512xf32>
    %cst_150 = arith.constant 0.707106769 : f32
    %478 = vector.broadcast %cst_150 : f32 to vector<16x512xf32>
    %479 = arith.mulf %475, %478 : vector<16x512xf32>
    %480 = math.erf %479 : vector<16x512xf32>
    %cst_151 = arith.constant 1.000000e+00 : f32
    %481 = vector.broadcast %cst_151 : f32 to vector<16x512xf32>
    %482 = arith.addf %481, %480 : vector<16x512xf32>
    %483 = arith.mulf %477, %482 : vector<16x512xf32>
    %484 = arith.truncf %483 : vector<16x512xf32> to vector<16x512xbf16>
    %c0_152 = arith.constant 0 : index
    %c0_153 = arith.constant 0 : index
    %485 = vector.load %arg21[%c0_152, %c0_153] : memref<512x128xbf16, #tpu.memory_space<vmem>>, vector<512x128xbf16>
    %cst_154 = arith.constant dense<0.000000e+00> : vector<16x128xf32>
    %486 = tpu.matmul %484, %485, %cst_154 {dimension_numbers = #tpu.dot_dimension_numbers<[1], [0], [0], [1], [0, 0, 1, 1], [], []>} : vector<16x512xbf16>, vector<512x128xbf16>, vector<16x128xf32> -> vector<16x128xf32>
    %487 = arith.addf %445, %486 : vector<16x128xf32>
    %c0_155 = arith.constant 0 : index
    %c0_156 = arith.constant 0 : index
    %488 = vector.load %arg22[%c0_155, %c0_156] : memref<1x128xf32, #tpu.memory_space<vmem>>, vector<1x128xf32>
    %489 = vector.broadcast %488 : vector<1x128xf32> to vector<16x128xf32>
    %490 = arith.addf %487, %489 : vector<16x128xf32>
    %491 = vector.shape_cast %490 : vector<16x128xf32> to vector<2x8x128xf32>
    %c0_157 = arith.constant 0 : index
    %c0_158 = arith.constant 0 : index
    %c0_159 = arith.constant 0 : index
    %492 = vector.load %arg23[%c0_157, %c0_158, %c0_159] : memref<2x8x128xf32, #tpu.memory_space<vmem>>, vector<2x8x128xf32>
    tpu.vector_store %arg23[%c0_157, %c0_158, %c0_159], %491 {strides = array<i32>} : memref<2x8x128xf32, #tpu.memory_space<vmem>>, vector<2x8x128xf32>,
    return
  }
  func.func @transform_0(%arg0: i32) -> (i32, i32, i32) {
    %c0_i32 = arith.constant 0 : i32
    %c0_i32_0 = arith.constant 0 : i32
    %c0_i32_1 = arith.constant 0 : i32
    return %arg0, %c0_i32, %c0_i32_0 : i32, i32, i32
  }
  func.func @transform_1(%arg0: i32) -> (i32, i32, i32) {
    %c0_i32 = arith.constant 0 : i32
    %c0_i32_0 = arith.constant 0 : i32
    %c0_i32_1 = arith.constant 0 : i32
    return %arg0, %c0_i32, %c0_i32_0 : i32, i32, i32
  }
  func.func @transform_2(%arg0: i32) -> (i32, i32) {
    %c0_i32 = arith.constant 0 : i32
    %c0_i32_0 = arith.constant 0 : i32
    %c0_i32_1 = arith.constant 0 : i32
    return %c0_i32, %c0_i32_0 : i32, i32
  }
  func.func @transform_3(%arg0: i32) -> (i32, i32) {
    %c0_i32 = arith.constant 0 : i32
    %c0_i32_0 = arith.constant 0 : i32
    %c0_i32_1 = arith.constant 0 : i32
    return %c0_i32, %c0_i32_0 : i32, i32
  }
  func.func @transform_4(%arg0: i32) -> (i32, i32) {
    %c0_i32 = arith.constant 0 : i32
    %c0_i32_0 = arith.constant 0 : i32
    %c0_i32_1 = arith.constant 0 : i32
    return %c0_i32, %c0_i32_0 : i32, i32
  }
  func.func @transform_5(%arg0: i32) -> (i32, i32) {
    %c0_i32 = arith.constant 0 : i32
    %c0_i32_0 = arith.constant 0 : i32
    %c0_i32_1 = arith.constant 0 : i32
    return %c0_i32, %c0_i32_0 : i32, i32
  }
  func.func @transform_6(%arg0: i32) -> (i32, i32) {
    %c0_i32 = arith.constant 0 : i32
    %c0_i32_0 = arith.constant 0 : i32
    %c0_i32_1 = arith.constant 0 : i32
    return %c0_i32, %c0_i32_0 : i32, i32
  }
  func.func @transform_7(%arg0: i32) -> (i32, i32) {
    %c0_i32 = arith.constant 0 : i32
    %c0_i32_0 = arith.constant 0 : i32
    %c0_i32_1 = arith.constant 0 : i32
    return %c0_i32, %c0_i32_0 : i32, i32
  }
  func.func @transform_8(%arg0: i32) -> (i32, i32) {
    %c0_i32 = arith.constant 0 : i32
    %c0_i32_0 = arith.constant 0 : i32
    %c0_i32_1 = arith.constant 0 : i32
    return %c0_i32, %c0_i32_0 : i32, i32
  }
  func.func @transform_9(%arg0: i32) -> (i32, i32) {
    %c0_i32 = arith.constant 0 : i32
    %c0_i32_0 = arith.constant 0 : i32
    %c0_i32_1 = arith.constant 0 : i32
    return %c0_i32, %c0_i32_0 : i32, i32
  }
  func.func @transform_10(%arg0: i32) -> (i32, i32) {
    %c0_i32 = arith.constant 0 : i32
    %c0_i32_0 = arith.constant 0 : i32
    %c0_i32_1 = arith.constant 0 : i32
    return %c0_i32, %c0_i32_0 : i32, i32
  }
  func.func @transform_11(%arg0: i32) -> (i32, i32) {
    %c0_i32 = arith.constant 0 : i32
    %c0_i32_0 = arith.constant 0 : i32
    %c0_i32_1 = arith.constant 0 : i32
    return %c0_i32, %c0_i32_0 : i32, i32
  }
  func.func @transform_12(%arg0: i32) -> (i32, i32) {
    %c0_i32 = arith.constant 0 : i32
    %c0_i32_0 = arith.constant 0 : i32
    %c0_i32_1 = arith.constant 0 : i32
    return %c0_i32, %c0_i32_0 : i32, i32
  }
  func.func @transform_13(%arg0: i32) -> (i32, i32) {
    %c0_i32 = arith.constant 0 : i32
    %c0_i32_0 = arith.constant 0 : i32
    %c0_i32_1 = arith.constant 0 : i32
    return %c0_i32, %c0_i32_0 : i32, i32
  }
  func.func @transform_14(%arg0: i32) -> (i32, i32) {
    %c0_i32 = arith.constant 0 : i32
    %c0_i32_0 = arith.constant 0 : i32
    %c0_i32_1 = arith.constant 0 : i32
    return %c0_i32, %c0_i32_0 : i32, i32
  }
  func.func @transform_15(%arg0: i32) -> (i32, i32) {
    %c0_i32 = arith.constant 0 : i32
    %c0_i32_0 = arith.constant 0 : i32
    %c0_i32_1 = arith.constant 0 : i32
    return %c0_i32, %c0_i32_0 : i32, i32
  }
  func.func @transform_16(%arg0: i32) -> (i32, i32) {
    %c0_i32 = arith.constant 0 : i32
    %c0_i32_0 = arith.constant 0 : i32
    %c0_i32_1 = arith.constant 0 : i32
    return %c0_i32, %c0_i32_0 : i32, i32
  }
  func.func @transform_17(%arg0: i32) -> (i32, i32) {
    %c0_i32 = arith.constant 0 : i32
    %c0_i32_0 = arith.constant 0 : i32
    %c0_i32_1 = arith.constant 0 : i32
    return %c0_i32, %c0_i32_0 : i32, i32
  }
  func.func @transform_18(%arg0: i32) -> (i32, i32) {
    %c0_i32 = arith.constant 0 : i32
    %c0_i32_0 = arith.constant 0 : i32
    %c0_i32_1 = arith.constant 0 : i32
    return %c0_i32, %c0_i32_0 : i32, i32
  }
  func.func @transform_19(%arg0: i32) -> (i32, i32) {
    %c0_i32 = arith.constant 0 : i32
    %c0_i32_0 = arith.constant 0 : i32
    %c0_i32_1 = arith.constant 0 : i32
    return %c0_i32, %c0_i32_0 : i32, i32
  }
  func.func @transform_20(%arg0: i32) -> (i32, i32) {
    %c0_i32 = arith.constant 0 : i32
    %c0_i32_0 = arith.constant 0 : i32
    %c0_i32_1 = arith.constant 0 : i32
    return %c0_i32, %c0_i32_0 : i32, i32
  }
  func.func @transform_21(%arg0: i32) -> (i32, i32) {
    %c0_i32 = arith.constant 0 : i32
    %c0_i32_0 = arith.constant 0 : i32
    %c0_i32_1 = arith.constant 0 : i32
    return %c0_i32, %c0_i32_0 : i32, i32
  }
  func.func @transform_22(%arg0: i32) -> (i32, i32, i32) {
    %c0_i32 = arith.constant 0 : i32
    %c0_i32_0 = arith.constant 0 : i32
    %c0_i32_1 = arith.constant 0 : i32
    return %arg0, %c0_i32, %c0_i32_0 : i32, i32, i32
  }
}

</mosaic_0001>

<bundles_post_ra>
// kernel: decoder_forward.5
= control target key start
LH: loop header
LB: loop body
LE: loop exit
PB: predicated region body
PF: predicated region fallthrough
CT: control target
= control target key end

     0   :  { %s344_s0 = inlined_call_operand.vmem [shape: f32[2,8,128], index: 0, kind: input, shape index: {}]   ;;  %s345_s1 = inlined_call_operand.vmem [shape: f32[1,128], index: 1, kind: input, shape index: {}]   ;;  %s346_s2 = inlined_call_operand.vmem [shape: f32[1,128], index: 2, kind: input, shape index: {}]   ;;  %s347_s3 = inlined_call_operand.vmem [shape: bf16[128,128], index: 3, kind: input, shape index: {}]   ;;  %s348_s4 = inlined_call_operand.hbm [shape: f32[2,8,128], index: 4, kind: output, shape index: {}]  }
   0x1   :  { %v19_v0 = vld [vmem:[%s344_s0] sm:$0xff]  ;;  %v20_v1 = vld [vmem:[%s344_s0 + $0x8] sm:$0xff] }
   0x2   :  { %21 = vadd.xlane.f32.xlu0 %v19_v0 }
   0x6   :  { %23 = vadd.xlane.f32.xlu0 %v20_v1 }
   0x7   :  { %9 = vsyncpa [#allocation3], 0  ;;  %v230_v2 = vld [vmem:[%s347_s3] sm:$0xff]   ;;  %v266_v3 = vmov 0.0   ;;  %v231_v12 = vld [vmem:[%s347_s3 + $0x8] sm:$0xff]   ;;  %vm267_vm0 = vmmov 0  }
   0x8   :  { %205 = vmatprep.subr.bf16.mxu0 %v266_v3  ;;  %v232_v13 = vld [vmem:[%s347_s3 + $0x10] sm:$0xff]   ;;  %v233_v14 = vld [vmem:[%s347_s3 + $0x18] sm:$0xff]   ;;  %v234_v15 = vld [vmem:[%s347_s3 + $0x20] sm:$0xff]   ;;  %221 = vmatprep.mubr.msk.bf16.mxu0 %vm267_vm0, %v266_v3  ;;  %s268_s11 = smov [#allocation2]  }
   0x9   :  { %206 = vmatpush3.bf16.msra.mxu0 %v230_v2  ;;  %v235_v16 = vld [vmem:[%s347_s3 + $0x28] sm:$0xff]   ;;  %v236_v17 = vld [vmem:[%s347_s3 + $0x30] sm:$0xff]   ;;  %v237_v18 = vld [vmem:[%s347_s3 + $0x38] sm:$0xff]   ;;  %s175_s12 = sshll.u32 %s268_s11, 4  ;;  %s176_s12 = int_to_ptr.vmem [resolvable:$true] %s175_s12 }
   0xa   :  { %207 = vmatprep.subr.bf16.mxu0 %v266_v3  ;;  %v186_v27 = vld [vmem:[%s345_s1] ss:$0 sm:$0xff]  ;;  %s242_s1 = scalar_lea.vmem %s176_s12, 256  ;;  %p247_p1 = scmp.lt.s32.totalorder %s176_s12, %s176_s12 }
   0xb   :  { %v187_v31 = vld [vmem:[%s346_s2] ss:$0 sm:$0xff]  ;;  %p243_p0 = scmp.ne.s32.totalorder %s176_s12, %s242_s1  ;;  %p248_p2 = scmp.lt.s32.totalorder %s242_s1, %s242_s1 }
   0xd   :  { %208 = vmatpush3.bf16.msra.mxu0 %v231_v12  ;;  %p249_p3 = por %p248_p2, %p247_p1 }
   0xe   :  { %209 = vmatprep.subr.bf16.mxu0 %v266_v3 }
   0xf   :  { %p250_p4 = pnand %p249_p3, %p243_p0 }
  0x11   :  { %210 = vmatpush3.bf16.msra.mxu0 %v232_v13 }
  0x12   :  { %211 = vmatprep.subr.bf16.mxu0 %v266_v3 }
  0x15   :  { %212 = vmatpush3.bf16.msra.mxu0 %v233_v14 }
  0x16   :  { %213 = vmatprep.subr.bf16.mxu0 %v266_v3 }
  0x19   :  { %214 = vmatpush3.bf16.msra.mxu0 %v234_v15 }
  0x1a   :  { %215 = vmatprep.subr.bf16.mxu0 %v266_v3 }
  0x1d   :  { %216 = vmatpush3.bf16.msra.mxu0 %v235_v16 }
  0x1e   :  { %217 = vmatprep.subr.bf16.mxu0 %v266_v3 }
  0x21   :  { %218 = vmatpush3.bf16.msra.mxu0 %v236_v17 }
  0x22   :  { %219 = vmatprep.subr.bf16.mxu0 %v266_v3 }
  0x25   :  { %220 = vmatpush3.bf16.msra.mxu0 %v237_v18 }
  0x8f   :  { %v22_v4 = vpop.xlane.xlu0 %21 }
  0x90   :  { %v26_v5 = vmul.f32 0.0078125, %v22_v4 }
  0x92   :  { %v28_v6 = vsub.f32 %v19_v0, %v26_v5 }
  0x93   :  { %v24_v7 = vpop.xlane.xlu0 %23 }
  0x94   :  { %v27_v8 = vmul.f32 0.0078125, %v24_v7  ;;  %v30_v9 = vmul.f32 %v28_v6, %v28_v6 }
  0x96   :  { %v29_v10 = vsub.f32 %v20_v1, %v27_v8  ;;  %32 = vadd.xlane.f32.xlu1 %v30_v9 }
  0x98   :  { %v31_v11 = vmul.f32 %v29_v10, %v29_v10 }
  0x9a   :  { %34 = vadd.xlane.f32.xlu1 %v31_v11 }
 0x123   :  { %v33_v19 = vpop.xlane.xlu1 %32 }
 0x124   :  { %v36_v20 = vmul.f32 0.0078125, %v33_v19 }
 0x126   :  { %v38_v21 = vadd.f32 1e-05, %v36_v20 }
 0x127   :  { %v35_v22 = vpop.xlane.xlu1 %34 }
 0x128   :  { %238 = vrsqrt.f32 %v38_v21  ;;  %v37_v23 = vmul.f32 0.0078125, %v35_v22 }
 0x12a   :  { %v39_v24 = vadd.f32 1e-05, %v37_v23 }
 0x12c   :  { %240 = vrsqrt.f32 %v39_v24 }
 0x132   :  { %v239_v25 = vpop.eup %238 }
 0x133   :  { %v42_v26 = vmul.f32 %v239_v25, %v28_v6 }
 0x135   :  { %v51_v30 = vmul.f32 %v186_v27, %v42_v26 }
 0x136   :  { %v241_v28 = vpop.eup %240 }
 0x137   :  { %v43_v29 = vmul.f32 %v241_v28, %v29_v10  ;;  %v60_v33 = vadd.f32 %v187_v31, %v51_v30 }
 0x139   :  { %v52_v32 = vmul.f32 %v186_v27, %v43_v29 }
 0x13b   :  { %v61_v34 = vadd.f32 %v187_v31, %v52_v32 }
 0x13d   :  { %v62_v35 = vpack.c.bf16 %v61_v34, %v60_v33 }
 0x13f   :  { %222 = vmatmul.mubr.bf16.vlgmr.msra.gmra.mrb[0].mxu0 %v62_v35 }
 0x212   :  { %v161_v36 = vpop.f32.mrb[0].mxu0 }
 0x213   :  { %168 = vst [vmem:[#allocation2] sm:$0xff] %v161_v36  ;;  %v223_v37 = vpop.f32.mrb[1].mxu0 }
 0x214   :  { %v164_v38 = vpop.f32.mrb[2].mxu0 }
 0x215   :  { %169 = vst [vmem:[#allocation2 + $0x8] sm:$0xff] %v164_v38  ;;  %v224_v39 = vpop.f32.mrb[3].mxu0 }
 0x216   :  { %253 = shalt.err (!%p250_p4)
}
 0x217   :  { %s254_s14 = scalar_lea.hbm %s348_s4, 256 }
 0x218   :  { %p255_p5 = scmp.ne.s32.totalorder %s348_s4, %s254_s14  ;;  %p258_p6 = scmp.lt.u32.totalorder %s254_s14, %s348_s4 }
 0x21a   :  { %p260_p7 = pnand %p258_p6, %p255_p5 }
 0x21c   :  { %263 = shalt.err (!%p260_p7)
}
 0x21d   :  { %s269_s19 = smov 128   ;;  %s270_s20 = smov 8  }
 0x21e   :  { %181 = dma.vmem_to_hbm [thread:$0]  %s176_s12, 256, %s348_s4, [#allocation3], %s269_s19, %s269_s19, %s270_s20  }
 0x21f   :  { %264 = dma.done.wait [#allocation3], 256  }
 0x220   :  { %265 = vsyncadd [#allocation3], 4294967040 }
 0x221   :  { %185 = vsyncpa [#allocation3], 1 }

// kernel: decoder_forward.3
= control target key start
LH: loop header
LB: loop body
LE: loop exit
PB: predicated region body
PF: predicated region fallthrough
CT: control target
= control target key end

     0   :  { %s6033_s0 = inlined_call_operand.vmem [shape: f32[2,8,128], index: 0, kind: input, shape index: {}]   ;;  %s6034_s1 = inlined_call_operand.hbm [shape: f32[2,16,128], index: 1, kind: input, shape index: {}]   ;;  %s6035_s2 = inlined_call_operand.vmem [shape: f32[1,128], index: 2, kind: input, shape index: {}]   ;;  %s6036_s3 = inlined_call_operand.hbm [shape: f32[1,128], index: 3, kind: input, shape index: {}]   ;;  %s6037_s4 = inlined_call_operand.hbm [shape: bf16[128,384], index: 4, kind: input, shape index: {}]   ;;  %s6038_s5 = inlined_call_operand.hbm [shape: f32[1,384], index: 5, kind: input, shape index: {}]   ;;  %s6039_s6 = inlined_call_operand.hbm [shape: bf16[128,128], index: 6, kind: input, shape index: {}]   ;;  %s6040_s7 = inlined_call_operand.hbm [shape: f32[1,128], index: 7, kind: input, shape index: {}]   ;;  %s6041_s8 = inlined_call_operand.hbm [shape: f32[1,128], index: 8, kind: input, shape index: {}]   ;;  %s6042_s9 = inlined_call_operand.hbm [shape: f32[1,128], index: 9, kind: input, shape index: {}]   ;;  %s6043_s10 = inlined_call_operand.hbm [shape: bf16[128,128], index: 10, kind: input, shape index: {}]   ;;  %s6044_s11 = inlined_call_operand.hbm [shape: f32[1,128], index: 11, kind: input, shape index: {}]   ;;  %s6045_s12 = inlined_call_operand.hbm [shape: bf16[128,256], index: 12, kind: input, shape index: {}]   ;;  %s6046_s13 = inlined_call_operand.hbm [shape: f32[1,256], index: 13, kind: input, shape index: {}]   ;;  %s6047_s14 = inlined_call_operand.hbm [shape: bf16[128,128], index: 14, kind: input, shape index: {}]   ;;  %s6048_s15 = inlined_call_operand.hbm [shape: f32[1,128], index: 15, kind: input, shape index: {}]   ;;  %s6049_s16 = inlined_call_operand.hbm [shape: f32[1,128], index: 16, kind: input, shape index: {}]   ;;  %s6050_s17 = inlined_call_operand.hbm [shape: f32[1,128], index: 17, kind: input, shape index: {}]   ;;  %s6051_s18 = inlined_call_operand.vmem [shape: bf16[128,512], index: 18, kind: input, shape index: {}]   ;;  %s6052_s19 = inlined_call_operand.hbm [shape: f32[1,512], index: 19, kind: input, shape index: {}]   ;;  %s6053_s20 = inlined_call_operand.hbm [shape: bf16[512,128], index: 20, kind: input, shape index: {}]   ;;  %s6054_s21 = inlined_call_operand.hbm [shape: f32[1,128], index: 21, kind: input, shape index: {}]   ;;  %s6055_s22 = inlined_call_operand.vmem [shape: f32[2,8,128], index: 22, kind: output, shape index: {}]  }
   0x1   :  { %6062 = sst [smem:[#allocation41_spill]] %s6033_s0 }
   0x2   :  { %6063 = sst [smem:[#allocation42_spill]] %s6034_s1 }
   0x3   :  { %6064 = sst [smem:[#allocation43_spill]] %s6035_s2 }
   0x4   :  { %6065 = sst [smem:[#allocation44_spill]] %s6036_s3 }
   0x5   :  { %6066 = sst [smem:[#allocation45_spill]] %s6037_s4 }
   0x6   :  { %6067 = sst [smem:[#allocation46_spill]] %s6038_s5 }
   0x7   :  { %6068 = sst [smem:[#allocation47_spill]] %s6039_s6 }
   0x8   :  { %27 = vsyncpa [#allocation3], 0 }
   0x9   :  { %28 = vsyncpa [#allocation5], 0 }
   0xa   :  { %29 = vsyncpa [#allocation8], 0 }
   0xb   :  { %30 = vsyncpa [#allocation11], 0 }
   0xc   :  { %31 = vsyncpa [#allocation14], 0 }
   0xd   :  { %32 = vsyncpa [#allocation17], 0 }
   0xe   :  { %33 = vsyncpa [#allocation20], 0 }
   0xf   :  { %34 = vsyncpa [#allocation23], 0 }
  0x10   :  { %35 = vsyncpa [#allocation26], 0 }
  0x11   :  { %36 = vsyncpa [#allocation29], 0  ;;  %s5089_s3 = smov [#allocation4]   ;;  %s5090_s29 = smov [#allocation7]  }
  0x12   :  { %s59_s28 = sshll.u32 %s5089_s3, 4  ;;  %s81_s30 = sshll.u32 %s5090_s29, 4  ;;  %s60_s28 = int_to_ptr.vmem [resolvable:$true] %s59_s28  ;;  %s82_s30 = int_to_ptr.vmem [resolvable:$true] %s81_s30 }
  0x13   :  { %s6069_s23 = sld [smem:[#allocation44_spill]] }
  0x19   :  { %s4651_s1 = scalar_lea.hbm %s6069_s23, 16 }
  0x1a   :  { %p4652_p0 = scmp.ne.s32.totalorder %s6069_s23, %s4651_s1  ;;  %p4655_p1 = scmp.lt.u32.totalorder %s4651_s1, %s6069_s23 }
  0x1c   :  { %p4657_p2 = pnand %p4655_p1, %p4652_p0 }
  0x1e   :  { %4660 = shalt.err (!%p4657_p2)
}
  0x1f   :  { %s4661_s26 = scalar_lea.vmem %s60_s28, 16  ;;  %s4665_s2 = scalar_lea.vmem %s60_s28, 32 }
  0x20   :  { %p4662_p3 = scmp.ne.s32.totalorder %s60_s28, %s4661_s26  ;;  %p4666_p4 = scmp.lt.s32.totalorder %s60_s28, %s60_s28 }
  0x21   :  { %p4667_p5 = scmp.lt.s32.totalorder %s4665_s2, %s4661_s26 }
  0x23   :  { %p4668_p6 = por %p4667_p5, %p4666_p4 }
  0x25   :  { %p4669_p7 = pnand %p4668_p6, %p4662_p3 }
  0x27   :  { %4672 = shalt.err (!%p4669_p7)
}
  0x28   :  { %62 = dma.hbm_to_vmem [thread:$0]  %s6069_s23, 16, %s60_s28, [#allocation5]  }
  0x29   :  { %s6070_s0 = sld [smem:[#allocation46_spill]] }
  0x2f   :  { %s4673_s5 = scalar_lea.hbm %s6070_s0, 48 }
  0x30   :  { %p4674_p8 = scmp.ne.s32.totalorder %s6070_s0, %s4673_s5  ;;  %p4677_p9 = scmp.lt.u32.totalorder %s4673_s5, %s6070_s0 }
  0x32   :  { %p4679_p10 = pnand %p4677_p9, %p4674_p8 }
  0x34   :  { %4682 = shalt.err (!%p4679_p10)
}
  0x35   :  { %s4683_s26 = scalar_lea.vmem %s82_s30, 48  ;;  %s4687_s2 = scalar_lea.vmem %s82_s30, 64 }
  0x36   :  { %p4684_p11 = scmp.ne.s32.totalorder %s82_s30, %s4683_s26  ;;  %p4688_p12 = scmp.lt.s32.totalorder %s82_s30, %s82_s30 }
  0x37   :  { %p4689_p13 = scmp.lt.s32.totalorder %s4687_s2, %s4683_s26 }
  0x39   :  { %p4690_p0 = por %p4689_p13, %p4688_p12 }
  0x3b   :  { %p4691_p1 = pnand %p4690_p0, %p4684_p11 }
  0x3d   :  { %4694 = shalt.err (!%p4691_p1)
}
  0x3e   :  { %84 = dma.hbm_to_vmem [thread:$0]  %s6070_s0, 48, %s82_s30, [#allocation8]  }
  0x3f   :  { %s5091_s27 = smov [#allocation10]   ;;  %s5092_s29 = smov [#allocation13]  }
  0x40   :  { %s103_s3 = sshll.u32 %s5091_s27, 4  ;;  %s123_s4 = sshll.u32 %s5092_s29, 4  ;;  %s104_s3 = int_to_ptr.vmem [resolvable:$true] %s103_s3  ;;  %s124_s4 = int_to_ptr.vmem [resolvable:$true] %s123_s4 }
  0x41   :  { %s4695_s1 = scalar_lea.hbm %s6040_s7, 16 }
  0x42   :  { %p4696_p2 = scmp.ne.s32.totalorder %s6040_s7, %s4695_s1  ;;  %p4699_p3 = scmp.lt.u32.totalorder %s4695_s1, %s6040_s7 }
  0x44   :  { %p4701_p4 = pnand %p4699_p3, %p4696_p2 }
  0x46   :  { %4704 = shalt.err (!%p4701_p4)
}
  0x47   :  { %s4705_s30 = scalar_lea.vmem %s104_s3, 16  ;;  %s4709_s0 = scalar_lea.vmem %s104_s3, 32 }
  0x48   :  { %p4706_p5 = scmp.ne.s32.totalorder %s104_s3, %s4705_s30  ;;  %p4710_p6 = scmp.lt.s32.totalorder %s104_s3, %s104_s3 }
  0x49   :  { %p4711_p7 = scmp.lt.s32.totalorder %s4709_s0, %s4705_s30 }
  0x4b   :  { %p4712_p8 = por %p4711_p7, %p4710_p6 }
  0x4d   :  { %p4713_p9 = pnand %p4712_p8, %p4706_p5 }
  0x4f   :  { %4716 = shalt.err (!%p4713_p9)
}
  0x50   :  { %106 = dma.hbm_to_vmem [thread:$0]  %s6040_s7, 16, %s104_s3, [#allocation11]  }
  0x51   :  { %s4717_s5 = scalar_lea.hbm %s6042_s9, 16 }
  0x52   :  { %p4718_p10 = scmp.ne.s32.totalorder %s6042_s9, %s4717_s5  ;;  %p4721_p11 = scmp.lt.u32.totalorder %s4717_s5, %s6042_s9 }
  0x54   :  { %p4723_p12 = pnand %p4721_p11, %p4718_p10 }
  0x56   :  { %4726 = shalt.err (!%p4723_p12)
}
  0x57   :  { %s4727_s26 = scalar_lea.vmem %s124_s4, 16  ;;  %s4731_s2 = scalar_lea.vmem %s124_s4, 32 }
  0x58   :  { %p4728_p13 = scmp.ne.s32.totalorder %s124_s4, %s4727_s26  ;;  %p4732_p0 = scmp.lt.s32.totalorder %s124_s4, %s124_s4 }
  0x59   :  { %p4733_p1 = scmp.lt.s32.totalorder %s4731_s2, %s4727_s26 }
  0x5b   :  { %p4734_p2 = por %p4733_p1, %p4732_p0 }
  0x5d   :  { %p4735_p3 = pnand %p4734_p2, %p4728_p13 }
  0x5f   :  { %4738 = shalt.err (!%p4735_p3)
}
  0x60   :  { %126 = dma.hbm_to_vmem [thread:$0]  %s6042_s9, 16, %s124_s4, [#allocation14]  }
  0x61   :  { %s5093_s30 = smov [#allocation16]   ;;  %s5094_s28 = smov [#allocation19]  }
  0x62   :  { %s145_s0 = sshll.u32 %s5093_s30, 4  ;;  %s167_s23 = sshll.u32 %s5094_s28, 4  ;;  %s146_s0 = int_to_ptr.vmem [resolvable:$true] %s145_s0  ;;  %s168_s23 = int_to_ptr.vmem [resolvable:$true] %s167_s23 }
  0x63   :  { %s4739_s5 = scalar_lea.hbm %s6044_s11, 16 }
  0x64   :  { %p4740_p4 = scmp.ne.s32.totalorder %s6044_s11, %s4739_s5  ;;  %p4743_p5 = scmp.lt.u32.totalorder %s4739_s5, %s6044_s11 }
  0x66   :  { %p4745_p6 = pnand %p4743_p5, %p4740_p4 }
  0x68   :  { %4748 = shalt.err (!%p4745_p6)
}
  0x69   :  { %s4749_s9 = scalar_lea.vmem %s146_s0, 16  ;;  %s4753_s4 = scalar_lea.vmem %s146_s0, 32 }
  0x6a   :  { %p4750_p7 = scmp.ne.s32.totalorder %s146_s0, %s4749_s9  ;;  %p4754_p8 = scmp.lt.s32.totalorder %s146_s0, %s146_s0 }
  0x6b   :  { %p4755_p9 = scmp.lt.s32.totalorder %s4753_s4, %s4749_s9 }
  0x6d   :  { %p4756_p10 = por %p4755_p9, %p4754_p8 }
  0x6f   :  { %p4757_p11 = pnand %p4756_p10, %p4750_p7 }
  0x71   :  { %4760 = shalt.err (!%p4757_p11)
}
  0x72   :  { %148 = dma.hbm_to_vmem [thread:$0]  %s6044_s11, 16, %s146_s0, [#allocation17]  }
  0x73   :  { %s4761_s30 = scalar_lea.hbm %s6046_s13, 32 }
  0x74   :  { %p4762_p12 = scmp.ne.s32.totalorder %s6046_s13, %s4761_s30  ;;  %p4765_p13 = scmp.lt.u32.totalorder %s4761_s30, %s6046_s13 }
  0x76   :  { %p4767_p0 = pnand %p4765_p13, %p4762_p12 }
  0x78   :  { %4770 = shalt.err (!%p4767_p0)
}
  0x79   :  { %s4771_s24 = scalar_lea.vmem %s168_s23, 32  ;;  %p4776_p2 = scmp.lt.s32.totalorder %s168_s23, %s168_s23 }
  0x7a   :  { %p4772_p1 = scmp.ne.s32.totalorder %s168_s23, %s4771_s24  ;;  %p4777_p3 = scmp.lt.s32.totalorder %s4771_s24, %s4771_s24 }
  0x7c   :  { %p4778_p4 = por %p4777_p3, %p4776_p2 }
  0x7e   :  { %p4779_p5 = pnand %p4778_p4, %p4772_p1 }
  0x80   :  { %4782 = shalt.err (!%p4779_p5)
}
  0x81   :  { %170 = dma.hbm_to_vmem [thread:$0]  %s6046_s13, 32, %s168_s23, [#allocation20]  }
  0x82   :  { %s5095_s1 = smov [#allocation22]   ;;  %s5096_s25 = smov [#allocation25]  }
  0x83   :  { %s189_s6 = sshll.u32 %s5095_s1, 4  ;;  %s209_s9 = sshll.u32 %s5096_s25, 4  ;;  %s190_s6 = int_to_ptr.vmem [resolvable:$true] %s189_s6  ;;  %s210_s9 = int_to_ptr.vmem [resolvable:$true] %s209_s9 }
  0x84   :  { %s4783_s2 = scalar_lea.hbm %s6048_s15, 16 }
  0x85   :  { %p4784_p6 = scmp.ne.s32.totalorder %s6048_s15, %s4783_s2  ;;  %p4787_p7 = scmp.lt.u32.totalorder %s4783_s2, %s6048_s15 }
  0x87   :  { %p4789_p8 = pnand %p4787_p7, %p4784_p6 }
  0x89   :  { %4792 = shalt.err (!%p4789_p8)
}
  0x8a   :  { %s4793_s13 = scalar_lea.vmem %s190_s6, 16  ;;  %s4797_s23 = scalar_lea.vmem %s190_s6, 32 }
  0x8b   :  { %p4794_p9 = scmp.ne.s32.totalorder %s190_s6, %s4793_s13  ;;  %p4798_p10 = scmp.lt.s32.totalorder %s190_s6, %s190_s6 }
  0x8c   :  { %p4799_p11 = scmp.lt.s32.totalorder %s4797_s23, %s4793_s13 }
  0x8e   :  { %p4800_p12 = por %p4799_p11, %p4798_p10 }
  0x90   :  { %p4801_p13 = pnand %p4800_p12, %p4794_p9 }
  0x92   :  { %4804 = shalt.err (!%p4801_p13)
}
  0x93   :  { %192 = dma.hbm_to_vmem [thread:$0]  %s6048_s15, 16, %s190_s6, [#allocation23]  }
  0x94   :  { %s4805_s11 = scalar_lea.hbm %s6050_s17, 16 }
  0x95   :  { %p4806_p0 = scmp.ne.s32.totalorder %s6050_s17, %s4805_s11  ;;  %p4809_p1 = scmp.lt.u32.totalorder %s4805_s11, %s6050_s17 }
  0x97   :  { %p4811_p2 = pnand %p4809_p1, %p4806_p0 }
  0x99   :  { %4814 = shalt.err (!%p4811_p2)
}
  0x9a   :  { %s4815_s26 = scalar_lea.vmem %s210_s9, 16  ;;  %s4819_s2 = scalar_lea.vmem %s210_s9, 32 }
  0x9b   :  { %p4816_p3 = scmp.ne.s32.totalorder %s210_s9, %s4815_s26  ;;  %p4820_p4 = scmp.lt.s32.totalorder %s210_s9, %s210_s9 }
  0x9c   :  { %p4821_p5 = scmp.lt.s32.totalorder %s4819_s2, %s4815_s26 }
  0x9e   :  { %p4822_p6 = por %p4821_p5, %p4820_p4 }
  0xa0   :  { %p4823_p7 = pnand %p4822_p6, %p4816_p3 }
  0xa2   :  { %4826 = shalt.err (!%p4823_p7)
}
  0xa3   :  { %212 = dma.hbm_to_vmem [thread:$0]  %s6050_s17, 16, %s210_s9, [#allocation26]  }
  0xa4   :  { %s5097_s7 = smov [#allocation28]   ;;  %s5098_s30 = smov [#allocation2]  }
  0xa5   :  { %s230_s3 = sshll.u32 %s5097_s7, 4  ;;  %s44_s28 = sshll.u32 %s5098_s30, 4  ;;  %s231_s3 = int_to_ptr.vmem [resolvable:$true] %s230_s3  ;;  %s5330_s28 = int_to_ptr.vmem [resolvable:$true] %s44_s28 }
  0xa6   :  { %s4827_s27 = scalar_lea.hbm %s6053_s20, 4096 }
  0xa7   :  { %p4828_p8 = scmp.ne.s32.totalorder %s6053_s20, %s4827_s27  ;;  %p4831_p9 = scmp.lt.u32.totalorder %s4827_s27, %s6053_s20 }
  0xa9   :  { %p4833_p10 = pnand %p4831_p9, %p4828_p8 }
  0xab   :  { %4836 = shalt.err (!%p4833_p10)
}
  0xac   :  { %s4837_s17 = scalar_lea.vmem %s231_s3, 4096  ;;  %p4842_p12 = scmp.lt.s32.totalorder %s231_s3, %s231_s3 }
  0xad   :  { %p4838_p11 = scmp.ne.s32.totalorder %s231_s3, %s4837_s17  ;;  %p4843_p13 = scmp.lt.s32.totalorder %s4837_s17, %s4837_s17 }
  0xaf   :  { %p4844_p0 = por %p4843_p13, %p4842_p12 }
  0xb1   :  { %p4845_p1 = pnand %p4844_p0, %p4838_p11 }
  0xb3   :  { %4848 = shalt.err (!%p4845_p1)
}
  0xb4   :  { %s5099_s9 = smov 64   ;;  %s5100_s0 = smov 4  }
  0xb5   :  { %236 = dma.hbm_to_vmem [thread:$0]  %s6053_s20, 4096, %s231_s3, [#allocation29], %s5099_s9, %s5099_s9, %s5100_s0  }
  0xb6   :  { %s6071_s2 = sld [smem:[#allocation42_spill]] }
  0xbc   :  { %s4849_s15 = scalar_lea.hbm %s6071_s2, 512 }
  0xbd   :  { %p4850_p2 = scmp.ne.s32.totalorder %s6071_s2, %s4849_s15  ;;  %p4853_p3 = scmp.lt.u32.totalorder %s4849_s15, %s6071_s2 }
  0xbf   :  { %p4855_p4 = pnand %p4853_p3, %p4850_p2 }
  0xc1   :  { %4858 = shalt.err (!%p4855_p4)
}
  0xc2   :  { %s4859_s23 = scalar_lea.vmem %s5330_s28, 512  ;;  %p4864_p6 = scmp.lt.s32.totalorder %s5330_s28, %s5330_s28 }
  0xc3   :  { %p4860_p5 = scmp.ne.s32.totalorder %s5330_s28, %s4859_s23  ;;  %p4865_p7 = scmp.lt.s32.totalorder %s4859_s23, %s4859_s23 }
  0xc5   :  { %p4866_p8 = por %p4865_p7, %p4864_p6 }
  0xc7   :  { %p4867_p9 = pnand %p4866_p8, %p4860_p5 }
  0xc9   :  { %4870 = shalt.err (!%p4867_p9)
}
  0xca   :  { %s5101_s20 = smov 128   ;;  %s5102_s3 = smov 8  }
  0xcb   :  { %50 = dma.hbm_to_vmem [thread:$0]  %s6071_s2, 512, %s5330_s28, [#allocation3], %s5101_s20, %s5101_s20, %s5102_s3  }
  0xcc   :  { %s5103_s5 = smov [#allocation6]   ;;  %s6072_s1 = sld [smem:[#allocation45_spill]] }
  0xcd   :  { %s68_s24 = sshll.u32 %s5103_s5, 4  ;;  %s69_s24 = int_to_ptr.vmem [resolvable:$true] %s68_s24 }
  0xd2   :  { %s4871_s25 = scalar_lea.hbm %s6072_s1, 3072 }
  0xd3   :  { %p4872_p10 = scmp.ne.s32.totalorder %s6072_s1, %s4871_s25  ;;  %p4875_p11 = scmp.lt.u32.totalorder %s4871_s25, %s6072_s1 }
  0xd5   :  { %p4877_p12 = pnand %p4875_p11, %p4872_p10 }
  0xd7   :  { %4880 = shalt.err (!%p4877_p12)
}
  0xd8   :  { %s4881_s7 = scalar_lea.vmem %s69_s24, 3072  ;;  %p4886_p0 = scmp.lt.s32.totalorder %s69_s24, %s69_s24 }
  0xd9   :  { %p4882_p13 = scmp.ne.s32.totalorder %s69_s24, %s4881_s7  ;;  %p4887_p1 = scmp.lt.s32.totalorder %s4881_s7, %s4881_s7 }
  0xdb   :  { %p4888_p2 = por %p4887_p1, %p4886_p0 }
  0xdd   :  { %p4889_p3 = pnand %p4888_p2, %p4882_p13 }
  0xdf   :  { %4892 = shalt.err (!%p4889_p3)
}
  0xe0   :  { %s5104_s28 = smov 192   ;;  %s5105_s2 = smov 12  }
  0xe1   :  { %74 = dma.hbm_to_vmem [thread:$0]  %s6072_s1, 3072, %s69_s24, [#allocation5], %s5104_s28, %s5104_s28, %s5105_s2  }
  0xe2   :  { %s5106_s23 = smov [#allocation9]   ;;  %s5107_s29 = smov [#allocation12]  }
  0xe3   :  { %s90_s27 = sshll.u32 %s5106_s23, 4  ;;  %s113_s5 = sshll.u32 %s5107_s29, 4  ;;  %s91_s27 = int_to_ptr.vmem [resolvable:$true] %s90_s27  ;;  %s114_s5 = int_to_ptr.vmem [resolvable:$true] %s113_s5 }
  0xe4   :  { %s6073_s25 = sld [smem:[#allocation47_spill]] }
  0xea   :  { %s4893_s4 = scalar_lea.hbm %s6073_s25, 1024 }
  0xeb   :  { %p4894_p4 = scmp.ne.s32.totalorder %s6073_s25, %s4893_s4  ;;  %p4897_p5 = scmp.lt.u32.totalorder %s4893_s4, %s6073_s25 }
  0xed   :  { %p4899_p6 = pnand %p4897_p5, %p4894_p4 }
  0xef   :  { %4902 = shalt.err (!%p4899_p6)
}
  0xf0   :  { %s4903_s24 = scalar_lea.vmem %s91_s27, 1024  ;;  %p4908_p8 = scmp.lt.s32.totalorder %s91_s27, %s91_s27 }
  0xf1   :  { %p4904_p7 = scmp.ne.s32.totalorder %s91_s27, %s4903_s24  ;;  %p4909_p9 = scmp.lt.s32.totalorder %s4903_s24, %s4903_s24 }
  0xf3   :  { %p4910_p10 = por %p4909_p9, %p4908_p8 }
  0xf5   :  { %p4911_p11 = pnand %p4910_p10, %p4904_p7 }
  0xf7   :  { %4914 = shalt.err (!%p4911_p11)
}
  0xf8   :  { %96 = dma.hbm_to_vmem [thread:$0]  %s6073_s25, 1024, %s91_s27, [#allocation8], %s5099_s9, %s5099_s9, %s5100_s0  }
  0xf9   :  { %s4915_s13 = scalar_lea.hbm %s6041_s8, 16 }
  0xfa   :  { %p4916_p12 = scmp.ne.s32.totalorder %s6041_s8, %s4915_s13  ;;  %p4919_p13 = scmp.lt.u32.totalorder %s4915_s13, %s6041_s8 }
  0xfc   :  { %p4921_p0 = pnand %p4919_p13, %p4916_p12 }
  0xfe   :  { %4924 = shalt.err (!%p4921_p0)
}
  0xff   :  { %s4925_s4 = scalar_lea.vmem %s114_s5, 16  ;;  %s4929_s26 = scalar_lea.vmem %s114_s5, 32 }
 0x100   :  { %p4926_p1 = scmp.ne.s32.totalorder %s114_s5, %s4925_s4  ;;  %p4930_p2 = scmp.lt.s32.totalorder %s114_s5, %s114_s5 }
 0x101   :  { %p4931_p3 = scmp.lt.s32.totalorder %s4929_s26, %s4925_s4 }
 0x103   :  { %p4932_p4 = por %p4931_p3, %p4930_p2 }
 0x105   :  { %p4933_p5 = pnand %p4932_p4, %p4926_p1 }
 0x107   :  { %4936 = shalt.err (!%p4933_p5)
}
 0x108   :  { %116 = dma.hbm_to_vmem [thread:$0]  %s6041_s8, 16, %s114_s5, [#allocation11]  }
 0x109   :  { %s5108_s15 = smov [#allocation15]   ;;  %s5109_s7 = smov [#allocation18]  }
 0x10a   :  { %s132_s6 = sshll.u32 %s5108_s15, 4  ;;  %s154_s24 = sshll.u32 %s5109_s7, 4  ;;  %s133_s6 = int_to_ptr.vmem [resolvable:$true] %s132_s6  ;;  %s155_s24 = int_to_ptr.vmem [resolvable:$true] %s154_s24 }
 0x10b   :  { %s4937_s2 = scalar_lea.hbm %s6043_s10, 1024 }
 0x10c   :  { %p4938_p6 = scmp.ne.s32.totalorder %s6043_s10, %s4937_s2  ;;  %p4941_p7 = scmp.lt.u32.totalorder %s4937_s2, %s6043_s10 }
 0x10e   :  { %p4943_p8 = pnand %p4941_p7, %p4938_p6 }
 0x110   :  { %4946 = shalt.err (!%p4943_p8)
}
 0x111   :  { %s4947_s8 = scalar_lea.vmem %s133_s6, 1024  ;;  %p4952_p10 = scmp.lt.s32.totalorder %s133_s6, %s133_s6 }
 0x112   :  { %p4948_p9 = scmp.ne.s32.totalorder %s133_s6, %s4947_s8  ;;  %p4953_p11 = scmp.lt.s32.totalorder %s4947_s8, %s4947_s8 }
 0x114   :  { %p4954_p12 = por %p4953_p11, %p4952_p10 }
 0x116   :  { %p4955_p13 = pnand %p4954_p12, %p4948_p9 }
 0x118   :  { %4958 = shalt.err (!%p4955_p13)
}
 0x119   :  { %138 = dma.hbm_to_vmem [thread:$0]  %s6043_s10, 1024, %s133_s6, [#allocation14], %s5099_s9, %s5099_s9, %s5100_s0  }
 0x11a   :  { %s4959_s26 = scalar_lea.hbm %s6045_s12, 2048 }
 0x11b   :  { %p4960_p0 = scmp.ne.s32.totalorder %s6045_s12, %s4959_s26  ;;  %p4963_p1 = scmp.lt.u32.totalorder %s4959_s26, %s6045_s12 }
 0x11d   :  { %p4965_p2 = pnand %p4963_p1, %p4960_p0 }
 0x11f   :  { %4968 = shalt.err (!%p4965_p2)
}
 0x120   :  { %s4969_s1 = scalar_lea.vmem %s155_s24, 2048  ;;  %p4974_p4 = scmp.lt.s32.totalorder %s155_s24, %s155_s24 }
 0x121   :  { %p4970_p3 = scmp.ne.s32.totalorder %s155_s24, %s4969_s1  ;;  %p4975_p5 = scmp.lt.s32.totalorder %s4969_s1, %s4969_s1 }
 0x123   :  { %p4976_p6 = por %p4975_p5, %p4974_p4 }
 0x125   :  { %p4977_p7 = pnand %p4976_p6, %p4970_p3 }
 0x127   :  { %4980 = shalt.err (!%p4977_p7)
}
 0x128   :  { %160 = dma.hbm_to_vmem [thread:$0]  %s6045_s12, 2048, %s155_s24, [#allocation17], %s5101_s20, %s5101_s20, %s5102_s3  }
 0x129   :  { %s5110_s28 = smov [#allocation21]   ;;  %s5111_s30 = smov [#allocation24]  }
 0x12a   :  { %s176_s2 = sshll.u32 %s5110_s28, 4  ;;  %s199_s13 = sshll.u32 %s5111_s30, 4  ;;  %s177_s2 = int_to_ptr.vmem [resolvable:$true] %s176_s2  ;;  %s200_s13 = int_to_ptr.vmem [resolvable:$true] %s199_s13 }
 0x12b   :  { %s4981_s8 = scalar_lea.hbm %s6047_s14, 1024 }
 0x12c   :  { %p4982_p8 = scmp.ne.s32.totalorder %s6047_s14, %s4981_s8  ;;  %p4985_p9 = scmp.lt.u32.totalorder %s4981_s8, %s6047_s14 }
 0x12e   :  { %p4987_p10 = pnand %p4985_p9, %p4982_p8 }
 0x130   :  { %4990 = shalt.err (!%p4987_p10)
}
 0x131   :  { %s4991_s12 = scalar_lea.vmem %s177_s2, 1024  ;;  %p4996_p12 = scmp.lt.s32.totalorder %s177_s2, %s177_s2 }
 0x132   :  { %p4992_p11 = scmp.ne.s32.totalorder %s177_s2, %s4991_s12  ;;  %p4997_p13 = scmp.lt.s32.totalorder %s4991_s12, %s4991_s12 }
 0x134   :  { %p4998_p0 = por %p4997_p13, %p4996_p12 }
 0x136   :  { %p4999_p1 = pnand %p4998_p0, %p4992_p11 }
 0x138   :  { %5002 = shalt.err (!%p4999_p1)
}
 0x139   :  { %182 = dma.hbm_to_vmem [thread:$0]  %s6047_s14, 1024, %s177_s2, [#allocation20], %s5099_s9, %s5099_s9, %s5100_s0  }
 0x13a   :  { %s5003_s27 = scalar_lea.hbm %s6049_s16, 16 }
 0x13b   :  { %p5004_p2 = scmp.ne.s32.totalorder %s6049_s16, %s5003_s27  ;;  %p5007_p3 = scmp.lt.u32.totalorder %s5003_s27, %s6049_s16 }
 0x13d   :  { %p5009_p4 = pnand %p5007_p3, %p5004_p2 }
 0x13f   :  { %5012 = shalt.err (!%p5009_p4)
}
 0x140   :  { %s5013_s10 = scalar_lea.vmem %s200_s13, 16  ;;  %s5017_s6 = scalar_lea.vmem %s200_s13, 32 }
 0x141   :  { %p5014_p5 = scmp.ne.s32.totalorder %s200_s13, %s5013_s10  ;;  %p5018_p6 = scmp.lt.s32.totalorder %s200_s13, %s200_s13 }
 0x142   :  { %p5019_p7 = scmp.lt.s32.totalorder %s5017_s6, %s5013_s10 }
 0x144   :  { %p5020_p8 = por %p5019_p7, %p5018_p6 }
 0x146   :  { %p5021_p9 = pnand %p5020_p8, %p5014_p5 }
 0x148   :  { %5024 = shalt.err (!%p5021_p9)
}
 0x149   :  { %202 = dma.hbm_to_vmem [thread:$0]  %s6049_s16, 16, %s200_s13, [#allocation23]  }
 0x14a   :  { %s5112_s28 = smov [#allocation27]   ;;  %s5113_s30 = smov [#allocation30]  }
 0x14b   :  { %s221_s2 = sshll.u32 %s5112_s28, 4  ;;  %s243_s23 = sshll.u32 %s5113_s30, 4  ;;  %s222_s2 = int_to_ptr.vmem [resolvable:$true] %s221_s2  ;;  %s244_s23 = int_to_ptr.vmem [resolvable:$true] %s243_s23 }
 0x14c   :  { %s5025_s5 = scalar_lea.hbm %s6052_s19, 64 }
 0x14d   :  { %p5026_p10 = scmp.ne.s32.totalorder %s6052_s19, %s5025_s5  ;;  %p5029_p11 = scmp.lt.u32.totalorder %s5025_s5, %s6052_s19 }
 0x14f   :  { %p5031_p12 = pnand %p5029_p11, %p5026_p10 }
 0x151   :  { %5034 = shalt.err (!%p5031_p12)
}
 0x152   :  { %s5035_s16 = scalar_lea.vmem %s222_s2, 64  ;;  %p5040_p0 = scmp.lt.s32.totalorder %s222_s2, %s222_s2 }
 0x153   :  { %p5036_p13 = scmp.ne.s32.totalorder %s222_s2, %s5035_s16  ;;  %p5041_p1 = scmp.lt.s32.totalorder %s5035_s16, %s5035_s16 }
 0x155   :  { %p5042_p2 = por %p5041_p1, %p5040_p0 }
 0x157   :  { %p5043_p3 = pnand %p5042_p2, %p5036_p13 }
 0x159   :  { %5046 = shalt.err (!%p5043_p3)
}
 0x15a   :  { %224 = dma.hbm_to_vmem [thread:$0]  %s6052_s19, 64, %s222_s2, [#allocation26]  }
 0x15b   :  { %s5047_s26 = scalar_lea.hbm %s6054_s21, 16 }
 0x15c   :  { %p5048_p4 = scmp.ne.s32.totalorder %s6054_s21, %s5047_s26  ;;  %p5051_p5 = scmp.lt.u32.totalorder %s5047_s26, %s6054_s21 }
 0x15e   :  { %p5053_p6 = pnand %p5051_p5, %p5048_p4 }
 0x160   :  { %5056 = shalt.err (!%p5053_p6)
}
 0x161   :  { %s5057_s1 = scalar_lea.vmem %s244_s23, 16  ;;  %s5061_s10 = scalar_lea.vmem %s244_s23, 32 }
 0x162   :  { %p5058_p7 = scmp.ne.s32.totalorder %s244_s23, %s5057_s1  ;;  %p5062_p8 = scmp.lt.s32.totalorder %s244_s23, %s244_s23 }
 0x163   :  { %p5063_p9 = scmp.lt.s32.totalorder %s5061_s10, %s5057_s1 }
 0x165   :  { %p5064_p10 = por %p5063_p9, %p5062_p8 }
 0x167   :  { %p5065_p11 = pnand %p5064_p10, %p5058_p7 }
 0x169   :  { %5068 = shalt.err (!%p5065_p11)
}
 0x16a   :  { %246 = dma.hbm_to_vmem [thread:$0]  %s6054_s21, 16, %s244_s23, [#allocation29]  }
 0x16b   :  { %5069 = dma.done.wait [#allocation3], 512  }
 0x16c   :  { %5070 = vsyncadd [#allocation3], 4294966784 }
 0x16d   :  { %5071 = dma.done.wait [#allocation5], 3088  }
 0x16e   :  { %5072 = vsyncadd [#allocation5], 4294964208 }
 0x16f   :  { %5073 = dma.done.wait [#allocation8], 1072  }
 0x170   :  { %5074 = vsyncadd [#allocation8], 4294966224 }
 0x171   :  { %5075 = dma.done.wait [#allocation11], 32  }
 0x172   :  { %5076 = vsyncadd [#allocation11], 4294967264 }
 0x173   :  { %5077 = dma.done.wait [#allocation14], 1040  }
 0x174   :  { %5078 = vsyncadd [#allocation14], 4294966256 }
 0x175   :  { %5079 = dma.done.wait [#allocation17], 2064  }
 0x176   :  { %5080 = vsyncadd [#allocation17], 4294965232 }
 0x177   :  { %5081 = dma.done.wait [#allocation20], 1056  }
 0x178   :  { %5082 = vsyncadd [#allocation20], 4294966240 }
 0x179   :  { %5083 = dma.done.wait [#allocation23], 32  }
 0x17a   :  { %5084 = vsyncadd [#allocation23], 4294967264 }
 0x17b   :  { %5085 = dma.done.wait [#allocation26], 80  }
 0x17c   :  { %5086 = vsyncadd [#allocation26], 4294967216 }
 0x17d   :  { %5087 = dma.done.wait [#allocation29], 4112  }
 0x17e   :  { %5088 = vsyncadd [#allocation29], 4294963184  ;;  %s6074_s0 = sld [smem:[#allocation41_spill]]  ;;  %v4397_v2 = vld [vmem:[#allocation6 + $0x4] ss:$12 sps:$4 sm:$0xff]   ;;  %v5114_v4 = vmov 0.0   ;;  %v387_v53 = vlaneseq }
 0x17f   :  { %v4399_v3 = vld [vmem:[#allocation6] ss:$12 sps:$4 sm:$0xff]   ;;  %4065 = vmatprep.subr.bf16.mxu1 %v5114_v4  ;;  %v4400_v5 = vld [vmem:[#allocation6 + $0x8] ss:$12 sps:$4 sm:$0xff]   ;;  %530 = vmatprep.subr.bf16.mxu0 %v4397_v2  ;;  %v4403_v15 = vld [vmem:[#allocation6 + $0x18] ss:$12 sps:$4 sm:$0xff]  }
 0x180   :  { %v4401_v6 = vld [vmem:[#allocation6 + $0x1c] ss:$12 sps:$4 sm:$0xff]   ;;  %531 = vmatpush1.bf16.msra.mxu0 %v4399_v3  ;;  %4066 = vmatpush3.bf16.msra.mxu1 %v4400_v5  ;;  %v4404_v16 = vld [vmem:[#allocation6 + $0x20] ss:$12 sps:$4 sm:$0xff]   ;;  %v4408_v19 = vld [vmem:[#allocation6 + $0x38] ss:$12 sps:$4 sm:$0xff]  }
 0x181   :  { %532 = vmatprep.subr.bf16.mxu0 %v4401_v6  ;;  %4067 = vmatprep.subr.bf16.mxu1 %v5114_v4  ;;  %v4405_v17 = vld [vmem:[#allocation6 + $0x34] ss:$12 sps:$4 sm:$0xff]   ;;  %v4407_v18 = vld [vmem:[#allocation6 + $0x30] ss:$12 sps:$4 sm:$0xff]   ;;  %v4409_v20 = vld [vmem:[#allocation6 + $0x4c] ss:$12 sps:$4 sm:$0xff]  }
 0x182   :  { %v4411_v21 = vld [vmem:[#allocation6 + $0x48] ss:$12 sps:$4 sm:$0xff]   ;;  %v4412_v22 = vld [vmem:[#allocation6 + $0x50] ss:$12 sps:$4 sm:$0xff]   ;;  %v4415_v24 = vld [vmem:[#allocation6 + $0x60] ss:$12 sps:$4 sm:$0xff]  }
 0x183   :  { %v4413_v23 = vld [vmem:[#allocation6 + $0x64] ss:$12 sps:$4 sm:$0xff]   ;;  %v4416_v25 = vld [vmem:[#allocation6 + $0x68] ss:$12 sps:$4 sm:$0xff]   ;;  %v4420_v28 = vld [vmem:[#allocation6 + $0x80] ss:$12 sps:$4 sm:$0xff]  }
 0x184   :  { %v305_v0 = vld [vmem:[%s6074_s0] sm:$0xff]  ;;  %v306_v1 = vld [vmem:[%s6074_s0 + $0x8] sm:$0xff]  ;;  %533 = vmatpush1.bf16.msra.mxu0 %v4403_v15  ;;  %4068 = vmatpush3.bf16.msra.mxu1 %v4404_v16  ;;  %v5115_v30 = vmov 0   ;;  %vm5116_vm0 = vmmov 0   ;;  %s6075_s29 = sld [smem:[#allocation43_spill]]  ;;  %v5523_v54 = vshrl.u32 %v387_v53, 7 }
 0x185   :  { %311 = vadd.xlane.f32.xlu0 %v305_v0  ;;  %4069 = vmatprep.subr.bf16.mxu1 %v5114_v4  ;;  %v4417_v26 = vld [vmem:[#allocation6 + $0x7c] ss:$12 sps:$4 sm:$0xff]   ;;  %v4419_v27 = vld [vmem:[#allocation6 + $0x78] ss:$12 sps:$4 sm:$0xff]   ;;  %v4421_v29 = vld [vmem:[#allocation6 + $0x94] ss:$12 sps:$4 sm:$0xff]  }
 0x186   :  { %534 = vmatprep.subr.bf16.mxu0 %v4405_v17  ;;  %562 = vmatprep.mubr.bf16.mxu0 %v5115_v30  ;;  %v4423_v31 = vld [vmem:[#allocation6 + $0x90] ss:$12 sps:$4 sm:$0xff]   ;;  %v4424_v32 = vld [vmem:[#allocation6 + $0x98] ss:$12 sps:$4 sm:$0xff]   ;;  %v4427_v34 = vld [vmem:[#allocation6 + $0xa8] ss:$12 sps:$4 sm:$0xff]  }
 0x187   :  { %4081 = vmatprep.mubr.msk.bf16.mxu1 %vm5116_vm0, %v5114_v4  ;;  %v4425_v33 = vld [vmem:[#allocation6 + $0xac] ss:$12 sps:$4 sm:$0xff]   ;;  %v4428_v35 = vld [vmem:[#allocation6 + $0xb0] ss:$12 sps:$4 sm:$0xff]   ;;  %v5526_v55 = vsub.s32 1, %v5523_v54  ;;  %v5529_v57 = vsub.s32 0, %v5523_v54 }
 0x188   :  { %535 = vmatpush1.bf16.msra.mxu0 %v4407_v18  ;;  %4070 = vmatpush3.bf16.msra.mxu1 %v4408_v19  ;;  %v3752_v48 = vld [vmem:[#allocation4] ss:$0 sm:$0xff]  ;;  %v385_v56 = vld [vmem:[#allocation7] sm:$0x7]  ;;  %v397_v58 = vsub.s32 2, %v5523_v54  ;;  %vm622_vm1 = vcmask 261120  }
 0x189   :  { %313 = vadd.xlane.f32.xlu0 %v306_v1  ;;  %4071 = vmatprep.subr.bf16.mxu1 %v5114_v4  ;;  %v394_v59 = vrot.slane %v385_v56, %v5526_v55  ;;  %v390_v62 = vrot.slane %v385_v56, %v5529_v57  ;;  %vm687_vm2 = vcmask 1043456   ;;  %v617_v18 = vand.u32 127, %v387_v53  ;;  %s5117_s8 = smov 96   ;;  %s5118_s5 = smov 32  }
 0x18a   :  { %536 = vmatprep.subr.bf16.mxu0 %v4409_v20  ;;  %v3751_v44 = vld [vmem:[%s6075_s29] ss:$0 sm:$0xff]  ;;  %v398_v63 = vrot.slane %v385_v56, %v397_v58  ;;  %vm671_vm4 = vcmask 64512   ;;  %vm1083_vm5 = vcmask 523264   ;;  %vm1085_vm6 = vcmask 785408  }
 0x18b   :  { %vm5549_vm3 = vcmp.le.s32.totalorder %v617_v18, %v5523_v54  ;;  %vm2033_vm7 = vcmask 130048  }
 0x18c   :  { %537 = vmatpush1.bf16.msra.mxu0 %v4411_v21  ;;  %4072 = vmatpush3.bf16.msra.mxu1 %v4412_v22 }
 0x18d   :  { %4073 = vmatprep.subr.bf16.mxu1 %v5114_v4  ;;  %538 = vmatprep.subr.bf16.mxu0 %v4413_v23 }
 0x190   :  { %539 = vmatpush1.bf16.msra.mxu0 %v4415_v24  ;;  %4074 = vmatpush3.bf16.msra.mxu1 %v4416_v25 }
 0x191   :  { %540 = vmatprep.subr.bf16.mxu0 %v4417_v26  ;;  %4075 = vmatprep.subr.bf16.mxu1 %v5114_v4 }
 0x194   :  { %541 = vmatpush1.bf16.msra.mxu0 %v4419_v27  ;;  %4076 = vmatpush3.bf16.msra.mxu1 %v4420_v28 }
 0x195   :  { %542 = vmatprep.subr.bf16.mxu0 %v4421_v29  ;;  %4077 = vmatprep.subr.bf16.mxu1 %v5114_v4 }
 0x198   :  { %543 = vmatpush1.bf16.msra.mxu0 %v4423_v31  ;;  %4078 = vmatpush3.bf16.msra.mxu1 %v4424_v32 }
 0x199   :  { %544 = vmatprep.subr.bf16.mxu0 %v4425_v33  ;;  %4079 = vmatprep.subr.bf16.mxu1 %v5114_v4 }
 0x19c   :  { %545 = vmatpush1.bf16.msra.mxu0 %v4427_v34  ;;  %4080 = vmatpush3.bf16.msra.mxu1 %v4428_v35 }
 0x19d   :  { %4085 = vmatprep.subr.bf16.mxu0 %v5114_v4  ;;  %4103 = vmatprep.subr.bf16.mxu1 %v5114_v4 }
 0x212   :  { %v312_v7 = vpop.xlane.xlu0 %311 }
 0x213   :  { %v316_v8 = vmul.f32 0.0078125, %v312_v7 }
 0x215   :  { %v5495_v9 = vsub.f32 %v305_v0, %v316_v8 }
 0x216   :  { %v314_v10 = vpop.xlane.xlu0 %313 }
 0x217   :  { %v317_v11 = vmul.f32 0.0078125, %v314_v10  ;;  %v320_v12 = vmul.f32 %v5495_v9, %v5495_v9 }
 0x219   :  { %v5499_v13 = vsub.f32 %v306_v1, %v317_v11  ;;  %322 = vadd.xlane.f32.xlu1 %v320_v12 }
 0x21b   :  { %v321_v14 = vmul.f32 %v5499_v13, %v5499_v13 }
 0x21d   :  { %324 = vadd.xlane.f32.xlu1 %v321_v14 }
 0x2a6   :  { %v323_v36 = vpop.xlane.xlu1 %322 }
 0x2a7   :  { %v326_v37 = vmul.f32 0.0078125, %v323_v36 }
 0x2a9   :  { %v328_v38 = vadd.f32 1e-05, %v326_v37 }
 0x2aa   :  { %v325_v39 = vpop.xlane.xlu1 %324 }
 0x2ab   :  { %4557 = vrsqrt.f32 %v328_v38  ;;  %v327_v40 = vmul.f32 0.0078125, %v325_v39 }
 0x2ad   :  { %v329_v41 = vadd.f32 1e-05, %v327_v40 }
 0x2af   :  { %4559 = vrsqrt.f32 %v329_v41 }
 0x2b5   :  { %v4558_v42 = vpop.eup %4557 }
 0x2b6   :  { %v332_v43 = vmul.f32 %v4558_v42, %v5495_v9 }
 0x2b8   :  { %v341_v47 = vmul.f32 %v3751_v44, %v332_v43 }
 0x2b9   :  { %v4560_v45 = vpop.eup %4559 }
 0x2ba   :  { %v333_v46 = vmul.f32 %v4560_v45, %v5499_v13  ;;  %v350_v50 = vadd.f32 %v3752_v48, %v341_v47 }
 0x2bc   :  { %v342_v49 = vmul.f32 %v3751_v44, %v333_v46 }
 0x2be   :  { %v351_v51 = vadd.f32 %v3752_v48, %v342_v49 }
 0x2c0   :  { %v352_v52 = vpack.c.bf16 %v351_v51, %v350_v50 }
 0x2c2   :  { %563 = vmatmul.mubr.bf16.vlgmr.msra.gmra.mrb[0].mxu0 %v352_v52  ;;  %4082 = vmatmul.mubr.bf16.vlgmr.msra.gmra.mrb[0].mxu1 %v352_v52 }
 0x2c3   :  { %4087 = vmatprep.mubr.msk.bf16.mxu0 %vm5116_vm0, %v5114_v4  ;;  %4105 = vmatprep.mubr.msk.bf16.mxu1 %vm5116_vm0, %v5114_v4 }
 0x395   :  { %v564_v60 = vpop.f32.mrb[0].mxu0  ;;  %v607_v61 = vpop.f32.mrb[0].mxu1 }
 0x396   :  { %v566_v0 = vpop.f32.mrb[1].mxu0  ;;  %v4083_v1 = vpop.f32.mrb[1].mxu1  ;;  %v608_v12 = vadd.f32 %v607_v61, %v398_v63  ;;  %v565_v14 = vadd.f32 %v564_v60, %v390_v62 }
 0x397   :  { %v567_v2 = vadd.f32 %v566_v0, %v394_v59  ;;  %v568_v3 = vpop.f32.mrb[2].mxu0  ;;  %v610_v5 = vpop.f32.mrb[2].mxu1 }
 0x398   :  { %v569_v6 = vadd.f32 %v568_v3, %v390_v62  ;;  %v5536_v7 = vadd.f32 %v610_v5, %v398_v63  ;;  %v570_v8 = vpop.f32.mrb[3].mxu0  ;;  %v4084_v9 = vpop.f32.mrb[3].mxu1  ;;  %v5540_v15 = vpack.c.bf16 %v608_v12, %v608_v12  ;;  %v619_v16 = vpack.c.bf16 %v565_v14, %v565_v14 }
 0x399   :  { %v620_v10 = vpack.c.bf16 %v567_v2, %v567_v2  ;;  %v571_v11 = vadd.f32 %v570_v8, %v394_v59 }
 0x39a   :  { %v689_v17 = vsel %vm687_vm2, %v5540_v15, 0  ;;  %v1087_v34 = vpack.c.bf16 %v569_v6, %v569_v6 }
 0x39b   :  { %v627_v13 = vsel %vm622_vm1, %v620_v10, 0  ;;  %v1088_v27 = vpack.c.bf16 %v571_v11, %v571_v11 }
 0x39c   :  { %4086 = vmatpush3.bf16.xpose.msra.mxu0 %v627_v13 }
 0x39d   :  { %4091 = vmatprep.subr.bf16.mxu0 %v5114_v4  ;;  %v1094_v48 = vsel %vm622_vm1, %v1088_v27, 0 }
 0x3a3   :  { %4088 = vmatmul.mubr.msk.bf16.vlgmr.msra.gmra.mrb[4].mxu0 %vm622_vm1, %v619_v16 }
 0x3a4   :  { %4092 = vmatpush3.bf16.msra.mxu0 %v689_v17  ;;  %4093 = vmatprep.mubr.msk.bf16.mxu0 %vm5116_vm0, %v5114_v4 }
 0x3a5   :  { %4097 = vmatprep.subr.bf16.mxu0 %v5114_v4 }
 0x476   :  { %v663_v19 = vpop.f32.mrb[4].mxu0 }
 0x477   :  { %v669_v21 = vmul.f32 0.17677669, %v663_v19  ;;  %v4089_v22 = vpop.f32.mrb[5].mxu0 }
 0x478   :  { %v666_v23 = vpop.f32.mrb[6].mxu0 }
 0x479   :  { %v4090_v24 = vpop.f32.mrb[7].mxu0  ;;  %v670_v25 = vsel %vm5549_vm3, %v669_v21, -1e+30 }
 0x47a   :  { %v672_v26 = vsel %vm671_vm4, %v670_v25, -inf }
 0x47b   :  { %673 = vmax.xlane.f32.xlu0 %v672_v26 }
 0x491   :  { %735 = vrot.lane.b32.xlu0 %v620_v10, %s5117_s8 }
 0x495   :  { %960 = vrot.lane.b32.xlu0 %v620_v10, %s5118_s5 }
 0x499   :  { %1200 = vrot.lane.b32.xlu0 %v1088_v27, %s5117_s8 }
 0x49d   :  { %1313 = vrot.lane.b32.xlu0 %v1088_v27, %s5099_s9 }
 0x4a1   :  { %1425 = vrot.lane.b32.xlu0 %v1088_v27, %s5118_s5 }
 0x508   :  { %v674_v28 = vpop.xlane.xlu0 %673 }
 0x509   :  { %v675_v29 = vsub.f32 %v670_v25, %v674_v28 }
 0x50b   :  { %v676_v31 = vmul.f32 1.442695, %v675_v29 }
 0x50c   :  { %v736_v38 = vpop.permute.xlu0 %735 }
 0x50d   :  { %4561 = vpow2.f32 %v676_v31  ;;  %v741_v41 = vsel %vm622_vm1, %v736_v38, 0 }
 0x510   :  { %v961_v44 = vpop.permute.xlu0 %960 }
 0x511   :  { %v966_v46 = vsel %vm622_vm1, %v961_v44, 0 }
 0x514   :  { %v1201_v49 = vpop.permute.xlu0 %1200 }
 0x515   :  { %v1206_v50 = vsel %vm622_vm1, %v1201_v49, 0 }
 0x517   :  { %v4562_v32 = vpop.eup %4561 }
 0x518   :  { %v678_v33 = vsel %vm671_vm4, %v4562_v32, 0.0  ;;  %v1314_v51 = vpop.permute.xlu0 %1313 }
 0x519   :  { %679 = vadd.xlane.f32.xlu1 %v678_v33  ;;  %v1319_v53 = vsel %vm622_vm1, %v1314_v51, 0 }
 0x51c   :  { %v1426_v56 = vpop.permute.xlu0 %1425 }
 0x51d   :  { %v1431_v60 = vsel %vm622_vm1, %v1426_v56, 0 }
 0x52a   :  { %732 = vrot.lane.b32.xlu1 %v619_v16, %s5117_s8 }
 0x52e   :  { %848 = vrot.lane.b32.xlu1 %v620_v10, %s5099_s9 }
 0x532   :  { %846 = vrot.lane.b32.xlu1 %v619_v16, %s5099_s9 }
 0x536   :  { %958 = vrot.lane.b32.xlu1 %v619_v16, %s5118_s5 }
 0x53a   :  { %1197 = vrot.lane.b32.xlu1 %v1087_v34, %s5117_s8 }
 0x53e   :  { %1311 = vrot.lane.b32.xlu1 %v1087_v34, %s5099_s9 }
 0x542   :  { %1423 = vrot.lane.b32.xlu1 %v1087_v34, %s5118_s5 }
 0x5a6   :  { %v680_v35 = vpop.xlane.xlu1 %679 }
 0x5a7   :  { %4563 = vrcp.f32 %v680_v35 }
 0x5aa   :  { %v733_v40 = vpop.permute.xlu1 %732 }
 0x5ae   :  { %v849_v42 = vpop.permute.xlu1 %848 }
 0x5af   :  { %v854_v43 = vsel %vm622_vm1, %v849_v42, 0 }
 0x5b1   :  { %v4564_v36 = vpop.eup %4563 }
 0x5b2   :  { %v682_v37 = vmul.f32 %v4564_v36, %v4562_v32  ;;  %v847_v45 = vpop.permute.xlu1 %846 }
 0x5b4   :  { %v683_v39 = vpack.c.bf16 %v682_v37, %v682_v37 }
 0x5b6   :  { %4094 = vmatmul.mubr.msk.bf16.vlgmr.msra.gmra.mrb[8].mxu0 %vm671_vm4, %v683_v39  ;;  %v959_v47 = vpop.permute.xlu1 %958 }
 0x5b7   :  { %4098 = vmatpush3.bf16.xpose.msra.mxu0 %v741_v41  ;;  %4099 = vmatprep.mubr.msk.bf16.mxu0 %vm5116_vm0, %v5114_v4 }
 0x5b8   :  { %4109 = vmatprep.subr.bf16.mxu0 %v5114_v4 }
 0x5ba   :  { %v1198_v52 = vpop.permute.xlu1 %1197 }
 0x5be   :  { %4100 = vmatmul.mubr.msk.bf16.vlgmr.msra.gmra.mrb[12].mxu0 %vm622_vm1, %v733_v40  ;;  %v1312_v59 = vpop.permute.xlu1 %1311 }
 0x5bf   :  { %4110 = vmatpush3.bf16.xpose.msra.mxu0 %v854_v43  ;;  %4111 = vmatprep.mubr.msk.bf16.mxu0 %vm5116_vm0, %v5114_v4 }
 0x5c0   :  { %4121 = vmatprep.subr.bf16.mxu0 %v5114_v4 }
 0x5c2   :  { %v1424_v61 = vpop.permute.xlu1 %1423 }
 0x5c6   :  { %4112 = vmatmul.mubr.msk.bf16.vlgmr.msra.gmra.mrb[16].mxu0 %vm622_vm1, %v847_v45 }
 0x5c7   :  { %4122 = vmatpush3.bf16.xpose.msra.mxu0 %v966_v46  ;;  %4123 = vmatprep.mubr.msk.bf16.mxu0 %vm5116_vm0, %v5114_v4 }
 0x5c8   :  { %4133 = vmatprep.subr.bf16.mxu0 %v5114_v4 }
 0x5ce   :  { %4124 = vmatmul.mubr.msk.bf16.vlgmr.msra.gmra.mrb[20].mxu0 %vm622_vm1, %v959_v47 }
 0x5cf   :  { %4134 = vmatpush3.bf16.xpose.msra.mxu0 %v1094_v48  ;;  %4135 = vmatprep.mubr.msk.bf16.mxu0 %vm5116_vm0, %v5114_v4 }
 0x5d0   :  { %4145 = vmatprep.subr.bf16.mxu0 %v5114_v4 }
 0x5d6   :  { %4136 = vmatmul.mubr.msk.bf16.vlgmr.msra.gmra.mrb[24].mxu0 %vm622_vm1, %v1087_v34 }
 0x5d7   :  { %4146 = vmatpush3.bf16.xpose.msra.mxu0 %v1206_v50  ;;  %4147 = vmatprep.mubr.msk.bf16.mxu0 %vm5116_vm0, %v5114_v4 }
 0x5d8   :  { %4157 = vmatprep.subr.bf16.mxu0 %v5114_v4 }
 0x5de   :  { %4148 = vmatmul.mubr.msk.bf16.vlgmr.msra.gmra.mrb[28].mxu0 %vm622_vm1, %v1198_v52 }
 0x5df   :  { %4158 = vmatpush3.bf16.xpose.msra.mxu0 %v1319_v53  ;;  %4159 = vmatprep.mubr.msk.bf16.mxu0 %vm5116_vm0, %v5114_v4 }
 0x5e0   :  { %4169 = vmatprep.subr.bf16.mxu0 %v5114_v4 }
 0x5e6   :  { %4160 = vmatmul.mubr.msk.bf16.vlgmr.msra.gmra.mrb[32].mxu0 %vm622_vm1, %v1312_v59 }
 0x5e7   :  { %4170 = vmatpush3.bf16.xpose.msra.mxu0 %v1431_v60  ;;  %4171 = vmatprep.mubr.msk.bf16.mxu0 %vm5116_vm0, %v5114_v4 }
 0x5e8   :  { %4181 = vmatprep.subr.bf16.mxu0 %v5114_v4 }
 0x5ee   :  { %4172 = vmatmul.mubr.msk.bf16.vlgmr.msra.gmra.mrb[36].mxu0 %vm622_vm1, %v1424_v61 }
 0x5ef   :  { %4197 = vmatprep.mubr.msk.bf16.mxu0 %vm5116_vm0, %v5114_v4 }
 0x689   :  { %v5607_v62 = vpop.f32.mrb[8].mxu0 }
 0x68a   :  { %v4095_v63 = vpop.f32.mrb[9].mxu0 }
 0x68b   :  { %v728_v0 = vpop.f32.mrb[10].mxu0 }
 0x68c   :  { %v4096_v1 = vpop.f32.mrb[11].mxu0 }
 0x691   :  { %v777_v2 = vpop.f32.mrb[12].mxu0 }
 0x692   :  { %v783_v3 = vmul.f32 0.17677669, %v777_v2  ;;  %v4101_v5 = vpop.f32.mrb[13].mxu0 }
 0x693   :  { %v780_v6 = vpop.f32.mrb[14].mxu0 }
 0x694   :  { %v4102_v8 = vpop.f32.mrb[15].mxu0  ;;  %v784_v9 = vsel %vm5549_vm3, %v783_v3, -1e+30 }
 0x695   :  { %v785_v10 = vsel %vm671_vm4, %v784_v9, -inf }
 0x696   :  { %786 = vmax.xlane.f32.xlu0 %v785_v10 }
 0x699   :  { %v890_v11 = vpop.f32.mrb[16].mxu0 }
 0x69a   :  { %v896_v12 = vmul.f32 0.17677669, %v890_v11  ;;  %v4113_v13 = vpop.f32.mrb[17].mxu0 }
 0x69b   :  { %v893_v14 = vpop.f32.mrb[18].mxu0 }
 0x69c   :  { %v4114_v16 = vpop.f32.mrb[19].mxu0  ;;  %v897_v17 = vsel %vm5549_vm3, %v896_v12, -1e+30 }
 0x69d   :  { %v898_v18 = vsel %vm671_vm4, %v897_v17, -inf }
 0x69e   :  { %899 = vmax.xlane.f32.xlu1 %v898_v18 }
 0x6a1   :  { %v1002_v19 = vpop.f32.mrb[20].mxu0 }
 0x6a2   :  { %v1008_v21 = vmul.f32 0.17677669, %v1002_v19  ;;  %v4125_v22 = vpop.f32.mrb[21].mxu0 }
 0x6a3   :  { %v1005_v23 = vpop.f32.mrb[22].mxu0 }
 0x6a4   :  { %v4126_v24 = vpop.f32.mrb[23].mxu0  ;;  %v1009_v25 = vsel %vm5549_vm3, %v1008_v21, -1e+30  ;;  %v1089_v23 = vpack.c.bf16 %v5536_v7, %v5536_v7 }
 0x6a5   :  { %v1010_v26 = vsel %vm671_vm4, %v1009_v25, -inf }
 0x6a6   :  { %1011 = vmax.xlane.f32.xlu0 %v1010_v26 }
 0x6a9   :  { %v1130_v27 = vpop.f32.mrb[24].mxu0 }
 0x6aa   :  { %v1136_v28 = vmul.f32 0.17677669, %v1130_v27  ;;  %v4137_v29 = vpop.f32.mrb[25].mxu0 }
 0x6ab   :  { %v1133_v31 = vpop.f32.mrb[26].mxu0 }
 0x6ac   :  { %v4138_v32 = vpop.f32.mrb[27].mxu0  ;;  %v1137_v33 = vsel %vm5549_vm3, %v1136_v28, -1e+30 }
 0x6ad   :  { %v1138_v34 = vsel %vm671_vm4, %v1137_v33, -inf }
 0x6ae   :  { %1139 = vmax.xlane.f32.xlu0 %v1138_v34 }
 0x6b1   :  { %v1242_v35 = vpop.f32.mrb[28].mxu0 }
 0x6b2   :  { %v1248_v36 = vmul.f32 0.17677669, %v1242_v35  ;;  %v4149_v37 = vpop.f32.mrb[29].mxu0 }
 0x6b3   :  { %v1245_v38 = vpop.f32.mrb[30].mxu0 }
 0x6b4   :  { %v4150_v39 = vpop.f32.mrb[31].mxu0  ;;  %v5623_v40 = vsel %vm5549_vm3, %v1248_v36, -1e+30 }
 0x6b5   :  { %v1250_v41 = vsel %vm671_vm4, %v5623_v40, -inf }
 0x6b6   :  { %1251 = vmax.xlane.f32.xlu0 %v1250_v41 }
 0x6b9   :  { %v1355_v42 = vpop.f32.mrb[32].mxu0 }
 0x6ba   :  { %v1361_v43 = vmul.f32 0.17677669, %v1355_v42  ;;  %v4161_v44 = vpop.f32.mrb[33].mxu0 }
 0x6bb   :  { %v1358_v45 = vpop.f32.mrb[34].mxu0 }
 0x6bc   :  { %v4162_v46 = vpop.f32.mrb[35].mxu0  ;;  %v1362_v47 = vsel %vm5549_vm3, %v1361_v43, -1e+30 }
 0x6bd   :  { %v1363_v48 = vsel %vm671_vm4, %v1362_v47, -inf }
 0x6be   :  { %1364 = vmax.xlane.f32.xlu1 %v1363_v48 }
 0x6c1   :  { %v1467_v49 = vpop.f32.mrb[36].mxu0 }
 0x6c2   :  { %v1473_v50 = vmul.f32 0.17677669, %v1467_v49  ;;  %v4173_v51 = vpop.f32.mrb[37].mxu0 }
 0x6c3   :  { %v1470_v52 = vpop.f32.mrb[38].mxu0 }
 0x6c4   :  { %v4174_v53 = vpop.f32.mrb[39].mxu0  ;;  %v1474_v56 = vsel %vm5549_vm3, %v1473_v50, -1e+30 }
 0x6c5   :  { %v1475_v59 = vsel %vm671_vm4, %v1474_v56, -inf }
 0x6c6   :  { %1476 = vmax.xlane.f32.xlu0 %v1475_v59 }
 0x6cf   :  { %798 = vrot.lane.b32.xlu1 %v5540_v15, %s5117_s8 }
 0x6dc   :  { %910 = vrot.lane.b32.xlu0 %v5540_v15, %s5099_s9 }
 0x723   :  { %v787_v60 = vpop.xlane.xlu0 %786 }
 0x724   :  { %v788_v61 = vsub.f32 %v784_v9, %v787_v60 }
 0x726   :  { %v789_v63 = vmul.f32 1.442695, %v788_v61 }
 0x728   :  { %4565 = vpow2.f32 %v789_v63 }
 0x72b   :  { %v900_v0 = vpop.xlane.xlu1 %899 }
 0x72c   :  { %v901_v1 = vsub.f32 %v897_v17, %v900_v0 }
 0x72e   :  { %v902_v2 = vmul.f32 1.442695, %v901_v1 }
 0x730   :  { %4567 = vpow2.f32 %v902_v2 }
 0x732   :  { %v4566_v3 = vpop.eup %4565 }
 0x733   :  { %v1012_v20 = vpop.xlane.xlu0 %1011  ;;  %v791_v5 = vsel %vm671_vm4, %v4566_v3, 0.0 }
 0x734   :  { %v1013_v6 = vsub.f32 %v1009_v25, %v1012_v20  ;;  %792 = vadd.xlane.f32.xlu1 %v791_v5 }
 0x736   :  { %v1014_v8 = vmul.f32 1.442695, %v1013_v6 }
 0x738   :  { %4569 = vpow2.f32 %v1014_v8 }
 0x73a   :  { %v4568_v10 = vpop.eup %4567 }
 0x73b   :  { %v1140_v11 = vpop.xlane.xlu0 %1139  ;;  %v904_v12 = vsel %vm671_vm4, %v4568_v10, 0.0 }
 0x73c   :  { %v1141_v13 = vsub.f32 %v1137_v33, %v1140_v11  ;;  %905 = vadd.xlane.f32.xlu0 %v904_v12 }
 0x73e   :  { %v1142_v9 = vmul.f32 1.442695, %v1141_v13 }
 0x740   :  { %4571 = vpow2.f32 %v1142_v9 }
 0x742   :  { %v4570_v14 = vpop.eup %4569 }
 0x743   :  { %v1016_v16 = vsel %vm671_vm4, %v4570_v14, 0.0  ;;  %v1252_v26 = vpop.xlane.xlu0 %1251 }
 0x744   :  { %1017 = vadd.xlane.f32.xlu1 %v1016_v16  ;;  %v1253_v27 = vsub.f32 %v5623_v40, %v1252_v26 }
 0x746   :  { %v1254_v29 = vmul.f32 1.442695, %v1253_v27 }
 0x74a   :  { %v5640_v17 = vpop.eup %4571 }
 0x74b   :  { %v1365_v18 = vpop.xlane.xlu1 %1364  ;;  %v1144_v19 = vsel %vm671_vm4, %v5640_v17, 0.0 }
 0x74c   :  { %1145 = vadd.xlane.f32.xlu0 %v1144_v19  ;;  %v1366_v24 = vsub.f32 %v1362_v47, %v1365_v18  ;;  %v4429_v19 = vld [vmem:[#allocation9] sm:$0xff]  }
 0x74d   :  { %4182 = vmatpush3.bf16.msra.mxu0 %v4429_v19 }
 0x74e   :  { %v1367_v25 = vmul.f32 1.442695, %v1366_v24  ;;  %4183 = vmatprep.subr.bf16.mxu0 %v5114_v4 }
 0x74f   :  { %v799_v21 = vpop.permute.xlu1 %798 }
 0x750   :  { %v804_v22 = vsel %vm687_vm2, %v799_v21, 0  ;;  %4573 = vpow2.f32 %v1367_v25  ;;  %v4430_v21 = vld [vmem:[#allocation9 + $0x8] sm:$0xff]  }
 0x751   :  { %4104 = vmatpush3.bf16.msra.mxu1 %v804_v22  ;;  %4575 = vpow2.f32 %v1254_v29  ;;  %4184 = vmatpush3.bf16.msra.mxu0 %v4430_v21  ;;  %v4431_v22 = vld [vmem:[#allocation9 + $0x10] sm:$0xff]  }
 0x752   :  { %4115 = vmatprep.subr.bf16.mxu1 %v5114_v4  ;;  %4185 = vmatprep.subr.bf16.mxu0 %v5114_v4 }
 0x753   :  { %v1477_v28 = vpop.xlane.xlu0 %1476 }
 0x754   :  { %v1478_v31 = vsub.f32 %v1474_v56, %v1477_v28  ;;  %v1154_v56 = vsel %vm687_vm2, %v1089_v23, 0 }
 0x755   :  { %1263 = vrot.lane.b32.xlu1 %v1089_v23, %s5117_s8  ;;  %4186 = vmatpush3.bf16.msra.mxu0 %v4431_v22 }
 0x756   :  { %v1479_v32 = vmul.f32 1.442695, %v1478_v31  ;;  %4187 = vmatprep.subr.bf16.mxu0 %v5114_v4 }
 0x757   :  { %v911_v38 = vpop.permute.xlu0 %910 }
 0x758   :  { %4577 = vpow2.f32 %v1479_v32  ;;  %v916_v43 = vsel %vm687_vm2, %v911_v38, 0  ;;  %v4432_v38 = vld [vmem:[#allocation9 + $0x18] sm:$0xff]  }
 0x759   :  { %4188 = vmatpush3.bf16.msra.mxu0 %v4432_v38 }
 0x75a   :  { %v5652_v33 = vpop.eup %4573  ;;  %4189 = vmatprep.subr.bf16.mxu0 %v5114_v4 }
 0x75b   :  { %v1369_v7 = vsel %vm671_vm4, %v5652_v33, 0.0  ;;  %v4576_v34 = vpop.eup %4575 }
 0x762   :  { %1022 = vrot.lane.b32.xlu0 %v5540_v15, %s5118_s5  ;;  %v1256_v15 = vsel %vm671_vm4, %v4576_v34, 0.0  ;;  %v5657_v35 = vpop.eup %4577 }
 0x763   :  { %v1481_v36 = vsel %vm671_vm4, %v5657_v35, 0.0 }
 0x779   :  { %1370 = vadd.xlane.f32.xlu1 %v1369_v7 }
 0x781   :  { %1257 = vadd.xlane.f32.xlu0 %v1256_v15 }
 0x785   :  { %1482 = vadd.xlane.f32.xlu0 %v1481_v36 }
 0x78a   :  { %1487 = vrot.lane.b32.xlu1 %v1089_v23, %s5118_s5 }
 0x79b   :  { %1375 = vrot.lane.b32.xlu0 %v1089_v23, %s5099_s9 }
 0x7c1   :  { %v793_v37 = vpop.xlane.xlu1 %792 }
 0x7c2   :  { %4579 = vrcp.f32 %v793_v37 }
 0x7c9   :  { %v906_v39 = vpop.xlane.xlu0 %905 }
 0x7ca   :  { %4581 = vrcp.f32 %v906_v39  ;;  %v4433_v39 = vld [vmem:[#allocation9 + $0x20] sm:$0xff]  }
 0x7cb   :  { %4190 = vmatpush3.bf16.msra.mxu0 %v4433_v39 }
 0x7cc   :  { %v4580_v40 = vpop.eup %4579  ;;  %4191 = vmatprep.subr.bf16.mxu0 %v5114_v4 }
 0x7cd   :  { %v795_v41 = vmul.f32 %v4580_v40, %v4566_v3  ;;  %v4434_v40 = vld [vmem:[#allocation9 + $0x28] sm:$0xff]  }
 0x7cf   :  { %v796_v42 = vpack.c.bf16 %v795_v41, %v795_v41  ;;  %4192 = vmatpush3.bf16.msra.mxu0 %v4434_v40 }
 0x7d0   :  { %4193 = vmatprep.subr.bf16.mxu0 %v5114_v4 }
 0x7d1   :  { %4106 = vmatmul.mubr.msk.bf16.vlgmr.msra.gmra.mrb[4].mxu1 %vm671_vm4, %v796_v42  ;;  %v1018_v44 = vpop.xlane.xlu1 %1017 }
 0x7d2   :  { %4583 = vrcp.f32 %v1018_v44  ;;  %4116 = vmatpush3.bf16.msra.mxu1 %v916_v43  ;;  %4117 = vmatprep.mubr.msk.bf16.mxu1 %vm5116_vm0, %v5114_v4  ;;  %v4435_v44 = vld [vmem:[#allocation9 + $0x30] sm:$0xff]  }
 0x7d3   :  { %4127 = vmatprep.subr.bf16.mxu1 %v5114_v4  ;;  %4194 = vmatpush3.bf16.msra.mxu0 %v4435_v44 }
 0x7d4   :  { %v4582_v45 = vpop.eup %4581  ;;  %4195 = vmatprep.subr.bf16.mxu0 %v5114_v4 }
 0x7d5   :  { %v908_v46 = vmul.f32 %v4582_v45, %v4568_v10  ;;  %v1264_v61 = vpop.permute.xlu1 %1263 }
 0x7d6   :  { %v1269_v0 = vsel %vm687_vm2, %v1264_v61, 0 }
 0x7d7   :  { %v909_v47 = vpack.c.bf16 %v908_v46, %v908_v46 }
 0x7d9   :  { %4118 = vmatmul.mubr.msk.bf16.vlgmr.msra.gmra.mrb[8].mxu1 %vm671_vm4, %v909_v47  ;;  %v1146_v48 = vpop.xlane.xlu0 %1145  ;;  %v4436_v47 = vld [vmem:[#allocation9 + $0x38] sm:$0xff]  }
 0x7da   :  { %4585 = vrcp.f32 %v1146_v48  ;;  %4129 = vmatprep.mubr.msk.bf16.mxu1 %vm5116_vm0, %v5114_v4  ;;  %4196 = vmatpush3.bf16.msra.mxu0 %v4436_v47  ;;  %v4456_v47 = vld [vmem:[#allocation18 + $0x54] ss:$8 sps:$4 sm:$0xff]  }
 0x7dc   :  { %v4584_v49 = vpop.eup %4583 }
 0x7dd   :  { %v1020_v50 = vmul.f32 %v4584_v49, %v4570_v14  ;;  %v1023_v51 = vpop.permute.xlu0 %1022 }
 0x7de   :  { %v1028_v52 = vsel %vm687_vm2, %v1023_v51, 0 }
 0x7df   :  { %4128 = vmatpush3.bf16.msra.mxu1 %v1028_v52  ;;  %v1021_v53 = vpack.c.bf16 %v1020_v50, %v1020_v50 }
 0x7e0   :  { %4139 = vmatprep.subr.bf16.mxu1 %v5114_v4 }
 0x7e2   :  { %4130 = vmatmul.mubr.msk.bf16.vlgmr.msra.gmra.mrb[12].mxu1 %vm671_vm4, %v1021_v53 }
 0x7e3   :  { %4140 = vmatpush3.bf16.msra.mxu1 %v1154_v56  ;;  %4141 = vmatprep.mubr.msk.bf16.mxu1 %vm5116_vm0, %v5114_v4 }
 0x7e4   :  { %v4586_v59 = vpop.eup %4585  ;;  %4151 = vmatprep.subr.bf16.mxu1 %v5114_v4 }
 0x7e5   :  { %v1148_v60 = vmul.f32 %v4586_v59, %v5640_v17 }
 0x7e7   :  { %v1149_v63 = vpack.c.bf16 %v1148_v60, %v1148_v60 }
 0x7ea   :  { %4142 = vmatmul.mubr.msk.bf16.vlgmr.msra.gmra.mrb[16].mxu1 %vm671_vm4, %v1149_v63 }
 0x7eb   :  { %4152 = vmatpush3.bf16.msra.mxu1 %v1269_v0  ;;  %4153 = vmatprep.mubr.msk.bf16.mxu1 %vm5116_vm0, %v5114_v4 }
 0x7ec   :  { %4163 = vmatprep.subr.bf16.mxu1 %v5114_v4 }
 0x806   :  { %v1371_v2 = vpop.xlane.xlu1 %1370 }
 0x80a   :  { %v1488_v13 = vpop.permute.xlu1 %1487 }
 0x80b   :  { %v1493_v16 = vsel %vm687_vm2, %v1488_v13, 0 }
 0x80e   :  { %v1258_v1 = vpop.xlane.xlu0 %1257 }
 0x80f   :  { %4587 = vrcp.f32 %v1258_v1 }
 0x810   :  { %4589 = vrcp.f32 %v1371_v2 }
 0x812   :  { %v1483_v3 = vpop.xlane.xlu0 %1482 }
 0x813   :  { %4591 = vrcp.f32 %v1483_v3 }
 0x816   :  { %v1376_v6 = vpop.permute.xlu0 %1375 }
 0x817   :  { %v1381_v11 = vsel %vm687_vm2, %v1376_v6, 0 }
 0x819   :  { %v4588_v20 = vpop.eup %4587 }
 0x81a   :  { %v1260_v5 = vmul.f32 %v4588_v20, %v4576_v34  ;;  %v4590_v10 = vpop.eup %4589 }
 0x81b   :  { %v1373_v12 = vmul.f32 %v4590_v10, %v5652_v33 }
 0x81c   :  { %v1261_v8 = vpack.c.bf16 %v1260_v5, %v1260_v5 }
 0x81d   :  { %v1374_v9 = vpack.c.bf16 %v1373_v12, %v1373_v12  ;;  %v4592_v14 = vpop.eup %4591 }
 0x81e   :  { %4154 = vmatmul.mubr.msk.bf16.vlgmr.msra.gmra.mrb[20].mxu1 %vm671_vm4, %v1261_v8  ;;  %v1485_v17 = vmul.f32 %v4592_v14, %v5657_v35 }
 0x81f   :  { %4164 = vmatpush3.bf16.msra.mxu1 %v1381_v11  ;;  %4165 = vmatprep.mubr.msk.bf16.mxu1 %vm5116_vm0, %v5114_v4 }
 0x820   :  { %4175 = vmatprep.subr.bf16.mxu1 %v5114_v4  ;;  %v1486_v18 = vpack.c.bf16 %v1485_v17, %v1485_v17 }
 0x826   :  { %4166 = vmatmul.mubr.msk.bf16.vlgmr.msra.gmra.mrb[24].mxu1 %vm671_vm4, %v1374_v9 }
 0x827   :  { %4176 = vmatpush3.bf16.msra.mxu1 %v1493_v16  ;;  %4177 = vmatprep.mubr.msk.bf16.mxu1 %vm5116_vm0, %v5114_v4 }
 0x828   :  { %4201 = vmatprep.subr.bf16.mxu1 %v5114_v4 }
 0x82e   :  { %4178 = vmatmul.mubr.msk.bf16.vlgmr.msra.gmra.mrb[28].mxu1 %vm671_vm4, %v1486_v18  ;;  %v3801_v18 = vld [vmem:[#allocation10] ss:$0 sm:$0xff] }
 0x82f   :  { %4217 = vmatprep.mubr.msk.bf16.mxu1 %vm5116_vm0, %v5114_v4 }
 0x8a4   :  { %v840_v23 = vpop.f32.mrb[4].mxu1 }
 0x8a5   :  { %v4107_v24 = vpop.f32.mrb[5].mxu1 }
 0x8a6   :  { %v843_v25 = vpop.f32.mrb[6].mxu1  ;;  %v4650_v24 = vld [vmem:[%s6074_s0 + $0x8] sm:$0xff] }
 0x8a7   :  { %v4108_v26 = vpop.f32.mrb[7].mxu1 }
 0x8ac   :  { %v952_v27 = vpop.f32.mrb[8].mxu1 }
 0x8ad   :  { %v4119_v28 = vpop.f32.mrb[9].mxu1 }
 0x8ae   :  { %v955_v29 = vpop.f32.mrb[10].mxu1  ;;  %v4437_v28 = vld [vmem:[#allocation18] ss:$8 sps:$4 sm:$0xff]  }
 0x8af   :  { %v4120_v31 = vpop.f32.mrb[11].mxu1  ;;  %v4439_v29 = vld [vmem:[#allocation18 + $0x4] ss:$8 sps:$4 sm:$0xff]  }
 0x8b0   :  { %v4442_v31 = vld [vmem:[#allocation18 + $0x14] ss:$8 sps:$4 sm:$0xff]   ;;  %1930 = vmatprep.subr.bf16.mxu0 %v4439_v29 }
 0x8b5   :  { %v1064_v32 = vpop.f32.mrb[12].mxu1 }
 0x8b6   :  { %v4131_v33 = vpop.f32.mrb[13].mxu1 }
 0x8b7   :  { %v1067_v7 = vpop.f32.mrb[14].mxu1  ;;  %v4440_v33 = vld [vmem:[#allocation18 + $0x10] ss:$8 sps:$4 sm:$0xff]  }
 0x8b8   :  { %v4132_v34 = vpop.f32.mrb[15].mxu1  ;;  %v4445_v7 = vld [vmem:[#allocation18 + $0x24] ss:$8 sps:$4 sm:$0xff]  }
 0x8b9   :  { %v4443_v34 = vld [vmem:[#allocation18 + $0x20] ss:$8 sps:$4 sm:$0xff]  }
 0x8bd   :  { %v1190_v15 = vpop.f32.mrb[16].mxu1 }
 0x8be   :  { %v4143_v35 = vpop.f32.mrb[17].mxu1 }
 0x8bf   :  { %v1193_v36 = vpop.f32.mrb[18].mxu1  ;;  %v4446_v35 = vld [vmem:[#allocation18 + $0x30] ss:$8 sps:$4 sm:$0xff]  }
 0x8c0   :  { %v4144_v37 = vpop.f32.mrb[19].mxu1  ;;  %v4452_v36 = vld [vmem:[#allocation18 + $0x44] ss:$8 sps:$4 sm:$0xff]  }
 0x8c1   :  { %v4450_v37 = vld [vmem:[#allocation18 + $0x40] ss:$8 sps:$4 sm:$0xff]  }
 0x8f1   :  { %v1305_v41 = vpop.f32.mrb[20].mxu1 }
 0x8f2   :  { %v4367_v42 = vpack.i.bf16 %v1305_v41, %v840_v23  ;;  %v4155_v43 = vpop.f32.mrb[21].mxu1 }
 0x8f3   :  { %v1308_v45 = vpop.f32.mrb[22].mxu1 }
 0x8f4   :  { %4368 = vrot.lane.b32.xlu1 %v4367_v42, %s5118_s5  ;;  %v4156_v46 = vpop.f32.mrb[23].mxu1 }
 0x8f5   :  { %v4453_v46 = vld [vmem:[#allocation15 + $0x8] sm:$0xff]  }
 0x8f9   :  { %v1417_v48 = vpop.f32.mrb[24].mxu1 }
 0x8fa   :  { %v4372_v49 = vpack.i.bf16 %v1417_v48, %v952_v27  ;;  %v4167_v50 = vpop.f32.mrb[25].mxu1  ;;  %v4454_v48 = vld [vmem:[#allocation18 + $0x50] ss:$8 sps:$4 sm:$0xff]  }
 0x8fb   :  { %v1420_v51 = vpop.f32.mrb[26].mxu1  ;;  %v4460_v50 = vld [vmem:[#allocation18 + $0x64] ss:$8 sps:$4 sm:$0xff]  }
 0x8fc   :  { %4373 = vrot.lane.b32.xlu1 %v4372_v49, %s5099_s9  ;;  %v4168_v52 = vpop.f32.mrb[27].mxu1  ;;  %v4457_v49 = vld [vmem:[#allocation15 + $0x10] sm:$0xff]   ;;  %v4458_v51 = vld [vmem:[#allocation18 + $0x60] ss:$8 sps:$4 sm:$0xff]  }
 0x8fd   :  { %v4461_v52 = vld [vmem:[#allocation15 + $0x18] sm:$0xff]  }
 0x901   :  { %v1529_v53 = vpop.f32.mrb[28].mxu1 }
 0x902   :  { %v4377_v56 = vpack.i.bf16 %v1529_v53, %v1064_v32  ;;  %v4179_v59 = vpop.f32.mrb[29].mxu1  ;;  %v4449_v32 = vld [vmem:[#allocation15] sm:$0xff]  }
 0x903   :  { %v1532_v60 = vpop.f32.mrb[30].mxu1  ;;  %4202 = vmatpush3.bf16.msra.mxu1 %v4449_v32  ;;  %v4464_v53 = vld [vmem:[#allocation18 + $0x74] ss:$8 sps:$4 sm:$0xff]  }
 0x904   :  { %4378 = vrot.lane.b32.xlu1 %v4377_v56, %s5117_s8  ;;  %v4180_v61 = vpop.f32.mrb[31].mxu1  ;;  %4203 = vmatprep.subr.bf16.mxu1 %v5114_v4  ;;  %v4462_v56 = vld [vmem:[#allocation18 + $0x70] ss:$8 sps:$4 sm:$0xff]   ;;  %v4465_v59 = vld [vmem:[#allocation15 + $0x20] sm:$0xff]  }
 0x905   :  { %v307_v60 = vld [vmem:[#allocation2] sm:$0xff]  ;;  %v308_v61 = vld [vmem:[#allocation2 + $0x8] sm:$0xff] }
 0x907   :  { %4204 = vmatpush3.bf16.msra.mxu1 %v4453_v46 }
 0x908   :  { %4205 = vmatprep.subr.bf16.mxu1 %v5114_v4 }
 0x90b   :  { %4206 = vmatpush3.bf16.msra.mxu1 %v4457_v49 }
 0x90c   :  { %4207 = vmatprep.subr.bf16.mxu1 %v5114_v4 }
 0x90f   :  { %4208 = vmatpush3.bf16.msra.mxu1 %v4461_v52 }
 0x910   :  { %4209 = vmatprep.subr.bf16.mxu1 %v5114_v4 }
 0x913   :  { %4210 = vmatpush3.bf16.msra.mxu1 %v4465_v59 }
 0x914   :  { %4211 = vmatprep.subr.bf16.mxu1 %v5114_v4 }
 0x966   :  { %v4369_v63 = vpop.permute.xlu1 %4368 }
 0x967   :  { %v4371_v1 = vunpack.i.h.bf16 %v4369_v63  ;;  %v4370_v2 = vunpack.i.l.bf16 %v4369_v63  ;;  %v1820_v63 = vpack.c.bf16 %v308_v61, %v307_v60 }
 0x969   :  { %v1547_v6 = vsel %vm622_vm1, %v1190_v15, %v4371_v1  ;;  %v1082_v8 = vsel %vm622_vm1, %v5607_v62, %v4370_v2  ;;  %v4649_v62 = vld [vmem:[%s6074_s0] sm:$0xff] }
 0x96a   :  { %v4448_v15 = vld [vmem:[#allocation18 + $0x34] ss:$8 sps:$4 sm:$0xff]  }
 0x96b   :  { %v4467_v1 = vld [vmem:[#allocation15 + $0x30] sm:$0xff]   ;;  %v4468_v2 = vld [vmem:[#allocation15 + $0x38] sm:$0xff]  }
 0x96e   :  { %v4374_v0 = vpop.permute.xlu1 %4373 }
 0x96f   :  { %v4376_v3 = vunpack.i.h.bf16 %v4374_v0  ;;  %v4375_v20 = vunpack.i.l.bf16 %v4374_v0  ;;  %v4466_v0 = vld [vmem:[#allocation15 + $0x28] sm:$0xff]  }
 0x970   :  { %4212 = vmatpush3.bf16.msra.mxu1 %v4466_v0 }
 0x971   :  { %v1548_v12 = vsel %vm1083_vm5, %v1547_v6, %v4376_v3  ;;  %v1084_v13 = vsel %vm1083_vm5, %v1082_v8, %v4375_v20  ;;  %4213 = vmatprep.subr.bf16.mxu1 %v5114_v4 }
 0x974   :  { %4214 = vmatpush3.bf16.msra.mxu1 %v4467_v1 }
 0x975   :  { %4215 = vmatprep.subr.bf16.mxu1 %v5114_v4 }
 0x976   :  { %v4379_v5 = vpop.permute.xlu1 %4378 }
 0x977   :  { %v4381_v10 = vunpack.i.h.bf16 %v4379_v5  ;;  %v4380_v11 = vunpack.i.l.bf16 %v4379_v5 }
 0x978   :  { %4216 = vmatpush3.bf16.msra.mxu1 %v4468_v2 }
 0x979   :  { %v1549_v9 = vsel %vm1085_vm6, %v1548_v12, %v4381_v10  ;;  %v1086_v14 = vsel %vm1085_vm6, %v1084_v13, %v4380_v11  ;;  %4221 = vmatprep.subr.bf16.mxu1 %v5114_v4  ;;  %v3802_v13 = vld [vmem:[#allocation12] ss:$0 sm:$0xff] }
 0x97a   :  { %v1550_v16 = vpack.c.bf16 %v1549_v9, %v1086_v14 }
 0x97c   :  { %4198 = vmatmul.mubr.bf16.vlgmr.msra.gmra.mrb[40].mxu0 %v1550_v16 }
 0x97d   :  { %1962 = vmatprep.mubr.bf16.mxu0 %v5115_v30  ;;  %1931 = vmatpush1.bf16.msra.mxu0 %v4437_v28 }
 0x97e   :  { %1932 = vmatprep.subr.bf16.mxu0 %v4442_v31 }
 0x981   :  { %1933 = vmatpush1.bf16.msra.mxu0 %v4440_v33 }
 0x982   :  { %1934 = vmatprep.subr.bf16.mxu0 %v4445_v7 }
 0x985   :  { %1935 = vmatpush1.bf16.msra.mxu0 %v4443_v34 }
 0x986   :  { %1936 = vmatprep.subr.bf16.mxu0 %v4448_v15 }
 0x989   :  { %1937 = vmatpush1.bf16.msra.mxu0 %v4446_v35 }
 0x98a   :  { %1938 = vmatprep.subr.bf16.mxu0 %v4452_v36 }
 0x98d   :  { %1939 = vmatpush1.bf16.msra.mxu0 %v4450_v37  ;;  %v3804_v37 = vld [vmem:[#allocation16] ss:$0 sm:$0xff] }
 0x98e   :  { %1940 = vmatprep.subr.bf16.mxu0 %v4456_v47 }
 0x991   :  { %1941 = vmatpush1.bf16.msra.mxu0 %v4454_v48 }
 0x992   :  { %1942 = vmatprep.subr.bf16.mxu0 %v4460_v50 }
 0x995   :  { %1943 = vmatpush1.bf16.msra.mxu0 %v4458_v51 }
 0x996   :  { %1944 = vmatprep.subr.bf16.mxu0 %v4464_v53 }
 0x999   :  { %1945 = vmatpush1.bf16.msra.mxu0 %v4462_v56 }
 0x99a   :  { %4251 = vmatprep.subr.bf16.mxu0 %v5114_v4 }
 0x99c   :  { %1963 = vmatmul.mubr.bf16.vlgmr.msra.gmra.mrb[44].mxu0 %v1820_v63 }
 0x99d   :  { %1972 = vmatprep.mubr.bf16.mxu0 %v5115_v30 }
 0xa4f   :  { %v1649_v17 = vpop.f32.mrb[40].mxu0 }
 0xa50   :  { %v1656_v19 = vadd.f32 %v4649_v62, %v1649_v17  ;;  %v4199_v21 = vpop.f32.mrb[41].mxu0  ;;  %v3803_v17 = vld [vmem:[#allocation13] ss:$0 sm:$0xff] }
 0xa51   :  { %v1652_v22 = vpop.f32.mrb[42].mxu0 }
 0xa52   :  { %v5720_v23 = vadd.f32 %v3801_v18, %v1656_v19  ;;  %v1657_v25 = vadd.f32 %v4650_v24, %v1652_v22  ;;  %v4200_v26 = vpop.f32.mrb[43].mxu0  ;;  %v1838_v22 = vld [vmem:[#allocation19] sm:$0x3] }
 0xa53   :  { %v5744_v24 = vrot.slane %v1838_v22, %v5529_v57 }
 0xa54   :  { %v5725_v27 = vadd.f32 %v3801_v18, %v1657_v25  ;;  %1667 = vadd.xlane.f32.xlu1 %v5720_v23  ;;  %v5747_v25 = vrot.slane %v1838_v22, %v5526_v55 }
 0xa56   :  { %1669 = vadd.xlane.f32.xlu0 %v5725_v27 }
 0xa6f   :  { %v1964_v26 = vpop.f32.mrb[44].mxu0 }
 0xa70   :  { %v1965_v28 = vadd.f32 %v1964_v26, %v5744_v24  ;;  %v1966_v29 = vpop.f32.mrb[45].mxu0 }
 0xa71   :  { %v1967_v31 = vadd.f32 %v1966_v29, %v5747_v25  ;;  %v1968_v32 = vpop.f32.mrb[46].mxu0 }
 0xa72   :  { %v1969_v33 = vadd.f32 %v1968_v32, %v5744_v24  ;;  %v1970_v7 = vpop.f32.mrb[47].mxu0 }
 0xa73   :  { %v1971_v34 = vadd.f32 %v1970_v7, %v5747_v25 }
 0xa74   :  { %v5753_v15 = vpack.c.bf16 %v1969_v33, %v1965_v28 }
 0xa75   :  { %v5755_v35 = vpack.c.bf16 %v1971_v34, %v1967_v31 }
 0xa76   :  { %v1990_v36 = vsel %vm622_vm1, %v5753_v15, 0 }
 0xae1   :  { %v1668_v38 = vpop.xlane.xlu1 %1667 }
 0xae2   :  { %v1671_v39 = vmul.f32 0.0078125, %v1668_v38 }
 0xae3   :  { %v1670_v40 = vpop.xlane.xlu0 %1669 }
 0xae4   :  { %v1673_v41 = vsub.f32 %v5720_v23, %v1671_v39  ;;  %v1672_v42 = vmul.f32 0.0078125, %v1670_v40 }
 0xae6   :  { %v1674_v43 = vsub.f32 %v5725_v27, %v1672_v42  ;;  %v1675_v44 = vmul.f32 %v1673_v41, %v1673_v41 }
 0xae8   :  { %1677 = vadd.xlane.f32.xlu0 %v1675_v44  ;;  %v1676_v45 = vmul.f32 %v1674_v43, %v1674_v43 }
 0xaec   :  { %1679 = vadd.xlane.f32.xlu0 %v1676_v45 }
 0xb75   :  { %v1678_v3 = vpop.xlane.xlu0 %1677 }
 0xb76   :  { %v1681_v20 = vmul.f32 0.0078125, %v1678_v3 }
 0xb78   :  { %v1683_v5 = vadd.f32 1e-05, %v1681_v20  ;;  %v309_v20 = vld [vmem:[#allocation2 + $0x10] sm:$0xff] }
 0xb79   :  { %v1680_v6 = vpop.xlane.xlu0 %1679 }
 0xb7a   :  { %4593 = vrsqrt.f32 %v1683_v5  ;;  %v1682_v8 = vmul.f32 0.0078125, %v1680_v6  ;;  %v310_v5 = vld [vmem:[#allocation2 + $0x18] sm:$0xff] }
 0xb7b   :  { %v1821_v6 = vpack.c.bf16 %v310_v5, %v309_v20 }
 0xb7c   :  { %v1684_v10 = vadd.f32 1e-05, %v1682_v8 }
 0xb7d   :  { %1973 = vmatmul.mubr.bf16.gmra.mrb[48].mxu0 %v1821_v6 }
 0xb7e   :  { %4595 = vrsqrt.f32 %v1684_v10  ;;  %4253 = vmatprep.mubr.msk.bf16.mxu0 %vm5116_vm0, %v5114_v4 }
 0xb84   :  { %v4594_v11 = vpop.eup %4593 }
 0xb85   :  { %v1687_v12 = vmul.f32 %v4594_v11, %v1673_v41 }
 0xb87   :  { %v1696_v16 = vmul.f32 %v3802_v13, %v1687_v12 }
 0xb88   :  { %v4596_v9 = vpop.eup %4595 }
 0xb89   :  { %v1688_v14 = vmul.f32 %v4596_v9, %v1674_v43  ;;  %v1705_v62 = vadd.f32 %v3803_v17, %v1696_v16 }
 0xb8b   :  { %v1697_v18 = vmul.f32 %v3802_v13, %v1688_v14 }
 0xb8d   :  { %v1706_v19 = vadd.f32 %v3803_v17, %v1697_v18 }
 0xb8f   :  { %v1707_v21 = vpack.c.bf16 %v1706_v19, %v1705_v62 }
 0xb91   :  { %4218 = vmatmul.mubr.bf16.vlgmr.msra.gmra.mrb[32].mxu1 %v1707_v21 }
 0xb92   :  { %4223 = vmatprep.mubr.msk.bf16.mxu1 %vm5116_vm0, %v5114_v4  ;;  %4222 = vmatpush3.bf16.xpose.msra.mxu1 %v1990_v36 }
 0xb93   :  { %4227 = vmatprep.subr.bf16.mxu1 %v5114_v4 }
 0xc50   :  { %v1974_v19 = vpop.f32.mrb[48].mxu0 }
 0xc51   :  { %v1975_v21 = vadd.f32 %v1974_v19, %v5744_v24  ;;  %v1976_v22 = vpop.f32.mrb[49].mxu0 }
 0xc52   :  { %v1977_v26 = vadd.f32 %v1976_v22, %v5747_v25  ;;  %v1978_v28 = vpop.f32.mrb[50].mxu0 }
 0xc53   :  { %v1979_v29 = vadd.f32 %v1978_v28, %v5744_v24  ;;  %v1980_v31 = vpop.f32.mrb[51].mxu0 }
 0xc54   :  { %v1981_v32 = vadd.f32 %v1980_v31, %v5747_v25 }
 0xc55   :  { %v2435_v33 = vpack.c.bf16 %v1979_v29, %v1975_v21 }
 0xc56   :  { %v5796_v7 = vpack.c.bf16 %v1981_v32, %v1977_v26 }
 0xc64   :  { %v1813_v38 = vpop.f32.mrb[32].mxu1 }
 0xc65   :  { %v1814_v39 = vadd.f32 %v3804_v37, %v1813_v38  ;;  %v4219_v40 = vpop.f32.mrb[33].mxu1 }
 0xc66   :  { %v1816_v41 = vpop.f32.mrb[34].mxu1 }
 0xc67   :  { %v1983_v42 = vpack.c.bf16 %v1814_v39, %v1814_v39  ;;  %v1817_v43 = vadd.f32 %v3804_v37, %v1816_v41  ;;  %v4220_v44 = vpop.f32.mrb[35].mxu1 }
 0xc69   :  { %4224 = vmatmul.mubr.msk.bf16.vlgmr.msra.gmra.mrb[36].mxu1 %vm622_vm1, %v1983_v42  ;;  %v2434_v62 = vpack.c.bf16 %v1817_v43, %v1817_v43 }
 0xc6a   :  { %4228 = vmatpush3.bf16.msra.mxu1 %v5755_v35  ;;  %4229 = vmatprep.mubr.msk.bf16.mxu1 %vm5116_vm0, %v5114_v4 }
 0xc6b   :  { %4233 = vmatprep.subr.bf16.mxu1 %v5114_v4 }
 0xd3c   :  { %v2026_v45 = vpop.f32.mrb[36].mxu1 }
 0xd3d   :  { %v2032_v46 = vmul.f32 0.17677669, %v2026_v45  ;;  %v4225_v47 = vpop.f32.mrb[37].mxu1 }
 0xd3e   :  { %v2029_v48 = vpop.f32.mrb[38].mxu1 }
 0xd3f   :  { %v4226_v49 = vpop.f32.mrb[39].mxu1  ;;  %v2034_v50 = vsel %vm2033_vm7, %v2032_v46, -inf  ;;  %v2441_v48 = vsel %vm622_vm1, %v2435_v33, 0 }
 0xd40   :  { %2035 = vmax.xlane.f32.xlu1 %v2034_v50 }
 0xd51   :  { %2093 = vrot.lane.b32.xlu1 %v5753_v15, %s5117_s8 }
 0xdcd   :  { %v2036_v51 = vpop.xlane.xlu1 %2035 }
 0xdce   :  { %v2037_v52 = vsub.f32 %v2032_v46, %v2036_v51 }
 0xdd0   :  { %v2038_v53 = vmul.f32 1.442695, %v2037_v52 }
 0xdd1   :  { %v2094_v0 = vpop.permute.xlu1 %2093 }
 0xdd2   :  { %4597 = vpow2.f32 %v2038_v53  ;;  %v2099_v2 = vsel %vm622_vm1, %v2094_v0, 0 }
 0xddc   :  { %v4598_v56 = vpop.eup %4597 }
 0xddd   :  { %v2040_v59 = vsel %vm2033_vm7, %v4598_v56, 0.0 }
 0xdde   :  { %2041 = vadd.xlane.f32.xlu0 %v2040_v59 }
 0xdf4   :  { %2090 = vrot.lane.b32.xlu0 %v1983_v42, %s5117_s8 }
 0xe6b   :  { %v2042_v60 = vpop.xlane.xlu0 %2041 }
 0xe6c   :  { %4599 = vrcp.f32 %v2042_v60 }
 0xe6f   :  { %v2091_v3 = vpop.permute.xlu0 %2090 }
 0xe76   :  { %v4600_v61 = vpop.eup %4599 }
 0xe77   :  { %v2044_v63 = vmul.f32 %v4600_v61, %v4598_v56 }
 0xe79   :  { %v2045_v1 = vpack.c.bf16 %v2044_v63, %v2044_v63 }
 0xe7b   :  { %4230 = vmatmul.mubr.msk.bf16.vlgmr.msra.gmra.mrb[40].mxu1 %vm2033_vm7, %v2045_v1 }
 0xe7c   :  { %4234 = vmatpush3.bf16.xpose.msra.mxu1 %v2099_v2  ;;  %4235 = vmatprep.mubr.msk.bf16.mxu1 %vm5116_vm0, %v5114_v4 }
 0xe7d   :  { %4239 = vmatprep.subr.bf16.mxu1 %v5114_v4 }
 0xe83   :  { %4236 = vmatmul.mubr.msk.bf16.vlgmr.msra.gmra.mrb[44].mxu1 %vm622_vm1, %v2091_v3 }
 0xe84   :  { %4241 = vmatprep.mubr.msk.bf16.mxu1 %vm5116_vm0, %v5114_v4 }
 0xf4e   :  { %v5780_v8 = vpop.f32.mrb[40].mxu1 }
 0xf4f   :  { %v4231_v10 = vpop.f32.mrb[41].mxu1 }
 0xf50   :  { %v2086_v11 = vpop.f32.mrb[42].mxu1 }
 0xf51   :  { %v4232_v12 = vpop.f32.mrb[43].mxu1 }
 0xf56   :  { %v2135_v13 = vpop.f32.mrb[44].mxu1 }
 0xf57   :  { %v2141_v9 = vmul.f32 0.17677669, %v2135_v13  ;;  %v4237_v14 = vpop.f32.mrb[45].mxu1 }
 0xf58   :  { %v2138_v16 = vpop.f32.mrb[46].mxu1 }
 0xf59   :  { %v4238_v17 = vpop.f32.mrb[47].mxu1  ;;  %v2142_v18 = vsel %vm2033_vm7, %v2141_v9, -inf }
 0xf5a   :  { %2143 = vmax.xlane.f32.xlu1 %v2142_v18 }
 0xf6b   :  { %2155 = vrot.lane.b32.xlu1 %v5755_v35, %s5117_s8 }
 0xf6f   :  { %2201 = vrot.lane.b32.xlu1 %v1983_v42, %s5099_s9 }
 0xf73   :  { %2312 = vrot.lane.b32.xlu1 %v5753_v15, %s5118_s5 }
 0xf77   :  { %2310 = vrot.lane.b32.xlu1 %v1983_v42, %s5118_s5 }
 0xf7b   :  { %2540 = vrot.lane.b32.xlu1 %v2434_v62, %s5117_s8 }
 0xf7f   :  { %2651 = vrot.lane.b32.xlu1 %v2434_v62, %s5099_s9 }
 0xf83   :  { %2760 = vrot.lane.b32.xlu1 %v2434_v62, %s5118_s5 }
 0xfe7   :  { %v2144_v34 = vpop.xlane.xlu1 %2143 }
 0xfe8   :  { %v2145_v36 = vsub.f32 %v2141_v9, %v2144_v34 }
 0xfea   :  { %v2146_v37 = vmul.f32 1.442695, %v2145_v36 }
 0xfeb   :  { %v2156_v38 = vpop.permute.xlu1 %2155 }
 0xfec   :  { %4601 = vpow2.f32 %v2146_v37  ;;  %4240 = vmatpush3.bf16.msra.mxu1 %v2156_v38 }
 0xfed   :  { %4245 = vmatprep.subr.bf16.mxu1 %v5114_v4 }
 0xfef   :  { %v2202_v44 = vpop.permute.xlu1 %2201 }
 0xff6   :  { %v4602_v39 = vpop.eup %4601 }
 0xff7   :  { %v2148_v40 = vsel %vm2033_vm7, %v4602_v39, 0.0 }
 0xff8   :  { %2149 = vadd.xlane.f32.xlu0 %v2148_v40 }
0x100e   :  { %2203 = vrot.lane.b32.xlu0 %v5753_v15, %s5099_s9  ;;  %v2313_v15 = vpop.permute.xlu1 %2312 }
0x100f   :  { %v2318_v46 = vsel %vm622_vm1, %v2313_v15, 0 }
0x1012   :  { %2543 = vrot.lane.b32.xlu0 %v2435_v33, %s5117_s8  ;;  %v2311_v47 = vpop.permute.xlu1 %2310 }
0x1016   :  { %2653 = vrot.lane.b32.xlu0 %v2435_v33, %s5099_s9  ;;  %v2541_v51 = vpop.permute.xlu1 %2540 }
0x101a   :  { %2762 = vrot.lane.b32.xlu0 %v2435_v33, %s5118_s5  ;;  %v2652_v59 = vpop.permute.xlu1 %2651 }
0x101e   :  { %v2761_v61 = vpop.permute.xlu1 %2760 }
0x1085   :  { %v2150_v24 = vpop.xlane.xlu0 %2149 }
0x1086   :  { %4603 = vrcp.f32 %v2150_v24 }
0x1089   :  { %v2204_v42 = vpop.permute.xlu0 %2203 }
0x108a   :  { %v2209_v45 = vsel %vm622_vm1, %v2204_v42, 0 }
0x108d   :  { %v2544_v49 = vpop.permute.xlu0 %2543 }
0x108e   :  { %v2549_v50 = vsel %vm622_vm1, %v2544_v49, 0 }
0x1090   :  { %v4604_v25 = vpop.eup %4603 }
0x1091   :  { %v2152_v41 = vmul.f32 %v4604_v25, %v4602_v39  ;;  %v2654_v52 = vpop.permute.xlu0 %2653 }
0x1092   :  { %v2659_v53 = vsel %vm622_vm1, %v2654_v52, 0 }
0x1093   :  { %v2153_v43 = vpack.c.bf16 %v2152_v41, %v2152_v41 }
0x1095   :  { %4242 = vmatmul.mubr.msk.bf16.vlgmr.msra.gmra.mrb[48].mxu1 %vm2033_vm7, %v2153_v43  ;;  %v2763_v56 = vpop.permute.xlu0 %2762 }
0x1096   :  { %4246 = vmatpush3.bf16.xpose.msra.mxu1 %v2209_v45  ;;  %4247 = vmatprep.mubr.msk.bf16.mxu1 %vm5116_vm0, %v5114_v4  ;;  %v2768_v60 = vsel %vm622_vm1, %v2763_v56, 0 }
0x1097   :  { %4257 = vmatprep.subr.bf16.mxu1 %v5114_v4 }
0x109d   :  { %4248 = vmatmul.mubr.msk.bf16.vlgmr.msra.gmra.mrb[52].mxu1 %vm622_vm1, %v2202_v44 }
0x109e   :  { %4258 = vmatpush3.bf16.xpose.msra.mxu1 %v2318_v46  ;;  %4259 = vmatprep.mubr.msk.bf16.mxu1 %vm5116_vm0, %v5114_v4 }
0x109f   :  { %4269 = vmatprep.subr.bf16.mxu1 %v5114_v4 }
0x10a5   :  { %4260 = vmatmul.mubr.msk.bf16.vlgmr.msra.gmra.mrb[56].mxu1 %vm622_vm1, %v2311_v47 }
0x10a6   :  { %4270 = vmatpush3.bf16.xpose.msra.mxu1 %v2441_v48  ;;  %4271 = vmatprep.mubr.msk.bf16.mxu1 %vm5116_vm0, %v5114_v4 }
0x10a7   :  { %4281 = vmatprep.subr.bf16.mxu1 %v5114_v4 }
0x10ad   :  { %4272 = vmatmul.mubr.msk.bf16.vlgmr.msra.gmra.mrb[60].mxu1 %vm622_vm1, %v2434_v62 }
0x10ae   :  { %4282 = vmatpush3.bf16.xpose.msra.mxu1 %v2549_v50  ;;  %4283 = vmatprep.mubr.msk.bf16.mxu1 %vm5116_vm0, %v5114_v4 }
0x10af   :  { %4293 = vmatprep.subr.bf16.mxu1 %v5114_v4 }
0x10b5   :  { %4284 = vmatmul.mubr.msk.bf16.vlgmr.msra.gmra.mrb[64].mxu1 %vm622_vm1, %v2541_v51 }
0x10b6   :  { %4294 = vmatpush3.bf16.xpose.msra.mxu1 %v2659_v53  ;;  %4295 = vmatprep.mubr.msk.bf16.mxu1 %vm5116_vm0, %v5114_v4 }
0x10b7   :  { %4305 = vmatprep.subr.bf16.mxu1 %v5114_v4 }
0x10bd   :  { %4296 = vmatmul.mubr.msk.bf16.vlgmr.msra.gmra.mrb[68].mxu1 %vm622_vm1, %v2652_v59 }
0x10be   :  { %4306 = vmatpush3.bf16.xpose.msra.mxu1 %v2768_v60  ;;  %4307 = vmatprep.mubr.msk.bf16.mxu1 %vm5116_vm0, %v5114_v4 }
0x10bf   :  { %4317 = vmatprep.subr.bf16.mxu1 %v5114_v4 }
0x10c5   :  { %4308 = vmatmul.mubr.msk.bf16.vlgmr.msra.gmra.mrb[72].mxu1 %vm622_vm1, %v2761_v61 }
0x10c6   :  { %4333 = vmatprep.mubr.msk.bf16.mxu1 %vm5116_vm0, %v5114_v4 }
0x1168   :  { %v5838_v63 = vpop.f32.mrb[48].mxu1 }
0x1169   :  { %v4243_v0 = vpop.f32.mrb[49].mxu1 }
0x116a   :  { %v2198_v1 = vpop.f32.mrb[50].mxu1 }
0x116b   :  { %v4244_v2 = vpop.f32.mrb[51].mxu1 }
0x1170   :  { %v2245_v3 = vpop.f32.mrb[52].mxu1 }
0x1171   :  { %v2251_v20 = vmul.f32 0.17677669, %v2245_v3  ;;  %v4249_v5 = vpop.f32.mrb[53].mxu1 }
0x1172   :  { %v2248_v6 = vpop.f32.mrb[54].mxu1 }
0x1173   :  { %v4250_v10 = vpop.f32.mrb[55].mxu1  ;;  %v2252_v11 = vsel %vm2033_vm7, %v2251_v20, -inf }
0x1174   :  { %2253 = vmax.xlane.f32.xlu0 %v2252_v11 }
0x1178   :  { %v2354_v12 = vpop.f32.mrb[56].mxu1 }
0x1179   :  { %v2360_v13 = vmul.f32 0.17677669, %v2354_v12  ;;  %v4261_v9 = vpop.f32.mrb[57].mxu1 }
0x117a   :  { %v2357_v14 = vpop.f32.mrb[58].mxu1 }
0x117b   :  { %v4262_v16 = vpop.f32.mrb[59].mxu1  ;;  %v2361_v17 = vsel %vm2033_vm7, %v2360_v13, -inf }
0x117c   :  { %2362 = vmax.xlane.f32.xlu1 %v2361_v17 }
0x1180   :  { %v2477_v18 = vpop.f32.mrb[60].mxu1 }
0x1181   :  { %v2483_v62 = vmul.f32 0.17677669, %v2477_v18  ;;  %v4273_v19 = vpop.f32.mrb[61].mxu1 }
0x1182   :  { %v2480_v21 = vpop.f32.mrb[62].mxu1 }
0x1183   :  { %v4274_v22 = vpop.f32.mrb[63].mxu1  ;;  %v2484_v26 = vsel %vm2033_vm7, %v2483_v62, -inf }
0x1184   :  { %2485 = vmax.xlane.f32.xlu0 %v2484_v26 }
0x1188   :  { %v2585_v28 = vpop.f32.mrb[64].mxu1 }
0x1189   :  { %v2591_v29 = vmul.f32 0.17677669, %v2585_v28  ;;  %v4285_v31 = vpop.f32.mrb[65].mxu1 }
0x118a   :  { %v2588_v32 = vpop.f32.mrb[66].mxu1 }
0x118b   :  { %v4286_v33 = vpop.f32.mrb[67].mxu1  ;;  %v2592_v34 = vsel %vm2033_vm7, %v2591_v29, -inf }
0x118c   :  { %2593 = vmax.xlane.f32.xlu0 %v2592_v34 }
0x1190   :  { %v2695_v36 = vpop.f32.mrb[68].mxu1 }
0x1191   :  { %v2701_v37 = vmul.f32 0.17677669, %v2695_v36  ;;  %v4297_v38 = vpop.f32.mrb[69].mxu1 }
0x1192   :  { %v2698_v39 = vpop.f32.mrb[70].mxu1 }
0x1193   :  { %v4298_v40 = vpop.f32.mrb[71].mxu1  ;;  %v2702_v24 = vsel %vm2033_vm7, %v2701_v37, -inf }
0x1194   :  { %2703 = vmax.xlane.f32.xlu0 %v2702_v24 }
0x1198   :  { %v2804_v25 = vpop.f32.mrb[72].mxu1 }
0x1199   :  { %v2810_v41 = vmul.f32 0.17677669, %v2804_v25  ;;  %v4309_v42 = vpop.f32.mrb[73].mxu1 }
0x119a   :  { %v2807_v43 = vpop.f32.mrb[74].mxu1 }
0x119b   :  { %v4310_v44 = vpop.f32.mrb[75].mxu1  ;;  %v2811_v45 = vsel %vm2033_vm7, %v2810_v41, -inf }
0x119c   :  { %2812 = vmax.xlane.f32.xlu1 %v2811_v45 }
0x1201   :  { %v2254_v15 = vpop.xlane.xlu0 %2253 }
0x1202   :  { %v2255_v46 = vsub.f32 %v2251_v20, %v2254_v15 }
0x1204   :  { %v2256_v47 = vmul.f32 1.442695, %v2255_v46 }
0x1206   :  { %4605 = vpow2.f32 %v2256_v47 }
0x1209   :  { %v2363_v48 = vpop.xlane.xlu1 %2362 }
0x120a   :  { %v2364_v49 = vsub.f32 %v2360_v13, %v2363_v48 }
0x120c   :  { %v2365_v50 = vmul.f32 1.442695, %v2364_v49 }
0x120e   :  { %4607 = vpow2.f32 %v2365_v50 }
0x1210   :  { %v4606_v51 = vpop.eup %4605 }
0x1211   :  { %v2486_v52 = vpop.xlane.xlu0 %2485  ;;  %v2258_v53 = vsel %vm2033_vm7, %v4606_v51, 0.0 }
0x1212   :  { %v2487_v56 = vsub.f32 %v2483_v62, %v2486_v52  ;;  %2259 = vadd.xlane.f32.xlu0 %v2258_v53 }
0x1214   :  { %v2488_v59 = vmul.f32 1.442695, %v2487_v56 }
0x1216   :  { %4609 = vpow2.f32 %v2488_v59 }
0x1218   :  { %v4608_v60 = vpop.eup %4607 }
0x1219   :  { %v2594_v61 = vpop.xlane.xlu0 %2593  ;;  %v2367_v0 = vsel %vm2033_vm7, %v4608_v60, 0.0 }
0x121a   :  { %v2595_v1 = vsub.f32 %v2591_v29, %v2594_v61  ;;  %2368 = vadd.xlane.f32.xlu1 %v2367_v0 }
0x121c   :  { %v2596_v2 = vmul.f32 1.442695, %v2595_v1 }
0x121e   :  { %4611 = vpow2.f32 %v2596_v2 }
0x1220   :  { %v4610_v3 = vpop.eup %4609 }
0x1221   :  { %v2704_v20 = vpop.xlane.xlu0 %2703  ;;  %v2490_v5 = vsel %vm2033_vm7, %v4610_v3, 0.0 }
0x1222   :  { %v2705_v6 = vsub.f32 %v2701_v37, %v2704_v20  ;;  %2491 = vadd.xlane.f32.xlu0 %v2490_v5  ;;  %v4469_v5 = vld [vmem:[#allocation21] sm:$0xff]  }
0x1223   :  { %4318 = vmatpush3.bf16.msra.mxu1 %v4469_v5 }
0x1224   :  { %v2706_v10 = vmul.f32 1.442695, %v2705_v6  ;;  %4319 = vmatprep.subr.bf16.mxu1 %v5114_v4 }
0x1226   :  { %4613 = vpow2.f32 %v2706_v10 }
0x1228   :  { %v4612_v11 = vpop.eup %4611 }
0x1229   :  { %v2598_v12 = vsel %vm2033_vm7, %v4612_v11, 0.0  ;;  %v2813_v14 = vpop.xlane.xlu1 %2812 }
0x122a   :  { %2599 = vadd.xlane.f32.xlu1 %v2598_v12  ;;  %v2814_v16 = vsub.f32 %v2810_v41, %v2813_v14  ;;  %v4470_v12 = vld [vmem:[#allocation21 + $0x8] sm:$0xff]  }
0x122b   :  { %4320 = vmatpush3.bf16.msra.mxu1 %v4470_v12  ;;  %v4494_v12 = vld [vmem:[%s6051_s18 + $0x4c] ss:$16 sps:$4 sm:$0xff]  }
0x122c   :  { %v2815_v17 = vmul.f32 1.442695, %v2814_v16  ;;  %4321 = vmatprep.subr.bf16.mxu1 %v5114_v4 }
0x122e   :  { %4615 = vpow2.f32 %v2815_v17 }
0x1230   :  { %v4614_v13 = vpop.eup %4613 }
0x1231   :  { %v2708_v9 = vsel %vm2033_vm7, %v4614_v13, 0.0 }
0x1232   :  { %2709 = vadd.xlane.f32.xlu1 %v2708_v9  ;;  %v4471_v9 = vld [vmem:[#allocation21 + $0x10] sm:$0xff]  }
0x1233   :  { %4322 = vmatpush3.bf16.msra.mxu1 %v4471_v9  ;;  %v4492_v9 = vld [vmem:[%s6051_s18 + $0x48] ss:$16 sps:$4 sm:$0xff]  }
0x1234   :  { %4323 = vmatprep.subr.bf16.mxu1 %v5114_v4 }
0x1238   :  { %2264 = vrot.lane.b32.xlu0 %v5755_v35, %s5099_s9  ;;  %v4616_v18 = vpop.eup %4615 }
0x1239   :  { %v2817_v62 = vsel %vm2033_vm7, %v4616_v18, 0.0 }
0x123c   :  { %2605 = vrot.lane.b32.xlu0 %v5796_v7, %s5117_s8 }
0x1240   :  { %2714 = vrot.lane.b32.xlu0 %v5796_v7, %s5099_s9 }
0x1243   :  { %2373 = vrot.lane.b32.xlu1 %v5755_v35, %s5118_s5 }
0x1244   :  { %2823 = vrot.lane.b32.xlu0 %v5796_v7, %s5118_s5 }
0x1267   :  { %2818 = vadd.xlane.f32.xlu1 %v2817_v62  ;;  %v4472_v62 = vld [vmem:[#allocation21 + $0x18] sm:$0xff]  }
0x1268   :  { %4324 = vmatpush3.bf16.msra.mxu1 %v4472_v62  ;;  %v4503_v62 = vld [vmem:[%s6051_s18 + $0x84] ss:$16 sps:$4 sm:$0xff]  }
0x1269   :  { %4325 = vmatprep.subr.bf16.mxu1 %v5114_v4 }
0x129f   :  { %v2260_v19 = vpop.xlane.xlu0 %2259 }
0x12a0   :  { %4617 = vrcp.f32 %v2260_v19  ;;  %v4473_v19 = vld [vmem:[#allocation21 + $0x20] sm:$0xff]  }
0x12a1   :  { %4326 = vmatpush3.bf16.msra.mxu1 %v4473_v19  ;;  %v4501_v19 = vld [vmem:[%s6051_s18 + $0x80] ss:$16 sps:$4 sm:$0xff]  }
0x12a2   :  { %4327 = vmatprep.subr.bf16.mxu1 %v5114_v4 }
0x12a7   :  { %v2369_v28 = vpop.xlane.xlu1 %2368 }
0x12a8   :  { %4619 = vrcp.f32 %v2369_v28 }
0x12aa   :  { %v4618_v21 = vpop.eup %4617 }
0x12ab   :  { %v2262_v26 = vmul.f32 %v4618_v21, %v4606_v51  ;;  %v4474_v21 = vld [vmem:[#allocation21 + $0x28] sm:$0xff]  }
0x12ac   :  { %4328 = vmatpush3.bf16.msra.mxu1 %v4474_v21  ;;  %v4504_v21 = vld [vmem:[%s6051_s18 + $0x88] ss:$16 sps:$4 sm:$0xff]  }
0x12ad   :  { %v2263_v35 = vpack.c.bf16 %v2262_v26, %v2262_v26  ;;  %4329 = vmatprep.subr.bf16.mxu1 %v5114_v4  ;;  %v4476_v26 = vld [vmem:[#allocation21 + $0x38] sm:$0xff]  }
0x12af   :  { %v2492_v22 = vpop.xlane.xlu0 %2491 }
0x12b0   :  { %4621 = vrcp.f32 %v2492_v22  ;;  %v4475_v22 = vld [vmem:[#allocation21 + $0x30] sm:$0xff]  }
0x12b1   :  { %4330 = vmatpush3.bf16.msra.mxu1 %v4475_v22  ;;  %v4509_v22 = vld [vmem:[%s6051_s18 + $0xa4] ss:$16 sps:$4 sm:$0xff]  }
0x12b2   :  { %v4620_v32 = vpop.eup %4619  ;;  %4331 = vmatprep.subr.bf16.mxu1 %v5114_v4 }
0x12b3   :  { %v2265_v29 = vpop.permute.xlu0 %2264  ;;  %v2371_v34 = vmul.f32 %v4620_v32, %v4608_v60 }
0x12b4   :  { %4252 = vmatpush3.bf16.msra.mxu0 %v2265_v29 }
0x12b5   :  { %4263 = vmatprep.subr.bf16.mxu0 %v5114_v4  ;;  %v2372_v37 = vpack.c.bf16 %v2371_v34, %v2371_v34  ;;  %4332 = vmatpush3.bf16.msra.mxu1 %v4476_v26  ;;  %v4512_v26 = vld [vmem:[%s6051_s18 + $0xac] ss:$16 sps:$4 sm:$0xff]  }
0x12b7   :  { %4254 = vmatmul.mubr.msk.bf16.vlgmr.msra.gmra.mrb[52].mxu0 %vm2033_vm7, %v2263_v35  ;;  %v2600_v31 = vpop.xlane.xlu1 %2599  ;;  %v2606_v25 = vpop.permute.xlu0 %2605 }
0x12b8   :  { %4265 = vmatprep.mubr.msk.bf16.mxu0 %vm5116_vm0, %v5114_v4  ;;  %4623 = vrcp.f32 %v2600_v31 }
0x12ba   :  { %v4622_v38 = vpop.eup %4621 }
0x12bb   :  { %v2494_v39 = vmul.f32 %v4622_v38, %v4610_v3  ;;  %v2715_v43 = vpop.permute.xlu0 %2714 }
0x12bd   :  { %v2495_v40 = vpack.c.bf16 %v2494_v39, %v2494_v39 }
0x12bf   :  { %v2710_v33 = vpop.xlane.xlu1 %2709  ;;  %v2824_v15 = vpop.permute.xlu0 %2823 }
0x12c0   :  { %4625 = vrcp.f32 %v2710_v33 }
0x12c2   :  { %v4624_v24 = vpop.eup %4623 }
0x12c3   :  { %v2374_v36 = vpop.permute.xlu1 %2373  ;;  %v2602_v41 = vmul.f32 %v4624_v24, %v4612_v11 }
0x12c4   :  { %4264 = vmatpush3.bf16.msra.mxu0 %v2374_v36 }
0x12c5   :  { %4275 = vmatprep.subr.bf16.mxu0 %v5114_v4 }
0x12c7   :  { %4266 = vmatmul.mubr.msk.bf16.vlgmr.msra.gmra.mrb[56].mxu0 %vm2033_vm7, %v2372_v37 }
0x12c8   :  { %4276 = vmatpush3.bf16.msra.mxu0 %v5796_v7  ;;  %4277 = vmatprep.mubr.msk.bf16.mxu0 %vm5116_vm0, %v5114_v4  ;;  %v2603_v7 = vpack.c.bf16 %v2602_v41, %v2602_v41 }
0x12c9   :  { %4287 = vmatprep.subr.bf16.mxu0 %v5114_v4 }
0x12ca   :  { %v4626_v42 = vpop.eup %4625 }
0x12cb   :  { %v2712_v44 = vmul.f32 %v4626_v42, %v4614_v13 }
0x12cd   :  { %v2713_v45 = vpack.c.bf16 %v2712_v44, %v2712_v44 }
0x12cf   :  { %4278 = vmatmul.mubr.msk.bf16.vlgmr.msra.gmra.mrb[60].mxu0 %vm2033_vm7, %v2495_v40 }
0x12d0   :  { %4288 = vmatpush3.bf16.msra.mxu0 %v2606_v25  ;;  %4289 = vmatprep.mubr.msk.bf16.mxu0 %vm5116_vm0, %v5114_v4 }
0x12d1   :  { %4299 = vmatprep.subr.bf16.mxu0 %v5114_v4 }
0x12d7   :  { %4290 = vmatmul.mubr.msk.bf16.vlgmr.msra.gmra.mrb[64].mxu0 %vm2033_vm7, %v2603_v7 }
0x12d8   :  { %4300 = vmatpush3.bf16.msra.mxu0 %v2715_v43  ;;  %4301 = vmatprep.mubr.msk.bf16.mxu0 %vm5116_vm0, %v5114_v4 }
0x12d9   :  { %4311 = vmatprep.subr.bf16.mxu0 %v5114_v4 }
0x12df   :  { %4302 = vmatmul.mubr.msk.bf16.vlgmr.msra.gmra.mrb[68].mxu0 %vm2033_vm7, %v2713_v45 }
0x12e0   :  { %4312 = vmatpush3.bf16.msra.mxu0 %v2824_v15  ;;  %4313 = vmatprep.mubr.msk.bf16.mxu0 %vm5116_vm0, %v5114_v4 }
0x12f4   :  { %v2819_v46 = vpop.xlane.xlu1 %2818 }
0x12f5   :  { %4627 = vrcp.f32 %v2819_v46  ;;  %v3853_v46 = vld [vmem:[#allocation22] ss:$0 sm:$0xff] }
0x12ff   :  { %v4628_v47 = vpop.eup %4627 }
0x1300   :  { %v2821_v48 = vmul.f32 %v4628_v47, %v4616_v18 }
0x1302   :  { %v2822_v49 = vpack.c.bf16 %v2821_v48, %v2821_v48 }
0x1304   :  { %4314 = vmatmul.mubr.msk.bf16.vlgmr.msra.gmra.mrb[72].mxu0 %vm2033_vm7, %v2822_v49 }
0x1305   :  { %3288 = vmatprep.mubr.bf16.mxu0 %v5115_v30 }
0x138a   :  { %v2304_v50 = vpop.f32.mrb[52].mxu0 }
0x138b   :  { %v4255_v51 = vpop.f32.mrb[53].mxu0 }
0x138c   :  { %v2307_v52 = vpop.f32.mrb[54].mxu0 }
0x138d   :  { %v4256_v53 = vpop.f32.mrb[55].mxu0 }
0x138e   :  { %v4480_v53 = vld [vmem:[%s6051_s18 + $0x8] ss:$16 sps:$4 sm:$0xff]  }
0x139a   :  { %v2413_v56 = vpop.f32.mrb[56].mxu0 }
0x139b   :  { %v4267_v59 = vpop.f32.mrb[57].mxu0 }
0x139c   :  { %v2416_v60 = vpop.f32.mrb[58].mxu0  ;;  %v4488_v59 = vld [vmem:[%s6051_s18 + $0x2c] ss:$16 sps:$4 sm:$0xff]  }
0x139d   :  { %v4268_v61 = vpop.f32.mrb[59].mxu0  ;;  %v4483_v60 = vld [vmem:[%s6051_s18 + $0x20] ss:$16 sps:$4 sm:$0xff]  }
0x139e   :  { %v4486_v61 = vld [vmem:[%s6051_s18 + $0x28] ss:$16 sps:$4 sm:$0xff]  }
0x13a2   :  { %v2533_v0 = vpop.f32.mrb[60].mxu0 }
0x13a3   :  { %v4279_v1 = vpop.f32.mrb[61].mxu0 }
0x13a4   :  { %v2536_v2 = vpop.f32.mrb[62].mxu0 }
0x13a5   :  { %v4280_v3 = vpop.f32.mrb[63].mxu0 }
0x13aa   :  { %v2645_v20 = vpop.f32.mrb[64].mxu0 }
0x13ab   :  { %v4382_v6 = vpack.i.bf16 %v2645_v20, %v5838_v63  ;;  %v4291_v10 = vpop.f32.mrb[65].mxu0 }
0x13ac   :  { %v2648_v11 = vpop.f32.mrb[66].mxu0 }
0x13ad   :  { %4383 = vrot.lane.b32.xlu0 %v4382_v6, %s5118_s5  ;;  %v4292_v13 = vpop.f32.mrb[67].mxu0  ;;  %v4491_v11 = vld [vmem:[%s6051_s18 + $0x44] ss:$16 sps:$4 sm:$0xff]  }
0x13ae   :  { %v4489_v13 = vld [vmem:[%s6051_s18 + $0x40] ss:$16 sps:$4 sm:$0xff]  }
0x13b2   :  { %v2754_v14 = vpop.f32.mrb[68].mxu0 }
0x13b3   :  { %v4387_v16 = vpack.i.bf16 %v2754_v14, %v2304_v50  ;;  %v4303_v17 = vpop.f32.mrb[69].mxu0  ;;  %v4497_v14 = vld [vmem:[%s6051_s18 + $0x64] ss:$16 sps:$4 sm:$0xff]  }
0x13b4   :  { %v2757_v18 = vpop.f32.mrb[70].mxu0  ;;  %v4495_v17 = vld [vmem:[%s6051_s18 + $0x60] ss:$16 sps:$4 sm:$0xff]  }
0x13b5   :  { %4388 = vrot.lane.b32.xlu0 %v4387_v16, %s5099_s9  ;;  %v4304_v63 = vpop.f32.mrb[71].mxu0  ;;  %v4500_v16 = vld [vmem:[%s6051_s18 + $0x6c] ss:$16 sps:$4 sm:$0xff]   ;;  %v4498_v18 = vld [vmem:[%s6051_s18 + $0x68] ss:$16 sps:$4 sm:$0xff]  }
0x13b6   :  { %v4506_v63 = vld [vmem:[%s6051_s18 + $0x8c] ss:$16 sps:$4 sm:$0xff]  }
0x13d7   :  { %v2863_v28 = vpop.f32.mrb[72].mxu0 }
0x13d8   :  { %v4392_v29 = vpack.i.bf16 %v2863_v28, %v2413_v56  ;;  %v4315_v35 = vpop.f32.mrb[73].mxu0  ;;  %v4485_v56 = vld [vmem:[%s6051_s18 + $0x24] ss:$16 sps:$4 sm:$0xff]   ;;  %v4507_v28 = vld [vmem:[%s6051_s18 + $0xa0] ss:$16 sps:$4 sm:$0xff]  }
0x13d9   :  { %v2866_v31 = vpop.f32.mrb[74].mxu0  ;;  %v4515_v35 = vld [vmem:[%s6051_s18 + $0xc4] ss:$16 sps:$4 sm:$0xff]  }
0x13da   :  { %4393 = vrot.lane.b32.xlu0 %v4392_v29, %s5117_s8  ;;  %v4316_v32 = vpop.f32.mrb[75].mxu0  ;;  %v4510_v29 = vld [vmem:[%s6051_s18 + $0xa8] ss:$16 sps:$4 sm:$0xff]   ;;  %v4518_v31 = vld [vmem:[%s6051_s18 + $0xcc] ss:$16 sps:$4 sm:$0xff]  }
0x13db   :  { %v4513_v32 = vld [vmem:[%s6051_s18 + $0xc0] ss:$16 sps:$4 sm:$0xff]  }
0x141f   :  { %v4384_v33 = vpop.permute.xlu0 %4383 }
0x1420   :  { %v4386_v36 = vunpack.i.h.bf16 %v4384_v33  ;;  %v4385_v37 = vunpack.i.l.bf16 %v4384_v33  ;;  %v4516_v33 = vld [vmem:[%s6051_s18 + $0xc8] ss:$16 sps:$4 sm:$0xff]  }
0x1422   :  { %v2881_v24 = vsel %vm622_vm1, %v2533_v0, %v4386_v36  ;;  %v2431_v4 = vsel %vm622_vm1, %v5780_v8, %v4385_v37  ;;  %v4524_v36 = vld [vmem:[%s6051_s18 + $0xec] ss:$16 sps:$4 sm:$0xff]   ;;  %v4519_v37 = vld [vmem:[%s6051_s18 + $0xe0] ss:$16 sps:$4 sm:$0xff]  }
0x1427   :  { %v4389_v34 = vpop.permute.xlu0 %4388 }
0x1428   :  { %v4391_v38 = vunpack.i.h.bf16 %v4389_v34  ;;  %v4390_v39 = vunpack.i.l.bf16 %v4389_v34  ;;  %v4521_v34 = vld [vmem:[%s6051_s18 + $0xe4] ss:$16 sps:$4 sm:$0xff]  }
0x142a   :  { %v2882_v7 = vsel %vm1083_vm5, %v2881_v24, %v4391_v38  ;;  %v2432_v42 = vsel %vm1083_vm5, %v2431_v4, %v4390_v39  ;;  %v4522_v38 = vld [vmem:[%s6051_s18 + $0xe8] ss:$16 sps:$4 sm:$0xff]  }
0x142b   :  { %v4525_v39 = vld [vmem:[#allocation28 + $0x40] sm:$0xff]  }
0x144c   :  { %v4394_v40 = vpop.permute.xlu0 %4393 }
0x144d   :  { %v4396_v25 = vunpack.i.h.bf16 %v4394_v40  ;;  %v4395_v41 = vunpack.i.l.bf16 %v4394_v40  ;;  %v4526_v40 = vld [vmem:[#allocation28 + $0xc0] sm:$0xff]  }
0x144f   :  { %v2883_v43 = vsel %vm1085_vm6, %v2882_v7, %v4396_v25  ;;  %v2433_v44 = vsel %vm1085_vm6, %v2432_v42, %v4395_v41 }
0x1450   :  { %v2884_v45 = vpack.c.bf16 %v2883_v43, %v2433_v44 }
0x1452   :  { %4334 = vmatmul.mubr.bf16.vlgmr.msra.gmra.mrb[76].mxu1 %v2884_v45  ;;  %v3854_v45 = vld [vmem:[#allocation24] ss:$0 sm:$0xff] }
0x1453   :  { %3331 = vmatprep.mubr.bf16.mxu1 %v5115_v30  ;;  %v4477_v30 = vld [vmem:[%s6051_s18] ss:$16 sps:$4 sm:$0xff]  }
0x1525   :  { %v2983_v15 = vpop.f32.mrb[76].mxu1 }
0x1526   :  { %v2990_v47 = vadd.f32 %v2983_v15, %v5720_v23  ;;  %v4335_v48 = vpop.f32.mrb[77].mxu1  ;;  %v4479_v23 = vld [vmem:[%s6051_s18 + $0x4] ss:$16 sps:$4 sm:$0xff]  }
0x1527   :  { %v2986_v8 = vpop.f32.mrb[78].mxu1  ;;  %3256 = vmatprep.subr.bf16.mxu0 %v4479_v23  ;;  %v3855_v48 = vld [vmem:[#allocation25] ss:$0 sm:$0xff]  ;;  %v4528_v23 = vld [vmem:[#allocation28 + $0x80] sm:$0xff]  }
0x1528   :  { %v5905_v49 = vadd.f32 %v3853_v46, %v2990_v47  ;;  %v2991_v50 = vadd.f32 %v2986_v8, %v5725_v27  ;;  %v4336_v51 = vpop.f32.mrb[79].mxu1  ;;  %v4482_v27 = vld [vmem:[%s6051_s18 + $0xc] ss:$16 sps:$4 sm:$0xff]   ;;  %3257 = vmatpush1.bf16.msra.mxu0 %v4477_v30 }
0x1529   :  { %3299 = vmatprep.subr.bf16.mxu1 %v4482_v27  ;;  %3258 = vmatprep.subr.bf16.mxu0 %v4485_v56  ;;  %v4527_v30 = vld [vmem:[#allocation28] sm:$0xff]   ;;  %v4529_v27 = vld [vmem:[#allocation28 + $0x48] sm:$0xff]  }
0x152a   :  { %v5908_v52 = vadd.f32 %v3853_v46, %v2991_v50  ;;  %3001 = vadd.xlane.f32.xlu0 %v5905_v49  ;;  %3300 = vmatpush1.bf16.msra.mxu1 %v4480_v53  ;;  %v4530_v56 = vld [vmem:[#allocation28 + $0xc8] sm:$0xff]  }
0x152b   :  { %3301 = vmatprep.subr.bf16.mxu1 %v4488_v59  ;;  %v4531_v59 = vld [vmem:[#allocation28 + $0x8] sm:$0xff]  }
0x152c   :  { %3003 = vadd.xlane.f32.xlu1 %v5908_v52  ;;  %3259 = vmatpush1.bf16.msra.mxu0 %v4483_v60  ;;  %v4532_v60 = vld [vmem:[#allocation28 + $0x88] sm:$0xff]  }
0x152d   :  { %3260 = vmatprep.subr.bf16.mxu0 %v4491_v11  ;;  %v4542_v11 = vld [vmem:[#allocation28 + $0xe0] sm:$0xff]  }
0x152e   :  { %3302 = vmatpush1.bf16.msra.mxu1 %v4486_v61  ;;  %v4533_v61 = vld [vmem:[#allocation28 + $0x50] sm:$0xff]  }
0x152f   :  { %3303 = vmatprep.subr.bf16.mxu1 %v4494_v12  ;;  %v4543_v12 = vld [vmem:[#allocation28 + $0x20] sm:$0xff]  }
0x1530   :  { %3261 = vmatpush1.bf16.msra.mxu0 %v4489_v13  ;;  %v4544_v13 = vld [vmem:[#allocation28 + $0xa0] sm:$0xff]  }
0x1531   :  { %3262 = vmatprep.subr.bf16.mxu0 %v4497_v14  ;;  %v4546_v14 = vld [vmem:[#allocation28 + $0xe8] sm:$0xff]  }
0x1532   :  { %3304 = vmatpush1.bf16.msra.mxu1 %v4492_v9  ;;  %v4545_v9 = vld [vmem:[#allocation28 + $0x68] sm:$0xff]  }
0x1533   :  { %3305 = vmatprep.subr.bf16.mxu1 %v4500_v16  ;;  %v4547_v16 = vld [vmem:[#allocation28 + $0x28] sm:$0xff]  }
0x1534   :  { %3263 = vmatpush1.bf16.msra.mxu0 %v4495_v17  ;;  %v4548_v17 = vld [vmem:[#allocation28 + $0xa8] sm:$0xff]  }
0x1535   :  { %3264 = vmatprep.subr.bf16.mxu0 %v4503_v62  ;;  %v4550_v62 = vld [vmem:[#allocation28 + $0xf0] sm:$0xff]  }
0x1536   :  { %3306 = vmatpush1.bf16.msra.mxu1 %v4498_v18  ;;  %v4549_v18 = vld [vmem:[#allocation28 + $0x70] sm:$0xff]  }
0x1537   :  { %3307 = vmatprep.subr.bf16.mxu1 %v4506_v63  ;;  %v4551_v63 = vld [vmem:[#allocation28 + $0x30] sm:$0xff]  }
0x1538   :  { %3265 = vmatpush1.bf16.msra.mxu0 %v4501_v19  ;;  %v4552_v19 = vld [vmem:[#allocation28 + $0xb0] sm:$0xff]  }
0x1539   :  { %3266 = vmatprep.subr.bf16.mxu0 %v4509_v22  ;;  %v4554_v22 = vld [vmem:[#allocation28 + $0xf8] sm:$0xff]  }
0x153a   :  { %3308 = vmatpush1.bf16.msra.mxu1 %v4504_v21  ;;  %v4553_v21 = vld [vmem:[#allocation28 + $0x78] sm:$0xff]  }
0x153b   :  { %3309 = vmatprep.subr.bf16.mxu1 %v4512_v26  ;;  %v4555_v26 = vld [vmem:[#allocation28 + $0x38] sm:$0xff]  }
0x153c   :  { %3267 = vmatpush1.bf16.msra.mxu0 %v4507_v28  ;;  %v4556_v28 = vld [vmem:[#allocation28 + $0xb8] sm:$0xff]  }
0x153d   :  { %3268 = vmatprep.subr.bf16.mxu0 %v4515_v35  ;;  %v3090_v35 = vsub.s32 3, %v5523_v54 }
0x153e   :  { %3310 = vmatpush1.bf16.msra.mxu1 %v4510_v29  ;;  %v3074_v29 = vld [vmem:[#allocation27] sm:$0xf] }
0x153f   :  { %3311 = vmatprep.subr.bf16.mxu1 %v4518_v31  ;;  %v3079_v31 = vrot.slane %v3074_v29, %v5529_v57 }
0x1540   :  { %3269 = vmatpush1.bf16.msra.mxu0 %v4513_v32  ;;  %v3087_v32 = vrot.slane %v3074_v29, %v397_v58 }
0x1541   :  { %3270 = vmatprep.subr.bf16.mxu0 %v4521_v34  ;;  %v3091_v34 = vrot.slane %v3074_v29, %v3090_v35 }
0x1542   :  { %3312 = vmatpush1.bf16.msra.mxu1 %v4516_v33  ;;  %v3083_v33 = vrot.slane %v3074_v29, %v5526_v55 }
0x1543   :  { %3313 = vmatprep.subr.bf16.mxu1 %v4524_v36 }
0x1544   :  { %3271 = vmatpush1.bf16.msra.mxu0 %v4519_v37 }
0x1545   :  { %4021 = vmatprep.subr.bf16.mxu0 %v4525_v39 }
0x1546   :  { %3314 = vmatpush1.bf16.msra.mxu1 %v4522_v38 }
0x1547   :  { %4043 = vmatprep.subr.bf16.mxu1 %v4526_v40 }
0x15b7   :  { %v3002_v0 = vpop.xlane.xlu0 %3001 }
0x15b8   :  { %v3005_v1 = vmul.f32 0.0078125, %v3002_v0  ;;  %v4534_v0 = vld [vmem:[#allocation28 + $0xd0] sm:$0xff]  }
0x15b9   :  { %v3004_v2 = vpop.xlane.xlu1 %3003 }
0x15ba   :  { %v5937_v3 = vsub.f32 %v5905_v49, %v3005_v1  ;;  %v3006_v20 = vmul.f32 0.0078125, %v3004_v2  ;;  %v4535_v1 = vld [vmem:[#allocation28 + $0x10] sm:$0xff]  }
0x15bb   :  { %v4536_v2 = vld [vmem:[#allocation28 + $0x90] sm:$0xff]  }
0x15bc   :  { %v5940_v5 = vsub.f32 %v5908_v52, %v3006_v20  ;;  %v3009_v6 = vmul.f32 %v5937_v3, %v5937_v3  ;;  %v4538_v20 = vld [vmem:[#allocation28 + $0xd8] sm:$0xff]  }
0x15be   :  { %3011 = vadd.xlane.f32.xlu1 %v3009_v6  ;;  %v3010_v10 = vmul.f32 %v5940_v5, %v5940_v5  ;;  %v4540_v6 = vld [vmem:[#allocation28 + $0x98] sm:$0xff]  }
0x15c2   :  { %3013 = vadd.xlane.f32.xlu1 %v3010_v10  ;;  %v4541_v10 = vld [vmem:[#allocation28 + $0x60] sm:$0xff]  }
0x164b   :  { %v3012_v24 = vpop.xlane.xlu1 %3011 }
0x164c   :  { %v3015_v4 = vmul.f32 0.0078125, %v3012_v24 }
0x164e   :  { %v3017_v25 = vadd.f32 1e-05, %v3015_v4 }
0x164f   :  { %v3014_v41 = vpop.xlane.xlu1 %3013 }
0x1650   :  { %4629 = vrsqrt.f32 %v3017_v25  ;;  %v3016_v7 = vmul.f32 0.0078125, %v3014_v41 }
0x1652   :  { %v3018_v42 = vadd.f32 1e-05, %v3016_v7 }
0x1654   :  { %4631 = vrsqrt.f32 %v3018_v42 }
0x165a   :  { %v4630_v43 = vpop.eup %4629 }
0x165b   :  { %v3021_v44 = vmul.f32 %v4630_v43, %v5937_v3  ;;  %v4537_v3 = vld [vmem:[#allocation28 + $0x58] sm:$0xff]  }
0x165d   :  { %v3030_v47 = vmul.f32 %v3854_v45, %v3021_v44 }
0x165e   :  { %v4632_v15 = vpop.eup %4631 }
0x165f   :  { %v3022_v46 = vmul.f32 %v4632_v15, %v5940_v5  ;;  %v3039_v50 = vadd.f32 %v3855_v48, %v3030_v47  ;;  %v4539_v5 = vld [vmem:[#allocation28 + $0x18] sm:$0xff]  }
0x1661   :  { %v3031_v8 = vmul.f32 %v3854_v45, %v3022_v46 }
0x1663   :  { %v3040_v51 = vadd.f32 %v3855_v48, %v3031_v8 }
0x1665   :  { %v3041_v53 = vpack.c.bf16 %v3040_v51, %v3039_v50 }
0x1667   :  { %3289 = vmatmul.mubr.bf16.vlgmr.msra.gmra.mrb[76].mxu0 %v3041_v53  ;;  %3332 = vmatmul.mubr.bf16.vlgmr.msra.gmra.mrb[80].mxu1 %v3041_v53 }
0x1668   :  { %4022 = vmatpush3.bf16.msra.mxu0 %v4527_v30  ;;  %4044 = vmatpush3.bf16.msra.mxu1 %v4528_v23 }
0x1669   :  { %4023 = vmatprep.subr.bf16.mxu0 %v4529_v27  ;;  %4045 = vmatprep.subr.bf16.mxu1 %v4530_v56 }
0x166c   :  { %4024 = vmatpush3.bf16.msra.mxu0 %v4531_v59  ;;  %4046 = vmatpush3.bf16.msra.mxu1 %v4532_v60 }
0x166d   :  { %4025 = vmatprep.subr.bf16.mxu0 %v4533_v61  ;;  %4047 = vmatprep.subr.bf16.mxu1 %v4534_v0 }
0x1670   :  { %4026 = vmatpush3.bf16.msra.mxu0 %v4535_v1  ;;  %4048 = vmatpush3.bf16.msra.mxu1 %v4536_v2 }
0x1671   :  { %4027 = vmatprep.subr.bf16.mxu0 %v4537_v3  ;;  %4049 = vmatprep.subr.bf16.mxu1 %v4538_v20 }
0x1674   :  { %4028 = vmatpush3.bf16.msra.mxu0 %v4539_v5  ;;  %4050 = vmatpush3.bf16.msra.mxu1 %v4540_v6 }
0x1675   :  { %4029 = vmatprep.subr.bf16.mxu0 %v4541_v10  ;;  %4051 = vmatprep.subr.bf16.mxu1 %v4542_v11 }
0x1678   :  { %4030 = vmatpush3.bf16.msra.mxu0 %v4543_v12  ;;  %4052 = vmatpush3.bf16.msra.mxu1 %v4544_v13 }
0x1679   :  { %4031 = vmatprep.subr.bf16.mxu0 %v4545_v9  ;;  %4053 = vmatprep.subr.bf16.mxu1 %v4546_v14 }
0x167c   :  { %4032 = vmatpush3.bf16.msra.mxu0 %v4547_v16  ;;  %4054 = vmatpush3.bf16.msra.mxu1 %v4548_v17 }
0x167d   :  { %4033 = vmatprep.subr.bf16.mxu0 %v4549_v18  ;;  %4055 = vmatprep.subr.bf16.mxu1 %v4550_v62 }
0x1680   :  { %4034 = vmatpush3.bf16.msra.mxu0 %v4551_v63  ;;  %4056 = vmatpush3.bf16.msra.mxu1 %v4552_v19 }
0x1681   :  { %4035 = vmatprep.subr.bf16.mxu0 %v4553_v21  ;;  %4057 = vmatprep.subr.bf16.mxu1 %v4554_v22 }
0x1684   :  { %4036 = vmatpush3.bf16.msra.mxu0 %v4555_v26  ;;  %4058 = vmatpush3.bf16.msra.mxu1 %v4556_v28 }
0x173a   :  { %v3290_v36 = vpop.f32.mrb[76].mxu0  ;;  %v3333_v37 = vpop.f32.mrb[80].mxu1 }
0x173b   :  { %v3291_v38 = vadd.f32 %v3290_v36, %v3079_v31  ;;  %v3334_v39 = vadd.f32 %v3333_v37, %v3087_v32  ;;  %v3292_v40 = vpop.f32.mrb[77].mxu0  ;;  %v3335_v24 = vpop.f32.mrb[81].mxu1 }
0x173c   :  { %v3293_v4 = vadd.f32 %v3292_v40, %v3083_v33  ;;  %v3336_v25 = vadd.f32 %v3335_v24, %v3091_v34  ;;  %v3294_v41 = vpop.f32.mrb[78].mxu0  ;;  %v3337_v7 = vpop.f32.mrb[82].mxu1 }
0x173d   :  { %v3350_v42 = vmul.f32 0.70710677, %v3291_v38  ;;  %v3352_v43 = vmul.f32 0.70710677, %v3334_v39  ;;  %v3295_v54 = vadd.f32 %v3294_v41, %v3079_v31  ;;  %v3338_v58 = vadd.f32 %v3337_v7, %v3087_v32  ;;  %v3296_v45 = vpop.f32.mrb[79].mxu0  ;;  %v3339_v55 = vpop.f32.mrb[83].mxu1 }
0x173e   :  { %v3351_v44 = vmul.f32 0.70710677, %v3293_v4  ;;  %v3353_v57 = vmul.f32 0.70710677, %v3336_v25  ;;  %v3297_v15 = vadd.f32 %v3296_v45, %v3083_v33  ;;  %v3340_v46 = vadd.f32 %v3339_v55, %v3091_v34 }
0x173f   :  { %4633 = verf.f32 %v3350_v42  ;;  %v3354_v47 = vmul.f32 0.70710677, %v3295_v54  ;;  %v3356_v48 = vmul.f32 0.70710677, %v3338_v58  ;;  %v3342_v59 = vmul.f32 0.5, %v3291_v38 }
0x1740   :  { %4635 = verf.f32 %v3352_v43  ;;  %v3355_v8 = vmul.f32 0.70710677, %v3297_v15  ;;  %v3357_v50 = vmul.f32 0.70710677, %v3340_v46  ;;  %v3344_v60 = vmul.f32 0.5, %v3334_v39 }
0x1741   :  { %4637 = verf.f32 %v3351_v44  ;;  %v3343_v1 = vmul.f32 0.5, %v3293_v4  ;;  %v3346_v3 = vmul.f32 0.5, %v3295_v54  ;;  %v3345_v6 = vmul.f32 0.5, %v3336_v25  ;;  %v3920_v43 = vld [vmem:[#allocation30] ss:$0 sm:$0xff] }
0x1742   :  { %4639 = verf.f32 %v3353_v57  ;;  %v3348_v11 = vmul.f32 0.5, %v3338_v58  ;;  %v3347_v16 = vmul.f32 0.5, %v3297_v15  ;;  %v3349_v63 = vmul.f32 0.5, %v3340_v46 }
0x1743   :  { %4641 = verf.f32 %v3354_v47 }
0x1744   :  { %4643 = verf.f32 %v3356_v48 }
0x1745   :  { %4645 = verf.f32 %v3355_v8 }
0x1746   :  { %4647 = verf.f32 %v3357_v50 }
0x1749   :  { %v4634_v51 = vpop.eup %4633 }
0x174a   :  { %v4636_v30 = vpop.eup %4635  ;;  %v3366_v27 = vadd.f32 1.0, %v4634_v51 }
0x174b   :  { %v4638_v23 = vpop.eup %4637  ;;  %v3368_v61 = vadd.f32 1.0, %v4636_v30 }
0x174c   :  { %v4640_v53 = vpop.eup %4639  ;;  %v3367_v2 = vadd.f32 1.0, %v4638_v23  ;;  %v3374_v9 = vmul.f32 %v3366_v27, %v3342_v59 }
0x174d   :  { %v4642_v56 = vpop.eup %4641  ;;  %v3369_v10 = vadd.f32 1.0, %v4640_v53  ;;  %v3376_v18 = vmul.f32 %v3368_v61, %v3344_v60 }
0x174e   :  { %v4644_v0 = vpop.eup %4643  ;;  %v3370_v20 = vadd.f32 1.0, %v4642_v56  ;;  %v3375_v21 = vmul.f32 %v3367_v2, %v3343_v1 }
0x174f   :  { %v4646_v5 = vpop.eup %4645  ;;  %v3372_v12 = vadd.f32 1.0, %v4644_v0  ;;  %v3377_v28 = vmul.f32 %v3369_v10, %v3345_v6 }
0x1750   :  { %v4648_v13 = vpop.eup %4647  ;;  %v3378_v14 = vmul.f32 %v3370_v20, %v3346_v3  ;;  %v3371_v17 = vadd.f32 1.0, %v4646_v5 }
0x1751   :  { %v3380_v62 = vmul.f32 %v3372_v12, %v3348_v11  ;;  %v3373_v19 = vadd.f32 1.0, %v4648_v13 }
0x1752   :  { %v3382_v22 = vpack.c.bf16 %v3378_v14, %v3374_v9  ;;  %v3379_v26 = vmul.f32 %v3371_v17, %v3347_v16 }
0x1753   :  { %v3384_v29 = vpack.c.bf16 %v3380_v62, %v3376_v18  ;;  %v3381_v35 = vmul.f32 %v3373_v19, %v3349_v63 }
0x1754   :  { %v3383_v31 = vpack.c.bf16 %v3379_v26, %v3375_v21 }
0x1755   :  { %v3385_v32 = vpack.c.bf16 %v3381_v35, %v3377_v28 }
0x1756   :  { %3674 = vmatprep.mubr.bf16.mxu0 %v3383_v31 }
0x1757   :  { %3715 = vmatprep.mubr.bf16.mxu1 %v3385_v32  ;;  %3675 = vmatmul.mubr.bf16.vlgmr.msra.gmra.mrb[80].mxu0 %v3382_v22 }
0x1758   :  { %3716 = vmatmul.mubr.bf16.vlgmr.msra.gmra.mrb[84].mxu1 %v3384_v29 }
0x182a   :  { %v4037_v33 = vpop.f32.mrb[80].mxu0 }
0x182b   :  { %v4059_v34 = vpop.f32.mrb[84].mxu1  ;;  %v4038_v36 = vpop.f32.mrb[81].mxu0 }
0x182c   :  { %v4039_v37 = vadd.f32 %v4038_v36, %v4037_v33  ;;  %v4060_v38 = vpop.f32.mrb[85].mxu1  ;;  %v4040_v39 = vpop.f32.mrb[82].mxu0 }
0x182d   :  { %v4061_v40 = vadd.f32 %v4060_v38, %v4059_v34  ;;  %v4062_v24 = vpop.f32.mrb[86].mxu1  ;;  %v4041_v4 = vpop.f32.mrb[83].mxu0 }
0x182e   :  { %v4042_v25 = vadd.f32 %v4041_v4, %v4040_v39  ;;  %v4063_v41 = vpop.f32.mrb[87].mxu1 }
0x182f   :  { %v3718_v7 = vadd.f32 %v4061_v40, %v4039_v37  ;;  %v4064_v42 = vadd.f32 %v4063_v41, %v4062_v24 }
0x1831   :  { %v3724_v44 = vadd.f32 %v3718_v7, %v5905_v49  ;;  %v3721_v57 = vadd.f32 %v4064_v42, %v4042_v25 }
0x1833   :  { %v3733_v54 = vadd.f32 %v3920_v43, %v3724_v44  ;;  %v3725_v58 = vadd.f32 %v3721_v57, %v5908_v52 }
0x1835   :  { %3735 = vst [vmem:[%s6055_s22] sm:$0xff] %v3733_v54  ;;  %v3734_v45 = vadd.f32 %v3920_v43, %v3725_v58 }
0x1837   :  { %3736 = vst [vmem:[%s6055_s22 + $0x8] sm:$0xff] %v3734_v45 }
0x1838   :  { %3741 = vsyncpa [#allocation3], 1 }
0x1839   :  { %3742 = vsyncpa [#allocation5], 1 }
0x183a   :  { %3743 = vsyncpa [#allocation8], 1 }
0x183b   :  { %3744 = vsyncpa [#allocation11], 1 }
0x183c   :  { %3745 = vsyncpa [#allocation14], 1 }
0x183d   :  { %3746 = vsyncpa [#allocation17], 1 }
0x183e   :  { %3747 = vsyncpa [#allocation20], 1 }
0x183f   :  { %3748 = vsyncpa [#allocation23], 1 }
0x1840   :  { %3749 = vsyncpa [#allocation26], 1 }
0x1841   :  { %3750 = vsyncpa [#allocation29], 1 }

// kernel: decoder_forward.4
= control target key start
LH: loop header
LB: loop body
LE: loop exit
PB: predicated region body
PF: predicated region fallthrough
CT: control target
= control target key end

     0   :  { %v4384_v3 = vmov 0.0   ;;  %v4385_v30 = vmov 0   ;;  %vm4386_vm0 = vmmov 0   ;;  %v154_v53 = vlaneseq  ;;  %s4388_s25 = smov 32   ;;  %s4389_s26 = smov 64   ;;  %s5387_s0 = inlined_call_operand.vmem [shape: f32[2,8,128], index: 0, kind: input, shape index: {}]   ;;  %s5388_s4 = inlined_call_operand.vmem [shape: bf16[128,384], index: 4, kind: input, shape index: {}]   ;;  %s5389_s2 = inlined_call_operand.vmem [shape: f32[1,128], index: 2, kind: input, shape index: {}]   ;;  %s5390_s3 = inlined_call_operand.vmem [shape: f32[1,128], index: 3, kind: input, shape index: {}]   ;;  %s5391_s5 = inlined_call_operand.vmem [shape: f32[1,384], index: 5, kind: input, shape index: {}]   ;;  %s5392_s6 = inlined_call_operand.vmem [shape: bf16[128,128], index: 6, kind: input, shape index: {}]   ;;  %s5393_s7 = inlined_call_operand.vmem [shape: f32[1,128], index: 7, kind: input, shape index: {}]   ;;  %s5394_s12 = inlined_call_operand.vmem [shape: bf16[128,256], index: 12, kind: input, shape index: {}]   ;;  %s5395_s10 = inlined_call_operand.vmem [shape: bf16[128,128], index: 10, kind: input, shape index: {}]   ;;  %s5396_s1 = inlined_call_operand.vmem [shape: f32[2,16,128], index: 1, kind: input, shape index: {}]   ;;  %s5397_s8 = inlined_call_operand.vmem [shape: f32[1,128], index: 8, kind: input, shape index: {}]   ;;  %s5398_s9 = inlined_call_operand.vmem [shape: f32[1,128], index: 9, kind: input, shape index: {}]   ;;  %s5399_s13 = inlined_call_operand.vmem [shape: f32[1,256], index: 13, kind: input, shape index: {}]   ;;  %s5400_s11 = inlined_call_operand.vmem [shape: f32[1,128], index: 11, kind: input, shape index: {}]   ;;  %s5401_s14 = inlined_call_operand.vmem [shape: bf16[128,128], index: 14, kind: input, shape index: {}]   ;;  %s5402_s15 = inlined_call_operand.vmem [shape: f32[1,128], index: 15, kind: input, shape index: {}]   ;;  %s5403_s18 = inlined_call_operand.vmem [shape: bf16[128,512], index: 18, kind: input, shape index: {}]   ;;  %s5404_s20 = inlined_call_operand.vmem [shape: bf16[512,128], index: 20, kind: input, shape index: {}]   ;;  %s5405_s16 = inlined_call_operand.vmem [shape: f32[1,128], index: 16, kind: input, shape index: {}]   ;;  %s5406_s17 = inlined_call_operand.vmem [shape: f32[1,128], index: 17, kind: input, shape index: {}]   ;;  %s5407_s19 = inlined_call_operand.vmem [shape: f32[1,512], index: 19, kind: input, shape index: {}]   ;;  %s5408_s21 = inlined_call_operand.vmem [shape: f32[1,128], index: 21, kind: input, shape index: {}]   ;;  %s5409_s22 = inlined_call_operand.vmem [shape: f32[2,8,128], index: 22, kind: output, shape index: {}]  }
   0x1   :  { %5413 = sst [smem:[#allocation2_spill]] %s5387_s0  ;;  %3822 = vmatprep.subr.bf16.mxu1 %v4384_v3  ;;  %329 = vmatprep.mubr.bf16.mxu0 %v4385_v30  ;;  %vm389_vm1 = vcmask 261120   ;;  %vm454_vm2 = vcmask 1043456   ;;  %vm438_vm4 = vcmask 64512   ;;  %vm850_vm5 = vcmask 523264  }
   0x2   :  { %5414 = sst [smem:[#allocation3_spill]] %s5388_s4  ;;  %s5420_s29 = sld [smem:[#allocation2_spill]]  ;;  %3838 = vmatprep.mubr.msk.bf16.mxu1 %vm4386_vm0, %v4384_v3  ;;  %v4616_v54 = vshrl.u32 %v154_v53, 7  ;;  %vm852_vm6 = vcmask 785408   ;;  %vm1800_vm7 = vcmask 130048  }
   0x3   :  { %5415 = sst [smem:[#allocation4_spill]] %s5389_s2  ;;  %s5421_s4 = sld [smem:[#allocation3_spill]] }
   0x4   :  { %5416 = sst [smem:[#allocation5_spill]] %s5390_s3  ;;  %s5422_s28 = sld [smem:[#allocation4_spill]]  ;;  %v4619_v55 = vsub.s32 1, %v4616_v54  ;;  %v4625_v57 = vsub.s32 0, %v4616_v54  ;;  %v164_v58 = vsub.s32 2, %v4616_v54 }
   0x5   :  { %5417 = sst [smem:[#allocation6_spill]] %s5391_s5  ;;  %s5423_s0 = sld [smem:[#allocation5_spill]] }
   0x6   :  { %5418 = sst [smem:[#allocation7_spill]] %s5392_s6  ;;  %s5424_s24 = sld [smem:[#allocation6_spill]] }
   0x7   :  { %5419 = sst [smem:[#allocation8_spill]] %s5393_s7  ;;  %s4387_s7 = smov 96  }
   0x8   :  { %v72_v0 = vld [vmem:[%s5420_s29] sm:$0xff]  ;;  %v73_v1 = vld [vmem:[%s5420_s29 + $0x8] sm:$0xff]  ;;  %s5428_s23 = sld [smem:[#allocation8_spill]] }
   0x9   :  { %78 = vadd.xlane.f32.xlu0 %v72_v0  ;;  %v4130_v2 = vld [vmem:[%s5421_s4 + $0x4] ss:$12 sps:$4 sm:$0xff]   ;;  %v4132_v4 = vld [vmem:[%s5421_s4] ss:$12 sps:$4 sm:$0xff]   ;;  %v4133_v5 = vld [vmem:[%s5421_s4 + $0x8] ss:$12 sps:$4 sm:$0xff]  }
   0xa   :  { %297 = vmatprep.subr.bf16.mxu0 %v4130_v2  ;;  %v4134_v6 = vld [vmem:[%s5421_s4 + $0x1c] ss:$12 sps:$4 sm:$0xff]   ;;  %3823 = vmatpush3.bf16.msra.mxu1 %v4133_v5  ;;  %v4136_v15 = vld [vmem:[%s5421_s4 + $0x18] ss:$12 sps:$4 sm:$0xff]   ;;  %v4137_v16 = vld [vmem:[%s5421_s4 + $0x20] ss:$12 sps:$4 sm:$0xff]  }
   0xb   :  { %298 = vmatpush1.bf16.msra.mxu0 %v4132_v4  ;;  %3824 = vmatprep.subr.bf16.mxu1 %v4384_v3  ;;  %v4138_v17 = vld [vmem:[%s5421_s4 + $0x34] ss:$12 sps:$4 sm:$0xff]   ;;  %v4140_v18 = vld [vmem:[%s5421_s4 + $0x30] ss:$12 sps:$4 sm:$0xff]   ;;  %v4141_v19 = vld [vmem:[%s5421_s4 + $0x38] ss:$12 sps:$4 sm:$0xff]  }
   0xc   :  { %299 = vmatprep.subr.bf16.mxu0 %v4134_v6  ;;  %v4142_v20 = vld [vmem:[%s5421_s4 + $0x4c] ss:$12 sps:$4 sm:$0xff]   ;;  %v4144_v21 = vld [vmem:[%s5421_s4 + $0x48] ss:$12 sps:$4 sm:$0xff]   ;;  %v4145_v22 = vld [vmem:[%s5421_s4 + $0x50] ss:$12 sps:$4 sm:$0xff]  }
   0xd   :  { %80 = vadd.xlane.f32.xlu0 %v73_v1  ;;  %v4146_v23 = vld [vmem:[%s5421_s4 + $0x64] ss:$12 sps:$4 sm:$0xff]   ;;  %v4148_v24 = vld [vmem:[%s5421_s4 + $0x60] ss:$12 sps:$4 sm:$0xff]   ;;  %v4149_v25 = vld [vmem:[%s5421_s4 + $0x68] ss:$12 sps:$4 sm:$0xff]  }
   0xe   :  { %3825 = vmatpush3.bf16.msra.mxu1 %v4137_v16  ;;  %v4150_v26 = vld [vmem:[%s5421_s4 + $0x7c] ss:$12 sps:$4 sm:$0xff]   ;;  %v4152_v27 = vld [vmem:[%s5421_s4 + $0x78] ss:$12 sps:$4 sm:$0xff]   ;;  %v4153_v28 = vld [vmem:[%s5421_s4 + $0x80] ss:$12 sps:$4 sm:$0xff]  }
   0xf   :  { %300 = vmatpush1.bf16.msra.mxu0 %v4136_v15  ;;  %3826 = vmatprep.subr.bf16.mxu1 %v4384_v3  ;;  %v4154_v29 = vld [vmem:[%s5421_s4 + $0x94] ss:$12 sps:$4 sm:$0xff]   ;;  %v4156_v31 = vld [vmem:[%s5421_s4 + $0x90] ss:$12 sps:$4 sm:$0xff]   ;;  %v4157_v32 = vld [vmem:[%s5421_s4 + $0x98] ss:$12 sps:$4 sm:$0xff]  }
  0x10   :  { %301 = vmatprep.subr.bf16.mxu0 %v4138_v17  ;;  %v4158_v33 = vld [vmem:[%s5421_s4 + $0xac] ss:$12 sps:$4 sm:$0xff]   ;;  %v4160_v34 = vld [vmem:[%s5421_s4 + $0xa8] ss:$12 sps:$4 sm:$0xff]   ;;  %v4161_v35 = vld [vmem:[%s5421_s4 + $0xb0] ss:$12 sps:$4 sm:$0xff]  }
  0x11   :  { %v3508_v44 = vld [vmem:[%s5422_s28] ss:$0 sm:$0xff]  ;;  %s5427_s4 = sld [smem:[#allocation7_spill]] }
  0x12   :  { %3827 = vmatpush3.bf16.msra.mxu1 %v4141_v19  ;;  %v3509_v48 = vld [vmem:[%s5423_s0] ss:$0 sm:$0xff] }
  0x13   :  { %302 = vmatpush1.bf16.msra.mxu0 %v4140_v18  ;;  %3828 = vmatprep.subr.bf16.mxu1 %v4384_v3  ;;  %v152_v56 = vld [vmem:[%s5424_s24] sm:$0x7]  ;;  %v384_v18 = vand.u32 127, %v154_v53 }
  0x14   :  { %303 = vmatprep.subr.bf16.mxu0 %v4142_v20  ;;  %v161_v59 = vrot.slane %v152_v56, %v4619_v55  ;;  %v157_v62 = vrot.slane %v152_v56, %v4625_v57  ;;  %v165_v63 = vrot.slane %v152_v56, %v164_v58 }
  0x15   :  { %vm4645_vm3 = vcmp.le.s32.totalorder %v384_v18, %v4616_v54 }
  0x16   :  { %3829 = vmatpush3.bf16.msra.mxu1 %v4145_v22 }
  0x17   :  { %304 = vmatpush1.bf16.msra.mxu0 %v4144_v21  ;;  %3830 = vmatprep.subr.bf16.mxu1 %v4384_v3 }
  0x18   :  { %305 = vmatprep.subr.bf16.mxu0 %v4146_v23 }
  0x1a   :  { %3831 = vmatpush3.bf16.msra.mxu1 %v4149_v25 }
  0x1b   :  { %306 = vmatpush1.bf16.msra.mxu0 %v4148_v24  ;;  %3832 = vmatprep.subr.bf16.mxu1 %v4384_v3 }
  0x1c   :  { %307 = vmatprep.subr.bf16.mxu0 %v4150_v26 }
  0x1e   :  { %3833 = vmatpush3.bf16.msra.mxu1 %v4153_v28 }
  0x1f   :  { %308 = vmatpush1.bf16.msra.mxu0 %v4152_v27  ;;  %3834 = vmatprep.subr.bf16.mxu1 %v4384_v3 }
  0x20   :  { %309 = vmatprep.subr.bf16.mxu0 %v4154_v29 }
  0x22   :  { %3835 = vmatpush3.bf16.msra.mxu1 %v4157_v32 }
  0x23   :  { %310 = vmatpush1.bf16.msra.mxu0 %v4156_v31  ;;  %3836 = vmatprep.subr.bf16.mxu1 %v4384_v3 }
  0x24   :  { %311 = vmatprep.subr.bf16.mxu0 %v4158_v33 }
  0x26   :  { %3837 = vmatpush3.bf16.msra.mxu1 %v4161_v35 }
  0x27   :  { %312 = vmatpush1.bf16.msra.mxu0 %v4160_v34  ;;  %3860 = vmatprep.subr.bf16.mxu1 %v4384_v3 }
  0x28   :  { %3842 = vmatprep.subr.bf16.mxu0 %v4384_v3 }
  0x96   :  { %v79_v7 = vpop.xlane.xlu0 %78 }
  0x97   :  { %v83_v8 = vmul.f32 0.0078125, %v79_v7 }
  0x99   :  { %v4525_v9 = vsub.f32 %v72_v0, %v83_v8 }
  0x9a   :  { %v81_v10 = vpop.xlane.xlu0 %80 }
  0x9b   :  { %v84_v11 = vmul.f32 0.0078125, %v81_v10  ;;  %v87_v12 = vmul.f32 %v4525_v9, %v4525_v9 }
  0x9d   :  { %v4529_v13 = vsub.f32 %v73_v1, %v84_v11  ;;  %89 = vadd.xlane.f32.xlu1 %v87_v12 }
  0x9f   :  { %v88_v14 = vmul.f32 %v4529_v13, %v4529_v13 }
  0xa1   :  { %91 = vadd.xlane.f32.xlu1 %v88_v14 }
 0x12a   :  { %v90_v36 = vpop.xlane.xlu1 %89 }
 0x12b   :  { %v93_v37 = vmul.f32 0.0078125, %v90_v36 }
 0x12d   :  { %v95_v38 = vadd.f32 1e-05, %v93_v37 }
 0x12e   :  { %v92_v39 = vpop.xlane.xlu1 %91 }
 0x12f   :  { %4290 = vrsqrt.f32 %v95_v38  ;;  %v94_v40 = vmul.f32 0.0078125, %v92_v39 }
 0x131   :  { %v96_v41 = vadd.f32 1e-05, %v94_v40 }
 0x133   :  { %4292 = vrsqrt.f32 %v96_v41 }
 0x139   :  { %v4291_v42 = vpop.eup %4290 }
 0x13a   :  { %v99_v43 = vmul.f32 %v4291_v42, %v4525_v9 }
 0x13c   :  { %v108_v47 = vmul.f32 %v3508_v44, %v99_v43 }
 0x13d   :  { %v4293_v45 = vpop.eup %4292 }
 0x13e   :  { %v100_v46 = vmul.f32 %v4293_v45, %v4529_v13  ;;  %v117_v50 = vadd.f32 %v3509_v48, %v108_v47 }
 0x140   :  { %v109_v49 = vmul.f32 %v3508_v44, %v100_v46 }
 0x142   :  { %v118_v51 = vadd.f32 %v3509_v48, %v109_v49 }
 0x144   :  { %v119_v52 = vpack.c.bf16 %v118_v51, %v117_v50 }
 0x146   :  { %330 = vmatmul.mubr.bf16.vlgmr.msra.gmra.mrb[0].mxu0 %v119_v52  ;;  %3839 = vmatmul.mubr.bf16.vlgmr.msra.gmra.mrb[0].mxu1 %v119_v52 }
 0x147   :  { %3844 = vmatprep.mubr.msk.bf16.mxu0 %vm4386_vm0, %v4384_v3  ;;  %3862 = vmatprep.mubr.msk.bf16.mxu1 %vm4386_vm0, %v4384_v3 }
 0x219   :  { %v331_v60 = vpop.f32.mrb[0].mxu0  ;;  %v374_v61 = vpop.f32.mrb[0].mxu1 }
 0x21a   :  { %v333_v0 = vpop.f32.mrb[1].mxu0  ;;  %v3840_v1 = vpop.f32.mrb[1].mxu1  ;;  %v375_v12 = vadd.f32 %v374_v61, %v165_v63  ;;  %v332_v14 = vadd.f32 %v331_v60, %v157_v62 }
 0x21b   :  { %v334_v2 = vadd.f32 %v333_v0, %v161_v59  ;;  %v335_v4 = vpop.f32.mrb[2].mxu0  ;;  %v377_v5 = vpop.f32.mrb[2].mxu1 }
 0x21c   :  { %v336_v6 = vadd.f32 %v335_v4, %v157_v62  ;;  %v4632_v7 = vadd.f32 %v377_v5, %v165_v63  ;;  %v337_v8 = vpop.f32.mrb[3].mxu0  ;;  %v3841_v9 = vpop.f32.mrb[3].mxu1  ;;  %v4636_v15 = vpack.c.bf16 %v375_v12, %v375_v12  ;;  %v386_v16 = vpack.c.bf16 %v332_v14, %v332_v14 }
 0x21d   :  { %v387_v10 = vpack.c.bf16 %v334_v2, %v334_v2  ;;  %v338_v11 = vadd.f32 %v337_v8, %v161_v59 }
 0x21e   :  { %v456_v17 = vsel %vm454_vm2, %v4636_v15, 0  ;;  %v854_v34 = vpack.c.bf16 %v336_v6, %v336_v6 }
 0x21f   :  { %v394_v13 = vsel %vm389_vm1, %v387_v10, 0  ;;  %v855_v27 = vpack.c.bf16 %v338_v11, %v338_v11 }
 0x220   :  { %3843 = vmatpush3.bf16.xpose.msra.mxu0 %v394_v13 }
 0x221   :  { %3848 = vmatprep.subr.bf16.mxu0 %v4384_v3  ;;  %v861_v48 = vsel %vm389_vm1, %v855_v27, 0 }
 0x227   :  { %3845 = vmatmul.mubr.msk.bf16.vlgmr.msra.gmra.mrb[4].mxu0 %vm389_vm1, %v386_v16 }
 0x228   :  { %3849 = vmatpush3.bf16.msra.mxu0 %v456_v17  ;;  %3850 = vmatprep.mubr.msk.bf16.mxu0 %vm4386_vm0, %v4384_v3 }
 0x229   :  { %3854 = vmatprep.subr.bf16.mxu0 %v4384_v3 }
 0x2fa   :  { %v430_v19 = vpop.f32.mrb[4].mxu0 }
 0x2fb   :  { %v436_v21 = vmul.f32 0.17677669, %v430_v19  ;;  %v3846_v22 = vpop.f32.mrb[5].mxu0 }
 0x2fc   :  { %v433_v23 = vpop.f32.mrb[6].mxu0 }
 0x2fd   :  { %v3847_v24 = vpop.f32.mrb[7].mxu0  ;;  %v437_v25 = vsel %vm4645_vm3, %v436_v21, -1e+30 }
 0x2fe   :  { %v439_v26 = vsel %vm438_vm4, %v437_v25, -inf }
 0x2ff   :  { %440 = vmax.xlane.f32.xlu0 %v439_v26 }
 0x315   :  { %502 = vrot.lane.b32.xlu0 %v387_v10, %s4387_s7 }
 0x319   :  { %727 = vrot.lane.b32.xlu0 %v387_v10, %s4388_s25 }
 0x31d   :  { %967 = vrot.lane.b32.xlu0 %v855_v27, %s4387_s7 }
 0x321   :  { %1080 = vrot.lane.b32.xlu0 %v855_v27, %s4389_s26 }
 0x325   :  { %1192 = vrot.lane.b32.xlu0 %v855_v27, %s4388_s25 }
 0x38c   :  { %v441_v28 = vpop.xlane.xlu0 %440 }
 0x38d   :  { %v442_v29 = vsub.f32 %v437_v25, %v441_v28 }
 0x38f   :  { %v443_v31 = vmul.f32 1.442695, %v442_v29 }
 0x390   :  { %v503_v38 = vpop.permute.xlu0 %502 }
 0x391   :  { %4294 = vpow2.f32 %v443_v31  ;;  %v508_v41 = vsel %vm389_vm1, %v503_v38, 0 }
 0x394   :  { %v728_v44 = vpop.permute.xlu0 %727 }
 0x395   :  { %v733_v46 = vsel %vm389_vm1, %v728_v44, 0 }
 0x398   :  { %v968_v49 = vpop.permute.xlu0 %967 }
 0x399   :  { %v973_v50 = vsel %vm389_vm1, %v968_v49, 0 }
 0x39b   :  { %v4295_v32 = vpop.eup %4294 }
 0x39c   :  { %v445_v33 = vsel %vm438_vm4, %v4295_v32, 0.0  ;;  %v1081_v51 = vpop.permute.xlu0 %1080 }
 0x39d   :  { %446 = vadd.xlane.f32.xlu1 %v445_v33  ;;  %v1086_v53 = vsel %vm389_vm1, %v1081_v51, 0 }
 0x3a0   :  { %v1193_v56 = vpop.permute.xlu0 %1192 }
 0x3a1   :  { %v1198_v60 = vsel %vm389_vm1, %v1193_v56, 0 }
 0x3ae   :  { %499 = vrot.lane.b32.xlu1 %v386_v16, %s4387_s7 }
 0x3b2   :  { %615 = vrot.lane.b32.xlu1 %v387_v10, %s4389_s26 }
 0x3b6   :  { %613 = vrot.lane.b32.xlu1 %v386_v16, %s4389_s26 }
 0x3ba   :  { %725 = vrot.lane.b32.xlu1 %v386_v16, %s4388_s25 }
 0x3be   :  { %964 = vrot.lane.b32.xlu1 %v854_v34, %s4387_s7 }
 0x3c2   :  { %1078 = vrot.lane.b32.xlu1 %v854_v34, %s4389_s26 }
 0x3c6   :  { %1190 = vrot.lane.b32.xlu1 %v854_v34, %s4388_s25 }
 0x42a   :  { %v447_v35 = vpop.xlane.xlu1 %446 }
 0x42b   :  { %4296 = vrcp.f32 %v447_v35 }
 0x42e   :  { %v500_v40 = vpop.permute.xlu1 %499 }
 0x432   :  { %v616_v42 = vpop.permute.xlu1 %615 }
 0x433   :  { %v621_v43 = vsel %vm389_vm1, %v616_v42, 0 }
 0x435   :  { %v4297_v36 = vpop.eup %4296 }
 0x436   :  { %v449_v37 = vmul.f32 %v4297_v36, %v4295_v32  ;;  %v614_v45 = vpop.permute.xlu1 %613 }
 0x438   :  { %v450_v39 = vpack.c.bf16 %v449_v37, %v449_v37 }
 0x43a   :  { %3851 = vmatmul.mubr.msk.bf16.vlgmr.msra.gmra.mrb[8].mxu0 %vm438_vm4, %v450_v39  ;;  %v726_v47 = vpop.permute.xlu1 %725 }
 0x43b   :  { %3855 = vmatpush3.bf16.xpose.msra.mxu0 %v508_v41  ;;  %3856 = vmatprep.mubr.msk.bf16.mxu0 %vm4386_vm0, %v4384_v3 }
 0x43c   :  { %3866 = vmatprep.subr.bf16.mxu0 %v4384_v3 }
 0x43e   :  { %v965_v52 = vpop.permute.xlu1 %964 }
 0x442   :  { %3857 = vmatmul.mubr.msk.bf16.vlgmr.msra.gmra.mrb[12].mxu0 %vm389_vm1, %v500_v40  ;;  %v1079_v59 = vpop.permute.xlu1 %1078 }
 0x443   :  { %3867 = vmatpush3.bf16.xpose.msra.mxu0 %v621_v43  ;;  %3868 = vmatprep.mubr.msk.bf16.mxu0 %vm4386_vm0, %v4384_v3 }
 0x444   :  { %3878 = vmatprep.subr.bf16.mxu0 %v4384_v3 }
 0x446   :  { %v1191_v61 = vpop.permute.xlu1 %1190 }
 0x44a   :  { %3869 = vmatmul.mubr.msk.bf16.vlgmr.msra.gmra.mrb[16].mxu0 %vm389_vm1, %v614_v45 }
 0x44b   :  { %3879 = vmatpush3.bf16.xpose.msra.mxu0 %v733_v46  ;;  %3880 = vmatprep.mubr.msk.bf16.mxu0 %vm4386_vm0, %v4384_v3 }
 0x44c   :  { %3890 = vmatprep.subr.bf16.mxu0 %v4384_v3 }
 0x452   :  { %3881 = vmatmul.mubr.msk.bf16.vlgmr.msra.gmra.mrb[20].mxu0 %vm389_vm1, %v726_v47 }
 0x453   :  { %3891 = vmatpush3.bf16.xpose.msra.mxu0 %v861_v48  ;;  %3892 = vmatprep.mubr.msk.bf16.mxu0 %vm4386_vm0, %v4384_v3 }
 0x454   :  { %3902 = vmatprep.subr.bf16.mxu0 %v4384_v3 }
 0x45a   :  { %3893 = vmatmul.mubr.msk.bf16.vlgmr.msra.gmra.mrb[24].mxu0 %vm389_vm1, %v854_v34 }
 0x45b   :  { %3903 = vmatpush3.bf16.xpose.msra.mxu0 %v973_v50  ;;  %3904 = vmatprep.mubr.msk.bf16.mxu0 %vm4386_vm0, %v4384_v3 }
 0x45c   :  { %3914 = vmatprep.subr.bf16.mxu0 %v4384_v3 }
 0x462   :  { %3905 = vmatmul.mubr.msk.bf16.vlgmr.msra.gmra.mrb[28].mxu0 %vm389_vm1, %v965_v52 }
 0x463   :  { %3915 = vmatpush3.bf16.xpose.msra.mxu0 %v1086_v53  ;;  %3916 = vmatprep.mubr.msk.bf16.mxu0 %vm4386_vm0, %v4384_v3 }
 0x464   :  { %3926 = vmatprep.subr.bf16.mxu0 %v4384_v3 }
 0x46a   :  { %3917 = vmatmul.mubr.msk.bf16.vlgmr.msra.gmra.mrb[32].mxu0 %vm389_vm1, %v1079_v59 }
 0x46b   :  { %3927 = vmatpush3.bf16.xpose.msra.mxu0 %v1198_v60  ;;  %3928 = vmatprep.mubr.msk.bf16.mxu0 %vm4386_vm0, %v4384_v3 }
 0x46c   :  { %3938 = vmatprep.subr.bf16.mxu0 %v4384_v3 }
 0x472   :  { %3929 = vmatmul.mubr.msk.bf16.vlgmr.msra.gmra.mrb[36].mxu0 %vm389_vm1, %v1191_v61 }
 0x473   :  { %3954 = vmatprep.mubr.msk.bf16.mxu0 %vm4386_vm0, %v4384_v3 }
 0x50d   :  { %v4703_v62 = vpop.f32.mrb[8].mxu0 }
 0x50e   :  { %v3852_v63 = vpop.f32.mrb[9].mxu0 }
 0x50f   :  { %v495_v0 = vpop.f32.mrb[10].mxu0 }
 0x510   :  { %v3853_v1 = vpop.f32.mrb[11].mxu0 }
 0x515   :  { %v544_v2 = vpop.f32.mrb[12].mxu0 }
 0x516   :  { %v550_v4 = vmul.f32 0.17677669, %v544_v2  ;;  %v3858_v5 = vpop.f32.mrb[13].mxu0 }
 0x517   :  { %v547_v6 = vpop.f32.mrb[14].mxu0 }
 0x518   :  { %v3859_v8 = vpop.f32.mrb[15].mxu0  ;;  %v551_v9 = vsel %vm4645_vm3, %v550_v4, -1e+30 }
 0x519   :  { %v552_v10 = vsel %vm438_vm4, %v551_v9, -inf }
 0x51a   :  { %553 = vmax.xlane.f32.xlu0 %v552_v10 }
 0x51d   :  { %v657_v11 = vpop.f32.mrb[16].mxu0 }
 0x51e   :  { %v663_v12 = vmul.f32 0.17677669, %v657_v11  ;;  %v3870_v13 = vpop.f32.mrb[17].mxu0 }
 0x51f   :  { %v660_v14 = vpop.f32.mrb[18].mxu0 }
 0x520   :  { %v3871_v16 = vpop.f32.mrb[19].mxu0  ;;  %v664_v17 = vsel %vm4645_vm3, %v663_v12, -1e+30 }
 0x521   :  { %v665_v18 = vsel %vm438_vm4, %v664_v17, -inf }
 0x522   :  { %666 = vmax.xlane.f32.xlu1 %v665_v18 }
 0x525   :  { %v769_v19 = vpop.f32.mrb[20].mxu0 }
 0x526   :  { %v775_v21 = vmul.f32 0.17677669, %v769_v19  ;;  %v3882_v22 = vpop.f32.mrb[21].mxu0 }
 0x527   :  { %v772_v23 = vpop.f32.mrb[22].mxu0 }
 0x528   :  { %v3883_v24 = vpop.f32.mrb[23].mxu0  ;;  %v776_v25 = vsel %vm4645_vm3, %v775_v21, -1e+30  ;;  %v856_v23 = vpack.c.bf16 %v4632_v7, %v4632_v7 }
 0x529   :  { %v777_v26 = vsel %vm438_vm4, %v776_v25, -inf }
 0x52a   :  { %778 = vmax.xlane.f32.xlu0 %v777_v26 }
 0x52d   :  { %v897_v27 = vpop.f32.mrb[24].mxu0 }
 0x52e   :  { %v903_v28 = vmul.f32 0.17677669, %v897_v27  ;;  %v3894_v29 = vpop.f32.mrb[25].mxu0 }
 0x52f   :  { %v900_v31 = vpop.f32.mrb[26].mxu0 }
 0x530   :  { %v3895_v32 = vpop.f32.mrb[27].mxu0  ;;  %v904_v33 = vsel %vm4645_vm3, %v903_v28, -1e+30 }
 0x531   :  { %v905_v34 = vsel %vm438_vm4, %v904_v33, -inf }
 0x532   :  { %906 = vmax.xlane.f32.xlu0 %v905_v34 }
 0x535   :  { %v1009_v35 = vpop.f32.mrb[28].mxu0 }
 0x536   :  { %v1015_v36 = vmul.f32 0.17677669, %v1009_v35  ;;  %v3906_v37 = vpop.f32.mrb[29].mxu0 }
 0x537   :  { %v1012_v38 = vpop.f32.mrb[30].mxu0 }
 0x538   :  { %v3907_v39 = vpop.f32.mrb[31].mxu0  ;;  %v4719_v40 = vsel %vm4645_vm3, %v1015_v36, -1e+30 }
 0x539   :  { %v1017_v41 = vsel %vm438_vm4, %v4719_v40, -inf }
 0x53a   :  { %1018 = vmax.xlane.f32.xlu0 %v1017_v41 }
 0x53d   :  { %v1122_v42 = vpop.f32.mrb[32].mxu0 }
 0x53e   :  { %v1128_v43 = vmul.f32 0.17677669, %v1122_v42  ;;  %v3918_v44 = vpop.f32.mrb[33].mxu0 }
 0x53f   :  { %v1125_v45 = vpop.f32.mrb[34].mxu0 }
 0x540   :  { %v3919_v46 = vpop.f32.mrb[35].mxu0  ;;  %v1129_v47 = vsel %vm4645_vm3, %v1128_v43, -1e+30 }
 0x541   :  { %v1130_v48 = vsel %vm438_vm4, %v1129_v47, -inf }
 0x542   :  { %1131 = vmax.xlane.f32.xlu1 %v1130_v48 }
 0x545   :  { %v1234_v49 = vpop.f32.mrb[36].mxu0 }
 0x546   :  { %v1240_v50 = vmul.f32 0.17677669, %v1234_v49  ;;  %v3930_v51 = vpop.f32.mrb[37].mxu0 }
 0x547   :  { %v1237_v52 = vpop.f32.mrb[38].mxu0 }
 0x548   :  { %v3931_v53 = vpop.f32.mrb[39].mxu0  ;;  %v1241_v56 = vsel %vm4645_vm3, %v1240_v50, -1e+30 }
 0x549   :  { %v1242_v59 = vsel %vm438_vm4, %v1241_v56, -inf }
 0x54a   :  { %1243 = vmax.xlane.f32.xlu0 %v1242_v59 }
 0x553   :  { %565 = vrot.lane.b32.xlu1 %v4636_v15, %s4387_s7 }
 0x560   :  { %677 = vrot.lane.b32.xlu0 %v4636_v15, %s4389_s26 }
 0x5a7   :  { %v554_v60 = vpop.xlane.xlu0 %553 }
 0x5a8   :  { %v555_v61 = vsub.f32 %v551_v9, %v554_v60 }
 0x5aa   :  { %v556_v63 = vmul.f32 1.442695, %v555_v61 }
 0x5ac   :  { %4298 = vpow2.f32 %v556_v63 }
 0x5af   :  { %v667_v0 = vpop.xlane.xlu1 %666 }
 0x5b0   :  { %v668_v1 = vsub.f32 %v664_v17, %v667_v0 }
 0x5b2   :  { %v669_v2 = vmul.f32 1.442695, %v668_v1 }
 0x5b4   :  { %4300 = vpow2.f32 %v669_v2 }
 0x5b6   :  { %v4299_v4 = vpop.eup %4298 }
 0x5b7   :  { %v779_v20 = vpop.xlane.xlu0 %778  ;;  %v558_v5 = vsel %vm438_vm4, %v4299_v4, 0.0 }
 0x5b8   :  { %v780_v6 = vsub.f32 %v776_v25, %v779_v20  ;;  %559 = vadd.xlane.f32.xlu1 %v558_v5 }
 0x5ba   :  { %v781_v8 = vmul.f32 1.442695, %v780_v6 }
 0x5bc   :  { %4302 = vpow2.f32 %v781_v8 }
 0x5be   :  { %v4301_v10 = vpop.eup %4300 }
 0x5bf   :  { %v907_v11 = vpop.xlane.xlu0 %906  ;;  %v671_v12 = vsel %vm438_vm4, %v4301_v10, 0.0 }
 0x5c0   :  { %v908_v13 = vsub.f32 %v904_v33, %v907_v11  ;;  %672 = vadd.xlane.f32.xlu0 %v671_v12 }
 0x5c2   :  { %v909_v9 = vmul.f32 1.442695, %v908_v13 }
 0x5c4   :  { %4304 = vpow2.f32 %v909_v9 }
 0x5c6   :  { %v4303_v14 = vpop.eup %4302 }
 0x5c7   :  { %v783_v16 = vsel %vm438_vm4, %v4303_v14, 0.0  ;;  %v1019_v26 = vpop.xlane.xlu0 %1018 }
 0x5c8   :  { %784 = vadd.xlane.f32.xlu1 %v783_v16  ;;  %v1020_v27 = vsub.f32 %v4719_v40, %v1019_v26 }
 0x5ca   :  { %v1021_v29 = vmul.f32 1.442695, %v1020_v27 }
 0x5ce   :  { %v4736_v17 = vpop.eup %4304 }
 0x5cf   :  { %v1132_v18 = vpop.xlane.xlu1 %1131  ;;  %v911_v19 = vsel %vm438_vm4, %v4736_v17, 0.0 }
 0x5d0   :  { %912 = vadd.xlane.f32.xlu0 %v911_v19  ;;  %v1133_v24 = vsub.f32 %v1129_v47, %v1132_v18  ;;  %v4162_v19 = vld [vmem:[%s5427_s4] sm:$0xff]  }
 0x5d1   :  { %3939 = vmatpush3.bf16.msra.mxu0 %v4162_v19 }
 0x5d2   :  { %v1134_v25 = vmul.f32 1.442695, %v1133_v24  ;;  %3940 = vmatprep.subr.bf16.mxu0 %v4384_v3 }
 0x5d3   :  { %v566_v21 = vpop.permute.xlu1 %565 }
 0x5d4   :  { %v571_v22 = vsel %vm454_vm2, %v566_v21, 0  ;;  %4306 = vpow2.f32 %v1134_v25  ;;  %v4163_v21 = vld [vmem:[%s5427_s4 + $0x8] sm:$0xff]  }
 0x5d5   :  { %3861 = vmatpush3.bf16.msra.mxu1 %v571_v22  ;;  %4308 = vpow2.f32 %v1021_v29  ;;  %3941 = vmatpush3.bf16.msra.mxu0 %v4163_v21  ;;  %v4164_v22 = vld [vmem:[%s5427_s4 + $0x10] sm:$0xff]  }
 0x5d6   :  { %3872 = vmatprep.subr.bf16.mxu1 %v4384_v3  ;;  %3942 = vmatprep.subr.bf16.mxu0 %v4384_v3 }
 0x5d7   :  { %v1244_v28 = vpop.xlane.xlu0 %1243 }
 0x5d8   :  { %v1245_v31 = vsub.f32 %v1241_v56, %v1244_v28  ;;  %v921_v56 = vsel %vm454_vm2, %v856_v23, 0 }
 0x5d9   :  { %1030 = vrot.lane.b32.xlu1 %v856_v23, %s4387_s7  ;;  %3943 = vmatpush3.bf16.msra.mxu0 %v4164_v22 }
 0x5da   :  { %v1246_v32 = vmul.f32 1.442695, %v1245_v31  ;;  %3944 = vmatprep.subr.bf16.mxu0 %v4384_v3 }
 0x5db   :  { %v678_v38 = vpop.permute.xlu0 %677 }
 0x5dc   :  { %4310 = vpow2.f32 %v1246_v32  ;;  %v683_v43 = vsel %vm454_vm2, %v678_v38, 0  ;;  %v4165_v38 = vld [vmem:[%s5427_s4 + $0x18] sm:$0xff]  }
 0x5dd   :  { %3945 = vmatpush3.bf16.msra.mxu0 %v4165_v38 }
 0x5de   :  { %v4748_v33 = vpop.eup %4306  ;;  %3946 = vmatprep.subr.bf16.mxu0 %v4384_v3 }
 0x5df   :  { %v1136_v7 = vsel %vm438_vm4, %v4748_v33, 0.0  ;;  %v4309_v34 = vpop.eup %4308 }
 0x5e6   :  { %789 = vrot.lane.b32.xlu0 %v4636_v15, %s4388_s25  ;;  %v1023_v15 = vsel %vm438_vm4, %v4309_v34, 0.0  ;;  %v4753_v35 = vpop.eup %4310 }
 0x5e7   :  { %v1248_v36 = vsel %vm438_vm4, %v4753_v35, 0.0 }
 0x5fd   :  { %1137 = vadd.xlane.f32.xlu1 %v1136_v7 }
 0x605   :  { %1024 = vadd.xlane.f32.xlu0 %v1023_v15 }
 0x609   :  { %1249 = vadd.xlane.f32.xlu0 %v1248_v36 }
 0x60e   :  { %1254 = vrot.lane.b32.xlu1 %v856_v23, %s4388_s25 }
 0x61f   :  { %1142 = vrot.lane.b32.xlu0 %v856_v23, %s4389_s26 }
 0x645   :  { %v560_v37 = vpop.xlane.xlu1 %559 }
 0x646   :  { %4312 = vrcp.f32 %v560_v37 }
 0x64d   :  { %v673_v39 = vpop.xlane.xlu0 %672 }
 0x64e   :  { %4314 = vrcp.f32 %v673_v39  ;;  %v4166_v39 = vld [vmem:[%s5427_s4 + $0x20] sm:$0xff]  }
 0x64f   :  { %3947 = vmatpush3.bf16.msra.mxu0 %v4166_v39 }
 0x650   :  { %v4313_v40 = vpop.eup %4312  ;;  %3948 = vmatprep.subr.bf16.mxu0 %v4384_v3 }
 0x651   :  { %v562_v41 = vmul.f32 %v4313_v40, %v4299_v4  ;;  %v4167_v40 = vld [vmem:[%s5427_s4 + $0x28] sm:$0xff]  }
 0x653   :  { %v563_v42 = vpack.c.bf16 %v562_v41, %v562_v41  ;;  %3949 = vmatpush3.bf16.msra.mxu0 %v4167_v40 }
 0x654   :  { %3950 = vmatprep.subr.bf16.mxu0 %v4384_v3 }
 0x655   :  { %3863 = vmatmul.mubr.msk.bf16.vlgmr.msra.gmra.mrb[4].mxu1 %vm438_vm4, %v563_v42  ;;  %v785_v44 = vpop.xlane.xlu1 %784 }
 0x656   :  { %4316 = vrcp.f32 %v785_v44  ;;  %3873 = vmatpush3.bf16.msra.mxu1 %v683_v43  ;;  %3874 = vmatprep.mubr.msk.bf16.mxu1 %vm4386_vm0, %v4384_v3  ;;  %v4168_v44 = vld [vmem:[%s5427_s4 + $0x30] sm:$0xff]  }
 0x657   :  { %3884 = vmatprep.subr.bf16.mxu1 %v4384_v3  ;;  %3951 = vmatpush3.bf16.msra.mxu0 %v4168_v44 }
 0x658   :  { %v4315_v45 = vpop.eup %4314  ;;  %3952 = vmatprep.subr.bf16.mxu0 %v4384_v3 }
 0x659   :  { %v675_v46 = vmul.f32 %v4315_v45, %v4301_v10  ;;  %v1031_v61 = vpop.permute.xlu1 %1030 }
 0x65a   :  { %v1036_v0 = vsel %vm454_vm2, %v1031_v61, 0 }
 0x65b   :  { %v676_v47 = vpack.c.bf16 %v675_v46, %v675_v46 }
 0x65d   :  { %3875 = vmatmul.mubr.msk.bf16.vlgmr.msra.gmra.mrb[8].mxu1 %vm438_vm4, %v676_v47  ;;  %v913_v48 = vpop.xlane.xlu0 %912  ;;  %v4169_v47 = vld [vmem:[%s5427_s4 + $0x38] sm:$0xff]  }
 0x65e   :  { %4318 = vrcp.f32 %v913_v48  ;;  %3886 = vmatprep.mubr.msk.bf16.mxu1 %vm4386_vm0, %v4384_v3  ;;  %3953 = vmatpush3.bf16.msra.mxu0 %v4169_v47  ;;  %v4189_v47 = vld [vmem:[%s5394_s12 + $0x54] ss:$8 sps:$4 sm:$0xff]  }
 0x660   :  { %v4317_v49 = vpop.eup %4316 }
 0x661   :  { %v787_v50 = vmul.f32 %v4317_v49, %v4303_v14  ;;  %v790_v51 = vpop.permute.xlu0 %789 }
 0x662   :  { %v795_v52 = vsel %vm454_vm2, %v790_v51, 0 }
 0x663   :  { %3885 = vmatpush3.bf16.msra.mxu1 %v795_v52  ;;  %v788_v53 = vpack.c.bf16 %v787_v50, %v787_v50 }
 0x664   :  { %3896 = vmatprep.subr.bf16.mxu1 %v4384_v3 }
 0x666   :  { %3887 = vmatmul.mubr.msk.bf16.vlgmr.msra.gmra.mrb[12].mxu1 %vm438_vm4, %v788_v53 }
 0x667   :  { %3897 = vmatpush3.bf16.msra.mxu1 %v921_v56  ;;  %3898 = vmatprep.mubr.msk.bf16.mxu1 %vm4386_vm0, %v4384_v3 }
 0x668   :  { %v4319_v59 = vpop.eup %4318  ;;  %3908 = vmatprep.subr.bf16.mxu1 %v4384_v3 }
 0x669   :  { %v915_v60 = vmul.f32 %v4319_v59, %v4736_v17 }
 0x66b   :  { %v916_v63 = vpack.c.bf16 %v915_v60, %v915_v60 }
 0x66e   :  { %3899 = vmatmul.mubr.msk.bf16.vlgmr.msra.gmra.mrb[16].mxu1 %vm438_vm4, %v916_v63 }
 0x66f   :  { %3909 = vmatpush3.bf16.msra.mxu1 %v1036_v0  ;;  %3910 = vmatprep.mubr.msk.bf16.mxu1 %vm4386_vm0, %v4384_v3 }
 0x670   :  { %3920 = vmatprep.subr.bf16.mxu1 %v4384_v3 }
 0x68a   :  { %v1138_v2 = vpop.xlane.xlu1 %1137 }
 0x68e   :  { %v1255_v13 = vpop.permute.xlu1 %1254 }
 0x68f   :  { %v1260_v16 = vsel %vm454_vm2, %v1255_v13, 0 }
 0x692   :  { %v1025_v1 = vpop.xlane.xlu0 %1024 }
 0x693   :  { %4320 = vrcp.f32 %v1025_v1 }
 0x694   :  { %4322 = vrcp.f32 %v1138_v2 }
 0x696   :  { %v1250_v4 = vpop.xlane.xlu0 %1249 }
 0x697   :  { %4324 = vrcp.f32 %v1250_v4 }
 0x69a   :  { %v1143_v6 = vpop.permute.xlu0 %1142 }
 0x69b   :  { %v1148_v11 = vsel %vm454_vm2, %v1143_v6, 0 }
 0x69d   :  { %v4321_v20 = vpop.eup %4320 }
 0x69e   :  { %v1027_v5 = vmul.f32 %v4321_v20, %v4309_v34  ;;  %v4323_v10 = vpop.eup %4322 }
 0x69f   :  { %v1140_v12 = vmul.f32 %v4323_v10, %v4748_v33 }
 0x6a0   :  { %v1028_v8 = vpack.c.bf16 %v1027_v5, %v1027_v5 }
 0x6a1   :  { %v1141_v9 = vpack.c.bf16 %v1140_v12, %v1140_v12  ;;  %v4325_v14 = vpop.eup %4324 }
 0x6a2   :  { %3911 = vmatmul.mubr.msk.bf16.vlgmr.msra.gmra.mrb[20].mxu1 %vm438_vm4, %v1028_v8  ;;  %v1252_v17 = vmul.f32 %v4325_v14, %v4753_v35 }
 0x6a3   :  { %3921 = vmatpush3.bf16.msra.mxu1 %v1148_v11  ;;  %3922 = vmatprep.mubr.msk.bf16.mxu1 %vm4386_vm0, %v4384_v3 }
 0x6a4   :  { %3932 = vmatprep.subr.bf16.mxu1 %v4384_v3  ;;  %v1253_v18 = vpack.c.bf16 %v1252_v17, %v1252_v17 }
 0x6aa   :  { %3923 = vmatmul.mubr.msk.bf16.vlgmr.msra.gmra.mrb[24].mxu1 %vm438_vm4, %v1141_v9 }
 0x6ab   :  { %3933 = vmatpush3.bf16.msra.mxu1 %v1260_v16  ;;  %3934 = vmatprep.mubr.msk.bf16.mxu1 %vm4386_vm0, %v4384_v3 }
 0x6ac   :  { %3958 = vmatprep.subr.bf16.mxu1 %v4384_v3 }
 0x6b2   :  { %3935 = vmatmul.mubr.msk.bf16.vlgmr.msra.gmra.mrb[28].mxu1 %vm438_vm4, %v1253_v18  ;;  %v3558_v18 = vld [vmem:[%s5428_s23] ss:$0 sm:$0xff] }
 0x6b3   :  { %3974 = vmatprep.mubr.msk.bf16.mxu1 %vm4386_vm0, %v4384_v3 }
 0x728   :  { %v607_v23 = vpop.f32.mrb[4].mxu1 }
 0x729   :  { %v3864_v24 = vpop.f32.mrb[5].mxu1 }
 0x72a   :  { %v610_v25 = vpop.f32.mrb[6].mxu1  ;;  %v4383_v24 = vld [vmem:[%s5420_s29 + $0x8] sm:$0xff] }
 0x72b   :  { %v3865_v26 = vpop.f32.mrb[7].mxu1 }
 0x730   :  { %v719_v27 = vpop.f32.mrb[8].mxu1 }
 0x731   :  { %v3876_v28 = vpop.f32.mrb[9].mxu1 }
 0x732   :  { %v722_v29 = vpop.f32.mrb[10].mxu1  ;;  %v4170_v28 = vld [vmem:[%s5394_s12] ss:$8 sps:$4 sm:$0xff]  }
 0x733   :  { %v3877_v31 = vpop.f32.mrb[11].mxu1  ;;  %v4172_v29 = vld [vmem:[%s5394_s12 + $0x4] ss:$8 sps:$4 sm:$0xff]  }
 0x734   :  { %v4175_v31 = vld [vmem:[%s5394_s12 + $0x14] ss:$8 sps:$4 sm:$0xff]   ;;  %1697 = vmatprep.subr.bf16.mxu0 %v4172_v29 }
 0x739   :  { %v831_v32 = vpop.f32.mrb[12].mxu1 }
 0x73a   :  { %v3888_v33 = vpop.f32.mrb[13].mxu1 }
 0x73b   :  { %v834_v7 = vpop.f32.mrb[14].mxu1  ;;  %v4178_v33 = vld [vmem:[%s5394_s12 + $0x24] ss:$8 sps:$4 sm:$0xff]  }
 0x73c   :  { %v3889_v34 = vpop.f32.mrb[15].mxu1  ;;  %v4182_v7 = vld [vmem:[%s5395_s10] sm:$0xff]  }
 0x73d   :  { %v4176_v34 = vld [vmem:[%s5394_s12 + $0x20] ss:$8 sps:$4 sm:$0xff]   ;;  %3959 = vmatpush3.bf16.msra.mxu1 %v4182_v7 }
 0x73e   :  { %3960 = vmatprep.subr.bf16.mxu1 %v4384_v3 }
 0x741   :  { %v957_v15 = vpop.f32.mrb[16].mxu1 }
 0x742   :  { %v3900_v35 = vpop.f32.mrb[17].mxu1 }
 0x743   :  { %v960_v36 = vpop.f32.mrb[18].mxu1  ;;  %v4179_v35 = vld [vmem:[%s5394_s12 + $0x30] ss:$8 sps:$4 sm:$0xff]  }
 0x744   :  { %v3901_v37 = vpop.f32.mrb[19].mxu1  ;;  %v4185_v36 = vld [vmem:[%s5394_s12 + $0x44] ss:$8 sps:$4 sm:$0xff]  }
 0x745   :  { %v4183_v37 = vld [vmem:[%s5394_s12 + $0x40] ss:$8 sps:$4 sm:$0xff]  }
 0x775   :  { %v1072_v41 = vpop.f32.mrb[20].mxu1 }
 0x776   :  { %v4100_v42 = vpack.i.bf16 %v1072_v41, %v607_v23  ;;  %v3912_v43 = vpop.f32.mrb[21].mxu1 }
 0x777   :  { %v1075_v45 = vpop.f32.mrb[22].mxu1 }
 0x778   :  { %4101 = vrot.lane.b32.xlu1 %v4100_v42, %s4388_s25  ;;  %v3913_v46 = vpop.f32.mrb[23].mxu1 }
 0x779   :  { %v4186_v46 = vld [vmem:[%s5395_s10 + $0x8] sm:$0xff]  }
 0x77a   :  { %3961 = vmatpush3.bf16.msra.mxu1 %v4186_v46 }
 0x77b   :  { %3962 = vmatprep.subr.bf16.mxu1 %v4384_v3 }
 0x77d   :  { %v1184_v48 = vpop.f32.mrb[24].mxu1 }
 0x77e   :  { %v4105_v49 = vpack.i.bf16 %v1184_v48, %v719_v27  ;;  %v3924_v50 = vpop.f32.mrb[25].mxu1  ;;  %v4187_v48 = vld [vmem:[%s5394_s12 + $0x50] ss:$8 sps:$4 sm:$0xff]  }
 0x77f   :  { %v1187_v51 = vpop.f32.mrb[26].mxu1  ;;  %v4193_v50 = vld [vmem:[%s5394_s12 + $0x64] ss:$8 sps:$4 sm:$0xff]  }
 0x780   :  { %4106 = vrot.lane.b32.xlu1 %v4105_v49, %s4389_s26  ;;  %v3925_v52 = vpop.f32.mrb[27].mxu1  ;;  %v4190_v49 = vld [vmem:[%s5395_s10 + $0x10] sm:$0xff]   ;;  %v4191_v51 = vld [vmem:[%s5394_s12 + $0x60] ss:$8 sps:$4 sm:$0xff]  }
 0x781   :  { %3963 = vmatpush3.bf16.msra.mxu1 %v4190_v49  ;;  %v4194_v52 = vld [vmem:[%s5395_s10 + $0x18] sm:$0xff]  }
 0x782   :  { %3964 = vmatprep.subr.bf16.mxu1 %v4384_v3 }
 0x785   :  { %v1296_v53 = vpop.f32.mrb[28].mxu1  ;;  %3965 = vmatpush3.bf16.msra.mxu1 %v4194_v52 }
 0x786   :  { %v4110_v56 = vpack.i.bf16 %v1296_v53, %v831_v32  ;;  %v3936_v59 = vpop.f32.mrb[29].mxu1  ;;  %v4173_v32 = vld [vmem:[%s5394_s12 + $0x10] ss:$8 sps:$4 sm:$0xff]   ;;  %v4197_v53 = vld [vmem:[%s5394_s12 + $0x74] ss:$8 sps:$4 sm:$0xff]   ;;  %3966 = vmatprep.subr.bf16.mxu1 %v4384_v3 }
 0x787   :  { %v1299_v60 = vpop.f32.mrb[30].mxu1  ;;  %v4198_v59 = vld [vmem:[%s5395_s10 + $0x20] sm:$0xff]  }
 0x788   :  { %4111 = vrot.lane.b32.xlu1 %v4110_v56, %s4387_s7  ;;  %v3937_v61 = vpop.f32.mrb[31].mxu1  ;;  %v4195_v56 = vld [vmem:[%s5394_s12 + $0x70] ss:$8 sps:$4 sm:$0xff]   ;;  %v74_v60 = vld [vmem:[%s5396_s1] sm:$0xff] }
 0x789   :  { %v75_v61 = vld [vmem:[%s5396_s1 + $0x8] sm:$0xff]  ;;  %3967 = vmatpush3.bf16.msra.mxu1 %v4198_v59 }
 0x78a   :  { %3968 = vmatprep.subr.bf16.mxu1 %v4384_v3 }
 0x7ea   :  { %v4102_v63 = vpop.permute.xlu1 %4101 }
 0x7eb   :  { %v4104_v1 = vunpack.i.h.bf16 %v4102_v63  ;;  %v4103_v2 = vunpack.i.l.bf16 %v4102_v63  ;;  %v1587_v63 = vpack.c.bf16 %v75_v61, %v74_v60 }
 0x7ed   :  { %v1314_v6 = vsel %vm389_vm1, %v957_v15, %v4104_v1  ;;  %v849_v8 = vsel %vm389_vm1, %v4703_v62, %v4103_v2  ;;  %v4382_v62 = vld [vmem:[%s5420_s29] sm:$0xff]  ;;  %v4181_v15 = vld [vmem:[%s5394_s12 + $0x34] ss:$8 sps:$4 sm:$0xff]  }
 0x7ee   :  { %v4200_v1 = vld [vmem:[%s5395_s10 + $0x30] sm:$0xff]   ;;  %v4201_v2 = vld [vmem:[%s5395_s10 + $0x38] sm:$0xff]  }
 0x7f2   :  { %v4107_v0 = vpop.permute.xlu1 %4106 }
 0x7f3   :  { %v4109_v4 = vunpack.i.h.bf16 %v4107_v0  ;;  %v4108_v20 = vunpack.i.l.bf16 %v4107_v0  ;;  %v4199_v0 = vld [vmem:[%s5395_s10 + $0x28] sm:$0xff]  }
 0x7f4   :  { %3969 = vmatpush3.bf16.msra.mxu1 %v4199_v0 }
 0x7f5   :  { %v1315_v12 = vsel %vm850_vm5, %v1314_v6, %v4109_v4  ;;  %v851_v13 = vsel %vm850_vm5, %v849_v8, %v4108_v20  ;;  %3970 = vmatprep.subr.bf16.mxu1 %v4384_v3 }
 0x7f8   :  { %3971 = vmatpush3.bf16.msra.mxu1 %v4200_v1 }
 0x7f9   :  { %3972 = vmatprep.subr.bf16.mxu1 %v4384_v3 }
 0x7fa   :  { %v4112_v5 = vpop.permute.xlu1 %4111 }
 0x7fb   :  { %v4114_v10 = vunpack.i.h.bf16 %v4112_v5  ;;  %v4113_v11 = vunpack.i.l.bf16 %v4112_v5 }
 0x7fc   :  { %3973 = vmatpush3.bf16.msra.mxu1 %v4201_v2 }
 0x7fd   :  { %v1316_v9 = vsel %vm852_vm6, %v1315_v12, %v4114_v10  ;;  %v853_v14 = vsel %vm852_vm6, %v851_v13, %v4113_v11  ;;  %3978 = vmatprep.subr.bf16.mxu1 %v4384_v3  ;;  %v3559_v13 = vld [vmem:[%s5397_s8] ss:$0 sm:$0xff] }
 0x7fe   :  { %v1317_v16 = vpack.c.bf16 %v1316_v9, %v853_v14 }
 0x800   :  { %3955 = vmatmul.mubr.bf16.vlgmr.msra.gmra.mrb[40].mxu0 %v1317_v16 }
 0x801   :  { %1729 = vmatprep.mubr.bf16.mxu0 %v4385_v30  ;;  %1698 = vmatpush1.bf16.msra.mxu0 %v4170_v28 }
 0x802   :  { %1699 = vmatprep.subr.bf16.mxu0 %v4175_v31 }
 0x805   :  { %1700 = vmatpush1.bf16.msra.mxu0 %v4173_v32 }
 0x806   :  { %1701 = vmatprep.subr.bf16.mxu0 %v4178_v33 }
 0x809   :  { %1702 = vmatpush1.bf16.msra.mxu0 %v4176_v34 }
 0x80a   :  { %1703 = vmatprep.subr.bf16.mxu0 %v4181_v15 }
 0x80d   :  { %1704 = vmatpush1.bf16.msra.mxu0 %v4179_v35 }
 0x80e   :  { %1705 = vmatprep.subr.bf16.mxu0 %v4185_v36 }
 0x811   :  { %1706 = vmatpush1.bf16.msra.mxu0 %v4183_v37  ;;  %v3561_v37 = vld [vmem:[%s5400_s11] ss:$0 sm:$0xff] }
 0x812   :  { %1707 = vmatprep.subr.bf16.mxu0 %v4189_v47 }
 0x815   :  { %1708 = vmatpush1.bf16.msra.mxu0 %v4187_v48 }
 0x816   :  { %1709 = vmatprep.subr.bf16.mxu0 %v4193_v50 }
 0x819   :  { %1710 = vmatpush1.bf16.msra.mxu0 %v4191_v51 }
 0x81a   :  { %1711 = vmatprep.subr.bf16.mxu0 %v4197_v53 }
 0x81d   :  { %1712 = vmatpush1.bf16.msra.mxu0 %v4195_v56 }
 0x81e   :  { %4008 = vmatprep.subr.bf16.mxu0 %v4384_v3 }
 0x820   :  { %1730 = vmatmul.mubr.bf16.vlgmr.msra.gmra.mrb[44].mxu0 %v1587_v63 }
 0x821   :  { %1739 = vmatprep.mubr.bf16.mxu0 %v4385_v30 }
 0x8d3   :  { %v1416_v17 = vpop.f32.mrb[40].mxu0 }
 0x8d4   :  { %v1423_v19 = vadd.f32 %v4382_v62, %v1416_v17  ;;  %v3956_v21 = vpop.f32.mrb[41].mxu0  ;;  %v3560_v17 = vld [vmem:[%s5398_s9] ss:$0 sm:$0xff] }
 0x8d5   :  { %v1419_v22 = vpop.f32.mrb[42].mxu0 }
 0x8d6   :  { %v4843_v23 = vadd.f32 %v3558_v18, %v1423_v19  ;;  %v1424_v25 = vadd.f32 %v4383_v24, %v1419_v22  ;;  %v3957_v26 = vpop.f32.mrb[43].mxu0  ;;  %v1605_v22 = vld [vmem:[%s5399_s13] sm:$0x3] }
 0x8d7   :  { %v4954_v24 = vrot.slane %v1605_v22, %v4625_v57 }
 0x8d8   :  { %v4848_v27 = vadd.f32 %v3558_v18, %v1424_v25  ;;  %1434 = vadd.xlane.f32.xlu1 %v4843_v23  ;;  %v4957_v25 = vrot.slane %v1605_v22, %v4619_v55 }
 0x8da   :  { %1436 = vadd.xlane.f32.xlu0 %v4848_v27 }
 0x8f3   :  { %v1731_v26 = vpop.f32.mrb[44].mxu0 }
 0x8f4   :  { %v1732_v28 = vadd.f32 %v1731_v26, %v4954_v24  ;;  %v1733_v29 = vpop.f32.mrb[45].mxu0 }
 0x8f5   :  { %v1734_v31 = vadd.f32 %v1733_v29, %v4957_v25  ;;  %v1735_v32 = vpop.f32.mrb[46].mxu0 }
 0x8f6   :  { %v1736_v33 = vadd.f32 %v1735_v32, %v4954_v24  ;;  %v1737_v7 = vpop.f32.mrb[47].mxu0 }
 0x8f7   :  { %v1738_v34 = vadd.f32 %v1737_v7, %v4957_v25 }
 0x8f8   :  { %v4963_v15 = vpack.c.bf16 %v1736_v33, %v1732_v28 }
 0x8f9   :  { %v4965_v35 = vpack.c.bf16 %v1738_v34, %v1734_v31 }
 0x8fa   :  { %v1757_v36 = vsel %vm389_vm1, %v4963_v15, 0 }
 0x965   :  { %v1435_v38 = vpop.xlane.xlu1 %1434 }
 0x966   :  { %v1438_v39 = vmul.f32 0.0078125, %v1435_v38 }
 0x967   :  { %v1437_v40 = vpop.xlane.xlu0 %1436 }
 0x968   :  { %v1440_v41 = vsub.f32 %v4843_v23, %v1438_v39  ;;  %v1439_v42 = vmul.f32 0.0078125, %v1437_v40 }
 0x96a   :  { %v1441_v43 = vsub.f32 %v4848_v27, %v1439_v42  ;;  %v1442_v44 = vmul.f32 %v1440_v41, %v1440_v41 }
 0x96c   :  { %1444 = vadd.xlane.f32.xlu0 %v1442_v44  ;;  %v1443_v45 = vmul.f32 %v1441_v43, %v1441_v43 }
 0x970   :  { %1446 = vadd.xlane.f32.xlu0 %v1443_v45 }
 0x9f9   :  { %v1445_v4 = vpop.xlane.xlu0 %1444 }
 0x9fa   :  { %v1448_v20 = vmul.f32 0.0078125, %v1445_v4 }
 0x9fc   :  { %v1450_v5 = vadd.f32 1e-05, %v1448_v20  ;;  %v76_v20 = vld [vmem:[%s5396_s1 + $0x10] sm:$0xff] }
 0x9fd   :  { %v1447_v6 = vpop.xlane.xlu0 %1446 }
 0x9fe   :  { %4326 = vrsqrt.f32 %v1450_v5  ;;  %v1449_v8 = vmul.f32 0.0078125, %v1447_v6  ;;  %v77_v5 = vld [vmem:[%s5396_s1 + $0x18] sm:$0xff] }
 0x9ff   :  { %v1588_v6 = vpack.c.bf16 %v77_v5, %v76_v20 }
 0xa00   :  { %v1451_v10 = vadd.f32 1e-05, %v1449_v8 }
 0xa01   :  { %1740 = vmatmul.mubr.bf16.gmra.mrb[48].mxu0 %v1588_v6 }
 0xa02   :  { %4328 = vrsqrt.f32 %v1451_v10  ;;  %4010 = vmatprep.mubr.msk.bf16.mxu0 %vm4386_vm0, %v4384_v3 }
 0xa08   :  { %v4327_v11 = vpop.eup %4326 }
 0xa09   :  { %v1454_v12 = vmul.f32 %v4327_v11, %v1440_v41 }
 0xa0b   :  { %v1463_v16 = vmul.f32 %v3559_v13, %v1454_v12 }
 0xa0c   :  { %v4329_v9 = vpop.eup %4328 }
 0xa0d   :  { %v1455_v14 = vmul.f32 %v4329_v9, %v1441_v43  ;;  %v1472_v62 = vadd.f32 %v3560_v17, %v1463_v16 }
 0xa0f   :  { %v1464_v18 = vmul.f32 %v3559_v13, %v1455_v14 }
 0xa11   :  { %v1473_v19 = vadd.f32 %v3560_v17, %v1464_v18 }
 0xa13   :  { %v1474_v21 = vpack.c.bf16 %v1473_v19, %v1472_v62 }
 0xa15   :  { %3975 = vmatmul.mubr.bf16.vlgmr.msra.gmra.mrb[32].mxu1 %v1474_v21 }
 0xa16   :  { %3980 = vmatprep.mubr.msk.bf16.mxu1 %vm4386_vm0, %v4384_v3  ;;  %3979 = vmatpush3.bf16.xpose.msra.mxu1 %v1757_v36 }
 0xa17   :  { %3984 = vmatprep.subr.bf16.mxu1 %v4384_v3 }
 0xad4   :  { %v1741_v19 = vpop.f32.mrb[48].mxu0 }
 0xad5   :  { %v1742_v21 = vadd.f32 %v1741_v19, %v4954_v24  ;;  %v1743_v22 = vpop.f32.mrb[49].mxu0 }
 0xad6   :  { %v1744_v26 = vadd.f32 %v1743_v22, %v4957_v25  ;;  %v1745_v28 = vpop.f32.mrb[50].mxu0 }
 0xad7   :  { %v1746_v29 = vadd.f32 %v1745_v28, %v4954_v24  ;;  %v1747_v31 = vpop.f32.mrb[51].mxu0 }
 0xad8   :  { %v1748_v32 = vadd.f32 %v1747_v31, %v4957_v25 }
 0xad9   :  { %v2202_v33 = vpack.c.bf16 %v1746_v29, %v1742_v21 }
 0xada   :  { %v5015_v7 = vpack.c.bf16 %v1748_v32, %v1744_v26 }
 0xae8   :  { %v1580_v38 = vpop.f32.mrb[32].mxu1 }
 0xae9   :  { %v1581_v39 = vadd.f32 %v3561_v37, %v1580_v38  ;;  %v3976_v40 = vpop.f32.mrb[33].mxu1 }
 0xaea   :  { %v1583_v41 = vpop.f32.mrb[34].mxu1 }
 0xaeb   :  { %v1750_v42 = vpack.c.bf16 %v1581_v39, %v1581_v39  ;;  %v1584_v43 = vadd.f32 %v3561_v37, %v1583_v41  ;;  %v3977_v44 = vpop.f32.mrb[35].mxu1 }
 0xaed   :  { %3981 = vmatmul.mubr.msk.bf16.vlgmr.msra.gmra.mrb[36].mxu1 %vm389_vm1, %v1750_v42  ;;  %v2201_v62 = vpack.c.bf16 %v1584_v43, %v1584_v43 }
 0xaee   :  { %3985 = vmatpush3.bf16.msra.mxu1 %v4965_v35  ;;  %3986 = vmatprep.mubr.msk.bf16.mxu1 %vm4386_vm0, %v4384_v3 }
 0xaef   :  { %3990 = vmatprep.subr.bf16.mxu1 %v4384_v3 }
 0xbc0   :  { %v1793_v45 = vpop.f32.mrb[36].mxu1 }
 0xbc1   :  { %v1799_v46 = vmul.f32 0.17677669, %v1793_v45  ;;  %v3982_v47 = vpop.f32.mrb[37].mxu1 }
 0xbc2   :  { %v1796_v48 = vpop.f32.mrb[38].mxu1 }
 0xbc3   :  { %v3983_v49 = vpop.f32.mrb[39].mxu1  ;;  %v1801_v50 = vsel %vm1800_vm7, %v1799_v46, -inf  ;;  %v2208_v48 = vsel %vm389_vm1, %v2202_v33, 0 }
 0xbc4   :  { %1802 = vmax.xlane.f32.xlu1 %v1801_v50 }
 0xbd5   :  { %1860 = vrot.lane.b32.xlu1 %v4963_v15, %s4387_s7 }
 0xc51   :  { %v1803_v51 = vpop.xlane.xlu1 %1802 }
 0xc52   :  { %v1804_v52 = vsub.f32 %v1799_v46, %v1803_v51 }
 0xc54   :  { %v1805_v53 = vmul.f32 1.442695, %v1804_v52 }
 0xc55   :  { %v1861_v0 = vpop.permute.xlu1 %1860 }
 0xc56   :  { %4330 = vpow2.f32 %v1805_v53  ;;  %v1866_v2 = vsel %vm389_vm1, %v1861_v0, 0 }
 0xc60   :  { %v4331_v56 = vpop.eup %4330 }
 0xc61   :  { %v1807_v59 = vsel %vm1800_vm7, %v4331_v56, 0.0 }
 0xc62   :  { %1808 = vadd.xlane.f32.xlu0 %v1807_v59 }
 0xc78   :  { %1857 = vrot.lane.b32.xlu0 %v1750_v42, %s4387_s7 }
 0xcef   :  { %v1809_v60 = vpop.xlane.xlu0 %1808 }
 0xcf0   :  { %4332 = vrcp.f32 %v1809_v60 }
 0xcf3   :  { %v1858_v4 = vpop.permute.xlu0 %1857 }
 0xcfa   :  { %v4333_v61 = vpop.eup %4332 }
 0xcfb   :  { %v1811_v63 = vmul.f32 %v4333_v61, %v4331_v56 }
 0xcfd   :  { %v1812_v1 = vpack.c.bf16 %v1811_v63, %v1811_v63 }
 0xcff   :  { %3987 = vmatmul.mubr.msk.bf16.vlgmr.msra.gmra.mrb[40].mxu1 %vm1800_vm7, %v1812_v1 }
 0xd00   :  { %3991 = vmatpush3.bf16.xpose.msra.mxu1 %v1866_v2  ;;  %3992 = vmatprep.mubr.msk.bf16.mxu1 %vm4386_vm0, %v4384_v3 }
 0xd01   :  { %3996 = vmatprep.subr.bf16.mxu1 %v4384_v3 }
 0xd07   :  { %3993 = vmatmul.mubr.msk.bf16.vlgmr.msra.gmra.mrb[44].mxu1 %vm389_vm1, %v1858_v4 }
 0xd08   :  { %3998 = vmatprep.mubr.msk.bf16.mxu1 %vm4386_vm0, %v4384_v3 }
 0xdd2   :  { %v4999_v8 = vpop.f32.mrb[40].mxu1 }
 0xdd3   :  { %v3988_v10 = vpop.f32.mrb[41].mxu1 }
 0xdd4   :  { %v1853_v11 = vpop.f32.mrb[42].mxu1 }
 0xdd5   :  { %v3989_v12 = vpop.f32.mrb[43].mxu1 }
 0xdda   :  { %v1902_v13 = vpop.f32.mrb[44].mxu1 }
 0xddb   :  { %v1908_v9 = vmul.f32 0.17677669, %v1902_v13  ;;  %v3994_v14 = vpop.f32.mrb[45].mxu1 }
 0xddc   :  { %v1905_v16 = vpop.f32.mrb[46].mxu1 }
 0xddd   :  { %v3995_v17 = vpop.f32.mrb[47].mxu1  ;;  %v1909_v18 = vsel %vm1800_vm7, %v1908_v9, -inf }
 0xdde   :  { %1910 = vmax.xlane.f32.xlu1 %v1909_v18 }
 0xdef   :  { %1922 = vrot.lane.b32.xlu1 %v4965_v35, %s4387_s7 }
 0xdf3   :  { %1968 = vrot.lane.b32.xlu1 %v1750_v42, %s4389_s26 }
 0xdf7   :  { %2079 = vrot.lane.b32.xlu1 %v4963_v15, %s4388_s25 }
 0xdfb   :  { %2077 = vrot.lane.b32.xlu1 %v1750_v42, %s4388_s25 }
 0xdff   :  { %2307 = vrot.lane.b32.xlu1 %v2201_v62, %s4387_s7 }
 0xe03   :  { %2418 = vrot.lane.b32.xlu1 %v2201_v62, %s4389_s26 }
 0xe07   :  { %2527 = vrot.lane.b32.xlu1 %v2201_v62, %s4388_s25 }
 0xe6b   :  { %v1911_v34 = vpop.xlane.xlu1 %1910 }
 0xe6c   :  { %v1912_v36 = vsub.f32 %v1908_v9, %v1911_v34 }
 0xe6e   :  { %v1913_v37 = vmul.f32 1.442695, %v1912_v36 }
 0xe6f   :  { %v1923_v38 = vpop.permute.xlu1 %1922 }
 0xe70   :  { %4334 = vpow2.f32 %v1913_v37  ;;  %3997 = vmatpush3.bf16.msra.mxu1 %v1923_v38 }
 0xe71   :  { %4002 = vmatprep.subr.bf16.mxu1 %v4384_v3 }
 0xe73   :  { %v1969_v44 = vpop.permute.xlu1 %1968 }
 0xe7a   :  { %v4335_v39 = vpop.eup %4334 }
 0xe7b   :  { %v1915_v40 = vsel %vm1800_vm7, %v4335_v39, 0.0 }
 0xe7c   :  { %1916 = vadd.xlane.f32.xlu0 %v1915_v40 }
 0xe92   :  { %1970 = vrot.lane.b32.xlu0 %v4963_v15, %s4389_s26  ;;  %v2080_v15 = vpop.permute.xlu1 %2079 }
 0xe93   :  { %v2085_v46 = vsel %vm389_vm1, %v2080_v15, 0 }
 0xe96   :  { %2310 = vrot.lane.b32.xlu0 %v2202_v33, %s4387_s7  ;;  %v2078_v47 = vpop.permute.xlu1 %2077 }
 0xe9a   :  { %2420 = vrot.lane.b32.xlu0 %v2202_v33, %s4389_s26  ;;  %v2308_v51 = vpop.permute.xlu1 %2307 }
 0xe9e   :  { %2529 = vrot.lane.b32.xlu0 %v2202_v33, %s4388_s25  ;;  %v2419_v59 = vpop.permute.xlu1 %2418 }
 0xea2   :  { %v2528_v61 = vpop.permute.xlu1 %2527 }
 0xf09   :  { %v1917_v24 = vpop.xlane.xlu0 %1916 }
 0xf0a   :  { %4336 = vrcp.f32 %v1917_v24 }
 0xf0d   :  { %v1971_v42 = vpop.permute.xlu0 %1970 }
 0xf0e   :  { %v1976_v45 = vsel %vm389_vm1, %v1971_v42, 0 }
 0xf11   :  { %v2311_v49 = vpop.permute.xlu0 %2310 }
 0xf12   :  { %v2316_v50 = vsel %vm389_vm1, %v2311_v49, 0 }
 0xf14   :  { %v4337_v25 = vpop.eup %4336 }
 0xf15   :  { %v1919_v41 = vmul.f32 %v4337_v25, %v4335_v39  ;;  %v2421_v52 = vpop.permute.xlu0 %2420 }
 0xf16   :  { %v2426_v53 = vsel %vm389_vm1, %v2421_v52, 0 }
 0xf17   :  { %v1920_v43 = vpack.c.bf16 %v1919_v41, %v1919_v41 }
 0xf19   :  { %3999 = vmatmul.mubr.msk.bf16.vlgmr.msra.gmra.mrb[48].mxu1 %vm1800_vm7, %v1920_v43  ;;  %v2530_v56 = vpop.permute.xlu0 %2529 }
 0xf1a   :  { %4003 = vmatpush3.bf16.xpose.msra.mxu1 %v1976_v45  ;;  %4004 = vmatprep.mubr.msk.bf16.mxu1 %vm4386_vm0, %v4384_v3  ;;  %v2535_v60 = vsel %vm389_vm1, %v2530_v56, 0 }
 0xf1b   :  { %4014 = vmatprep.subr.bf16.mxu1 %v4384_v3 }
 0xf21   :  { %4005 = vmatmul.mubr.msk.bf16.vlgmr.msra.gmra.mrb[52].mxu1 %vm389_vm1, %v1969_v44 }
 0xf22   :  { %4015 = vmatpush3.bf16.xpose.msra.mxu1 %v2085_v46  ;;  %4016 = vmatprep.mubr.msk.bf16.mxu1 %vm4386_vm0, %v4384_v3 }
 0xf23   :  { %4026 = vmatprep.subr.bf16.mxu1 %v4384_v3 }
 0xf29   :  { %4017 = vmatmul.mubr.msk.bf16.vlgmr.msra.gmra.mrb[56].mxu1 %vm389_vm1, %v2078_v47 }
 0xf2a   :  { %4027 = vmatpush3.bf16.xpose.msra.mxu1 %v2208_v48  ;;  %4028 = vmatprep.mubr.msk.bf16.mxu1 %vm4386_vm0, %v4384_v3 }
 0xf2b   :  { %4038 = vmatprep.subr.bf16.mxu1 %v4384_v3 }
 0xf31   :  { %4029 = vmatmul.mubr.msk.bf16.vlgmr.msra.gmra.mrb[60].mxu1 %vm389_vm1, %v2201_v62 }
 0xf32   :  { %4039 = vmatpush3.bf16.xpose.msra.mxu1 %v2316_v50  ;;  %4040 = vmatprep.mubr.msk.bf16.mxu1 %vm4386_vm0, %v4384_v3 }
 0xf33   :  { %4050 = vmatprep.subr.bf16.mxu1 %v4384_v3 }
 0xf39   :  { %4041 = vmatmul.mubr.msk.bf16.vlgmr.msra.gmra.mrb[64].mxu1 %vm389_vm1, %v2308_v51 }
 0xf3a   :  { %4051 = vmatpush3.bf16.xpose.msra.mxu1 %v2426_v53  ;;  %4052 = vmatprep.mubr.msk.bf16.mxu1 %vm4386_vm0, %v4384_v3 }
 0xf3b   :  { %4062 = vmatprep.subr.bf16.mxu1 %v4384_v3 }
 0xf41   :  { %4053 = vmatmul.mubr.msk.bf16.vlgmr.msra.gmra.mrb[68].mxu1 %vm389_vm1, %v2419_v59 }
 0xf42   :  { %4063 = vmatpush3.bf16.xpose.msra.mxu1 %v2535_v60  ;;  %4064 = vmatprep.mubr.msk.bf16.mxu1 %vm4386_vm0, %v4384_v3 }
 0xf43   :  { %4074 = vmatprep.subr.bf16.mxu1 %v4384_v3 }
 0xf49   :  { %4065 = vmatmul.mubr.msk.bf16.vlgmr.msra.gmra.mrb[72].mxu1 %vm389_vm1, %v2528_v61 }
 0xf4a   :  { %4090 = vmatprep.mubr.msk.bf16.mxu1 %vm4386_vm0, %v4384_v3 }
 0xfec   :  { %v5057_v63 = vpop.f32.mrb[48].mxu1 }
 0xfed   :  { %v4000_v0 = vpop.f32.mrb[49].mxu1 }
 0xfee   :  { %v1965_v1 = vpop.f32.mrb[50].mxu1 }
 0xfef   :  { %v4001_v2 = vpop.f32.mrb[51].mxu1 }
 0xff4   :  { %v2012_v4 = vpop.f32.mrb[52].mxu1 }
 0xff5   :  { %v2018_v20 = vmul.f32 0.17677669, %v2012_v4  ;;  %v4006_v5 = vpop.f32.mrb[53].mxu1 }
 0xff6   :  { %v2015_v6 = vpop.f32.mrb[54].mxu1 }
 0xff7   :  { %v4007_v10 = vpop.f32.mrb[55].mxu1  ;;  %v2019_v11 = vsel %vm1800_vm7, %v2018_v20, -inf }
 0xff8   :  { %2020 = vmax.xlane.f32.xlu0 %v2019_v11 }
 0xffc   :  { %v2121_v12 = vpop.f32.mrb[56].mxu1 }
 0xffd   :  { %v2127_v13 = vmul.f32 0.17677669, %v2121_v12  ;;  %v4018_v9 = vpop.f32.mrb[57].mxu1 }
 0xffe   :  { %v2124_v14 = vpop.f32.mrb[58].mxu1 }
 0xfff   :  { %v4019_v16 = vpop.f32.mrb[59].mxu1  ;;  %v2128_v17 = vsel %vm1800_vm7, %v2127_v13, -inf }
0x1000   :  { %2129 = vmax.xlane.f32.xlu1 %v2128_v17 }
0x1004   :  { %v2244_v18 = vpop.f32.mrb[60].mxu1 }
0x1005   :  { %v2250_v62 = vmul.f32 0.17677669, %v2244_v18  ;;  %v4030_v19 = vpop.f32.mrb[61].mxu1 }
0x1006   :  { %v2247_v21 = vpop.f32.mrb[62].mxu1 }
0x1007   :  { %v4031_v22 = vpop.f32.mrb[63].mxu1  ;;  %v2251_v26 = vsel %vm1800_vm7, %v2250_v62, -inf }
0x1008   :  { %2252 = vmax.xlane.f32.xlu0 %v2251_v26 }
0x100c   :  { %v2352_v28 = vpop.f32.mrb[64].mxu1 }
0x100d   :  { %v2358_v29 = vmul.f32 0.17677669, %v2352_v28  ;;  %v4042_v31 = vpop.f32.mrb[65].mxu1 }
0x100e   :  { %v2355_v32 = vpop.f32.mrb[66].mxu1 }
0x100f   :  { %v4043_v33 = vpop.f32.mrb[67].mxu1  ;;  %v2359_v34 = vsel %vm1800_vm7, %v2358_v29, -inf }
0x1010   :  { %2360 = vmax.xlane.f32.xlu0 %v2359_v34 }
0x1014   :  { %v2462_v36 = vpop.f32.mrb[68].mxu1 }
0x1015   :  { %v2468_v37 = vmul.f32 0.17677669, %v2462_v36  ;;  %v4054_v38 = vpop.f32.mrb[69].mxu1 }
0x1016   :  { %v2465_v39 = vpop.f32.mrb[70].mxu1 }
0x1017   :  { %v4055_v40 = vpop.f32.mrb[71].mxu1  ;;  %v2469_v24 = vsel %vm1800_vm7, %v2468_v37, -inf }
0x1018   :  { %2470 = vmax.xlane.f32.xlu0 %v2469_v24 }
0x101c   :  { %v2571_v25 = vpop.f32.mrb[72].mxu1 }
0x101d   :  { %v2577_v41 = vmul.f32 0.17677669, %v2571_v25  ;;  %v4066_v42 = vpop.f32.mrb[73].mxu1 }
0x101e   :  { %v2574_v43 = vpop.f32.mrb[74].mxu1 }
0x101f   :  { %v4067_v44 = vpop.f32.mrb[75].mxu1  ;;  %v2578_v45 = vsel %vm1800_vm7, %v2577_v41, -inf }
0x1020   :  { %2579 = vmax.xlane.f32.xlu1 %v2578_v45 }
0x1085   :  { %v2021_v15 = vpop.xlane.xlu0 %2020 }
0x1086   :  { %v2022_v46 = vsub.f32 %v2018_v20, %v2021_v15 }
0x1088   :  { %v2023_v47 = vmul.f32 1.442695, %v2022_v46 }
0x108a   :  { %4338 = vpow2.f32 %v2023_v47 }
0x108d   :  { %v2130_v48 = vpop.xlane.xlu1 %2129 }
0x108e   :  { %v2131_v49 = vsub.f32 %v2127_v13, %v2130_v48 }
0x1090   :  { %v2132_v50 = vmul.f32 1.442695, %v2131_v49 }
0x1092   :  { %4340 = vpow2.f32 %v2132_v50 }
0x1094   :  { %v4339_v51 = vpop.eup %4338 }
0x1095   :  { %v2253_v52 = vpop.xlane.xlu0 %2252  ;;  %v2025_v53 = vsel %vm1800_vm7, %v4339_v51, 0.0 }
0x1096   :  { %v2254_v56 = vsub.f32 %v2250_v62, %v2253_v52  ;;  %2026 = vadd.xlane.f32.xlu0 %v2025_v53 }
0x1098   :  { %v2255_v59 = vmul.f32 1.442695, %v2254_v56 }
0x109a   :  { %4342 = vpow2.f32 %v2255_v59 }
0x109c   :  { %v4341_v60 = vpop.eup %4340 }
0x109d   :  { %v2361_v61 = vpop.xlane.xlu0 %2360  ;;  %v2134_v0 = vsel %vm1800_vm7, %v4341_v60, 0.0 }
0x109e   :  { %v2362_v1 = vsub.f32 %v2358_v29, %v2361_v61  ;;  %2135 = vadd.xlane.f32.xlu1 %v2134_v0 }
0x10a0   :  { %v2363_v2 = vmul.f32 1.442695, %v2362_v1 }
0x10a2   :  { %4344 = vpow2.f32 %v2363_v2 }
0x10a4   :  { %v4343_v4 = vpop.eup %4342 }
0x10a5   :  { %v2471_v20 = vpop.xlane.xlu0 %2470  ;;  %v2257_v5 = vsel %vm1800_vm7, %v4343_v4, 0.0 }
0x10a6   :  { %v2472_v6 = vsub.f32 %v2468_v37, %v2471_v20  ;;  %2258 = vadd.xlane.f32.xlu0 %v2257_v5 }
0x10a8   :  { %v2473_v10 = vmul.f32 1.442695, %v2472_v6 }
0x10aa   :  { %4346 = vpow2.f32 %v2473_v10  ;;  %v4202_v10 = vld [vmem:[%s5401_s14] sm:$0xff]  }
0x10ab   :  { %4075 = vmatpush3.bf16.msra.mxu1 %v4202_v10 }
0x10ac   :  { %v4345_v11 = vpop.eup %4344  ;;  %4076 = vmatprep.subr.bf16.mxu1 %v4384_v3 }
0x10ad   :  { %v2365_v12 = vsel %vm1800_vm7, %v4345_v11, 0.0  ;;  %v2580_v14 = vpop.xlane.xlu1 %2579 }
0x10ae   :  { %2366 = vadd.xlane.f32.xlu1 %v2365_v12  ;;  %v2581_v16 = vsub.f32 %v2577_v41, %v2580_v14 }
0x10b0   :  { %v2582_v17 = vmul.f32 1.442695, %v2581_v16 }
0x10b2   :  { %4348 = vpow2.f32 %v2582_v17 }
0x10b4   :  { %v4347_v13 = vpop.eup %4346 }
0x10b5   :  { %v2475_v9 = vsel %vm1800_vm7, %v4347_v13, 0.0 }
0x10b6   :  { %2476 = vadd.xlane.f32.xlu1 %v2475_v9 }
0x10bc   :  { %2031 = vrot.lane.b32.xlu0 %v4965_v35, %s4389_s26  ;;  %v4349_v18 = vpop.eup %4348 }
0x10bd   :  { %v2584_v62 = vsel %vm1800_vm7, %v4349_v18, 0.0 }
0x10c0   :  { %2372 = vrot.lane.b32.xlu0 %v5015_v7, %s4387_s7 }
0x10c4   :  { %2481 = vrot.lane.b32.xlu0 %v5015_v7, %s4389_s26 }
0x10c7   :  { %2140 = vrot.lane.b32.xlu1 %v4965_v35, %s4388_s25 }
0x10c8   :  { %2590 = vrot.lane.b32.xlu0 %v5015_v7, %s4388_s25 }
0x10eb   :  { %2585 = vadd.xlane.f32.xlu1 %v2584_v62  ;;  %v4205_v62 = vld [vmem:[%s5401_s14 + $0x18] sm:$0xff]  }
0x1123   :  { %v2027_v19 = vpop.xlane.xlu0 %2026 }
0x1124   :  { %4350 = vrcp.f32 %v2027_v19  ;;  %v4206_v19 = vld [vmem:[%s5401_s14 + $0x20] sm:$0xff]  }
0x112b   :  { %v2136_v28 = vpop.xlane.xlu1 %2135 }
0x112c   :  { %4352 = vrcp.f32 %v2136_v28 }
0x112e   :  { %v4351_v21 = vpop.eup %4350 }
0x112f   :  { %v2029_v26 = vmul.f32 %v4351_v21, %v4339_v51  ;;  %v4207_v21 = vld [vmem:[%s5401_s14 + $0x28] sm:$0xff]  }
0x1131   :  { %v2030_v35 = vpack.c.bf16 %v2029_v26, %v2029_v26  ;;  %v4209_v26 = vld [vmem:[%s5401_s14 + $0x38] sm:$0xff]  }
0x1133   :  { %v2259_v22 = vpop.xlane.xlu0 %2258 }
0x1134   :  { %4354 = vrcp.f32 %v2259_v22  ;;  %v4208_v22 = vld [vmem:[%s5401_s14 + $0x30] sm:$0xff]  }
0x1136   :  { %v4353_v32 = vpop.eup %4352 }
0x1137   :  { %v2032_v29 = vpop.permute.xlu0 %2031  ;;  %v2138_v34 = vmul.f32 %v4353_v32, %v4341_v60 }
0x1138   :  { %4009 = vmatpush3.bf16.msra.mxu0 %v2032_v29 }
0x1139   :  { %4020 = vmatprep.subr.bf16.mxu0 %v4384_v3  ;;  %v2139_v37 = vpack.c.bf16 %v2138_v34, %v2138_v34 }
0x113b   :  { %4011 = vmatmul.mubr.msk.bf16.vlgmr.msra.gmra.mrb[52].mxu0 %vm1800_vm7, %v2030_v35  ;;  %v2367_v31 = vpop.xlane.xlu1 %2366  ;;  %v2373_v25 = vpop.permute.xlu0 %2372 }
0x113c   :  { %4022 = vmatprep.mubr.msk.bf16.mxu0 %vm4386_vm0, %v4384_v3  ;;  %4356 = vrcp.f32 %v2367_v31 }
0x113e   :  { %v4355_v38 = vpop.eup %4354 }
0x113f   :  { %v2261_v39 = vmul.f32 %v4355_v38, %v4343_v4  ;;  %v2482_v43 = vpop.permute.xlu0 %2481 }
0x1141   :  { %v2262_v40 = vpack.c.bf16 %v2261_v39, %v2261_v39 }
0x1143   :  { %v2477_v33 = vpop.xlane.xlu1 %2476  ;;  %v2591_v15 = vpop.permute.xlu0 %2590 }
0x1144   :  { %4358 = vrcp.f32 %v2477_v33 }
0x1146   :  { %v4357_v24 = vpop.eup %4356 }
0x1147   :  { %v2141_v36 = vpop.permute.xlu1 %2140  ;;  %v2369_v41 = vmul.f32 %v4357_v24, %v4345_v11 }
0x1148   :  { %4021 = vmatpush3.bf16.msra.mxu0 %v2141_v36 }
0x1149   :  { %4032 = vmatprep.subr.bf16.mxu0 %v4384_v3 }
0x114b   :  { %4023 = vmatmul.mubr.msk.bf16.vlgmr.msra.gmra.mrb[56].mxu0 %vm1800_vm7, %v2139_v37 }
0x114c   :  { %4033 = vmatpush3.bf16.msra.mxu0 %v5015_v7  ;;  %4034 = vmatprep.mubr.msk.bf16.mxu0 %vm4386_vm0, %v4384_v3  ;;  %v2370_v7 = vpack.c.bf16 %v2369_v41, %v2369_v41 }
0x114d   :  { %4044 = vmatprep.subr.bf16.mxu0 %v4384_v3 }
0x114e   :  { %v4359_v42 = vpop.eup %4358 }
0x114f   :  { %v2479_v44 = vmul.f32 %v4359_v42, %v4347_v13  ;;  %v4203_v13 = vld [vmem:[%s5401_s14 + $0x8] sm:$0xff]  }
0x1150   :  { %4077 = vmatpush3.bf16.msra.mxu1 %v4203_v13  ;;  %v4222_v13 = vld [vmem:[%s5403_s18 + $0x40] ss:$16 sps:$4 sm:$0xff]  }
0x1151   :  { %v2480_v45 = vpack.c.bf16 %v2479_v44, %v2479_v44  ;;  %4078 = vmatprep.subr.bf16.mxu1 %v4384_v3 }
0x1153   :  { %4035 = vmatmul.mubr.msk.bf16.vlgmr.msra.gmra.mrb[60].mxu0 %vm1800_vm7, %v2262_v40 }
0x1154   :  { %4045 = vmatpush3.bf16.msra.mxu0 %v2373_v25  ;;  %4046 = vmatprep.mubr.msk.bf16.mxu0 %vm4386_vm0, %v4384_v3 }
0x1155   :  { %4056 = vmatprep.subr.bf16.mxu0 %v4384_v3 }
0x115b   :  { %4047 = vmatmul.mubr.msk.bf16.vlgmr.msra.gmra.mrb[64].mxu0 %vm1800_vm7, %v2370_v7 }
0x115c   :  { %4057 = vmatpush3.bf16.msra.mxu0 %v2482_v43  ;;  %4058 = vmatprep.mubr.msk.bf16.mxu0 %vm4386_vm0, %v4384_v3 }
0x115d   :  { %4068 = vmatprep.subr.bf16.mxu0 %v4384_v3 }
0x1163   :  { %4059 = vmatmul.mubr.msk.bf16.vlgmr.msra.gmra.mrb[68].mxu0 %vm1800_vm7, %v2480_v45 }
0x1164   :  { %4069 = vmatpush3.bf16.msra.mxu0 %v2591_v15  ;;  %4070 = vmatprep.mubr.msk.bf16.mxu0 %vm4386_vm0, %v4384_v3 }
0x1178   :  { %v2586_v46 = vpop.xlane.xlu1 %2585 }
0x1179   :  { %4360 = vrcp.f32 %v2586_v46  ;;  %v3610_v46 = vld [vmem:[%s5402_s15] ss:$0 sm:$0xff] }
0x1183   :  { %v4361_v47 = vpop.eup %4360 }
0x1184   :  { %v2588_v48 = vmul.f32 %v4361_v47, %v4349_v18 }
0x1186   :  { %v2589_v49 = vpack.c.bf16 %v2588_v48, %v2588_v48 }
0x1188   :  { %4071 = vmatmul.mubr.msk.bf16.vlgmr.msra.gmra.mrb[72].mxu0 %vm1800_vm7, %v2589_v49 }
0x1189   :  { %3055 = vmatprep.mubr.bf16.mxu0 %v4385_v30 }
0x120e   :  { %v2071_v50 = vpop.f32.mrb[52].mxu0 }
0x120f   :  { %v4012_v51 = vpop.f32.mrb[53].mxu0 }
0x1210   :  { %v2074_v52 = vpop.f32.mrb[54].mxu0 }
0x1211   :  { %v4013_v53 = vpop.f32.mrb[55].mxu0 }
0x1212   :  { %v4213_v53 = vld [vmem:[%s5403_s18 + $0x8] ss:$16 sps:$4 sm:$0xff]  }
0x121e   :  { %v2180_v56 = vpop.f32.mrb[56].mxu0 }
0x121f   :  { %v4024_v59 = vpop.f32.mrb[57].mxu0 }
0x1220   :  { %v2183_v60 = vpop.f32.mrb[58].mxu0  ;;  %v4218_v59 = vld [vmem:[%s5403_s18 + $0x24] ss:$16 sps:$4 sm:$0xff]  }
0x1221   :  { %v4025_v61 = vpop.f32.mrb[59].mxu0  ;;  %v4219_v60 = vld [vmem:[%s5403_s18 + $0x28] ss:$16 sps:$4 sm:$0xff]  }
0x1222   :  { %v4221_v61 = vld [vmem:[%s5403_s18 + $0x2c] ss:$16 sps:$4 sm:$0xff]  }
0x1226   :  { %v2300_v0 = vpop.f32.mrb[60].mxu0 }
0x1227   :  { %v4036_v1 = vpop.f32.mrb[61].mxu0 }
0x1228   :  { %v2303_v2 = vpop.f32.mrb[62].mxu0 }
0x1229   :  { %v4037_v4 = vpop.f32.mrb[63].mxu0 }
0x122e   :  { %v2412_v20 = vpop.f32.mrb[64].mxu0 }
0x122f   :  { %v4115_v5 = vpack.i.bf16 %v2412_v20, %v5057_v63  ;;  %v4048_v6 = vpop.f32.mrb[65].mxu0  ;;  %v4204_v63 = vld [vmem:[%s5401_s14 + $0x10] sm:$0xff]  }
0x1230   :  { %v2415_v11 = vpop.f32.mrb[66].mxu0  ;;  %4079 = vmatpush3.bf16.msra.mxu1 %v4204_v63  ;;  %v4225_v63 = vld [vmem:[%s5403_s18 + $0x48] ss:$16 sps:$4 sm:$0xff]  }
0x1231   :  { %4116 = vrot.lane.b32.xlu0 %v4115_v5, %s4388_s25  ;;  %v4049_v12 = vpop.f32.mrb[67].mxu0  ;;  %4080 = vmatprep.subr.bf16.mxu1 %v4384_v3  ;;  %v4224_v11 = vld [vmem:[%s5403_s18 + $0x44] ss:$16 sps:$4 sm:$0xff]  }
0x1232   :  { %v4227_v12 = vld [vmem:[%s5403_s18 + $0x4c] ss:$16 sps:$4 sm:$0xff]  }
0x1234   :  { %4081 = vmatpush3.bf16.msra.mxu1 %v4205_v62  ;;  %v4239_v62 = vld [vmem:[%s5403_s18 + $0x8c] ss:$16 sps:$4 sm:$0xff]  }
0x1235   :  { %4082 = vmatprep.subr.bf16.mxu1 %v4384_v3 }
0x1236   :  { %v2521_v9 = vpop.f32.mrb[68].mxu0 }
0x1237   :  { %v4120_v14 = vpack.i.bf16 %v2521_v9, %v2071_v50  ;;  %v4060_v16 = vpop.f32.mrb[69].mxu0  ;;  %v4230_v9 = vld [vmem:[%s5403_s18 + $0x64] ss:$16 sps:$4 sm:$0xff]  }
0x1238   :  { %v2524_v17 = vpop.f32.mrb[70].mxu0  ;;  %4083 = vmatpush3.bf16.msra.mxu1 %v4206_v19  ;;  %v4228_v16 = vld [vmem:[%s5403_s18 + $0x60] ss:$16 sps:$4 sm:$0xff]  }
0x1239   :  { %4121 = vrot.lane.b32.xlu0 %v4120_v14, %s4389_s26  ;;  %v4061_v18 = vpop.f32.mrb[71].mxu0  ;;  %4084 = vmatprep.subr.bf16.mxu1 %v4384_v3  ;;  %v4233_v14 = vld [vmem:[%s5403_s18 + $0x6c] ss:$16 sps:$4 sm:$0xff]   ;;  %v4231_v17 = vld [vmem:[%s5403_s18 + $0x68] ss:$16 sps:$4 sm:$0xff]  }
0x123a   :  { %v4236_v18 = vld [vmem:[%s5403_s18 + $0x84] ss:$16 sps:$4 sm:$0xff]   ;;  %v4234_v19 = vld [vmem:[%s5403_s18 + $0x80] ss:$16 sps:$4 sm:$0xff]  }
0x123c   :  { %4085 = vmatpush3.bf16.msra.mxu1 %v4207_v21  ;;  %v4237_v21 = vld [vmem:[%s5403_s18 + $0x88] ss:$16 sps:$4 sm:$0xff]  }
0x123d   :  { %4086 = vmatprep.subr.bf16.mxu1 %v4384_v3 }
0x1240   :  { %4087 = vmatpush3.bf16.msra.mxu1 %v4208_v22  ;;  %v4242_v22 = vld [vmem:[%s5403_s18 + $0xa4] ss:$16 sps:$4 sm:$0xff]  }
0x1241   :  { %4088 = vmatprep.subr.bf16.mxu1 %v4384_v3 }
0x1244   :  { %4089 = vmatpush3.bf16.msra.mxu1 %v4209_v26  ;;  %v4245_v26 = vld [vmem:[%s5403_s18 + $0xac] ss:$16 sps:$4 sm:$0xff]  }
0x125b   :  { %v2630_v28 = vpop.f32.mrb[72].mxu0 }
0x125c   :  { %v4125_v29 = vpack.i.bf16 %v2630_v28, %v2180_v56  ;;  %v4072_v35 = vpop.f32.mrb[73].mxu0  ;;  %v4216_v56 = vld [vmem:[%s5403_s18 + $0x20] ss:$16 sps:$4 sm:$0xff]  }
0x125d   :  { %v2633_v31 = vpop.f32.mrb[74].mxu0  ;;  %v4240_v28 = vld [vmem:[%s5403_s18 + $0xa0] ss:$16 sps:$4 sm:$0xff]   ;;  %v4248_v35 = vld [vmem:[%s5403_s18 + $0xc4] ss:$16 sps:$4 sm:$0xff]  }
0x125e   :  { %4126 = vrot.lane.b32.xlu0 %v4125_v29, %s4387_s7  ;;  %v4073_v32 = vpop.f32.mrb[75].mxu0  ;;  %v4243_v29 = vld [vmem:[%s5403_s18 + $0xa8] ss:$16 sps:$4 sm:$0xff]   ;;  %v4251_v31 = vld [vmem:[%s5403_s18 + $0xcc] ss:$16 sps:$4 sm:$0xff]  }
0x125f   :  { %v4246_v32 = vld [vmem:[%s5403_s18 + $0xc0] ss:$16 sps:$4 sm:$0xff]  }
0x12a3   :  { %v4117_v33 = vpop.permute.xlu0 %4116 }
0x12a4   :  { %v4119_v36 = vunpack.i.h.bf16 %v4117_v33  ;;  %v4118_v37 = vunpack.i.l.bf16 %v4117_v33  ;;  %v4249_v33 = vld [vmem:[%s5403_s18 + $0xc8] ss:$16 sps:$4 sm:$0xff]  }
0x12a6   :  { %v2648_v3 = vsel %vm389_vm1, %v2300_v0, %v4119_v36  ;;  %v2198_v24 = vsel %vm389_vm1, %v4999_v8, %v4118_v37  ;;  %v4257_v36 = vld [vmem:[%s5403_s18 + $0xec] ss:$16 sps:$4 sm:$0xff]   ;;  %v4252_v37 = vld [vmem:[%s5403_s18 + $0xe0] ss:$16 sps:$4 sm:$0xff]  }
0x12ab   :  { %v4122_v34 = vpop.permute.xlu0 %4121 }
0x12ac   :  { %v4124_v38 = vunpack.i.h.bf16 %v4122_v34  ;;  %v4123_v39 = vunpack.i.l.bf16 %v4122_v34  ;;  %v4254_v34 = vld [vmem:[%s5403_s18 + $0xe4] ss:$16 sps:$4 sm:$0xff]  }
0x12ae   :  { %v2649_v7 = vsel %vm850_vm5, %v2648_v3, %v4124_v38  ;;  %v2199_v42 = vsel %vm850_vm5, %v2198_v24, %v4123_v39  ;;  %v4255_v38 = vld [vmem:[%s5403_s18 + $0xe8] ss:$16 sps:$4 sm:$0xff]   ;;  %v4258_v39 = vld [vmem:[%s5404_s20 + $0x40] sm:$0xff]  }
0x12d0   :  { %v4127_v40 = vpop.permute.xlu0 %4126 }
0x12d1   :  { %v4129_v25 = vunpack.i.h.bf16 %v4127_v40  ;;  %v4128_v41 = vunpack.i.l.bf16 %v4127_v40  ;;  %v4259_v40 = vld [vmem:[%s5404_s20 + $0xc0] sm:$0xff]  }
0x12d3   :  { %v2650_v43 = vsel %vm852_vm6, %v2649_v7, %v4129_v25  ;;  %v2200_v44 = vsel %vm852_vm6, %v2199_v42, %v4128_v41 }
0x12d4   :  { %v2651_v45 = vpack.c.bf16 %v2650_v43, %v2200_v44 }
0x12d6   :  { %4091 = vmatmul.mubr.bf16.vlgmr.msra.gmra.mrb[76].mxu1 %v2651_v45  ;;  %v3611_v45 = vld [vmem:[%s5405_s16] ss:$0 sm:$0xff] }
0x12d7   :  { %3098 = vmatprep.mubr.bf16.mxu1 %v4385_v30  ;;  %v4210_v30 = vld [vmem:[%s5403_s18] ss:$16 sps:$4 sm:$0xff]  }
0x13a9   :  { %v2750_v15 = vpop.f32.mrb[76].mxu1 }
0x13aa   :  { %v2757_v8 = vadd.f32 %v2750_v15, %v4843_v23  ;;  %v4092_v47 = vpop.f32.mrb[77].mxu1  ;;  %v4212_v23 = vld [vmem:[%s5403_s18 + $0x4] ss:$16 sps:$4 sm:$0xff]  }
0x13ab   :  { %v2753_v48 = vpop.f32.mrb[78].mxu1  ;;  %3023 = vmatprep.subr.bf16.mxu0 %v4212_v23  ;;  %v3612_v47 = vld [vmem:[%s5406_s17] ss:$0 sm:$0xff] }
0x13ac   :  { %v5151_v49 = vadd.f32 %v3610_v46, %v2757_v8  ;;  %v2758_v50 = vadd.f32 %v2753_v48, %v4848_v27  ;;  %v4093_v51 = vpop.f32.mrb[79].mxu1  ;;  %v4215_v27 = vld [vmem:[%s5403_s18 + $0xc] ss:$16 sps:$4 sm:$0xff]   ;;  %3024 = vmatpush1.bf16.msra.mxu0 %v4210_v30  ;;  %v4260_v30 = vld [vmem:[%s5404_s20] sm:$0xff]  }
0x13ad   :  { %3066 = vmatprep.subr.bf16.mxu1 %v4215_v27  ;;  %3025 = vmatprep.subr.bf16.mxu0 %v4218_v59  ;;  %v4261_v23 = vld [vmem:[%s5404_s20 + $0x80] sm:$0xff]   ;;  %v4262_v27 = vld [vmem:[%s5404_s20 + $0x48] sm:$0xff]  }
0x13ae   :  { %v5154_v52 = vadd.f32 %v3610_v46, %v2758_v50  ;;  %2768 = vadd.xlane.f32.xlu0 %v5151_v49  ;;  %3067 = vmatpush1.bf16.msra.mxu1 %v4213_v53  ;;  %v4264_v59 = vld [vmem:[%s5404_s20 + $0x8] sm:$0xff]  }
0x13af   :  { %3068 = vmatprep.subr.bf16.mxu1 %v4221_v61  ;;  %v4266_v61 = vld [vmem:[%s5404_s20 + $0x50] sm:$0xff]  }
0x13b0   :  { %2770 = vadd.xlane.f32.xlu1 %v5154_v52  ;;  %3026 = vmatpush1.bf16.msra.mxu0 %v4216_v56  ;;  %v4263_v56 = vld [vmem:[%s5404_s20 + $0xc8] sm:$0xff]  }
0x13b1   :  { %3027 = vmatprep.subr.bf16.mxu0 %v4224_v11  ;;  %v4275_v11 = vld [vmem:[%s5404_s20 + $0xe0] sm:$0xff]  }
0x13b2   :  { %3069 = vmatpush1.bf16.msra.mxu1 %v4219_v60  ;;  %v4265_v60 = vld [vmem:[%s5404_s20 + $0x88] sm:$0xff]  }
0x13b3   :  { %3070 = vmatprep.subr.bf16.mxu1 %v4227_v12  ;;  %v4276_v12 = vld [vmem:[%s5404_s20 + $0x20] sm:$0xff]  }
0x13b4   :  { %3028 = vmatpush1.bf16.msra.mxu0 %v4222_v13  ;;  %v4277_v13 = vld [vmem:[%s5404_s20 + $0xa0] sm:$0xff]  }
0x13b5   :  { %3029 = vmatprep.subr.bf16.mxu0 %v4230_v9  ;;  %v4279_v9 = vld [vmem:[%s5404_s20 + $0xe8] sm:$0xff]  }
0x13b6   :  { %3071 = vmatpush1.bf16.msra.mxu1 %v4225_v63  ;;  %v4278_v63 = vld [vmem:[%s5404_s20 + $0x68] sm:$0xff]  }
0x13b7   :  { %3072 = vmatprep.subr.bf16.mxu1 %v4233_v14  ;;  %v4280_v14 = vld [vmem:[%s5404_s20 + $0x28] sm:$0xff]  }
0x13b8   :  { %3030 = vmatpush1.bf16.msra.mxu0 %v4228_v16  ;;  %v4281_v16 = vld [vmem:[%s5404_s20 + $0xa8] sm:$0xff]  }
0x13b9   :  { %3031 = vmatprep.subr.bf16.mxu0 %v4236_v18  ;;  %v4283_v18 = vld [vmem:[%s5404_s20 + $0xf0] sm:$0xff]  }
0x13ba   :  { %3073 = vmatpush1.bf16.msra.mxu1 %v4231_v17  ;;  %v4282_v17 = vld [vmem:[%s5404_s20 + $0x70] sm:$0xff]  }
0x13bb   :  { %3074 = vmatprep.subr.bf16.mxu1 %v4239_v62  ;;  %v4284_v62 = vld [vmem:[%s5404_s20 + $0x30] sm:$0xff]  }
0x13bc   :  { %3032 = vmatpush1.bf16.msra.mxu0 %v4234_v19  ;;  %v4285_v19 = vld [vmem:[%s5404_s20 + $0xb0] sm:$0xff]  }
0x13bd   :  { %3033 = vmatprep.subr.bf16.mxu0 %v4242_v22  ;;  %v4287_v22 = vld [vmem:[%s5404_s20 + $0xf8] sm:$0xff]  }
0x13be   :  { %3075 = vmatpush1.bf16.msra.mxu1 %v4237_v21  ;;  %v4286_v21 = vld [vmem:[%s5404_s20 + $0x78] sm:$0xff]  }
0x13bf   :  { %3076 = vmatprep.subr.bf16.mxu1 %v4245_v26  ;;  %v4288_v26 = vld [vmem:[%s5404_s20 + $0x38] sm:$0xff]  }
0x13c0   :  { %3034 = vmatpush1.bf16.msra.mxu0 %v4240_v28  ;;  %v4289_v28 = vld [vmem:[%s5404_s20 + $0xb8] sm:$0xff]  }
0x13c1   :  { %3035 = vmatprep.subr.bf16.mxu0 %v4248_v35  ;;  %v2857_v35 = vsub.s32 3, %v4616_v54 }
0x13c2   :  { %3077 = vmatpush1.bf16.msra.mxu1 %v4243_v29  ;;  %v2841_v29 = vld [vmem:[%s5407_s19] sm:$0xf] }
0x13c3   :  { %3078 = vmatprep.subr.bf16.mxu1 %v4251_v31  ;;  %v2846_v31 = vrot.slane %v2841_v29, %v4625_v57 }
0x13c4   :  { %3036 = vmatpush1.bf16.msra.mxu0 %v4246_v32  ;;  %v2854_v32 = vrot.slane %v2841_v29, %v164_v58 }
0x13c5   :  { %3037 = vmatprep.subr.bf16.mxu0 %v4254_v34  ;;  %v2858_v34 = vrot.slane %v2841_v29, %v2857_v35 }
0x13c6   :  { %3079 = vmatpush1.bf16.msra.mxu1 %v4249_v33  ;;  %v2850_v33 = vrot.slane %v2841_v29, %v4619_v55 }
0x13c7   :  { %3080 = vmatprep.subr.bf16.mxu1 %v4257_v36 }
0x13c8   :  { %3038 = vmatpush1.bf16.msra.mxu0 %v4252_v37 }
0x13c9   :  { %3778 = vmatprep.subr.bf16.mxu0 %v4258_v39 }
0x13ca   :  { %3081 = vmatpush1.bf16.msra.mxu1 %v4255_v38 }
0x13cb   :  { %3800 = vmatprep.subr.bf16.mxu1 %v4259_v40 }
0x143b   :  { %v2769_v0 = vpop.xlane.xlu0 %2768 }
0x143c   :  { %v2772_v1 = vmul.f32 0.0078125, %v2769_v0  ;;  %v4267_v0 = vld [vmem:[%s5404_s20 + $0xd0] sm:$0xff]  }
0x143d   :  { %v2771_v2 = vpop.xlane.xlu1 %2770 }
0x143e   :  { %v5183_v4 = vsub.f32 %v5151_v49, %v2772_v1  ;;  %v2773_v20 = vmul.f32 0.0078125, %v2771_v2  ;;  %v4268_v1 = vld [vmem:[%s5404_s20 + $0x10] sm:$0xff]  }
0x143f   :  { %v4269_v2 = vld [vmem:[%s5404_s20 + $0x90] sm:$0xff]  }
0x1440   :  { %v5186_v5 = vsub.f32 %v5154_v52, %v2773_v20  ;;  %v2776_v6 = vmul.f32 %v5183_v4, %v5183_v4  ;;  %v4271_v20 = vld [vmem:[%s5404_s20 + $0xd8] sm:$0xff]  }
0x1442   :  { %2778 = vadd.xlane.f32.xlu1 %v2776_v6  ;;  %v2777_v10 = vmul.f32 %v5186_v5, %v5186_v5  ;;  %v4273_v6 = vld [vmem:[%s5404_s20 + $0x98] sm:$0xff]  }
0x1446   :  { %2780 = vadd.xlane.f32.xlu1 %v2777_v10  ;;  %v4274_v10 = vld [vmem:[%s5404_s20 + $0x60] sm:$0xff]  }
0x14cf   :  { %v2779_v3 = vpop.xlane.xlu1 %2778 }
0x14d0   :  { %v2782_v24 = vmul.f32 0.0078125, %v2779_v3 }
0x14d2   :  { %v2784_v25 = vadd.f32 1e-05, %v2782_v24 }
0x14d3   :  { %v2781_v41 = vpop.xlane.xlu1 %2780 }
0x14d4   :  { %4362 = vrsqrt.f32 %v2784_v25  ;;  %v2783_v7 = vmul.f32 0.0078125, %v2781_v41 }
0x14d6   :  { %v2785_v42 = vadd.f32 1e-05, %v2783_v7 }
0x14d8   :  { %4364 = vrsqrt.f32 %v2785_v42 }
0x14de   :  { %v4363_v43 = vpop.eup %4362 }
0x14df   :  { %v2788_v44 = vmul.f32 %v4363_v43, %v5183_v4  ;;  %v4270_v4 = vld [vmem:[%s5404_s20 + $0x58] sm:$0xff]  }
0x14e1   :  { %v2797_v8 = vmul.f32 %v3611_v45, %v2788_v44 }
0x14e2   :  { %v4365_v15 = vpop.eup %4364 }
0x14e3   :  { %v2789_v46 = vmul.f32 %v4365_v15, %v5186_v5  ;;  %v2806_v50 = vadd.f32 %v3612_v47, %v2797_v8  ;;  %v4272_v5 = vld [vmem:[%s5404_s20 + $0x18] sm:$0xff]  }
0x14e5   :  { %v2798_v48 = vmul.f32 %v3611_v45, %v2789_v46 }
0x14e7   :  { %v2807_v51 = vadd.f32 %v3612_v47, %v2798_v48 }
0x14e9   :  { %v2808_v53 = vpack.c.bf16 %v2807_v51, %v2806_v50 }
0x14eb   :  { %3056 = vmatmul.mubr.bf16.vlgmr.msra.gmra.mrb[76].mxu0 %v2808_v53  ;;  %3099 = vmatmul.mubr.bf16.vlgmr.msra.gmra.mrb[80].mxu1 %v2808_v53 }
0x14ec   :  { %3779 = vmatpush3.bf16.msra.mxu0 %v4260_v30  ;;  %3801 = vmatpush3.bf16.msra.mxu1 %v4261_v23 }
0x14ed   :  { %3780 = vmatprep.subr.bf16.mxu0 %v4262_v27  ;;  %3802 = vmatprep.subr.bf16.mxu1 %v4263_v56 }
0x14f0   :  { %3781 = vmatpush3.bf16.msra.mxu0 %v4264_v59  ;;  %3803 = vmatpush3.bf16.msra.mxu1 %v4265_v60 }
0x14f1   :  { %3782 = vmatprep.subr.bf16.mxu0 %v4266_v61  ;;  %3804 = vmatprep.subr.bf16.mxu1 %v4267_v0 }
0x14f4   :  { %3783 = vmatpush3.bf16.msra.mxu0 %v4268_v1  ;;  %3805 = vmatpush3.bf16.msra.mxu1 %v4269_v2 }
0x14f5   :  { %3784 = vmatprep.subr.bf16.mxu0 %v4270_v4  ;;  %3806 = vmatprep.subr.bf16.mxu1 %v4271_v20 }
0x14f8   :  { %3785 = vmatpush3.bf16.msra.mxu0 %v4272_v5  ;;  %3807 = vmatpush3.bf16.msra.mxu1 %v4273_v6 }
0x14f9   :  { %3786 = vmatprep.subr.bf16.mxu0 %v4274_v10  ;;  %3808 = vmatprep.subr.bf16.mxu1 %v4275_v11 }
0x14fc   :  { %3787 = vmatpush3.bf16.msra.mxu0 %v4276_v12  ;;  %3809 = vmatpush3.bf16.msra.mxu1 %v4277_v13 }
0x14fd   :  { %3788 = vmatprep.subr.bf16.mxu0 %v4278_v63  ;;  %3810 = vmatprep.subr.bf16.mxu1 %v4279_v9 }
0x1500   :  { %3789 = vmatpush3.bf16.msra.mxu0 %v4280_v14  ;;  %3811 = vmatpush3.bf16.msra.mxu1 %v4281_v16 }
0x1501   :  { %3790 = vmatprep.subr.bf16.mxu0 %v4282_v17  ;;  %3812 = vmatprep.subr.bf16.mxu1 %v4283_v18 }
0x1504   :  { %3791 = vmatpush3.bf16.msra.mxu0 %v4284_v62  ;;  %3813 = vmatpush3.bf16.msra.mxu1 %v4285_v19 }
0x1505   :  { %3792 = vmatprep.subr.bf16.mxu0 %v4286_v21  ;;  %3814 = vmatprep.subr.bf16.mxu1 %v4287_v22 }
0x1508   :  { %3793 = vmatpush3.bf16.msra.mxu0 %v4288_v26  ;;  %3815 = vmatpush3.bf16.msra.mxu1 %v4289_v28 }
0x15be   :  { %v3057_v36 = vpop.f32.mrb[76].mxu0  ;;  %v3100_v37 = vpop.f32.mrb[80].mxu1 }
0x15bf   :  { %v3058_v38 = vadd.f32 %v3057_v36, %v2846_v31  ;;  %v3101_v39 = vadd.f32 %v3100_v37, %v2854_v32  ;;  %v3059_v40 = vpop.f32.mrb[77].mxu0  ;;  %v3102_v3 = vpop.f32.mrb[81].mxu1 }
0x15c0   :  { %v3060_v24 = vadd.f32 %v3059_v40, %v2850_v33  ;;  %v3103_v25 = vadd.f32 %v3102_v3, %v2858_v34  ;;  %v3061_v41 = vpop.f32.mrb[78].mxu0  ;;  %v3104_v7 = vpop.f32.mrb[82].mxu1 }
0x15c1   :  { %v3117_v42 = vmul.f32 0.70710677, %v3058_v38  ;;  %v3119_v43 = vmul.f32 0.70710677, %v3101_v39  ;;  %v3062_v54 = vadd.f32 %v3061_v41, %v2846_v31  ;;  %v3105_v58 = vadd.f32 %v3104_v7, %v2854_v32  ;;  %v3063_v45 = vpop.f32.mrb[79].mxu0  ;;  %v3106_v55 = vpop.f32.mrb[83].mxu1 }
0x15c2   :  { %v3118_v44 = vmul.f32 0.70710677, %v3060_v24  ;;  %v3120_v57 = vmul.f32 0.70710677, %v3103_v25  ;;  %v3064_v15 = vadd.f32 %v3063_v45, %v2850_v33  ;;  %v3107_v46 = vadd.f32 %v3106_v55, %v2858_v34 }
0x15c3   :  { %4366 = verf.f32 %v3117_v42  ;;  %v3121_v8 = vmul.f32 0.70710677, %v3062_v54  ;;  %v3123_v47 = vmul.f32 0.70710677, %v3105_v58  ;;  %v3109_v59 = vmul.f32 0.5, %v3058_v38 }
0x15c4   :  { %4368 = verf.f32 %v3119_v43  ;;  %v3122_v48 = vmul.f32 0.70710677, %v3064_v15  ;;  %v3124_v50 = vmul.f32 0.70710677, %v3107_v46  ;;  %v3111_v60 = vmul.f32 0.5, %v3101_v39 }
0x15c5   :  { %4370 = verf.f32 %v3118_v44  ;;  %v3110_v1 = vmul.f32 0.5, %v3060_v24  ;;  %v3113_v4 = vmul.f32 0.5, %v3062_v54  ;;  %v3112_v6 = vmul.f32 0.5, %v3103_v25  ;;  %v3677_v43 = vld [vmem:[%s5408_s21] ss:$0 sm:$0xff] }
0x15c6   :  { %4372 = verf.f32 %v3120_v57  ;;  %v3115_v11 = vmul.f32 0.5, %v3105_v58  ;;  %v3114_v14 = vmul.f32 0.5, %v3064_v15  ;;  %v3116_v62 = vmul.f32 0.5, %v3107_v46 }
0x15c7   :  { %4374 = verf.f32 %v3121_v8 }
0x15c8   :  { %4376 = verf.f32 %v3123_v47 }
0x15c9   :  { %4378 = verf.f32 %v3122_v48 }
0x15ca   :  { %4380 = verf.f32 %v3124_v50 }
0x15cd   :  { %v4367_v51 = vpop.eup %4366 }
0x15ce   :  { %v4369_v30 = vpop.eup %4368  ;;  %v3133_v27 = vadd.f32 1.0, %v4367_v51 }
0x15cf   :  { %v4371_v23 = vpop.eup %4370  ;;  %v3135_v61 = vadd.f32 1.0, %v4369_v30 }
0x15d0   :  { %v4373_v53 = vpop.eup %4372  ;;  %v3134_v2 = vadd.f32 1.0, %v4371_v23  ;;  %v3141_v63 = vmul.f32 %v3133_v27, %v3109_v59 }
0x15d1   :  { %v4375_v56 = vpop.eup %4374  ;;  %v3136_v10 = vadd.f32 1.0, %v4373_v53  ;;  %v3143_v17 = vmul.f32 %v3135_v61, %v3111_v60 }
0x15d2   :  { %v4377_v0 = vpop.eup %4376  ;;  %v3137_v20 = vadd.f32 1.0, %v4375_v56  ;;  %v3142_v21 = vmul.f32 %v3134_v2, %v3110_v1 }
0x15d3   :  { %v4379_v5 = vpop.eup %4378  ;;  %v3139_v12 = vadd.f32 1.0, %v4377_v0  ;;  %v3144_v28 = vmul.f32 %v3136_v10, %v3112_v6 }
0x15d4   :  { %v4381_v13 = vpop.eup %4380  ;;  %v3145_v9 = vmul.f32 %v3137_v20, %v3113_v4  ;;  %v3138_v16 = vadd.f32 1.0, %v4379_v5 }
0x15d5   :  { %v3147_v18 = vmul.f32 %v3139_v12, %v3115_v11  ;;  %v3140_v19 = vadd.f32 1.0, %v4381_v13 }
0x15d6   :  { %v3149_v22 = vpack.c.bf16 %v3145_v9, %v3141_v63  ;;  %v3146_v26 = vmul.f32 %v3138_v16, %v3114_v14 }
0x15d7   :  { %v3151_v29 = vpack.c.bf16 %v3147_v18, %v3143_v17  ;;  %v3148_v35 = vmul.f32 %v3140_v19, %v3116_v62 }
0x15d8   :  { %v3150_v31 = vpack.c.bf16 %v3146_v26, %v3142_v21 }
0x15d9   :  { %v3152_v32 = vpack.c.bf16 %v3148_v35, %v3144_v28 }
0x15da   :  { %3441 = vmatprep.mubr.bf16.mxu0 %v3150_v31 }
0x15db   :  { %3482 = vmatprep.mubr.bf16.mxu1 %v3152_v32  ;;  %3442 = vmatmul.mubr.bf16.vlgmr.msra.gmra.mrb[80].mxu0 %v3149_v22 }
0x15dc   :  { %3483 = vmatmul.mubr.bf16.vlgmr.msra.gmra.mrb[84].mxu1 %v3151_v29 }
0x16ae   :  { %v3794_v33 = vpop.f32.mrb[80].mxu0 }
0x16af   :  { %v3816_v34 = vpop.f32.mrb[84].mxu1  ;;  %v3795_v36 = vpop.f32.mrb[81].mxu0 }
0x16b0   :  { %v3796_v37 = vadd.f32 %v3795_v36, %v3794_v33  ;;  %v3817_v38 = vpop.f32.mrb[85].mxu1  ;;  %v3797_v39 = vpop.f32.mrb[82].mxu0 }
0x16b1   :  { %v3818_v40 = vadd.f32 %v3817_v38, %v3816_v34  ;;  %v3819_v3 = vpop.f32.mrb[86].mxu1  ;;  %v3798_v24 = vpop.f32.mrb[83].mxu0 }
0x16b2   :  { %v3799_v25 = vadd.f32 %v3798_v24, %v3797_v39  ;;  %v3820_v41 = vpop.f32.mrb[87].mxu1 }
0x16b3   :  { %v3485_v7 = vadd.f32 %v3818_v40, %v3796_v37  ;;  %v3821_v42 = vadd.f32 %v3820_v41, %v3819_v3 }
0x16b5   :  { %v3491_v44 = vadd.f32 %v3485_v7, %v5151_v49  ;;  %v3488_v57 = vadd.f32 %v3821_v42, %v3799_v25 }
0x16b7   :  { %v3500_v54 = vadd.f32 %v3677_v43, %v3491_v44  ;;  %v3492_v58 = vadd.f32 %v3488_v57, %v5154_v52 }
0x16b9   :  { %3502 = vst [vmem:[%s5409_s22] sm:$0xff] %v3500_v54  ;;  %v3501_v45 = vadd.f32 %v3677_v43, %v3492_v58 }
0x16bb   :  { %3503 = vst [vmem:[%s5409_s22 + $0x8] sm:$0xff] %v3501_v45 }

</bundles_post_ra>
